<compile_context>
chip_gen: v5e
topology: v5e:2x2
jax: 0.10.0
libtpu: 0.0.40
codegen_flags: <defaults>
</compile_context>

<pallas_src>
import functools
import math

import jax
import jax.numpy as jnp
from jax import lax
from jax.experimental import pallas as pl
from jax.experimental.pallas import tpu as pltpu


# ----------------------------------------------------------------------------- config
HIDDEN = 128          # stand-in for encoder.config.hidden_size
D_FF = 256            # feed-forward width (PyTorch default is 2048; scaled down)
VIS_FEAT = 2048
VIS_POS = 4
VOCAB = 100
OUT_FEATURES = 64     # encoder_output_features -> feature_mapper Linear(H, 64)
LANG_HEADS = 2
IMG_HEADS = 2
JOINT_HEADS = 4
LN_EPS = 1e-5

_VMEM = pltpu.MemorySpace.VMEM


# -------------------------------------------------------------------- in-kernel helpers
def _layernorm(x, g, b, eps):
    """PyTorch-semantics LayerNorm over the last dim (biased variance)."""
    mu = jnp.mean(x, axis=-1, keepdims=True)
    xc = x - mu
    var = jnp.mean(xc * xc, axis=-1, keepdims=True)
    return xc * lax.rsqrt(var + eps) * g + b


# ----------------------------------------------------------------------------- kernels
def _tf_layer_kernel(x_ref, bias_ref,
                     in_w_ref, in_b_ref, out_w_ref, out_b_ref,
                     ff1_w_ref, ff1_b_ref, ff2_w_ref, ff2_b_ref,
                     ln1_g_ref, ln1_b_ref, ln2_g_ref, ln2_b_ref,
                     o_ref, *, nhead, eps):
    """Fused post-norm nn.TransformerEncoderLayer (eval mode, ReLU FFN).

    x_ref   : (rows, E)   rows = B*S laid out row-major from a (B, S, E) tensor.
    bias_ref: (rows, rows) additive attention bias implementing the
              batch_first=False "attend over axis 0" semantics (0 / -1e30).
    """
    E = x_ref.shape[-1]
    Dh = E // nhead
    scale = 1.0 / math.sqrt(Dh)

    x = x_ref[...].astype(jnp.float32)                       # (rows, E)
    bias = bias_ref[...]                                     # (rows, rows)

    # ---- QKV projection: one MXU matmul for all rows / heads --------------------
    qkv = jnp.dot(x, in_w_ref[...],
                  preferred_element_type=jnp.float32) + in_b_ref[...]   # (rows, 3E)

    # ---- multi-head attention (heads = static lane slices) ----------------------
    ctx_heads = []
    for h in range(nhead):
        qh = qkv[:, h * Dh:(h + 1) * Dh] * scale
        kh = qkv[:, E + h * Dh:E + (h + 1) * Dh]
        vh = qkv[:, 2 * E + h * Dh:2 * E + (h + 1) * Dh]
        # contract on the last axis of both operands -> no explicit k transpose
        s = lax.dot_general(qh, kh, (((1,), (1,)), ((), ())),
                            preferred_element_type=jnp.float32)          # (rows, rows)
        s = s + bias
        s = s - jnp.max(s, axis=-1, keepdims=True)
        p = jnp.exp(s)
        p = p * pl.reciprocal(jnp.sum(p, axis=-1, keepdims=True), approx=True)
        ctx_heads.append(jnp.dot(p, vh, preferred_element_type=jnp.float32))
    ctx = jnp.concatenate(ctx_heads, axis=-1)                 # (rows, E) lane-dense

    attn = jnp.dot(ctx, out_w_ref[...],
                   preferred_element_type=jnp.float32) + out_b_ref[...]

    # ---- residual + LayerNorm 1 --------------------------------------------------
    x1 = _layernorm(x + attn, ln1_g_ref[...], ln1_b_ref[...], eps)

    # ---- feed-forward (ReLU) ------------------------------------------------------
    h1 = jnp.dot(x1, ff1_w_ref[...],
                 preferred_element_type=jnp.float32) + ff1_b_ref[...]
    h1 = jnp.maximum(h1, 0.0)
    h2 = jnp.dot(h1, ff2_w_ref[...],
                 preferred_element_type=jnp.float32) + ff2_b_ref[...]

    # ---- residual + LayerNorm 2 ---------------------------------------------------
    o_ref[...] = _layernorm(x1 + h2, ln2_g_ref[...], ln2_b_ref[...], eps).astype(o_ref.dtype)


def _vis_embed_kernel(feat_ref, pos_ref, fw_ref, fb_ref, pw_ref, pb_ref,
                      g_ref, b_ref, o_ref, *, eps):
    """Fused stand-in vision embedding: LN(feat @ Wf + bf + pos @ Wp + bp)."""
    vf = jnp.dot(feat_ref[...], fw_ref[...],
                 preferred_element_type=jnp.float32) + fb_ref[...]
    vp = jnp.dot(pos_ref[...], pw_ref[...],
                 preferred_element_type=jnp.float32) + pb_ref[...]
    o_ref[...] = _layernorm(vf + vp, g_ref[...], b_ref[...], eps).astype(o_ref.dtype)


def _ln_kernel(x_ref, g_ref, b_ref, o_ref, *, eps):
    o_ref[...] = _layernorm(x_ref[...].astype(jnp.float32),
                            g_ref[...], b_ref[...], eps).astype(o_ref.dtype)


def _linear_kernel(x_ref, w_ref, b_ref, o_ref):
    y = jnp.dot(x_ref[...], w_ref[...], preferred_element_type=jnp.float32) + b_ref[...]
    o_ref[...] = y.astype(o_ref.dtype)


# ------------------------------------------------------------------------ pallas wrappers
def _vmem_specs(n):
    return [pl.BlockSpec(memory_space=_VMEM)] * n


def fused_tf_layer(x2, bias, p, nhead):
    rows, E = x2.shape
    return pl.pallas_call(
        functools.partial(_tf_layer_kernel, nhead=nhead, eps=LN_EPS),
        out_shape=jax.ShapeDtypeStruct((rows, E), x2.dtype),
        in_specs=_vmem_specs(14),
        out_specs=pl.BlockSpec(memory_space=_VMEM),
    )(x2, bias,
      p["in_w"], p["in_b"], p["out_w"], p["out_b"],
      p["ff1_w"], p["ff1_b"], p["ff2_w"], p["ff2_b"],
      p["ln1_g"], p["ln1_b"], p["ln2_g"], p["ln2_b"])


def vis_embed(feat2, pos2, params):
    M = feat2.shape[0]
    return pl.pallas_call(
        functools.partial(_vis_embed_kernel, eps=LN_EPS),
        out_shape=jax.ShapeDtypeStruct((M, HIDDEN), feat2.dtype),
        in_specs=_vmem_specs(8),
        out_specs=pl.BlockSpec(memory_space=_VMEM),
    )(feat2, pos2, params["vis_w"], params["vis_b"], params["pos_w"], params["pos_b"],
      params["vis_ln_g"], params["vis_ln_b"])


def layernorm(x2, gamma, beta):
    M, E = x2.shape
    return pl.pallas_call(
        functools.partial(_ln_kernel, eps=LN_EPS),
        out_shape=jax.ShapeDtypeStruct((M, E), x2.dtype),
        in_specs=_vmem_specs(3),
        out_specs=pl.BlockSpec(memory_space=_VMEM),
    )(x2, gamma, beta)


def linear(x2, w, b):
    M, _ = x2.shape
    N = w.shape[1]
    return pl.pallas_call(
        _linear_kernel,
        out_shape=jax.ShapeDtypeStruct((M, N), x2.dtype),
        in_specs=_vmem_specs(3),
        out_specs=pl.BlockSpec(memory_space=_VMEM),
    )(x2, w, b)


# ------------------------------------------------------------------ transformer stack
def _axis0_attn_bias(B, S, dtype=jnp.float32):
    """Additive attention bias for rows laid out row-major from a (B, S, E) tensor.

    nn.TransformerEncoder with batch_first=False on a (B, S, E) input attends over
    axis 0 with axis 1 as the batch axis: rows (b, s) and (b', s') interact iff
    s == s'.  Encoded as 0 (allowed) / -1e30 (blocked)."""
    g = jnp.arange(B * S, dtype=jnp.int32) % S
    same = g[:, None] == g[None, :]
    return jnp.where(same, 0.0, -1e30).astype(dtype)


def transformer_encoder(x, layers, nhead):
    """x: (B, S, E) -> (B, S, E). One fused pallas_call per layer."""
    B, S, E = x.shape
    bias = _axis0_attn_bias(B, S, x.dtype)      # constant-folded under jit
    x2 = x.reshape(B * S, E)
    for p in layers:
        x2 = fused_tf_layer(x2, bias, p, nhead)
    return x2.reshape(B, S, E)


# ----------------------------------------------------------------------------- params
def _dense(key, shape, scale=0.02):
    return jax.random.normal(key, shape, jnp.float32) * scale


def init_tf_layer(key, E, Dff):
    k = jax.random.split(key, 4)
    return dict(
        in_w=_dense(k[0], (E, 3 * E)), in_b=jnp.zeros((1, 3 * E), jnp.float32),
        out_w=_dense(k[1], (E, E)), out_b=jnp.zeros((1, E), jnp.float32),
        ff1_w=_dense(k[2], (E, Dff)), ff1_b=jnp.zeros((1, Dff), jnp.float32),
        ff2_w=_dense(k[3], (Dff, E)), ff2_b=jnp.zeros((1, E), jnp.float32),
        ln1_g=jnp.ones((1, E), jnp.float32), ln1_b=jnp.zeros((1, E), jnp.float32),
        ln2_g=jnp.ones((1, E), jnp.float32), ln2_b=jnp.zeros((1, E), jnp.float32),
    )


def init_params(key):
    ks = jax.random.split(key, 16)
    return dict(
        # stand-in LXMERT backbone params
        embed=_dense(ks[0], (VOCAB, HIDDEN), 0.02),
        lang_ln_g=jnp.ones((1, HIDDEN), jnp.float32),
        lang_ln_b=jnp.zeros((1, HIDDEN), jnp.float32),
        vis_w=_dense(ks[1], (VIS_FEAT, HIDDEN)), vis_b=jnp.zeros((1, HIDDEN), jnp.float32),
        pos_w=_dense(ks[2], (VIS_POS, HIDDEN)), pos_b=jnp.zeros((1, HIDDEN), jnp.float32),
        vis_ln_g=jnp.ones((1, HIDDEN), jnp.float32),
        vis_ln_b=jnp.zeros((1, HIDDEN), jnp.float32),
        # wrapper transformers
        lang_tf=[init_tf_layer(ks[3], HIDDEN, D_FF), init_tf_layer(ks[4], HIDDEN, D_FF)],
        img_tf=[init_tf_layer(ks[5], HIDDEN, D_FF), init_tf_layer(ks[6], HIDDEN, D_FF)],
        joint_tf=[init_tf_layer(ks[7], HIDDEN, D_FF)],
        # feature_mapper
        fm_w=_dense(ks[8], (HIDDEN, OUT_FEATURES)),
        fm_b=jnp.zeros((1, OUT_FEATURES), jnp.float32),
    )


# ---------------------------------------------------------------------------- forward
def lxmert_encoder_wrapper_forward(params, input_ids, visual_feats, visual_pos,
                                   attention_mask,
                                   concat_img_features=True,
                                   activate_img_features=True,
                                   output_only_img_features=False):
    B, L = input_ids.shape
    V = visual_feats.shape[1]
    E = HIDDEN

    # ---- stand-in LXMERT encoder (language / vision outputs) --------------------
    # TODO(synk): replace with real pretrained LXMERT cross-modality encoder.
    lang = jnp.take(params["embed"], input_ids, axis=0).reshape(B * L, E)
    lang = layernorm(lang, params["lang_ln_g"], params["lang_ln_b"]).reshape(B, L, E)
    vision = vis_embed(visual_feats.reshape(B * V, VIS_FEAT),
                       visual_pos.reshape(B * V, VIS_POS), params).reshape(B, V, E)

    # ---- wrapper logic (mirrors PyTorch forward; eval mode, no dropout) ---------
    lang_encoded = transformer_encoder(lang, params["lang_tf"], LANG_HEADS)
    visual_encoded = vision
    text_attention_mask = attention_mask

    if concat_img_features and activate_img_features:
        visual_encoded = transformer_encoder(visual_encoded, params["img_tf"], IMG_HEADS)
        encoded_input = jnp.concatenate([visual_encoded, lang_encoded], axis=1)
        extended_attention_mask = jnp.concatenate(
            [jnp.ones(visual_encoded.shape[:-1], text_attention_mask.dtype),
             text_attention_mask], axis=-1)
    elif output_only_img_features:
        encoded_input = visual_encoded
        extended_attention_mask = jnp.ones(visual_encoded.shape[:-1],
                                           text_attention_mask.dtype)
    else:
        encoded_input = lang_encoded
        extended_attention_mask = text_attention_mask

    encoded_input = transformer_encoder(encoded_input, params["joint_tf"], JOINT_HEADS)

    T0, T1, _ = encoded_input.shape
    mapped = linear(encoded_input.reshape(T0 * T1, E), params["fm_w"], params["fm_b"])
    encoded_input = mapped.reshape(T0, T1, OUT_FEATURES)

    return dict(
        language_output=lang_encoded,
        vision_output=visual_encoded,
        last_hidden_state=encoded_input,
        extended_attention_mask=extended_attention_mask,
    )


# ------------------------------------------------------------------------------- main
if __name__ == "__main__":
    key = jax.random.PRNGKey(0)
    kp, k1, k2, k3 = jax.random.split(key, 4)

    B, L, V = 2, 8, 4
    params = init_params(kp)
    input_ids = jax.random.randint(k1, (B, L), 0, VOCAB, dtype=jnp.int32)
    visual_feats = jax.random.normal(k2, (B, V, VIS_FEAT), jnp.float32)
    visual_pos = jax.random.uniform(k3, (B, V, VIS_POS), jnp.float32)
    attention_mask = jnp.ones((B, L), jnp.float32)

    fwd = jax.jit(functools.partial(lxmert_encoder_wrapper_forward,
                                    concat_img_features=True,
                                    activate_img_features=True,
                                    output_only_img_features=False))
    out = fwd(params, input_ids, visual_feats, visual_pos, attention_mask)
    jax.block_until_ready(out)

    assert out["language_output"].shape == (B, L, HIDDEN)
    assert out["vision_output"].shape == (B, V, HIDDEN)
    assert out["last_hidden_state"].shape == (B, V + L, OUT_FEATURES)
    assert out["extended_attention_mask"].shape == (B, V + L)
    assert bool(jnp.all(jnp.isfinite(out["last_hidden_state"])))
    assert bool(jnp.all(jnp.isfinite(out["language_output"])))
    assert bool(jnp.all(jnp.isfinite(out["vision_output"])))
    print("KERNEL_OK")
</pallas_src>

<mosaic_0001>
module attributes {stable_mosaic.version = 11 : i64} {
  func.func @_vis_embed_kernel(%arg0: memref<8x2048xf32, #tpu.memory_space<vmem>>, %arg1: memref<8x4xf32, #tpu.memory_space<vmem>>, %arg2: memref<2048x128xf32, #tpu.memory_space<vmem>>, %arg3: memref<1x128xf32, #tpu.memory_space<vmem>>, %arg4: memref<4x128xf32, #tpu.memory_space<vmem>>, %arg5: memref<1x128xf32, #tpu.memory_space<vmem>>, %arg6: memref<1x128xf32, #tpu.memory_space<vmem>>, %arg7: memref<1x128xf32, #tpu.memory_space<vmem>>, %arg8: memref<8x128xf32, #tpu.memory_space<vmem>>) attributes {dimension_semantics = [], scalar_prefetch = 0 : i64, scratch_operands = 0 : i64, tpu.core_type = #tpu.core_type<tc>} {
    %c0 = arith.constant 0 : index
    %c0_0 = arith.constant 0 : index
    %0 = vector.load %arg0[%c0, %c0_0] : memref<8x2048xf32, #tpu.memory_space<vmem>>, vector<8x2048xf32>
    %c0_1 = arith.constant 0 : index
    %c0_2 = arith.constant 0 : index
    %1 = vector.load %arg2[%c0_1, %c0_2] : memref<2048x128xf32, #tpu.memory_space<vmem>>, vector<2048x128xf32>
    %cst = arith.constant dense<0.000000e+00> : vector<8x128xf32>
    %2 = tpu.matmul %0, %1, %cst {dimension_numbers = #tpu.dot_dimension_numbers<[1], [0], [0], [1], [0, 0, 1, 1], [], []>} : vector<8x2048xf32>, vector<2048x128xf32>, vector<8x128xf32> -> vector<8x128xf32>
    %c0_3 = arith.constant 0 : index
    %c0_4 = arith.constant 0 : index
    %3 = vector.load %arg3[%c0_3, %c0_4] : memref<1x128xf32, #tpu.memory_space<vmem>>, vector<1x128xf32>
    %4 = vector.broadcast %3 : vector<1x128xf32> to vector<8x128xf32>
    %5 = arith.addf %2, %4 : vector<8x128xf32>
    %c0_5 = arith.constant 0 : index
    %c0_6 = arith.constant 0 : index
    %6 = vector.load %arg1[%c0_5, %c0_6] : memref<8x4xf32, #tpu.memory_space<vmem>>, vector<8x4xf32>
    %c0_7 = arith.constant 0 : index
    %c0_8 = arith.constant 0 : index
    %7 = vector.load %arg4[%c0_7, %c0_8] : memref<4x128xf32, #tpu.memory_space<vmem>>, vector<4x128xf32>
    %cst_9 = arith.constant dense<0.000000e+00> : vector<8x128xf32>
    %8 = tpu.matmul %6, %7, %cst_9 {dimension_numbers = #tpu.dot_dimension_numbers<[1], [0], [0], [1], [0, 0, 1, 1], [], []>} : vector<8x4xf32>, vector<4x128xf32>, vector<8x128xf32> -> vector<8x128xf32>
    %c0_10 = arith.constant 0 : index
    %c0_11 = arith.constant 0 : index
    %9 = vector.load %arg5[%c0_10, %c0_11] : memref<1x128xf32, #tpu.memory_space<vmem>>, vector<1x128xf32>
    %10 = vector.broadcast %9 : vector<1x128xf32> to vector<8x128xf32>
    %11 = arith.addf %8, %10 : vector<8x128xf32>
    %12 = arith.addf %5, %11 : vector<8x128xf32>
    %c0_12 = arith.constant 0 : index
    %c0_13 = arith.constant 0 : index
    %13 = vector.load %arg6[%c0_12, %c0_13] : memref<1x128xf32, #tpu.memory_space<vmem>>, vector<1x128xf32>
    %c0_14 = arith.constant 0 : index
    %c0_15 = arith.constant 0 : index
    %14 = vector.load %arg7[%c0_14, %c0_15] : memref<1x128xf32, #tpu.memory_space<vmem>>, vector<1x128xf32>
    %cst_16 = arith.constant dense<0.000000e+00> : vector<8xf32>
    %15 = vector.multi_reduction <add>, %12, %cst_16 [1] : vector<8x128xf32> to vector<8xf32>
    %16 = vector.shape_cast %15 : vector<8xf32> to vector<8x1xf32>
    %cst_17 = arith.constant 1.280000e+02 : f32
    %17 = vector.broadcast %cst_17 : f32 to vector<8x1xf32>
    %18 = arith.divf %16, %17 : vector<8x1xf32>
    %19 = vector.broadcast %18 : vector<8x1xf32> to vector<8x128xf32>
    %20 = arith.subf %12, %19 : vector<8x128xf32>
    %21 = arith.mulf %20, %20 : vector<8x128xf32>
    %cst_18 = arith.constant dense<0.000000e+00> : vector<8xf32>
    %22 = vector.multi_reduction <add>, %21, %cst_18 [1] : vector<8x128xf32> to vector<8xf32>
    %23 = vector.shape_cast %22 : vector<8xf32> to vector<8x1xf32>
    %cst_19 = arith.constant 1.280000e+02 : f32
    %24 = vector.broadcast %cst_19 : f32 to vector<8x1xf32>
    %25 = arith.divf %23, %24 : vector<8x1xf32>
    %cst_20 = arith.constant 9.99999974E-6 : f32
    %26 = vector.broadcast %cst_20 : f32 to vector<8x1xf32>
    %27 = arith.addf %25, %26 : vector<8x1xf32>
    %28 = math.rsqrt %27 : vector<8x1xf32>
    %29 = vector.broadcast %28 : vector<8x1xf32> to vector<8x128xf32>
    %30 = arith.mulf %20, %29 : vector<8x128xf32>
    %31 = vector.broadcast %13 : vector<1x128xf32> to vector<8x128xf32>
    %32 = arith.mulf %30, %31 : vector<8x128xf32>
    %33 = vector.broadcast %14 : vector<1x128xf32> to vector<8x128xf32>
    %34 = arith.addf %32, %33 : vector<8x128xf32>
    %c0_21 = arith.constant 0 : index
    %c0_22 = arith.constant 0 : index
    %35 = vector.load %arg8[%c0_21, %c0_22] : memref<8x128xf32, #tpu.memory_space<vmem>>, vector<8x128xf32>
    tpu.vector_store %arg8[%c0_21, %c0_22], %34 {strides = array<i32>} : memref<8x128xf32, #tpu.memory_space<vmem>>, vector<8x128xf32>,
    return
  }
}

module attributes {stable_mosaic.version = 11 : i64} {
  func.func @_tf_layer_kernel(%arg0: memref<8x128xf32, #tpu.memory_space<vmem>>, %arg1: memref<8x8xf32, #tpu.memory_space<vmem>>, %arg2: memref<128x384xf32, #tpu.memory_space<vmem>>, %arg3: memref<1x384xf32, #tpu.memory_space<vmem>>, %arg4: memref<128x128xf32, #tpu.memory_space<vmem>>, %arg5: memref<1x128xf32, #tpu.memory_space<vmem>>, %arg6: memref<128x256xf32, #tpu.memory_space<vmem>>, %arg7: memref<1x256xf32, #tpu.memory_space<vmem>>, %arg8: memref<256x128xf32, #tpu.memory_space<vmem>>, %arg9: memref<1x128xf32, #tpu.memory_space<vmem>>, %arg10: memref<1x128xf32, #tpu.memory_space<vmem>>, %arg11: memref<1x128xf32, #tpu.memory_space<vmem>>, %arg12: memref<1x128xf32, #tpu.memory_space<vmem>>, %arg13: memref<1x128xf32, #tpu.memory_space<vmem>>, %arg14: memref<8x128xf32, #tpu.memory_space<vmem>>) attributes {dimension_semantics = [], scalar_prefetch = 0 : i64, scratch_operands = 0 : i64, tpu.core_type = #tpu.core_type<tc>} {
    %c0 = arith.constant 0 : index
    %c0_0 = arith.constant 0 : index
    %0 = vector.load %arg0[%c0, %c0_0] : memref<8x128xf32, #tpu.memory_space<vmem>>, vector<8x128xf32>
    %c0_1 = arith.constant 0 : index
    %c0_2 = arith.constant 0 : index
    %1 = vector.load %arg1[%c0_1, %c0_2] : memref<8x8xf32, #tpu.memory_space<vmem>>, vector<8x8xf32>
    %c0_3 = arith.constant 0 : index
    %c0_4 = arith.constant 0 : index
    %2 = vector.load %arg2[%c0_3, %c0_4] : memref<128x384xf32, #tpu.memory_space<vmem>>, vector<128x384xf32>
    %cst = arith.constant dense<0.000000e+00> : vector<8x384xf32>
    %3 = tpu.matmul %0, %2, %cst {dimension_numbers = #tpu.dot_dimension_numbers<[1], [0], [0], [1], [0, 0, 1, 1], [], []>} : vector<8x128xf32>, vector<128x384xf32>, vector<8x384xf32> -> vector<8x384xf32>
    %c0_5 = arith.constant 0 : index
    %c0_6 = arith.constant 0 : index
    %4 = vector.load %arg3[%c0_5, %c0_6] : memref<1x384xf32, #tpu.memory_space<vmem>>, vector<1x384xf32>
    %5 = vector.broadcast %4 : vector<1x384xf32> to vector<8x384xf32>
    %6 = arith.addf %3, %5 : vector<8x384xf32>
    %7 = vector.extract_strided_slice %6 {offsets = [0, 0], sizes = [8, 64], strides = [1, 1]} : vector<8x384xf32> to vector<8x64xf32>
    %cst_7 = arith.constant 1.250000e-01 : f32
    %8 = vector.broadcast %cst_7 : f32 to vector<8x64xf32>
    %9 = arith.mulf %7, %8 : vector<8x64xf32>
    %10 = vector.extract_strided_slice %6 {offsets = [0, 128], sizes = [8, 64], strides = [1, 1]} : vector<8x384xf32> to vector<8x64xf32>
    %11 = vector.extract_strided_slice %6 {offsets = [0, 256], sizes = [8, 64], strides = [1, 1]} : vector<8x384xf32> to vector<8x64xf32>
    %cst_8 = arith.constant dense<0.000000e+00> : vector<8x8xf32>
    %12 = tpu.matmul %9, %10, %cst_8 {dimension_numbers = #tpu.dot_dimension_numbers<[1], [1], [0], [0], [0, 0, 1, 0], [], []>} : vector<8x64xf32>, vector<8x64xf32>, vector<8x8xf32> -> vector<8x8xf32>
    %13 = arith.addf %12, %1 : vector<8x8xf32>
    %cst_9 = arith.constant dense<0xFF800000> : vector<8xf32>
    %14 = vector.multi_reduction <maximumf>, %13, %cst_9 [1] : vector<8x8xf32> to vector<8xf32>
    %15 = vector.shape_cast %14 : vector<8xf32> to vector<8x1xf32>
    %16 = vector.broadcast %15 : vector<8x1xf32> to vector<8x8xf32>
    %17 = arith.subf %13, %16 : vector<8x8xf32>
    %18 = math.exp %17 : vector<8x8xf32>
    %cst_10 = arith.constant dense<0.000000e+00> : vector<8xf32>
    %19 = vector.multi_reduction <add>, %18, %cst_10 [1] : vector<8x8xf32> to vector<8xf32>
    %20 = vector.shape_cast %19 : vector<8xf32> to vector<8x1xf32>
    %21 = tpu.reciprocal %20 {approx = true} : vector<8x1xf32> -> vector<8x1xf32>
    %22 = vector.broadcast %21 : vector<8x1xf32> to vector<8x8xf32>
    %23 = arith.mulf %18, %22 : vector<8x8xf32>
    %cst_11 = arith.constant dense<0.000000e+00> : vector<8x64xf32>
    %24 = tpu.matmul %23, %11, %cst_11 {dimension_numbers = #tpu.dot_dimension_numbers<[1], [0], [0], [1], [0, 0, 1, 1], [], []>} : vector<8x8xf32>, vector<8x64xf32>, vector<8x64xf32> -> vector<8x64xf32>
    %25 = vector.extract_strided_slice %6 {offsets = [0, 64], sizes = [8, 64], strides = [1, 1]} : vector<8x384xf32> to vector<8x64xf32>
    %cst_12 = arith.constant 1.250000e-01 : f32
    %26 = vector.broadcast %cst_12 : f32 to vector<8x64xf32>
    %27 = arith.mulf %25, %26 : vector<8x64xf32>
    %28 = vector.extract_strided_slice %6 {offsets = [0, 192], sizes = [8, 64], strides = [1, 1]} : vector<8x384xf32> to vector<8x64xf32>
    %29 = vector.extract_strided_slice %6 {offsets = [0, 320], sizes = [8, 64], strides = [1, 1]} : vector<8x384xf32> to vector<8x64xf32>
    %cst_13 = arith.constant dense<0.000000e+00> : vector<8x8xf32>
    %30 = tpu.matmul %27, %28, %cst_13 {dimension_numbers = #tpu.dot_dimension_numbers<[1], [1], [0], [0], [0, 0, 1, 0], [], []>} : vector<8x64xf32>, vector<8x64xf32>, vector<8x8xf32> -> vector<8x8xf32>
    %31 = arith.addf %30, %1 : vector<8x8xf32>
    %cst_14 = arith.constant dense<0xFF800000> : vector<8xf32>
    %32 = vector.multi_reduction <maximumf>, %31, %cst_14 [1] : vector<8x8xf32> to vector<8xf32>
    %33 = vector.shape_cast %32 : vector<8xf32> to vector<8x1xf32>
    %34 = vector.broadcast %33 : vector<8x1xf32> to vector<8x8xf32>
    %35 = arith.subf %31, %34 : vector<8x8xf32>
    %36 = math.exp %35 : vector<8x8xf32>
    %cst_15 = arith.constant dense<0.000000e+00> : vector<8xf32>
    %37 = vector.multi_reduction <add>, %36, %cst_15 [1] : vector<8x8xf32> to vector<8xf32>
    %38 = vector.shape_cast %37 : vector<8xf32> to vector<8x1xf32>
    %39 = tpu.reciprocal %38 {approx = true} : vector<8x1xf32> -> vector<8x1xf32>
    %40 = vector.broadcast %39 : vector<8x1xf32> to vector<8x8xf32>
    %41 = arith.mulf %36, %40 : vector<8x8xf32>
    %cst_16 = arith.constant dense<0.000000e+00> : vector<8x64xf32>
    %42 = tpu.matmul %41, %29, %cst_16 {dimension_numbers = #tpu.dot_dimension_numbers<[1], [0], [0], [1], [0, 0, 1, 1], [], []>} : vector<8x8xf32>, vector<8x64xf32>, vector<8x64xf32> -> vector<8x64xf32>
    %43 = tpu.concatenate %24, %42 in 1 : vector<8x64xf32>, vector<8x64xf32> -> vector<8x128xf32>
    %c0_17 = arith.constant 0 : index
    %c0_18 = arith.constant 0 : index
    %44 = vector.load %arg4[%c0_17, %c0_18] : memref<128x128xf32, #tpu.memory_space<vmem>>, vector<128x128xf32>
    %cst_19 = arith.constant dense<0.000000e+00> : vector<8x128xf32>
    %45 = tpu.matmul %43, %44, %cst_19 {dimension_numbers = #tpu.dot_dimension_numbers<[1], [0], [0], [1], [0, 0, 1, 1], [], []>} : vector<8x128xf32>, vector<128x128xf32>, vector<8x128xf32> -> vector<8x128xf32>
    %c0_20 = arith.constant 0 : index
    %c0_21 = arith.constant 0 : index
    %46 = vector.load %arg5[%c0_20, %c0_21] : memref<1x128xf32, #tpu.memory_space<vmem>>, vector<1x128xf32>
    %47 = vector.broadcast %46 : vector<1x128xf32> to vector<8x128xf32>
    %48 = arith.addf %45, %47 : vector<8x128xf32>
    %49 = arith.addf %0, %48 : vector<8x128xf32>
    %c0_22 = arith.constant 0 : index
    %c0_23 = arith.constant 0 : index
    %50 = vector.load %arg10[%c0_22, %c0_23] : memref<1x128xf32, #tpu.memory_space<vmem>>, vector<1x128xf32>
    %c0_24 = arith.constant 0 : index
    %c0_25 = arith.constant 0 : index
    %51 = vector.load %arg11[%c0_24, %c0_25] : memref<1x128xf32, #tpu.memory_space<vmem>>, vector<1x128xf32>
    %cst_26 = arith.constant dense<0.000000e+00> : vector<8xf32>
    %52 = vector.multi_reduction <add>, %49, %cst_26 [1] : vector<8x128xf32> to vector<8xf32>
    %53 = vector.shape_cast %52 : vector<8xf32> to vector<8x1xf32>
    %cst_27 = arith.constant 1.280000e+02 : f32
    %54 = vector.broadcast %cst_27 : f32 to vector<8x1xf32>
    %55 = arith.divf %53, %54 : vector<8x1xf32>
    %56 = vector.broadcast %55 : vector<8x1xf32> to vector<8x128xf32>
    %57 = arith.subf %49, %56 : vector<8x128xf32>
    %58 = arith.mulf %57, %57 : vector<8x128xf32>
    %cst_28 = arith.constant dense<0.000000e+00> : vector<8xf32>
    %59 = vector.multi_reduction <add>, %58, %cst_28 [1] : vector<8x128xf32> to vector<8xf32>
    %60 = vector.shape_cast %59 : vector<8xf32> to vector<8x1xf32>
    %cst_29 = arith.constant 1.280000e+02 : f32
    %61 = vector.broadcast %cst_29 : f32 to vector<8x1xf32>
    %62 = arith.divf %60, %61 : vector<8x1xf32>
    %cst_30 = arith.constant 9.99999974E-6 : f32
    %63 = vector.broadcast %cst_30 : f32 to vector<8x1xf32>
    %64 = arith.addf %62, %63 : vector<8x1xf32>
    %65 = math.rsqrt %64 : vector<8x1xf32>
    %66 = vector.broadcast %65 : vector<8x1xf32> to vector<8x128xf32>
    %67 = arith.mulf %57, %66 : vector<8x128xf32>
    %68 = vector.broadcast %50 : vector<1x128xf32> to vector<8x128xf32>
    %69 = arith.mulf %67, %68 : vector<8x128xf32>
    %70 = vector.broadcast %51 : vector<1x128xf32> to vector<8x128xf32>
    %71 = arith.addf %69, %70 : vector<8x128xf32>
    %c0_31 = arith.constant 0 : index
    %c0_32 = arith.constant 0 : index
    %72 = vector.load %arg6[%c0_31, %c0_32] : memref<128x256xf32, #tpu.memory_space<vmem>>, vector<128x256xf32>
    %cst_33 = arith.constant dense<0.000000e+00> : vector<8x256xf32>
    %73 = tpu.matmul %71, %72, %cst_33 {dimension_numbers = #tpu.dot_dimension_numbers<[1], [0], [0], [1], [0, 0, 1, 1], [], []>} : vector<8x128xf32>, vector<128x256xf32>, vector<8x256xf32> -> vector<8x256xf32>
    %c0_34 = arith.constant 0 : index
    %c0_35 = arith.constant 0 : index
    %74 = vector.load %arg7[%c0_34, %c0_35] : memref<1x256xf32, #tpu.memory_space<vmem>>, vector<1x256xf32>
    %75 = vector.broadcast %74 : vector<1x256xf32> to vector<8x256xf32>
    %76 = arith.addf %73, %75 : vector<8x256xf32>
    %cst_36 = arith.constant 0.000000e+00 : f32
    %77 = vector.broadcast %cst_36 : f32 to vector<8x256xf32>
    %78 = arith.maximumf %76, %77 : vector<8x256xf32>
    %c0_37 = arith.constant 0 : index
    %c0_38 = arith.constant 0 : index
    %79 = vector.load %arg8[%c0_37, %c0_38] : memref<256x128xf32, #tpu.memory_space<vmem>>, vector<256x128xf32>
    %cst_39 = arith.constant dense<0.000000e+00> : vector<8x128xf32>
    %80 = tpu.matmul %78, %79, %cst_39 {dimension_numbers = #tpu.dot_dimension_numbers<[1], [0], [0], [1], [0, 0, 1, 1], [], []>} : vector<8x256xf32>, vector<256x128xf32>, vector<8x128xf32> -> vector<8x128xf32>
    %c0_40 = arith.constant 0 : index
    %c0_41 = arith.constant 0 : index
    %81 = vector.load %arg9[%c0_40, %c0_41] : memref<1x128xf32, #tpu.memory_space<vmem>>, vector<1x128xf32>
    %82 = vector.broadcast %81 : vector<1x128xf32> to vector<8x128xf32>
    %83 = arith.addf %80, %82 : vector<8x128xf32>
    %84 = arith.addf %71, %83 : vector<8x128xf32>
    %c0_42 = arith.constant 0 : index
    %c0_43 = arith.constant 0 : index
    %85 = vector.load %arg12[%c0_42, %c0_43] : memref<1x128xf32, #tpu.memory_space<vmem>>, vector<1x128xf32>
    %c0_44 = arith.constant 0 : index
    %c0_45 = arith.constant 0 : index
    %86 = vector.load %arg13[%c0_44, %c0_45] : memref<1x128xf32, #tpu.memory_space<vmem>>, vector<1x128xf32>
    %cst_46 = arith.constant dense<0.000000e+00> : vector<8xf32>
    %87 = vector.multi_reduction <add>, %84, %cst_46 [1] : vector<8x128xf32> to vector<8xf32>
    %88 = vector.shape_cast %87 : vector<8xf32> to vector<8x1xf32>
    %cst_47 = arith.constant 1.280000e+02 : f32
    %89 = vector.broadcast %cst_47 : f32 to vector<8x1xf32>
    %90 = arith.divf %88, %89 : vector<8x1xf32>
    %91 = vector.broadcast %90 : vector<8x1xf32> to vector<8x128xf32>
    %92 = arith.subf %84, %91 : vector<8x128xf32>
    %93 = arith.mulf %92, %92 : vector<8x128xf32>
    %cst_48 = arith.constant dense<0.000000e+00> : vector<8xf32>
    %94 = vector.multi_reduction <add>, %93, %cst_48 [1] : vector<8x128xf32> to vector<8xf32>
    %95 = vector.shape_cast %94 : vector<8xf32> to vector<8x1xf32>
    %cst_49 = arith.constant 1.280000e+02 : f32
    %96 = vector.broadcast %cst_49 : f32 to vector<8x1xf32>
    %97 = arith.divf %95, %96 : vector<8x1xf32>
    %cst_50 = arith.constant 9.99999974E-6 : f32
    %98 = vector.broadcast %cst_50 : f32 to vector<8x1xf32>
    %99 = arith.addf %97, %98 : vector<8x1xf32>
    %100 = math.rsqrt %99 : vector<8x1xf32>
    %101 = vector.broadcast %100 : vector<8x1xf32> to vector<8x128xf32>
    %102 = arith.mulf %92, %101 : vector<8x128xf32>
    %103 = vector.broadcast %85 : vector<1x128xf32> to vector<8x128xf32>
    %104 = arith.mulf %102, %103 : vector<8x128xf32>
    %105 = vector.broadcast %86 : vector<1x128xf32> to vector<8x128xf32>
    %106 = arith.addf %104, %105 : vector<8x128xf32>
    %c0_51 = arith.constant 0 : index
    %c0_52 = arith.constant 0 : index
    %107 = vector.load %arg14[%c0_51, %c0_52] : memref<8x128xf32, #tpu.memory_space<vmem>>, vector<8x128xf32>
    tpu.vector_store %arg14[%c0_51, %c0_52], %106 {strides = array<i32>} : memref<8x128xf32, #tpu.memory_space<vmem>>, vector<8x128xf32>,
    return
  }
}

module attributes {stable_mosaic.version = 11 : i64} {
  func.func @_tf_layer_kernel(%arg0: memref<8x128xf32, #tpu.memory_space<vmem>>, %arg1: memref<8x8xf32, #tpu.memory_space<vmem>>, %arg2: memref<128x384xf32, #tpu.memory_space<vmem>>, %arg3: memref<1x384xf32, #tpu.memory_space<vmem>>, %arg4: memref<128x128xf32, #tpu.memory_space<vmem>>, %arg5: memref<1x128xf32, #tpu.memory_space<vmem>>, %arg6: memref<128x256xf32, #tpu.memory_space<vmem>>, %arg7: memref<1x256xf32, #tpu.memory_space<vmem>>, %arg8: memref<256x128xf32, #tpu.memory_space<vmem>>, %arg9: memref<1x128xf32, #tpu.memory_space<vmem>>, %arg10: memref<1x128xf32, #tpu.memory_space<vmem>>, %arg11: memref<1x128xf32, #tpu.memory_space<vmem>>, %arg12: memref<1x128xf32, #tpu.memory_space<vmem>>, %arg13: memref<1x128xf32, #tpu.memory_space<vmem>>, %arg14: memref<8x128xf32, #tpu.memory_space<vmem>>) attributes {dimension_semantics = [], scalar_prefetch = 0 : i64, scratch_operands = 0 : i64, tpu.core_type = #tpu.core_type<tc>} {
    %c0 = arith.constant 0 : index
    %c0_0 = arith.constant 0 : index
    %0 = vector.load %arg0[%c0, %c0_0] : memref<8x128xf32, #tpu.memory_space<vmem>>, vector<8x128xf32>
    %c0_1 = arith.constant 0 : index
    %c0_2 = arith.constant 0 : index
    %1 = vector.load %arg1[%c0_1, %c0_2] : memref<8x8xf32, #tpu.memory_space<vmem>>, vector<8x8xf32>
    %c0_3 = arith.constant 0 : index
    %c0_4 = arith.constant 0 : index
    %2 = vector.load %arg2[%c0_3, %c0_4] : memref<128x384xf32, #tpu.memory_space<vmem>>, vector<128x384xf32>
    %cst = arith.constant dense<0.000000e+00> : vector<8x384xf32>
    %3 = tpu.matmul %0, %2, %cst {dimension_numbers = #tpu.dot_dimension_numbers<[1], [0], [0], [1], [0, 0, 1, 1], [], []>} : vector<8x128xf32>, vector<128x384xf32>, vector<8x384xf32> -> vector<8x384xf32>
    %c0_5 = arith.constant 0 : index
    %c0_6 = arith.constant 0 : index
    %4 = vector.load %arg3[%c0_5, %c0_6] : memref<1x384xf32, #tpu.memory_space<vmem>>, vector<1x384xf32>
    %5 = vector.broadcast %4 : vector<1x384xf32> to vector<8x384xf32>
    %6 = arith.addf %3, %5 : vector<8x384xf32>
    %7 = vector.extract_strided_slice %6 {offsets = [0, 0], sizes = [8, 64], strides = [1, 1]} : vector<8x384xf32> to vector<8x64xf32>
    %cst_7 = arith.constant 1.250000e-01 : f32
    %8 = vector.broadcast %cst_7 : f32 to vector<8x64xf32>
    %9 = arith.mulf %7, %8 : vector<8x64xf32>
    %10 = vector.extract_strided_slice %6 {offsets = [0, 128], sizes = [8, 64], strides = [1, 1]} : vector<8x384xf32> to vector<8x64xf32>
    %11 = vector.extract_strided_slice %6 {offsets = [0, 256], sizes = [8, 64], strides = [1, 1]} : vector<8x384xf32> to vector<8x64xf32>
    %cst_8 = arith.constant dense<0.000000e+00> : vector<8x8xf32>
    %12 = tpu.matmul %9, %10, %cst_8 {dimension_numbers = #tpu.dot_dimension_numbers<[1], [1], [0], [0], [0, 0, 1, 0], [], []>} : vector<8x64xf32>, vector<8x64xf32>, vector<8x8xf32> -> vector<8x8xf32>
    %13 = arith.addf %12, %1 : vector<8x8xf32>
    %cst_9 = arith.constant dense<0xFF800000> : vector<8xf32>
    %14 = vector.multi_reduction <maximumf>, %13, %cst_9 [1] : vector<8x8xf32> to vector<8xf32>
    %15 = vector.shape_cast %14 : vector<8xf32> to vector<8x1xf32>
    %16 = vector.broadcast %15 : vector<8x1xf32> to vector<8x8xf32>
    %17 = arith.subf %13, %16 : vector<8x8xf32>
    %18 = math.exp %17 : vector<8x8xf32>
    %cst_10 = arith.constant dense<0.000000e+00> : vector<8xf32>
    %19 = vector.multi_reduction <add>, %18, %cst_10 [1] : vector<8x8xf32> to vector<8xf32>
    %20 = vector.shape_cast %19 : vector<8xf32> to vector<8x1xf32>
    %21 = tpu.reciprocal %20 {approx = true} : vector<8x1xf32> -> vector<8x1xf32>
    %22 = vector.broadcast %21 : vector<8x1xf32> to vector<8x8xf32>
    %23 = arith.mulf %18, %22 : vector<8x8xf32>
    %cst_11 = arith.constant dense<0.000000e+00> : vector<8x64xf32>
    %24 = tpu.matmul %23, %11, %cst_11 {dimension_numbers = #tpu.dot_dimension_numbers<[1], [0], [0], [1], [0, 0, 1, 1], [], []>} : vector<8x8xf32>, vector<8x64xf32>, vector<8x64xf32> -> vector<8x64xf32>
    %25 = vector.extract_strided_slice %6 {offsets = [0, 64], sizes = [8, 64], strides = [1, 1]} : vector<8x384xf32> to vector<8x64xf32>
    %cst_12 = arith.constant 1.250000e-01 : f32
    %26 = vector.broadcast %cst_12 : f32 to vector<8x64xf32>
    %27 = arith.mulf %25, %26 : vector<8x64xf32>
    %28 = vector.extract_strided_slice %6 {offsets = [0, 192], sizes = [8, 64], strides = [1, 1]} : vector<8x384xf32> to vector<8x64xf32>
    %29 = vector.extract_strided_slice %6 {offsets = [0, 320], sizes = [8, 64], strides = [1, 1]} : vector<8x384xf32> to vector<8x64xf32>
    %cst_13 = arith.constant dense<0.000000e+00> : vector<8x8xf32>
    %30 = tpu.matmul %27, %28, %cst_13 {dimension_numbers = #tpu.dot_dimension_numbers<[1], [1], [0], [0], [0, 0, 1, 0], [], []>} : vector<8x64xf32>, vector<8x64xf32>, vector<8x8xf32> -> vector<8x8xf32>
    %31 = arith.addf %30, %1 : vector<8x8xf32>
    %cst_14 = arith.constant dense<0xFF800000> : vector<8xf32>
    %32 = vector.multi_reduction <maximumf>, %31, %cst_14 [1] : vector<8x8xf32> to vector<8xf32>
    %33 = vector.shape_cast %32 : vector<8xf32> to vector<8x1xf32>
    %34 = vector.broadcast %33 : vector<8x1xf32> to vector<8x8xf32>
    %35 = arith.subf %31, %34 : vector<8x8xf32>
    %36 = math.exp %35 : vector<8x8xf32>
    %cst_15 = arith.constant dense<0.000000e+00> : vector<8xf32>
    %37 = vector.multi_reduction <add>, %36, %cst_15 [1] : vector<8x8xf32> to vector<8xf32>
    %38 = vector.shape_cast %37 : vector<8xf32> to vector<8x1xf32>
    %39 = tpu.reciprocal %38 {approx = true} : vector<8x1xf32> -> vector<8x1xf32>
    %40 = vector.broadcast %39 : vector<8x1xf32> to vector<8x8xf32>
    %41 = arith.mulf %36, %40 : vector<8x8xf32>
    %cst_16 = arith.constant dense<0.000000e+00> : vector<8x64xf32>
    %42 = tpu.matmul %41, %29, %cst_16 {dimension_numbers = #tpu.dot_dimension_numbers<[1], [0], [0], [1], [0, 0, 1, 1], [], []>} : vector<8x8xf32>, vector<8x64xf32>, vector<8x64xf32> -> vector<8x64xf32>
    %43 = tpu.concatenate %24, %42 in 1 : vector<8x64xf32>, vector<8x64xf32> -> vector<8x128xf32>
    %c0_17 = arith.constant 0 : index
    %c0_18 = arith.constant 0 : index
    %44 = vector.load %arg4[%c0_17, %c0_18] : memref<128x128xf32, #tpu.memory_space<vmem>>, vector<128x128xf32>
    %cst_19 = arith.constant dense<0.000000e+00> : vector<8x128xf32>
    %45 = tpu.matmul %43, %44, %cst_19 {dimension_numbers = #tpu.dot_dimension_numbers<[1], [0], [0], [1], [0, 0, 1, 1], [], []>} : vector<8x128xf32>, vector<128x128xf32>, vector<8x128xf32> -> vector<8x128xf32>
    %c0_20 = arith.constant 0 : index
    %c0_21 = arith.constant 0 : index
    %46 = vector.load %arg5[%c0_20, %c0_21] : memref<1x128xf32, #tpu.memory_space<vmem>>, vector<1x128xf32>
    %47 = vector.broadcast %46 : vector<1x128xf32> to vector<8x128xf32>
    %48 = arith.addf %45, %47 : vector<8x128xf32>
    %49 = arith.addf %0, %48 : vector<8x128xf32>
    %c0_22 = arith.constant 0 : index
    %c0_23 = arith.constant 0 : index
    %50 = vector.load %arg10[%c0_22, %c0_23] : memref<1x128xf32, #tpu.memory_space<vmem>>, vector<1x128xf32>
    %c0_24 = arith.constant 0 : index
    %c0_25 = arith.constant 0 : index
    %51 = vector.load %arg11[%c0_24, %c0_25] : memref<1x128xf32, #tpu.memory_space<vmem>>, vector<1x128xf32>
    %cst_26 = arith.constant dense<0.000000e+00> : vector<8xf32>
    %52 = vector.multi_reduction <add>, %49, %cst_26 [1] : vector<8x128xf32> to vector<8xf32>
    %53 = vector.shape_cast %52 : vector<8xf32> to vector<8x1xf32>
    %cst_27 = arith.constant 1.280000e+02 : f32
    %54 = vector.broadcast %cst_27 : f32 to vector<8x1xf32>
    %55 = arith.divf %53, %54 : vector<8x1xf32>
    %56 = vector.broadcast %55 : vector<8x1xf32> to vector<8x128xf32>
    %57 = arith.subf %49, %56 : vector<8x128xf32>
    %58 = arith.mulf %57, %57 : vector<8x128xf32>
    %cst_28 = arith.constant dense<0.000000e+00> : vector<8xf32>
    %59 = vector.multi_reduction <add>, %58, %cst_28 [1] : vector<8x128xf32> to vector<8xf32>
    %60 = vector.shape_cast %59 : vector<8xf32> to vector<8x1xf32>
    %cst_29 = arith.constant 1.280000e+02 : f32
    %61 = vector.broadcast %cst_29 : f32 to vector<8x1xf32>
    %62 = arith.divf %60, %61 : vector<8x1xf32>
    %cst_30 = arith.constant 9.99999974E-6 : f32
    %63 = vector.broadcast %cst_30 : f32 to vector<8x1xf32>
    %64 = arith.addf %62, %63 : vector<8x1xf32>
    %65 = math.rsqrt %64 : vector<8x1xf32>
    %66 = vector.broadcast %65 : vector<8x1xf32> to vector<8x128xf32>
    %67 = arith.mulf %57, %66 : vector<8x128xf32>
    %68 = vector.broadcast %50 : vector<1x128xf32> to vector<8x128xf32>
    %69 = arith.mulf %67, %68 : vector<8x128xf32>
    %70 = vector.broadcast %51 : vector<1x128xf32> to vector<8x128xf32>
    %71 = arith.addf %69, %70 : vector<8x128xf32>
    %c0_31 = arith.constant 0 : index
    %c0_32 = arith.constant 0 : index
    %72 = vector.load %arg6[%c0_31, %c0_32] : memref<128x256xf32, #tpu.memory_space<vmem>>, vector<128x256xf32>
    %cst_33 = arith.constant dense<0.000000e+00> : vector<8x256xf32>
    %73 = tpu.matmul %71, %72, %cst_33 {dimension_numbers = #tpu.dot_dimension_numbers<[1], [0], [0], [1], [0, 0, 1, 1], [], []>} : vector<8x128xf32>, vector<128x256xf32>, vector<8x256xf32> -> vector<8x256xf32>
    %c0_34 = arith.constant 0 : index
    %c0_35 = arith.constant 0 : index
    %74 = vector.load %arg7[%c0_34, %c0_35] : memref<1x256xf32, #tpu.memory_space<vmem>>, vector<1x256xf32>
    %75 = vector.broadcast %74 : vector<1x256xf32> to vector<8x256xf32>
    %76 = arith.addf %73, %75 : vector<8x256xf32>
    %cst_36 = arith.constant 0.000000e+00 : f32
    %77 = vector.broadcast %cst_36 : f32 to vector<8x256xf32>
    %78 = arith.maximumf %76, %77 : vector<8x256xf32>
    %c0_37 = arith.constant 0 : index
    %c0_38 = arith.constant 0 : index
    %79 = vector.load %arg8[%c0_37, %c0_38] : memref<256x128xf32, #tpu.memory_space<vmem>>, vector<256x128xf32>
    %cst_39 = arith.constant dense<0.000000e+00> : vector<8x128xf32>
    %80 = tpu.matmul %78, %79, %cst_39 {dimension_numbers = #tpu.dot_dimension_numbers<[1], [0], [0], [1], [0, 0, 1, 1], [], []>} : vector<8x256xf32>, vector<256x128xf32>, vector<8x128xf32> -> vector<8x128xf32>
    %c0_40 = arith.constant 0 : index
    %c0_41 = arith.constant 0 : index
    %81 = vector.load %arg9[%c0_40, %c0_41] : memref<1x128xf32, #tpu.memory_space<vmem>>, vector<1x128xf32>
    %82 = vector.broadcast %81 : vector<1x128xf32> to vector<8x128xf32>
    %83 = arith.addf %80, %82 : vector<8x128xf32>
    %84 = arith.addf %71, %83 : vector<8x128xf32>
    %c0_42 = arith.constant 0 : index
    %c0_43 = arith.constant 0 : index
    %85 = vector.load %arg12[%c0_42, %c0_43] : memref<1x128xf32, #tpu.memory_space<vmem>>, vector<1x128xf32>
    %c0_44 = arith.constant 0 : index
    %c0_45 = arith.constant 0 : index
    %86 = vector.load %arg13[%c0_44, %c0_45] : memref<1x128xf32, #tpu.memory_space<vmem>>, vector<1x128xf32>
    %cst_46 = arith.constant dense<0.000000e+00> : vector<8xf32>
    %87 = vector.multi_reduction <add>, %84, %cst_46 [1] : vector<8x128xf32> to vector<8xf32>
    %88 = vector.shape_cast %87 : vector<8xf32> to vector<8x1xf32>
    %cst_47 = arith.constant 1.280000e+02 : f32
    %89 = vector.broadcast %cst_47 : f32 to vector<8x1xf32>
    %90 = arith.divf %88, %89 : vector<8x1xf32>
    %91 = vector.broadcast %90 : vector<8x1xf32> to vector<8x128xf32>
    %92 = arith.subf %84, %91 : vector<8x128xf32>
    %93 = arith.mulf %92, %92 : vector<8x128xf32>
    %cst_48 = arith.constant dense<0.000000e+00> : vector<8xf32>
    %94 = vector.multi_reduction <add>, %93, %cst_48 [1] : vector<8x128xf32> to vector<8xf32>
    %95 = vector.shape_cast %94 : vector<8xf32> to vector<8x1xf32>
    %cst_49 = arith.constant 1.280000e+02 : f32
    %96 = vector.broadcast %cst_49 : f32 to vector<8x1xf32>
    %97 = arith.divf %95, %96 : vector<8x1xf32>
    %cst_50 = arith.constant 9.99999974E-6 : f32
    %98 = vector.broadcast %cst_50 : f32 to vector<8x1xf32>
    %99 = arith.addf %97, %98 : vector<8x1xf32>
    %100 = math.rsqrt %99 : vector<8x1xf32>
    %101 = vector.broadcast %100 : vector<8x1xf32> to vector<8x128xf32>
    %102 = arith.mulf %92, %101 : vector<8x128xf32>
    %103 = vector.broadcast %85 : vector<1x128xf32> to vector<8x128xf32>
    %104 = arith.mulf %102, %103 : vector<8x128xf32>
    %105 = vector.broadcast %86 : vector<1x128xf32> to vector<8x128xf32>
    %106 = arith.addf %104, %105 : vector<8x128xf32>
    %c0_51 = arith.constant 0 : index
    %c0_52 = arith.constant 0 : index
    %107 = vector.load %arg14[%c0_51, %c0_52] : memref<8x128xf32, #tpu.memory_space<vmem>>, vector<8x128xf32>
    tpu.vector_store %arg14[%c0_51, %c0_52], %106 {strides = array<i32>} : memref<8x128xf32, #tpu.memory_space<vmem>>, vector<8x128xf32>,
    return
  }
}

module attributes {stable_mosaic.version = 11 : i64} {
  func.func @_ln_kernel(%arg0: memref<16x128xf32, #tpu.memory_space<vmem>>, %arg1: memref<1x128xf32, #tpu.memory_space<vmem>>, %arg2: memref<1x128xf32, #tpu.memory_space<vmem>>, %arg3: memref<16x128xf32, #tpu.memory_space<vmem>>) attributes {dimension_semantics = [], scalar_prefetch = 0 : i64, scratch_operands = 0 : i64, tpu.core_type = #tpu.core_type<tc>} {
    %c0 = arith.constant 0 : index
    %c0_0 = arith.constant 0 : index
    %0 = vector.load %arg0[%c0, %c0_0] : memref<16x128xf32, #tpu.memory_space<vmem>>, vector<16x128xf32>
    %c0_1 = arith.constant 0 : index
    %c0_2 = arith.constant 0 : index
    %1 = vector.load %arg1[%c0_1, %c0_2] : memref<1x128xf32, #tpu.memory_space<vmem>>, vector<1x128xf32>
    %c0_3 = arith.constant 0 : index
    %c0_4 = arith.constant 0 : index
    %2 = vector.load %arg2[%c0_3, %c0_4] : memref<1x128xf32, #tpu.memory_space<vmem>>, vector<1x128xf32>
    %cst = arith.constant dense<0.000000e+00> : vector<16xf32>
    %3 = vector.multi_reduction <add>, %0, %cst [1] : vector<16x128xf32> to vector<16xf32>
    %4 = vector.shape_cast %3 : vector<16xf32> to vector<16x1xf32>
    %cst_5 = arith.constant 1.280000e+02 : f32
    %5 = vector.broadcast %cst_5 : f32 to vector<16x1xf32>
    %6 = arith.divf %4, %5 : vector<16x1xf32>
    %7 = vector.broadcast %6 : vector<16x1xf32> to vector<16x128xf32>
    %8 = arith.subf %0, %7 : vector<16x128xf32>
    %9 = arith.mulf %8, %8 : vector<16x128xf32>
    %cst_6 = arith.constant dense<0.000000e+00> : vector<16xf32>
    %10 = vector.multi_reduction <add>, %9, %cst_6 [1] : vector<16x128xf32> to vector<16xf32>
    %11 = vector.shape_cast %10 : vector<16xf32> to vector<16x1xf32>
    %cst_7 = arith.constant 1.280000e+02 : f32
    %12 = vector.broadcast %cst_7 : f32 to vector<16x1xf32>
    %13 = arith.divf %11, %12 : vector<16x1xf32>
    %cst_8 = arith.constant 9.99999974E-6 : f32
    %14 = vector.broadcast %cst_8 : f32 to vector<16x1xf32>
    %15 = arith.addf %13, %14 : vector<16x1xf32>
    %16 = math.rsqrt %15 : vector<16x1xf32>
    %17 = vector.broadcast %16 : vector<16x1xf32> to vector<16x128xf32>
    %18 = arith.mulf %8, %17 : vector<16x128xf32>
    %19 = vector.broadcast %1 : vector<1x128xf32> to vector<16x128xf32>
    %20 = arith.mulf %18, %19 : vector<16x128xf32>
    %21 = vector.broadcast %2 : vector<1x128xf32> to vector<16x128xf32>
    %22 = arith.addf %20, %21 : vector<16x128xf32>
    %c0_9 = arith.constant 0 : index
    %c0_10 = arith.constant 0 : index
    %23 = vector.load %arg3[%c0_9, %c0_10] : memref<16x128xf32, #tpu.memory_space<vmem>>, vector<16x128xf32>
    tpu.vector_store %arg3[%c0_9, %c0_10], %22 {strides = array<i32>} : memref<16x128xf32, #tpu.memory_space<vmem>>, vector<16x128xf32>,
    return
  }
}

module attributes {stable_mosaic.version = 11 : i64} {
  func.func @_tf_layer_kernel(%arg0: memref<16x128xf32, #tpu.memory_space<vmem>>, %arg1: memref<16x16xf32, #tpu.memory_space<vmem>>, %arg2: memref<128x384xf32, #tpu.memory_space<vmem>>, %arg3: memref<1x384xf32, #tpu.memory_space<vmem>>, %arg4: memref<128x128xf32, #tpu.memory_space<vmem>>, %arg5: memref<1x128xf32, #tpu.memory_space<vmem>>, %arg6: memref<128x256xf32, #tpu.memory_space<vmem>>, %arg7: memref<1x256xf32, #tpu.memory_space<vmem>>, %arg8: memref<256x128xf32, #tpu.memory_space<vmem>>, %arg9: memref<1x128xf32, #tpu.memory_space<vmem>>, %arg10: memref<1x128xf32, #tpu.memory_space<vmem>>, %arg11: memref<1x128xf32, #tpu.memory_space<vmem>>, %arg12: memref<1x128xf32, #tpu.memory_space<vmem>>, %arg13: memref<1x128xf32, #tpu.memory_space<vmem>>, %arg14: memref<16x128xf32, #tpu.memory_space<vmem>>) attributes {dimension_semantics = [], scalar_prefetch = 0 : i64, scratch_operands = 0 : i64, tpu.core_type = #tpu.core_type<tc>} {
    %c0 = arith.constant 0 : index
    %c0_0 = arith.constant 0 : index
    %0 = vector.load %arg0[%c0, %c0_0] : memref<16x128xf32, #tpu.memory_space<vmem>>, vector<16x128xf32>
    %c0_1 = arith.constant 0 : index
    %c0_2 = arith.constant 0 : index
    %1 = vector.load %arg1[%c0_1, %c0_2] : memref<16x16xf32, #tpu.memory_space<vmem>>, vector<16x16xf32>
    %c0_3 = arith.constant 0 : index
    %c0_4 = arith.constant 0 : index
    %2 = vector.load %arg2[%c0_3, %c0_4] : memref<128x384xf32, #tpu.memory_space<vmem>>, vector<128x384xf32>
    %cst = arith.constant dense<0.000000e+00> : vector<16x384xf32>
    %3 = tpu.matmul %0, %2, %cst {dimension_numbers = #tpu.dot_dimension_numbers<[1], [0], [0], [1], [0, 0, 1, 1], [], []>} : vector<16x128xf32>, vector<128x384xf32>, vector<16x384xf32> -> vector<16x384xf32>
    %c0_5 = arith.constant 0 : index
    %c0_6 = arith.constant 0 : index
    %4 = vector.load %arg3[%c0_5, %c0_6] : memref<1x384xf32, #tpu.memory_space<vmem>>, vector<1x384xf32>
    %5 = vector.broadcast %4 : vector<1x384xf32> to vector<16x384xf32>
    %6 = arith.addf %3, %5 : vector<16x384xf32>
    %7 = vector.extract_strided_slice %6 {offsets = [0, 0], sizes = [16, 64], strides = [1, 1]} : vector<16x384xf32> to vector<16x64xf32>
    %cst_7 = arith.constant 1.250000e-01 : f32
    %8 = vector.broadcast %cst_7 : f32 to vector<16x64xf32>
    %9 = arith.mulf %7, %8 : vector<16x64xf32>
    %10 = vector.extract_strided_slice %6 {offsets = [0, 128], sizes = [16, 64], strides = [1, 1]} : vector<16x384xf32> to vector<16x64xf32>
    %11 = vector.extract_strided_slice %6 {offsets = [0, 256], sizes = [16, 64], strides = [1, 1]} : vector<16x384xf32> to vector<16x64xf32>
    %cst_8 = arith.constant dense<0.000000e+00> : vector<16x16xf32>
    %12 = tpu.matmul %9, %10, %cst_8 {dimension_numbers = #tpu.dot_dimension_numbers<[1], [1], [0], [0], [0, 0, 1, 0], [], []>} : vector<16x64xf32>, vector<16x64xf32>, vector<16x16xf32> -> vector<16x16xf32>
    %13 = arith.addf %12, %1 : vector<16x16xf32>
    %cst_9 = arith.constant dense<0xFF800000> : vector<16xf32>
    %14 = vector.multi_reduction <maximumf>, %13, %cst_9 [1] : vector<16x16xf32> to vector<16xf32>
    %15 = vector.shape_cast %14 : vector<16xf32> to vector<16x1xf32>
    %16 = vector.broadcast %15 : vector<16x1xf32> to vector<16x16xf32>
    %17 = arith.subf %13, %16 : vector<16x16xf32>
    %18 = math.exp %17 : vector<16x16xf32>
    %cst_10 = arith.constant dense<0.000000e+00> : vector<16xf32>
    %19 = vector.multi_reduction <add>, %18, %cst_10 [1] : vector<16x16xf32> to vector<16xf32>
    %20 = vector.shape_cast %19 : vector<16xf32> to vector<16x1xf32>
    %21 = tpu.reciprocal %20 {approx = true} : vector<16x1xf32> -> vector<16x1xf32>
    %22 = vector.broadcast %21 : vector<16x1xf32> to vector<16x16xf32>
    %23 = arith.mulf %18, %22 : vector<16x16xf32>
    %cst_11 = arith.constant dense<0.000000e+00> : vector<16x64xf32>
    %24 = tpu.matmul %23, %11, %cst_11 {dimension_numbers = #tpu.dot_dimension_numbers<[1], [0], [0], [1], [0, 0, 1, 1], [], []>} : vector<16x16xf32>, vector<16x64xf32>, vector<16x64xf32> -> vector<16x64xf32>
    %25 = vector.extract_strided_slice %6 {offsets = [0, 64], sizes = [16, 64], strides = [1, 1]} : vector<16x384xf32> to vector<16x64xf32>
    %cst_12 = arith.constant 1.250000e-01 : f32
    %26 = vector.broadcast %cst_12 : f32 to vector<16x64xf32>
    %27 = arith.mulf %25, %26 : vector<16x64xf32>
    %28 = vector.extract_strided_slice %6 {offsets = [0, 192], sizes = [16, 64], strides = [1, 1]} : vector<16x384xf32> to vector<16x64xf32>
    %29 = vector.extract_strided_slice %6 {offsets = [0, 320], sizes = [16, 64], strides = [1, 1]} : vector<16x384xf32> to vector<16x64xf32>
    %cst_13 = arith.constant dense<0.000000e+00> : vector<16x16xf32>
    %30 = tpu.matmul %27, %28, %cst_13 {dimension_numbers = #tpu.dot_dimension_numbers<[1], [1], [0], [0], [0, 0, 1, 0], [], []>} : vector<16x64xf32>, vector<16x64xf32>, vector<16x16xf32> -> vector<16x16xf32>
    %31 = arith.addf %30, %1 : vector<16x16xf32>
    %cst_14 = arith.constant dense<0xFF800000> : vector<16xf32>
    %32 = vector.multi_reduction <maximumf>, %31, %cst_14 [1] : vector<16x16xf32> to vector<16xf32>
    %33 = vector.shape_cast %32 : vector<16xf32> to vector<16x1xf32>
    %34 = vector.broadcast %33 : vector<16x1xf32> to vector<16x16xf32>
    %35 = arith.subf %31, %34 : vector<16x16xf32>
    %36 = math.exp %35 : vector<16x16xf32>
    %cst_15 = arith.constant dense<0.000000e+00> : vector<16xf32>
    %37 = vector.multi_reduction <add>, %36, %cst_15 [1] : vector<16x16xf32> to vector<16xf32>
    %38 = vector.shape_cast %37 : vector<16xf32> to vector<16x1xf32>
    %39 = tpu.reciprocal %38 {approx = true} : vector<16x1xf32> -> vector<16x1xf32>
    %40 = vector.broadcast %39 : vector<16x1xf32> to vector<16x16xf32>
    %41 = arith.mulf %36, %40 : vector<16x16xf32>
    %cst_16 = arith.constant dense<0.000000e+00> : vector<16x64xf32>
    %42 = tpu.matmul %41, %29, %cst_16 {dimension_numbers = #tpu.dot_dimension_numbers<[1], [0], [0], [1], [0, 0, 1, 1], [], []>} : vector<16x16xf32>, vector<16x64xf32>, vector<16x64xf32> -> vector<16x64xf32>
    %43 = tpu.concatenate %24, %42 in 1 : vector<16x64xf32>, vector<16x64xf32> -> vector<16x128xf32>
    %c0_17 = arith.constant 0 : index
    %c0_18 = arith.constant 0 : index
    %44 = vector.load %arg4[%c0_17, %c0_18] : memref<128x128xf32, #tpu.memory_space<vmem>>, vector<128x128xf32>
    %cst_19 = arith.constant dense<0.000000e+00> : vector<16x128xf32>
    %45 = tpu.matmul %43, %44, %cst_19 {dimension_numbers = #tpu.dot_dimension_numbers<[1], [0], [0], [1], [0, 0, 1, 1], [], []>} : vector<16x128xf32>, vector<128x128xf32>, vector<16x128xf32> -> vector<16x128xf32>
    %c0_20 = arith.constant 0 : index
    %c0_21 = arith.constant 0 : index
    %46 = vector.load %arg5[%c0_20, %c0_21] : memref<1x128xf32, #tpu.memory_space<vmem>>, vector<1x128xf32>
    %47 = vector.broadcast %46 : vector<1x128xf32> to vector<16x128xf32>
    %48 = arith.addf %45, %47 : vector<16x128xf32>
    %49 = arith.addf %0, %48 : vector<16x128xf32>
    %c0_22 = arith.constant 0 : index
    %c0_23 = arith.constant 0 : index
    %50 = vector.load %arg10[%c0_22, %c0_23] : memref<1x128xf32, #tpu.memory_space<vmem>>, vector<1x128xf32>
    %c0_24 = arith.constant 0 : index
    %c0_25 = arith.constant 0 : index
    %51 = vector.load %arg11[%c0_24, %c0_25] : memref<1x128xf32, #tpu.memory_space<vmem>>, vector<1x128xf32>
    %cst_26 = arith.constant dense<0.000000e+00> : vector<16xf32>
    %52 = vector.multi_reduction <add>, %49, %cst_26 [1] : vector<16x128xf32> to vector<16xf32>
    %53 = vector.shape_cast %52 : vector<16xf32> to vector<16x1xf32>
    %cst_27 = arith.constant 1.280000e+02 : f32
    %54 = vector.broadcast %cst_27 : f32 to vector<16x1xf32>
    %55 = arith.divf %53, %54 : vector<16x1xf32>
    %56 = vector.broadcast %55 : vector<16x1xf32> to vector<16x128xf32>
    %57 = arith.subf %49, %56 : vector<16x128xf32>
    %58 = arith.mulf %57, %57 : vector<16x128xf32>
    %cst_28 = arith.constant dense<0.000000e+00> : vector<16xf32>
    %59 = vector.multi_reduction <add>, %58, %cst_28 [1] : vector<16x128xf32> to vector<16xf32>
    %60 = vector.shape_cast %59 : vector<16xf32> to vector<16x1xf32>
    %cst_29 = arith.constant 1.280000e+02 : f32
    %61 = vector.broadcast %cst_29 : f32 to vector<16x1xf32>
    %62 = arith.divf %60, %61 : vector<16x1xf32>
    %cst_30 = arith.constant 9.99999974E-6 : f32
    %63 = vector.broadcast %cst_30 : f32 to vector<16x1xf32>
    %64 = arith.addf %62, %63 : vector<16x1xf32>
    %65 = math.rsqrt %64 : vector<16x1xf32>
    %66 = vector.broadcast %65 : vector<16x1xf32> to vector<16x128xf32>
    %67 = arith.mulf %57, %66 : vector<16x128xf32>
    %68 = vector.broadcast %50 : vector<1x128xf32> to vector<16x128xf32>
    %69 = arith.mulf %67, %68 : vector<16x128xf32>
    %70 = vector.broadcast %51 : vector<1x128xf32> to vector<16x128xf32>
    %71 = arith.addf %69, %70 : vector<16x128xf32>
    %c0_31 = arith.constant 0 : index
    %c0_32 = arith.constant 0 : index
    %72 = vector.load %arg6[%c0_31, %c0_32] : memref<128x256xf32, #tpu.memory_space<vmem>>, vector<128x256xf32>
    %cst_33 = arith.constant dense<0.000000e+00> : vector<16x256xf32>
    %73 = tpu.matmul %71, %72, %cst_33 {dimension_numbers = #tpu.dot_dimension_numbers<[1], [0], [0], [1], [0, 0, 1, 1], [], []>} : vector<16x128xf32>, vector<128x256xf32>, vector<16x256xf32> -> vector<16x256xf32>
    %c0_34 = arith.constant 0 : index
    %c0_35 = arith.constant 0 : index
    %74 = vector.load %arg7[%c0_34, %c0_35] : memref<1x256xf32, #tpu.memory_space<vmem>>, vector<1x256xf32>
    %75 = vector.broadcast %74 : vector<1x256xf32> to vector<16x256xf32>
    %76 = arith.addf %73, %75 : vector<16x256xf32>
    %cst_36 = arith.constant 0.000000e+00 : f32
    %77 = vector.broadcast %cst_36 : f32 to vector<16x256xf32>
    %78 = arith.maximumf %76, %77 : vector<16x256xf32>
    %c0_37 = arith.constant 0 : index
    %c0_38 = arith.constant 0 : index
    %79 = vector.load %arg8[%c0_37, %c0_38] : memref<256x128xf32, #tpu.memory_space<vmem>>, vector<256x128xf32>
    %cst_39 = arith.constant dense<0.000000e+00> : vector<16x128xf32>
    %80 = tpu.matmul %78, %79, %cst_39 {dimension_numbers = #tpu.dot_dimension_numbers<[1], [0], [0], [1], [0, 0, 1, 1], [], []>} : vector<16x256xf32>, vector<256x128xf32>, vector<16x128xf32> -> vector<16x128xf32>
    %c0_40 = arith.constant 0 : index
    %c0_41 = arith.constant 0 : index
    %81 = vector.load %arg9[%c0_40, %c0_41] : memref<1x128xf32, #tpu.memory_space<vmem>>, vector<1x128xf32>
    %82 = vector.broadcast %81 : vector<1x128xf32> to vector<16x128xf32>
    %83 = arith.addf %80, %82 : vector<16x128xf32>
    %84 = arith.addf %71, %83 : vector<16x128xf32>
    %c0_42 = arith.constant 0 : index
    %c0_43 = arith.constant 0 : index
    %85 = vector.load %arg12[%c0_42, %c0_43] : memref<1x128xf32, #tpu.memory_space<vmem>>, vector<1x128xf32>
    %c0_44 = arith.constant 0 : index
    %c0_45 = arith.constant 0 : index
    %86 = vector.load %arg13[%c0_44, %c0_45] : memref<1x128xf32, #tpu.memory_space<vmem>>, vector<1x128xf32>
    %cst_46 = arith.constant dense<0.000000e+00> : vector<16xf32>
    %87 = vector.multi_reduction <add>, %84, %cst_46 [1] : vector<16x128xf32> to vector<16xf32>
    %88 = vector.shape_cast %87 : vector<16xf32> to vector<16x1xf32>
    %cst_47 = arith.constant 1.280000e+02 : f32
    %89 = vector.broadcast %cst_47 : f32 to vector<16x1xf32>
    %90 = arith.divf %88, %89 : vector<16x1xf32>
    %91 = vector.broadcast %90 : vector<16x1xf32> to vector<16x128xf32>
    %92 = arith.subf %84, %91 : vector<16x128xf32>
    %93 = arith.mulf %92, %92 : vector<16x128xf32>
    %cst_48 = arith.constant dense<0.000000e+00> : vector<16xf32>
    %94 = vector.multi_reduction <add>, %93, %cst_48 [1] : vector<16x128xf32> to vector<16xf32>
    %95 = vector.shape_cast %94 : vector<16xf32> to vector<16x1xf32>
    %cst_49 = arith.constant 1.280000e+02 : f32
    %96 = vector.broadcast %cst_49 : f32 to vector<16x1xf32>
    %97 = arith.divf %95, %96 : vector<16x1xf32>
    %cst_50 = arith.constant 9.99999974E-6 : f32
    %98 = vector.broadcast %cst_50 : f32 to vector<16x1xf32>
    %99 = arith.addf %97, %98 : vector<16x1xf32>
    %100 = math.rsqrt %99 : vector<16x1xf32>
    %101 = vector.broadcast %100 : vector<16x1xf32> to vector<16x128xf32>
    %102 = arith.mulf %92, %101 : vector<16x128xf32>
    %103 = vector.broadcast %85 : vector<1x128xf32> to vector<16x128xf32>
    %104 = arith.mulf %102, %103 : vector<16x128xf32>
    %105 = vector.broadcast %86 : vector<1x128xf32> to vector<16x128xf32>
    %106 = arith.addf %104, %105 : vector<16x128xf32>
    %c0_51 = arith.constant 0 : index
    %c0_52 = arith.constant 0 : index
    %107 = vector.load %arg14[%c0_51, %c0_52] : memref<16x128xf32, #tpu.memory_space<vmem>>, vector<16x128xf32>
    tpu.vector_store %arg14[%c0_51, %c0_52], %106 {strides = array<i32>} : memref<16x128xf32, #tpu.memory_space<vmem>>, vector<16x128xf32>,
    return
  }
}

module attributes {stable_mosaic.version = 11 : i64} {
  func.func @_tf_layer_kernel(%arg0: memref<16x128xf32, #tpu.memory_space<vmem>>, %arg1: memref<16x16xf32, #tpu.memory_space<vmem>>, %arg2: memref<128x384xf32, #tpu.memory_space<vmem>>, %arg3: memref<1x384xf32, #tpu.memory_space<vmem>>, %arg4: memref<128x128xf32, #tpu.memory_space<vmem>>, %arg5: memref<1x128xf32, #tpu.memory_space<vmem>>, %arg6: memref<128x256xf32, #tpu.memory_space<vmem>>, %arg7: memref<1x256xf32, #tpu.memory_space<vmem>>, %arg8: memref<256x128xf32, #tpu.memory_space<vmem>>, %arg9: memref<1x128xf32, #tpu.memory_space<vmem>>, %arg10: memref<1x128xf32, #tpu.memory_space<vmem>>, %arg11: memref<1x128xf32, #tpu.memory_space<vmem>>, %arg12: memref<1x128xf32, #tpu.memory_space<vmem>>, %arg13: memref<1x128xf32, #tpu.memory_space<vmem>>, %arg14: memref<16x128xf32, #tpu.memory_space<vmem>>) attributes {dimension_semantics = [], scalar_prefetch = 0 : i64, scratch_operands = 0 : i64, tpu.core_type = #tpu.core_type<tc>} {
    %c0 = arith.constant 0 : index
    %c0_0 = arith.constant 0 : index
    %0 = vector.load %arg0[%c0, %c0_0] : memref<16x128xf32, #tpu.memory_space<vmem>>, vector<16x128xf32>
    %c0_1 = arith.constant 0 : index
    %c0_2 = arith.constant 0 : index
    %1 = vector.load %arg1[%c0_1, %c0_2] : memref<16x16xf32, #tpu.memory_space<vmem>>, vector<16x16xf32>
    %c0_3 = arith.constant 0 : index
    %c0_4 = arith.constant 0 : index
    %2 = vector.load %arg2[%c0_3, %c0_4] : memref<128x384xf32, #tpu.memory_space<vmem>>, vector<128x384xf32>
    %cst = arith.constant dense<0.000000e+00> : vector<16x384xf32>
    %3 = tpu.matmul %0, %2, %cst {dimension_numbers = #tpu.dot_dimension_numbers<[1], [0], [0], [1], [0, 0, 1, 1], [], []>} : vector<16x128xf32>, vector<128x384xf32>, vector<16x384xf32> -> vector<16x384xf32>
    %c0_5 = arith.constant 0 : index
    %c0_6 = arith.constant 0 : index
    %4 = vector.load %arg3[%c0_5, %c0_6] : memref<1x384xf32, #tpu.memory_space<vmem>>, vector<1x384xf32>
    %5 = vector.broadcast %4 : vector<1x384xf32> to vector<16x384xf32>
    %6 = arith.addf %3, %5 : vector<16x384xf32>
    %7 = vector.extract_strided_slice %6 {offsets = [0, 0], sizes = [16, 64], strides = [1, 1]} : vector<16x384xf32> to vector<16x64xf32>
    %cst_7 = arith.constant 1.250000e-01 : f32
    %8 = vector.broadcast %cst_7 : f32 to vector<16x64xf32>
    %9 = arith.mulf %7, %8 : vector<16x64xf32>
    %10 = vector.extract_strided_slice %6 {offsets = [0, 128], sizes = [16, 64], strides = [1, 1]} : vector<16x384xf32> to vector<16x64xf32>
    %11 = vector.extract_strided_slice %6 {offsets = [0, 256], sizes = [16, 64], strides = [1, 1]} : vector<16x384xf32> to vector<16x64xf32>
    %cst_8 = arith.constant dense<0.000000e+00> : vector<16x16xf32>
    %12 = tpu.matmul %9, %10, %cst_8 {dimension_numbers = #tpu.dot_dimension_numbers<[1], [1], [0], [0], [0, 0, 1, 0], [], []>} : vector<16x64xf32>, vector<16x64xf32>, vector<16x16xf32> -> vector<16x16xf32>
    %13 = arith.addf %12, %1 : vector<16x16xf32>
    %cst_9 = arith.constant dense<0xFF800000> : vector<16xf32>
    %14 = vector.multi_reduction <maximumf>, %13, %cst_9 [1] : vector<16x16xf32> to vector<16xf32>
    %15 = vector.shape_cast %14 : vector<16xf32> to vector<16x1xf32>
    %16 = vector.broadcast %15 : vector<16x1xf32> to vector<16x16xf32>
    %17 = arith.subf %13, %16 : vector<16x16xf32>
    %18 = math.exp %17 : vector<16x16xf32>
    %cst_10 = arith.constant dense<0.000000e+00> : vector<16xf32>
    %19 = vector.multi_reduction <add>, %18, %cst_10 [1] : vector<16x16xf32> to vector<16xf32>
    %20 = vector.shape_cast %19 : vector<16xf32> to vector<16x1xf32>
    %21 = tpu.reciprocal %20 {approx = true} : vector<16x1xf32> -> vector<16x1xf32>
    %22 = vector.broadcast %21 : vector<16x1xf32> to vector<16x16xf32>
    %23 = arith.mulf %18, %22 : vector<16x16xf32>
    %cst_11 = arith.constant dense<0.000000e+00> : vector<16x64xf32>
    %24 = tpu.matmul %23, %11, %cst_11 {dimension_numbers = #tpu.dot_dimension_numbers<[1], [0], [0], [1], [0, 0, 1, 1], [], []>} : vector<16x16xf32>, vector<16x64xf32>, vector<16x64xf32> -> vector<16x64xf32>
    %25 = vector.extract_strided_slice %6 {offsets = [0, 64], sizes = [16, 64], strides = [1, 1]} : vector<16x384xf32> to vector<16x64xf32>
    %cst_12 = arith.constant 1.250000e-01 : f32
    %26 = vector.broadcast %cst_12 : f32 to vector<16x64xf32>
    %27 = arith.mulf %25, %26 : vector<16x64xf32>
    %28 = vector.extract_strided_slice %6 {offsets = [0, 192], sizes = [16, 64], strides = [1, 1]} : vector<16x384xf32> to vector<16x64xf32>
    %29 = vector.extract_strided_slice %6 {offsets = [0, 320], sizes = [16, 64], strides = [1, 1]} : vector<16x384xf32> to vector<16x64xf32>
    %cst_13 = arith.constant dense<0.000000e+00> : vector<16x16xf32>
    %30 = tpu.matmul %27, %28, %cst_13 {dimension_numbers = #tpu.dot_dimension_numbers<[1], [1], [0], [0], [0, 0, 1, 0], [], []>} : vector<16x64xf32>, vector<16x64xf32>, vector<16x16xf32> -> vector<16x16xf32>
    %31 = arith.addf %30, %1 : vector<16x16xf32>
    %cst_14 = arith.constant dense<0xFF800000> : vector<16xf32>
    %32 = vector.multi_reduction <maximumf>, %31, %cst_14 [1] : vector<16x16xf32> to vector<16xf32>
    %33 = vector.shape_cast %32 : vector<16xf32> to vector<16x1xf32>
    %34 = vector.broadcast %33 : vector<16x1xf32> to vector<16x16xf32>
    %35 = arith.subf %31, %34 : vector<16x16xf32>
    %36 = math.exp %35 : vector<16x16xf32>
    %cst_15 = arith.constant dense<0.000000e+00> : vector<16xf32>
    %37 = vector.multi_reduction <add>, %36, %cst_15 [1] : vector<16x16xf32> to vector<16xf32>
    %38 = vector.shape_cast %37 : vector<16xf32> to vector<16x1xf32>
    %39 = tpu.reciprocal %38 {approx = true} : vector<16x1xf32> -> vector<16x1xf32>
    %40 = vector.broadcast %39 : vector<16x1xf32> to vector<16x16xf32>
    %41 = arith.mulf %36, %40 : vector<16x16xf32>
    %cst_16 = arith.constant dense<0.000000e+00> : vector<16x64xf32>
    %42 = tpu.matmul %41, %29, %cst_16 {dimension_numbers = #tpu.dot_dimension_numbers<[1], [0], [0], [1], [0, 0, 1, 1], [], []>} : vector<16x16xf32>, vector<16x64xf32>, vector<16x64xf32> -> vector<16x64xf32>
    %43 = tpu.concatenate %24, %42 in 1 : vector<16x64xf32>, vector<16x64xf32> -> vector<16x128xf32>
    %c0_17 = arith.constant 0 : index
    %c0_18 = arith.constant 0 : index
    %44 = vector.load %arg4[%c0_17, %c0_18] : memref<128x128xf32, #tpu.memory_space<vmem>>, vector<128x128xf32>
    %cst_19 = arith.constant dense<0.000000e+00> : vector<16x128xf32>
    %45 = tpu.matmul %43, %44, %cst_19 {dimension_numbers = #tpu.dot_dimension_numbers<[1], [0], [0], [1], [0, 0, 1, 1], [], []>} : vector<16x128xf32>, vector<128x128xf32>, vector<16x128xf32> -> vector<16x128xf32>
    %c0_20 = arith.constant 0 : index
    %c0_21 = arith.constant 0 : index
    %46 = vector.load %arg5[%c0_20, %c0_21] : memref<1x128xf32, #tpu.memory_space<vmem>>, vector<1x128xf32>
    %47 = vector.broadcast %46 : vector<1x128xf32> to vector<16x128xf32>
    %48 = arith.addf %45, %47 : vector<16x128xf32>
    %49 = arith.addf %0, %48 : vector<16x128xf32>
    %c0_22 = arith.constant 0 : index
    %c0_23 = arith.constant 0 : index
    %50 = vector.load %arg10[%c0_22, %c0_23] : memref<1x128xf32, #tpu.memory_space<vmem>>, vector<1x128xf32>
    %c0_24 = arith.constant 0 : index
    %c0_25 = arith.constant 0 : index
    %51 = vector.load %arg11[%c0_24, %c0_25] : memref<1x128xf32, #tpu.memory_space<vmem>>, vector<1x128xf32>
    %cst_26 = arith.constant dense<0.000000e+00> : vector<16xf32>
    %52 = vector.multi_reduction <add>, %49, %cst_26 [1] : vector<16x128xf32> to vector<16xf32>
    %53 = vector.shape_cast %52 : vector<16xf32> to vector<16x1xf32>
    %cst_27 = arith.constant 1.280000e+02 : f32
    %54 = vector.broadcast %cst_27 : f32 to vector<16x1xf32>
    %55 = arith.divf %53, %54 : vector<16x1xf32>
    %56 = vector.broadcast %55 : vector<16x1xf32> to vector<16x128xf32>
    %57 = arith.subf %49, %56 : vector<16x128xf32>
    %58 = arith.mulf %57, %57 : vector<16x128xf32>
    %cst_28 = arith.constant dense<0.000000e+00> : vector<16xf32>
    %59 = vector.multi_reduction <add>, %58, %cst_28 [1] : vector<16x128xf32> to vector<16xf32>
    %60 = vector.shape_cast %59 : vector<16xf32> to vector<16x1xf32>
    %cst_29 = arith.constant 1.280000e+02 : f32
    %61 = vector.broadcast %cst_29 : f32 to vector<16x1xf32>
    %62 = arith.divf %60, %61 : vector<16x1xf32>
    %cst_30 = arith.constant 9.99999974E-6 : f32
    %63 = vector.broadcast %cst_30 : f32 to vector<16x1xf32>
    %64 = arith.addf %62, %63 : vector<16x1xf32>
    %65 = math.rsqrt %64 : vector<16x1xf32>
    %66 = vector.broadcast %65 : vector<16x1xf32> to vector<16x128xf32>
    %67 = arith.mulf %57, %66 : vector<16x128xf32>
    %68 = vector.broadcast %50 : vector<1x128xf32> to vector<16x128xf32>
    %69 = arith.mulf %67, %68 : vector<16x128xf32>
    %70 = vector.broadcast %51 : vector<1x128xf32> to vector<16x128xf32>
    %71 = arith.addf %69, %70 : vector<16x128xf32>
    %c0_31 = arith.constant 0 : index
    %c0_32 = arith.constant 0 : index
    %72 = vector.load %arg6[%c0_31, %c0_32] : memref<128x256xf32, #tpu.memory_space<vmem>>, vector<128x256xf32>
    %cst_33 = arith.constant dense<0.000000e+00> : vector<16x256xf32>
    %73 = tpu.matmul %71, %72, %cst_33 {dimension_numbers = #tpu.dot_dimension_numbers<[1], [0], [0], [1], [0, 0, 1, 1], [], []>} : vector<16x128xf32>, vector<128x256xf32>, vector<16x256xf32> -> vector<16x256xf32>
    %c0_34 = arith.constant 0 : index
    %c0_35 = arith.constant 0 : index
    %74 = vector.load %arg7[%c0_34, %c0_35] : memref<1x256xf32, #tpu.memory_space<vmem>>, vector<1x256xf32>
    %75 = vector.broadcast %74 : vector<1x256xf32> to vector<16x256xf32>
    %76 = arith.addf %73, %75 : vector<16x256xf32>
    %cst_36 = arith.constant 0.000000e+00 : f32
    %77 = vector.broadcast %cst_36 : f32 to vector<16x256xf32>
    %78 = arith.maximumf %76, %77 : vector<16x256xf32>
    %c0_37 = arith.constant 0 : index
    %c0_38 = arith.constant 0 : index
    %79 = vector.load %arg8[%c0_37, %c0_38] : memref<256x128xf32, #tpu.memory_space<vmem>>, vector<256x128xf32>
    %cst_39 = arith.constant dense<0.000000e+00> : vector<16x128xf32>
    %80 = tpu.matmul %78, %79, %cst_39 {dimension_numbers = #tpu.dot_dimension_numbers<[1], [0], [0], [1], [0, 0, 1, 1], [], []>} : vector<16x256xf32>, vector<256x128xf32>, vector<16x128xf32> -> vector<16x128xf32>
    %c0_40 = arith.constant 0 : index
    %c0_41 = arith.constant 0 : index
    %81 = vector.load %arg9[%c0_40, %c0_41] : memref<1x128xf32, #tpu.memory_space<vmem>>, vector<1x128xf32>
    %82 = vector.broadcast %81 : vector<1x128xf32> to vector<16x128xf32>
    %83 = arith.addf %80, %82 : vector<16x128xf32>
    %84 = arith.addf %71, %83 : vector<16x128xf32>
    %c0_42 = arith.constant 0 : index
    %c0_43 = arith.constant 0 : index
    %85 = vector.load %arg12[%c0_42, %c0_43] : memref<1x128xf32, #tpu.memory_space<vmem>>, vector<1x128xf32>
    %c0_44 = arith.constant 0 : index
    %c0_45 = arith.constant 0 : index
    %86 = vector.load %arg13[%c0_44, %c0_45] : memref<1x128xf32, #tpu.memory_space<vmem>>, vector<1x128xf32>
    %cst_46 = arith.constant dense<0.000000e+00> : vector<16xf32>
    %87 = vector.multi_reduction <add>, %84, %cst_46 [1] : vector<16x128xf32> to vector<16xf32>
    %88 = vector.shape_cast %87 : vector<16xf32> to vector<16x1xf32>
    %cst_47 = arith.constant 1.280000e+02 : f32
    %89 = vector.broadcast %cst_47 : f32 to vector<16x1xf32>
    %90 = arith.divf %88, %89 : vector<16x1xf32>
    %91 = vector.broadcast %90 : vector<16x1xf32> to vector<16x128xf32>
    %92 = arith.subf %84, %91 : vector<16x128xf32>
    %93 = arith.mulf %92, %92 : vector<16x128xf32>
    %cst_48 = arith.constant dense<0.000000e+00> : vector<16xf32>
    %94 = vector.multi_reduction <add>, %93, %cst_48 [1] : vector<16x128xf32> to vector<16xf32>
    %95 = vector.shape_cast %94 : vector<16xf32> to vector<16x1xf32>
    %cst_49 = arith.constant 1.280000e+02 : f32
    %96 = vector.broadcast %cst_49 : f32 to vector<16x1xf32>
    %97 = arith.divf %95, %96 : vector<16x1xf32>
    %cst_50 = arith.constant 9.99999974E-6 : f32
    %98 = vector.broadcast %cst_50 : f32 to vector<16x1xf32>
    %99 = arith.addf %97, %98 : vector<16x1xf32>
    %100 = math.rsqrt %99 : vector<16x1xf32>
    %101 = vector.broadcast %100 : vector<16x1xf32> to vector<16x128xf32>
    %102 = arith.mulf %92, %101 : vector<16x128xf32>
    %103 = vector.broadcast %85 : vector<1x128xf32> to vector<16x128xf32>
    %104 = arith.mulf %102, %103 : vector<16x128xf32>
    %105 = vector.broadcast %86 : vector<1x128xf32> to vector<16x128xf32>
    %106 = arith.addf %104, %105 : vector<16x128xf32>
    %c0_51 = arith.constant 0 : index
    %c0_52 = arith.constant 0 : index
    %107 = vector.load %arg14[%c0_51, %c0_52] : memref<16x128xf32, #tpu.memory_space<vmem>>, vector<16x128xf32>
    tpu.vector_store %arg14[%c0_51, %c0_52], %106 {strides = array<i32>} : memref<16x128xf32, #tpu.memory_space<vmem>>, vector<16x128xf32>,
    return
  }
}

module attributes {stable_mosaic.version = 11 : i64} {
  func.func @_linear_kernel(%arg0: memref<24x128xf32, #tpu.memory_space<vmem>>, %arg1: memref<128x64xf32, #tpu.memory_space<vmem>>, %arg2: memref<1x64xf32, #tpu.memory_space<vmem>>, %arg3: memref<24x64xf32, #tpu.memory_space<vmem>>) attributes {dimension_semantics = [], scalar_prefetch = 0 : i64, scratch_operands = 0 : i64, tpu.core_type = #tpu.core_type<tc>} {
    %c0 = arith.constant 0 : index
    %c0_0 = arith.constant 0 : index
    %0 = vector.load %arg0[%c0, %c0_0] : memref<24x128xf32, #tpu.memory_space<vmem>>, vector<24x128xf32>
    %c0_1 = arith.constant 0 : index
    %c0_2 = arith.constant 0 : index
    %1 = vector.load %arg1[%c0_1, %c0_2] : memref<128x64xf32, #tpu.memory_space<vmem>>, vector<128x64xf32>
    %cst = arith.constant dense<0.000000e+00> : vector<24x64xf32>
    %2 = tpu.matmul %0, %1, %cst {dimension_numbers = #tpu.dot_dimension_numbers<[1], [0], [0], [1], [0, 0, 1, 1], [], []>} : vector<24x128xf32>, vector<128x64xf32>, vector<24x64xf32> -> vector<24x64xf32>
    %c0_3 = arith.constant 0 : index
    %c0_4 = arith.constant 0 : index
    %3 = vector.load %arg2[%c0_3, %c0_4] : memref<1x64xf32, #tpu.memory_space<vmem>>, vector<1x64xf32>
    %4 = vector.broadcast %3 : vector<1x64xf32> to vector<24x64xf32>
    %5 = arith.addf %2, %4 : vector<24x64xf32>
    %c0_5 = arith.constant 0 : index
    %c0_6 = arith.constant 0 : index
    %6 = vector.load %arg3[%c0_5, %c0_6] : memref<24x64xf32, #tpu.memory_space<vmem>>, vector<24x64xf32>
    tpu.vector_store %arg3[%c0_5, %c0_6], %5 {strides = array<i32>} : memref<24x64xf32, #tpu.memory_space<vmem>>, vector<24x64xf32>,
    return
  }
}

module attributes {stable_mosaic.version = 11 : i64} {
  func.func @_tf_layer_kernel(%arg0: memref<24x128xf32, #tpu.memory_space<vmem>>, %arg1: memref<24x24xf32, #tpu.memory_space<vmem>>, %arg2: memref<128x384xf32, #tpu.memory_space<vmem>>, %arg3: memref<1x384xf32, #tpu.memory_space<vmem>>, %arg4: memref<128x128xf32, #tpu.memory_space<vmem>>, %arg5: memref<1x128xf32, #tpu.memory_space<vmem>>, %arg6: memref<128x256xf32, #tpu.memory_space<vmem>>, %arg7: memref<1x256xf32, #tpu.memory_space<vmem>>, %arg8: memref<256x128xf32, #tpu.memory_space<vmem>>, %arg9: memref<1x128xf32, #tpu.memory_space<vmem>>, %arg10: memref<1x128xf32, #tpu.memory_space<vmem>>, %arg11: memref<1x128xf32, #tpu.memory_space<vmem>>, %arg12: memref<1x128xf32, #tpu.memory_space<vmem>>, %arg13: memref<1x128xf32, #tpu.memory_space<vmem>>, %arg14: memref<24x128xf32, #tpu.memory_space<vmem>>) attributes {dimension_semantics = [], scalar_prefetch = 0 : i64, scratch_operands = 0 : i64, tpu.core_type = #tpu.core_type<tc>} {
    %c0 = arith.constant 0 : index
    %c0_0 = arith.constant 0 : index
    %0 = vector.load %arg0[%c0, %c0_0] : memref<24x128xf32, #tpu.memory_space<vmem>>, vector<24x128xf32>
    %c0_1 = arith.constant 0 : index
    %c0_2 = arith.constant 0 : index
    %1 = vector.load %arg1[%c0_1, %c0_2] : memref<24x24xf32, #tpu.memory_space<vmem>>, vector<24x24xf32>
    %c0_3 = arith.constant 0 : index
    %c0_4 = arith.constant 0 : index
    %2 = vector.load %arg2[%c0_3, %c0_4] : memref<128x384xf32, #tpu.memory_space<vmem>>, vector<128x384xf32>
    %cst = arith.constant dense<0.000000e+00> : vector<24x384xf32>
    %3 = tpu.matmul %0, %2, %cst {dimension_numbers = #tpu.dot_dimension_numbers<[1], [0], [0], [1], [0, 0, 1, 1], [], []>} : vector<24x128xf32>, vector<128x384xf32>, vector<24x384xf32> -> vector<24x384xf32>
    %c0_5 = arith.constant 0 : index
    %c0_6 = arith.constant 0 : index
    %4 = vector.load %arg3[%c0_5, %c0_6] : memref<1x384xf32, #tpu.memory_space<vmem>>, vector<1x384xf32>
    %5 = vector.broadcast %4 : vector<1x384xf32> to vector<24x384xf32>
    %6 = arith.addf %3, %5 : vector<24x384xf32>
    %7 = vector.extract_strided_slice %6 {offsets = [0, 0], sizes = [24, 32], strides = [1, 1]} : vector<24x384xf32> to vector<24x32xf32>
    %cst_7 = arith.constant 0.176776692 : f32
    %8 = vector.broadcast %cst_7 : f32 to vector<24x32xf32>
    %9 = arith.mulf %7, %8 : vector<24x32xf32>
    %10 = vector.extract_strided_slice %6 {offsets = [0, 128], sizes = [24, 32], strides = [1, 1]} : vector<24x384xf32> to vector<24x32xf32>
    %11 = vector.extract_strided_slice %6 {offsets = [0, 256], sizes = [24, 32], strides = [1, 1]} : vector<24x384xf32> to vector<24x32xf32>
    %cst_8 = arith.constant dense<0.000000e+00> : vector<24x24xf32>
    %12 = tpu.matmul %9, %10, %cst_8 {dimension_numbers = #tpu.dot_dimension_numbers<[1], [1], [0], [0], [0, 0, 1, 0], [], []>} : vector<24x32xf32>, vector<24x32xf32>, vector<24x24xf32> -> vector<24x24xf32>
    %13 = arith.addf %12, %1 : vector<24x24xf32>
    %cst_9 = arith.constant dense<0xFF800000> : vector<24xf32>
    %14 = vector.multi_reduction <maximumf>, %13, %cst_9 [1] : vector<24x24xf32> to vector<24xf32>
    %15 = vector.shape_cast %14 : vector<24xf32> to vector<24x1xf32>
    %16 = vector.broadcast %15 : vector<24x1xf32> to vector<24x24xf32>
    %17 = arith.subf %13, %16 : vector<24x24xf32>
    %18 = math.exp %17 : vector<24x24xf32>
    %cst_10 = arith.constant dense<0.000000e+00> : vector<24xf32>
    %19 = vector.multi_reduction <add>, %18, %cst_10 [1] : vector<24x24xf32> to vector<24xf32>
    %20 = vector.shape_cast %19 : vector<24xf32> to vector<24x1xf32>
    %21 = tpu.reciprocal %20 {approx = true} : vector<24x1xf32> -> vector<24x1xf32>
    %22 = vector.broadcast %21 : vector<24x1xf32> to vector<24x24xf32>
    %23 = arith.mulf %18, %22 : vector<24x24xf32>
    %cst_11 = arith.constant dense<0.000000e+00> : vector<24x32xf32>
    %24 = tpu.matmul %23, %11, %cst_11 {dimension_numbers = #tpu.dot_dimension_numbers<[1], [0], [0], [1], [0, 0, 1, 1], [], []>} : vector<24x24xf32>, vector<24x32xf32>, vector<24x32xf32> -> vector<24x32xf32>
    %25 = vector.extract_strided_slice %6 {offsets = [0, 32], sizes = [24, 32], strides = [1, 1]} : vector<24x384xf32> to vector<24x32xf32>
    %cst_12 = arith.constant 0.176776692 : f32
    %26 = vector.broadcast %cst_12 : f32 to vector<24x32xf32>
    %27 = arith.mulf %25, %26 : vector<24x32xf32>
    %28 = vector.extract_strided_slice %6 {offsets = [0, 160], sizes = [24, 32], strides = [1, 1]} : vector<24x384xf32> to vector<24x32xf32>
    %29 = vector.extract_strided_slice %6 {offsets = [0, 288], sizes = [24, 32], strides = [1, 1]} : vector<24x384xf32> to vector<24x32xf32>
    %cst_13 = arith.constant dense<0.000000e+00> : vector<24x24xf32>
    %30 = tpu.matmul %27, %28, %cst_13 {dimension_numbers = #tpu.dot_dimension_numbers<[1], [1], [0], [0], [0, 0, 1, 0], [], []>} : vector<24x32xf32>, vector<24x32xf32>, vector<24x24xf32> -> vector<24x24xf32>
    %31 = arith.addf %30, %1 : vector<24x24xf32>
    %cst_14 = arith.constant dense<0xFF800000> : vector<24xf32>
    %32 = vector.multi_reduction <maximumf>, %31, %cst_14 [1] : vector<24x24xf32> to vector<24xf32>
    %33 = vector.shape_cast %32 : vector<24xf32> to vector<24x1xf32>
    %34 = vector.broadcast %33 : vector<24x1xf32> to vector<24x24xf32>
    %35 = arith.subf %31, %34 : vector<24x24xf32>
    %36 = math.exp %35 : vector<24x24xf32>
    %cst_15 = arith.constant dense<0.000000e+00> : vector<24xf32>
    %37 = vector.multi_reduction <add>, %36, %cst_15 [1] : vector<24x24xf32> to vector<24xf32>
    %38 = vector.shape_cast %37 : vector<24xf32> to vector<24x1xf32>
    %39 = tpu.reciprocal %38 {approx = true} : vector<24x1xf32> -> vector<24x1xf32>
    %40 = vector.broadcast %39 : vector<24x1xf32> to vector<24x24xf32>
    %41 = arith.mulf %36, %40 : vector<24x24xf32>
    %cst_16 = arith.constant dense<0.000000e+00> : vector<24x32xf32>
    %42 = tpu.matmul %41, %29, %cst_16 {dimension_numbers = #tpu.dot_dimension_numbers<[1], [0], [0], [1], [0, 0, 1, 1], [], []>} : vector<24x24xf32>, vector<24x32xf32>, vector<24x32xf32> -> vector<24x32xf32>
    %43 = vector.extract_strided_slice %6 {offsets = [0, 64], sizes = [24, 32], strides = [1, 1]} : vector<24x384xf32> to vector<24x32xf32>
    %cst_17 = arith.constant 0.176776692 : f32
    %44 = vector.broadcast %cst_17 : f32 to vector<24x32xf32>
    %45 = arith.mulf %43, %44 : vector<24x32xf32>
    %46 = vector.extract_strided_slice %6 {offsets = [0, 192], sizes = [24, 32], strides = [1, 1]} : vector<24x384xf32> to vector<24x32xf32>
    %47 = vector.extract_strided_slice %6 {offsets = [0, 320], sizes = [24, 32], strides = [1, 1]} : vector<24x384xf32> to vector<24x32xf32>
    %cst_18 = arith.constant dense<0.000000e+00> : vector<24x24xf32>
    %48 = tpu.matmul %45, %46, %cst_18 {dimension_numbers = #tpu.dot_dimension_numbers<[1], [1], [0], [0], [0, 0, 1, 0], [], []>} : vector<24x32xf32>, vector<24x32xf32>, vector<24x24xf32> -> vector<24x24xf32>
    %49 = arith.addf %48, %1 : vector<24x24xf32>
    %cst_19 = arith.constant dense<0xFF800000> : vector<24xf32>
    %50 = vector.multi_reduction <maximumf>, %49, %cst_19 [1] : vector<24x24xf32> to vector<24xf32>
    %51 = vector.shape_cast %50 : vector<24xf32> to vector<24x1xf32>
    %52 = vector.broadcast %51 : vector<24x1xf32> to vector<24x24xf32>
    %53 = arith.subf %49, %52 : vector<24x24xf32>
    %54 = math.exp %53 : vector<24x24xf32>
    %cst_20 = arith.constant dense<0.000000e+00> : vector<24xf32>
    %55 = vector.multi_reduction <add>, %54, %cst_20 [1] : vector<24x24xf32> to vector<24xf32>
    %56 = vector.shape_cast %55 : vector<24xf32> to vector<24x1xf32>
    %57 = tpu.reciprocal %56 {approx = true} : vector<24x1xf32> -> vector<24x1xf32>
    %58 = vector.broadcast %57 : vector<24x1xf32> to vector<24x24xf32>
    %59 = arith.mulf %54, %58 : vector<24x24xf32>
    %cst_21 = arith.constant dense<0.000000e+00> : vector<24x32xf32>
    %60 = tpu.matmul %59, %47, %cst_21 {dimension_numbers = #tpu.dot_dimension_numbers<[1], [0], [0], [1], [0, 0, 1, 1], [], []>} : vector<24x24xf32>, vector<24x32xf32>, vector<24x32xf32> -> vector<24x32xf32>
    %61 = vector.extract_strided_slice %6 {offsets = [0, 96], sizes = [24, 32], strides = [1, 1]} : vector<24x384xf32> to vector<24x32xf32>
    %cst_22 = arith.constant 0.176776692 : f32
    %62 = vector.broadcast %cst_22 : f32 to vector<24x32xf32>
    %63 = arith.mulf %61, %62 : vector<24x32xf32>
    %64 = vector.extract_strided_slice %6 {offsets = [0, 224], sizes = [24, 32], strides = [1, 1]} : vector<24x384xf32> to vector<24x32xf32>
    %65 = vector.extract_strided_slice %6 {offsets = [0, 352], sizes = [24, 32], strides = [1, 1]} : vector<24x384xf32> to vector<24x32xf32>
    %cst_23 = arith.constant dense<0.000000e+00> : vector<24x24xf32>
    %66 = tpu.matmul %63, %64, %cst_23 {dimension_numbers = #tpu.dot_dimension_numbers<[1], [1], [0], [0], [0, 0, 1, 0], [], []>} : vector<24x32xf32>, vector<24x32xf32>, vector<24x24xf32> -> vector<24x24xf32>
    %67 = arith.addf %66, %1 : vector<24x24xf32>
    %cst_24 = arith.constant dense<0xFF800000> : vector<24xf32>
    %68 = vector.multi_reduction <maximumf>, %67, %cst_24 [1] : vector<24x24xf32> to vector<24xf32>
    %69 = vector.shape_cast %68 : vector<24xf32> to vector<24x1xf32>
    %70 = vector.broadcast %69 : vector<24x1xf32> to vector<24x24xf32>
    %71 = arith.subf %67, %70 : vector<24x24xf32>
    %72 = math.exp %71 : vector<24x24xf32>
    %cst_25 = arith.constant dense<0.000000e+00> : vector<24xf32>
    %73 = vector.multi_reduction <add>, %72, %cst_25 [1] : vector<24x24xf32> to vector<24xf32>
    %74 = vector.shape_cast %73 : vector<24xf32> to vector<24x1xf32>
    %75 = tpu.reciprocal %74 {approx = true} : vector<24x1xf32> -> vector<24x1xf32>
    %76 = vector.broadcast %75 : vector<24x1xf32> to vector<24x24xf32>
    %77 = arith.mulf %72, %76 : vector<24x24xf32>
    %cst_26 = arith.constant dense<0.000000e+00> : vector<24x32xf32>
    %78 = tpu.matmul %77, %65, %cst_26 {dimension_numbers = #tpu.dot_dimension_numbers<[1], [0], [0], [1], [0, 0, 1, 1], [], []>} : vector<24x24xf32>, vector<24x32xf32>, vector<24x32xf32> -> vector<24x32xf32>
    %79 = tpu.concatenate %24, %42, %60, %78 in 1 : vector<24x32xf32>, vector<24x32xf32>, vector<24x32xf32>, vector<24x32xf32> -> vector<24x128xf32>
    %c0_27 = arith.constant 0 : index
    %c0_28 = arith.constant 0 : index
    %80 = vector.load %arg4[%c0_27, %c0_28] : memref<128x128xf32, #tpu.memory_space<vmem>>, vector<128x128xf32>
    %cst_29 = arith.constant dense<0.000000e+00> : vector<24x128xf32>
    %81 = tpu.matmul %79, %80, %cst_29 {dimension_numbers = #tpu.dot_dimension_numbers<[1], [0], [0], [1], [0, 0, 1, 1], [], []>} : vector<24x128xf32>, vector<128x128xf32>, vector<24x128xf32> -> vector<24x128xf32>
    %c0_30 = arith.constant 0 : index
    %c0_31 = arith.constant 0 : index
    %82 = vector.load %arg5[%c0_30, %c0_31] : memref<1x128xf32, #tpu.memory_space<vmem>>, vector<1x128xf32>
    %83 = vector.broadcast %82 : vector<1x128xf32> to vector<24x128xf32>
    %84 = arith.addf %81, %83 : vector<24x128xf32>
    %85 = arith.addf %0, %84 : vector<24x128xf32>
    %c0_32 = arith.constant 0 : index
    %c0_33 = arith.constant 0 : index
    %86 = vector.load %arg10[%c0_32, %c0_33] : memref<1x128xf32, #tpu.memory_space<vmem>>, vector<1x128xf32>
    %c0_34 = arith.constant 0 : index
    %c0_35 = arith.constant 0 : index
    %87 = vector.load %arg11[%c0_34, %c0_35] : memref<1x128xf32, #tpu.memory_space<vmem>>, vector<1x128xf32>
    %cst_36 = arith.constant dense<0.000000e+00> : vector<24xf32>
    %88 = vector.multi_reduction <add>, %85, %cst_36 [1] : vector<24x128xf32> to vector<24xf32>
    %89 = vector.shape_cast %88 : vector<24xf32> to vector<24x1xf32>
    %cst_37 = arith.constant 1.280000e+02 : f32
    %90 = vector.broadcast %cst_37 : f32 to vector<24x1xf32>
    %91 = arith.divf %89, %90 : vector<24x1xf32>
    %92 = vector.broadcast %91 : vector<24x1xf32> to vector<24x128xf32>
    %93 = arith.subf %85, %92 : vector<24x128xf32>
    %94 = arith.mulf %93, %93 : vector<24x128xf32>
    %cst_38 = arith.constant dense<0.000000e+00> : vector<24xf32>
    %95 = vector.multi_reduction <add>, %94, %cst_38 [1] : vector<24x128xf32> to vector<24xf32>
    %96 = vector.shape_cast %95 : vector<24xf32> to vector<24x1xf32>
    %cst_39 = arith.constant 1.280000e+02 : f32
    %97 = vector.broadcast %cst_39 : f32 to vector<24x1xf32>
    %98 = arith.divf %96, %97 : vector<24x1xf32>
    %cst_40 = arith.constant 9.99999974E-6 : f32
    %99 = vector.broadcast %cst_40 : f32 to vector<24x1xf32>
    %100 = arith.addf %98, %99 : vector<24x1xf32>
    %101 = math.rsqrt %100 : vector<24x1xf32>
    %102 = vector.broadcast %101 : vector<24x1xf32> to vector<24x128xf32>
    %103 = arith.mulf %93, %102 : vector<24x128xf32>
    %104 = vector.broadcast %86 : vector<1x128xf32> to vector<24x128xf32>
    %105 = arith.mulf %103, %104 : vector<24x128xf32>
    %106 = vector.broadcast %87 : vector<1x128xf32> to vector<24x128xf32>
    %107 = arith.addf %105, %106 : vector<24x128xf32>
    %c0_41 = arith.constant 0 : index
    %c0_42 = arith.constant 0 : index
    %108 = vector.load %arg6[%c0_41, %c0_42] : memref<128x256xf32, #tpu.memory_space<vmem>>, vector<128x256xf32>
    %cst_43 = arith.constant dense<0.000000e+00> : vector<24x256xf32>
    %109 = tpu.matmul %107, %108, %cst_43 {dimension_numbers = #tpu.dot_dimension_numbers<[1], [0], [0], [1], [0, 0, 1, 1], [], []>} : vector<24x128xf32>, vector<128x256xf32>, vector<24x256xf32> -> vector<24x256xf32>
    %c0_44 = arith.constant 0 : index
    %c0_45 = arith.constant 0 : index
    %110 = vector.load %arg7[%c0_44, %c0_45] : memref<1x256xf32, #tpu.memory_space<vmem>>, vector<1x256xf32>
    %111 = vector.broadcast %110 : vector<1x256xf32> to vector<24x256xf32>
    %112 = arith.addf %109, %111 : vector<24x256xf32>
    %cst_46 = arith.constant 0.000000e+00 : f32
    %113 = vector.broadcast %cst_46 : f32 to vector<24x256xf32>
    %114 = arith.maximumf %112, %113 : vector<24x256xf32>
    %c0_47 = arith.constant 0 : index
    %c0_48 = arith.constant 0 : index
    %115 = vector.load %arg8[%c0_47, %c0_48] : memref<256x128xf32, #tpu.memory_space<vmem>>, vector<256x128xf32>
    %cst_49 = arith.constant dense<0.000000e+00> : vector<24x128xf32>
    %116 = tpu.matmul %114, %115, %cst_49 {dimension_numbers = #tpu.dot_dimension_numbers<[1], [0], [0], [1], [0, 0, 1, 1], [], []>} : vector<24x256xf32>, vector<256x128xf32>, vector<24x128xf32> -> vector<24x128xf32>
    %c0_50 = arith.constant 0 : index
    %c0_51 = arith.constant 0 : index
    %117 = vector.load %arg9[%c0_50, %c0_51] : memref<1x128xf32, #tpu.memory_space<vmem>>, vector<1x128xf32>
    %118 = vector.broadcast %117 : vector<1x128xf32> to vector<24x128xf32>
    %119 = arith.addf %116, %118 : vector<24x128xf32>
    %120 = arith.addf %107, %119 : vector<24x128xf32>
    %c0_52 = arith.constant 0 : index
    %c0_53 = arith.constant 0 : index
    %121 = vector.load %arg12[%c0_52, %c0_53] : memref<1x128xf32, #tpu.memory_space<vmem>>, vector<1x128xf32>
    %c0_54 = arith.constant 0 : index
    %c0_55 = arith.constant 0 : index
    %122 = vector.load %arg13[%c0_54, %c0_55] : memref<1x128xf32, #tpu.memory_space<vmem>>, vector<1x128xf32>
    %cst_56 = arith.constant dense<0.000000e+00> : vector<24xf32>
    %123 = vector.multi_reduction <add>, %120, %cst_56 [1] : vector<24x128xf32> to vector<24xf32>
    %124 = vector.shape_cast %123 : vector<24xf32> to vector<24x1xf32>
    %cst_57 = arith.constant 1.280000e+02 : f32
    %125 = vector.broadcast %cst_57 : f32 to vector<24x1xf32>
    %126 = arith.divf %124, %125 : vector<24x1xf32>
    %127 = vector.broadcast %126 : vector<24x1xf32> to vector<24x128xf32>
    %128 = arith.subf %120, %127 : vector<24x128xf32>
    %129 = arith.mulf %128, %128 : vector<24x128xf32>
    %cst_58 = arith.constant dense<0.000000e+00> : vector<24xf32>
    %130 = vector.multi_reduction <add>, %129, %cst_58 [1] : vector<24x128xf32> to vector<24xf32>
    %131 = vector.shape_cast %130 : vector<24xf32> to vector<24x1xf32>
    %cst_59 = arith.constant 1.280000e+02 : f32
    %132 = vector.broadcast %cst_59 : f32 to vector<24x1xf32>
    %133 = arith.divf %131, %132 : vector<24x1xf32>
    %cst_60 = arith.constant 9.99999974E-6 : f32
    %134 = vector.broadcast %cst_60 : f32 to vector<24x1xf32>
    %135 = arith.addf %133, %134 : vector<24x1xf32>
    %136 = math.rsqrt %135 : vector<24x1xf32>
    %137 = vector.broadcast %136 : vector<24x1xf32> to vector<24x128xf32>
    %138 = arith.mulf %128, %137 : vector<24x128xf32>
    %139 = vector.broadcast %121 : vector<1x128xf32> to vector<24x128xf32>
    %140 = arith.mulf %138, %139 : vector<24x128xf32>
    %141 = vector.broadcast %122 : vector<1x128xf32> to vector<24x128xf32>
    %142 = arith.addf %140, %141 : vector<24x128xf32>
    %c0_61 = arith.constant 0 : index
    %c0_62 = arith.constant 0 : index
    %143 = vector.load %arg14[%c0_61, %c0_62] : memref<24x128xf32, #tpu.memory_space<vmem>>, vector<24x128xf32>
    tpu.vector_store %arg14[%c0_61, %c0_62], %142 {strides = array<i32>} : memref<24x128xf32, #tpu.memory_space<vmem>>, vector<24x128xf32>,
    return
  }
}

</mosaic_0001>

<bundles_post_ra>
// kernel: lxmert_encoder_wrapper_forward.8
= control target key start
LH: loop header
LB: loop body
LE: loop exit
PB: predicated region body
PF: predicated region fallthrough
CT: control target
= control target key end

     0   :  { %v90_v2 = vmov 128.0   ;;  %s129_s0 = inlined_call_operand.vmem [shape: f32[16,128], index: 0, kind: input, shape index: {}]   ;;  %s130_s1 = inlined_call_operand.vmem [shape: f32[1,128], index: 1, kind: input, shape index: {}]   ;;  %s131_s2 = inlined_call_operand.vmem [shape: f32[1,128], index: 2, kind: input, shape index: {}]   ;;  %s132_s3 = inlined_call_operand.vmem [shape: f32[16,128], index: 3, kind: output, shape index: {}]  }
   0x1   :  { %v14_v0 = vld [vmem:[%s129_s0] sm:$0xff]  ;;  %v15_v1 = vld [vmem:[%s129_s0 + $0x8] sm:$0xff]  ;;  %84 = vrcp.f32 %v90_v2 }
   0x2   :  { %18 = vadd.xlane.f32.xlu0 %v14_v0  ;;  %v82_v31 = vld [vmem:[%s130_s1] ss:$0 sm:$0xff] }
   0x3   :  { %v83_v34 = vld [vmem:[%s131_s2] ss:$0 sm:$0xff] }
   0x7   :  { %v85_v3 = vpop.eup %84 }
   0x8   :  { %v23_v4 = vmul.f32 128.0, %v85_v3  ;;  %vm27_vm0 = vweird.f32 %v85_v3 }
   0xa   :  { %20 = vadd.xlane.f32.xlu0 %v15_v1  ;;  %v24_v5 = vsub.f32 1.0, %v23_v4 }
   0xc   :  { %v25_v6 = vmul.f32 %v85_v3, %v24_v5 }
   0xe   :  { %v26_v7 = vadd.f32 %v85_v3, %v25_v6 }
  0x10   :  { %v28_v8 = vsel %vm27_vm0, %v85_v3, %v26_v7 }
  0x75   :  { %v19_v9 = vpop.xlane.xlu0 %18 }
  0x76   :  { %v29_v10 = vmul.f32 %v28_v8, %v19_v9 }
  0x78   :  { %v31_v11 = vsub.f32 %v14_v0, %v29_v10 }
  0x7a   :  { %v33_v12 = vmul.f32 %v31_v11, %v31_v11 }
  0x7c   :  { %35 = vadd.xlane.f32.xlu1 %v33_v12 }
  0x7d   :  { %v21_v13 = vpop.xlane.xlu0 %20 }
  0x7e   :  { %v30_v14 = vmul.f32 %v28_v8, %v21_v13 }
  0x80   :  { %v32_v15 = vsub.f32 %v15_v1, %v30_v14 }
  0x82   :  { %v34_v16 = vmul.f32 %v32_v15, %v32_v15 }
  0x84   :  { %37 = vadd.xlane.f32.xlu1 %v34_v16 }
  0xef   :  { %v36_v17 = vpop.xlane.xlu1 %35 }
  0xf0   :  { %v39_v18 = vmul.f32 %v36_v17, %v28_v8 }
  0xf2   :  { %v41_v19 = vadd.f32 1e-05, %v39_v18 }
  0xf4   :  { %86 = vrsqrt.f32 %v41_v19  ;;  %vm49_vm2 = vweird.f32 %v41_v19 }
  0xf7   :  { %v38_v20 = vpop.xlane.xlu1 %37 }
  0xf8   :  { %v40_v21 = vmul.f32 %v38_v20, %v28_v8 }
  0xfa   :  { %v87_v22 = vpop.eup %86  ;;  %v42_v23 = vadd.f32 1e-05, %v40_v21 }
  0xfb   :  { %v44_v24 = vmul.f32 %v87_v22, %v41_v19  ;;  %vm50_vm1 = vweird.f32 %v87_v22 }
  0xfc   :  { %88 = vrsqrt.f32 %v42_v23  ;;  %vm51_vm3 = vmor %vm49_vm2, %vm50_vm1  ;;  %vm59_vm5 = vweird.f32 %v42_v23 }
  0xfd   :  { %v45_v25 = vmul.f32 %v87_v22, %v44_v24 }
  0xff   :  { %v46_v26 = vmul.f32 0.5, %v45_v25 }
 0x101   :  { %v47_v27 = vsub.f32 1.5, %v46_v26 }
 0x102   :  { %v89_v28 = vpop.eup %88 }
 0x103   :  { %v48_v29 = vmul.f32 %v87_v22, %v47_v27  ;;  %v54_v30 = vmul.f32 %v89_v28, %v42_v23  ;;  %vm60_vm4 = vweird.f32 %v89_v28 }
 0x104   :  { %vm61_vm6 = vmor %vm59_vm5, %vm60_vm4 }
 0x105   :  { %v52_v32 = vsel %vm51_vm3, %v87_v22, %v48_v29  ;;  %v55_v33 = vmul.f32 %v89_v28, %v54_v30 }
 0x106   :  { %v63_v35 = vmul.f32 %v52_v32, %v31_v11 }
 0x107   :  { %v56_v36 = vmul.f32 0.5, %v55_v33 }
 0x108   :  { %v68_v37 = vmul.f32 %v82_v31, %v63_v35 }
 0x109   :  { %v57_v38 = vsub.f32 1.5, %v56_v36 }
 0x10a   :  { %v73_v39 = vadd.f32 %v83_v34, %v68_v37 }
 0x10b   :  { %v58_v40 = vmul.f32 %v89_v28, %v57_v38 }
 0x10c   :  { %75 = vst [vmem:[%s132_s3] sm:$0xff] %v73_v39 }
 0x10d   :  { %v62_v41 = vsel %vm61_vm6, %v89_v28, %v58_v40 }
 0x10e   :  { %v64_v42 = vmul.f32 %v62_v41, %v32_v15 }
 0x110   :  { %v69_v43 = vmul.f32 %v82_v31, %v64_v42 }
 0x112   :  { %v74_v44 = vadd.f32 %v83_v34, %v69_v43 }
 0x114   :  { %76 = vst [vmem:[%s132_s3 + $0x8] sm:$0xff] %v74_v44 }

// kernel: lxmert_encoder_wrapper_forward.13
= control target key start
LH: loop header
LB: loop body
LE: loop exit
PB: predicated region body
PF: predicated region fallthrough
CT: control target
= control target key end

     0   :  { %19 = vsyncpa [#allocation3], 0  ;;  %s944_s0 = inlined_call_operand.vmem [shape: f32[8,128], index: 0, kind: input, shape index: {}]   ;;  %s945_s1 = inlined_call_operand.vmem [shape: f32[8,8], index: 1, kind: input, shape index: {}]   ;;  %s946_s2 = inlined_call_operand.hbm [shape: f32[128,384], index: 2, kind: input, shape index: {}]   ;;  %s947_s3 = inlined_call_operand.vmem [shape: f32[1,384], index: 3, kind: input, shape index: {}]   ;;  %s948_s4 = inlined_call_operand.hbm [shape: f32[128,128], index: 4, kind: input, shape index: {}]   ;;  %s949_s5 = inlined_call_operand.vmem [shape: f32[1,128], index: 5, kind: input, shape index: {}]   ;;  %s950_s6 = inlined_call_operand.hbm [shape: f32[128,256], index: 6, kind: input, shape index: {}]   ;;  %s951_s7 = inlined_call_operand.vmem [shape: f32[1,256], index: 7, kind: input, shape index: {}]   ;;  %s952_s8 = inlined_call_operand.hbm [shape: f32[256,128], index: 8, kind: input, shape index: {}]   ;;  %s953_s9 = inlined_call_operand.vmem [shape: f32[1,128], index: 9, kind: input, shape index: {}]   ;;  %s954_s10 = inlined_call_operand.vmem [shape: f32[1,128], index: 10, kind: input, shape index: {}]   ;;  %s955_s11 = inlined_call_operand.vmem [shape: f32[1,128], index: 11, kind: input, shape index: {}]   ;;  %s956_s12 = inlined_call_operand.vmem [shape: f32[1,128], index: 12, kind: input, shape index: {}]   ;;  %s957_s13 = inlined_call_operand.vmem [shape: f32[1,128], index: 13, kind: input, shape index: {}]   ;;  %s958_s14 = inlined_call_operand.vmem [shape: f32[8,128], index: 14, kind: output, shape index: {}]  }
   0x1   :  { %20 = vsyncpa [#allocation5], 0  ;;  %s45_s15 = sshll.u32 %s948_s4, 4  ;;  %s46_s15 = int_to_ptr.hbm [resolvable:$true] %s45_s15 }
   0x2   :  { %21 = vsyncpa [#allocation8], 0  ;;  %s775_s16 = smov [#allocation4]   ;;  %s30_s20 = sshll.u32 %s946_s2, 4  ;;  %s31_s20 = int_to_ptr.hbm [resolvable:$true] %s30_s20 }
   0x3   :  { %s47_s17 = sshll.u32 %s775_s16, 4  ;;  %s776_s21 = smov 128   ;;  %s48_s17 = int_to_ptr.vmem [resolvable:$true] %s47_s17 }
   0x4   :  { %s777_s22 = smov 8   ;;  %s778_s23 = smov [#allocation2]  }
   0x5   :  { %53 = dma.hbm_to_vmem [thread:$0]  %s46_s15, 2048, %s48_s17, [#allocation5], %s776_s21, %s776_s21, %s777_s22  }
   0x6   :  { %s32_s24 = sshll.u32 %s778_s23, 4  ;;  %s779_s25 = smov 384   ;;  %s33_s24 = int_to_ptr.vmem [resolvable:$true] %s32_s24 }
   0x7   :  { %s780_s26 = smov 24   ;;  %s60_s28 = sshll.u32 %s950_s6, 4  ;;  %s61_s28 = int_to_ptr.hbm [resolvable:$true] %s60_s28 }
   0x8   :  { %38 = dma.hbm_to_vmem [thread:$0]  %s31_s20, 6144, %s33_s24, [#allocation3], %s779_s25, %s779_s25, %s780_s26  }
   0x9   :  { %s781_s29 = smov [#allocation6]   ;;  %s75_s18 = sshll.u32 %s952_s8, 4  ;;  %s76_s18 = int_to_ptr.hbm [resolvable:$true] %s75_s18 }
   0xa   :  { %s62_s30 = sshll.u32 %s781_s29, 4  ;;  %s782_s15 = smov 256   ;;  %s63_s30 = int_to_ptr.vmem [resolvable:$true] %s62_s30 }
   0xb   :  { %s783_s17 = smov 16   ;;  %s784_s19 = smov [#allocation7]  }
   0xc   :  { %68 = dma.hbm_to_vmem [thread:$0]  %s61_s28, 4096, %s63_s30, [#allocation5], %s782_s15, %s782_s15, %s783_s17  }
   0xd   :  { %s77_s23 = sshll.u32 %s784_s19, 4  ;;  %s78_s23 = int_to_ptr.vmem [resolvable:$true] %s77_s23 }
   0xe   :  { %83 = dma.hbm_to_vmem [thread:$0]  %s76_s18, 4096, %s78_s23, [#allocation8], %s776_s21, %s776_s21, %s777_s22  }
   0xf   :  { %769 = dma.done.wait [#allocation3], 6144  }
  0x10   :  { %770 = vsyncadd [#allocation3], 4294961152 }
  0x11   :  { %771 = dma.done.wait [#allocation5], 6144  }
  0x12   :  { %772 = vsyncadd [#allocation5], 4294961152 }
  0x13   :  { %773 = dma.done.wait [#allocation8], 4096  }
  0x14   :  { %774 = vsyncadd [#allocation8], 4294963200  ;;  %v158_v0 = vld [vmem:[#allocation2 + $0x170] sm:$0xff]  ;;  %v155_v1 = vld [vmem:[#allocation2 + $0x158] sm:$0xff]  ;;  %vm229_vm0 = vcmask 523264   ;;  %vm256_vm1 = vcmask 64512  }
  0x15   :  { %188 = vmatpush.msra.mxu1 %v158_v0  ;;  %v157_v2 = vld [vmem:[#allocation2 + $0x168] sm:$0xff]  ;;  %v154_v3 = vld [vmem:[#allocation2 + $0x150] sm:$0xff]  ;;  %v152_v4 = vld [vmem:[#allocation2 + $0x140] sm:$0xff] }
  0x16   :  { %168 = vmatpush.msra.mxu0 %v157_v2  ;;  %v151_v5 = vld [vmem:[#allocation2 + $0x138] sm:$0xff]  ;;  %v149_v6 = vld [vmem:[#allocation2 + $0x128] sm:$0xff]  ;;  %v148_v7 = vld [vmem:[#allocation2 + $0x120] sm:$0xff] }
  0x17   :  { %189 = vmatpush.msra.mxu1 %v155_v1  ;;  %v146_v8 = vld [vmem:[#allocation2 + $0x110] sm:$0xff]  ;;  %v145_v9 = vld [vmem:[#allocation2 + $0x108] sm:$0xff]  ;;  %v143_v10 = vld [vmem:[#allocation2 + $0xf8] sm:$0xff] }
  0x18   :  { %169 = vmatpush.msra.mxu0 %v154_v3  ;;  %v142_v11 = vld [vmem:[#allocation2 + $0xf0] sm:$0xff]  ;;  %v140_v12 = vld [vmem:[#allocation2 + $0xe0] sm:$0xff]  ;;  %v139_v13 = vld [vmem:[#allocation2 + $0xd8] sm:$0xff] }
  0x19   :  { %190 = vmatpush.msra.mxu1 %v152_v4  ;;  %v137_v14 = vld [vmem:[#allocation2 + $0xc8] sm:$0xff]  ;;  %v136_v15 = vld [vmem:[#allocation2 + $0xc0] sm:$0xff]  ;;  %v134_v16 = vld [vmem:[#allocation2 + $0xb0] sm:$0xff] }
  0x1a   :  { %170 = vmatpush.msra.mxu0 %v151_v5  ;;  %v133_v17 = vld [vmem:[#allocation2 + $0xa8] sm:$0xff]  ;;  %v131_v18 = vld [vmem:[#allocation2 + $0x98] sm:$0xff]  ;;  %v130_v19 = vld [vmem:[#allocation2 + $0x90] sm:$0xff] }
  0x1b   :  { %191 = vmatpush.msra.mxu1 %v149_v6  ;;  %v128_v20 = vld [vmem:[#allocation2 + $0x80] sm:$0xff]  ;;  %v127_v21 = vld [vmem:[#allocation2 + $0x78] sm:$0xff]  ;;  %v125_v22 = vld [vmem:[#allocation2 + $0x68] sm:$0xff] }
  0x1c   :  { %171 = vmatpush.msra.mxu0 %v148_v7  ;;  %v124_v23 = vld [vmem:[#allocation2 + $0x60] sm:$0xff]  ;;  %v122_v24 = vld [vmem:[#allocation2 + $0x50] sm:$0xff]  ;;  %v121_v25 = vld [vmem:[#allocation2 + $0x48] sm:$0xff] }
  0x1d   :  { %192 = vmatpush.msra.mxu1 %v146_v8  ;;  %v119_v26 = vld [vmem:[#allocation2 + $0x38] sm:$0xff]  ;;  %v118_v27 = vld [vmem:[#allocation2 + $0x30] sm:$0xff]  ;;  %v116_v28 = vld [vmem:[#allocation2 + $0x20] sm:$0xff] }
  0x1e   :  { %172 = vmatpush.msra.mxu0 %v145_v9  ;;  %v115_v29 = vld [vmem:[#allocation2 + $0x18] sm:$0xff]  ;;  %v113_v30 = vld [vmem:[#allocation2 + $0x8] sm:$0xff]  ;;  %v877_v31 = vld [vmem:[%s944_s0] sm:$0xff]  ;;  %s785_s0 = smov 64  }
  0x1f   :  { %193 = vmatpush.msra.mxu1 %v143_v10  ;;  %v112_v32 = vld [vmem:[#allocation2] sm:$0xff]  ;;  %v159_v41 = vld [vmem:[#allocation2 + $0x178] sm:$0xff]  ;;  %v153_v45 = vld [vmem:[#allocation2 + $0x148] sm:$0xff] }
  0x20   :  { %173 = vmatpush.msra.mxu0 %v142_v11  ;;  %v884_v33 = vld [vmem:[%s947_s3] sm:$0x7]  ;;  %208 = vmatpush.msra.mxu2 %v159_v41  ;;  %v150_v46 = vld [vmem:[#allocation2 + $0x130] sm:$0xff]  ;;  %v147_v47 = vld [vmem:[#allocation2 + $0x118] sm:$0xff] }
  0x21   :  { %194 = vmatpush.msra.mxu1 %v140_v12  ;;  %v163_v34 = vperm.slane %v884_v33, 1  ;;  %v162_v35 = vperm.slane %v884_v33, 0  ;;  %v156_v44 = vld [vmem:[#allocation2 + $0x160] sm:$0xff]  ;;  %v141_v49 = vld [vmem:[#allocation2 + $0xe8] sm:$0xff]  ;;  %v138_v50 = vld [vmem:[#allocation2 + $0xd0] sm:$0xff]  ;;  %v164_v6 = vperm.slane %v884_v33, 2 }
  0x22   :  { %174 = vmatpush.msra.mxu0 %v139_v13  ;;  %209 = vmatpush.msra.mxu2 %v156_v44  ;;  %v144_v48 = vld [vmem:[#allocation2 + $0x100] sm:$0xff]  ;;  %v135_v51 = vld [vmem:[#allocation2 + $0xb8] sm:$0xff]  ;;  %v129_v53 = vld [vmem:[#allocation2 + $0x88] sm:$0xff] }
  0x23   :  { %195 = vmatpush.msra.mxu1 %v137_v14  ;;  %v132_v52 = vld [vmem:[#allocation2 + $0xa0] sm:$0xff]  ;;  %v126_v54 = vld [vmem:[#allocation2 + $0x70] sm:$0xff]  ;;  %v123_v55 = vld [vmem:[#allocation2 + $0x58] sm:$0xff] }
  0x24   :  { %175 = vmatpush.msra.mxu0 %v136_v15  ;;  %210 = vmatpush.msra.mxu2 %v153_v45  ;;  %v120_v56 = vld [vmem:[#allocation2 + $0x40] sm:$0xff]  ;;  %v117_v57 = vld [vmem:[#allocation2 + $0x28] sm:$0xff]  ;;  %v114_v58 = vld [vmem:[#allocation2 + $0x10] sm:$0xff] }
  0x25   :  { %196 = vmatpush.msra.mxu1 %v134_v16  ;;  %v111_v59 = vld [vmem:[%s945_s1] sm:$0xff]  ;;  %v367_v33 = vld [vmem:[#allocation4 + $0x28] sm:$0xff] }
  0x26   :  { %176 = vmatpush.msra.mxu0 %v133_v17  ;;  %211 = vmatpush.msra.mxu2 %v150_v46 }
  0x27   :  { %197 = vmatpush.msra.mxu1 %v131_v18 }
  0x28   :  { %177 = vmatpush.msra.mxu0 %v130_v19  ;;  %212 = vmatpush.msra.mxu2 %v147_v47  ;;  %v786_v47 = vmov 128.0  }
  0x29   :  { %198 = vmatpush.msra.mxu1 %v128_v20 }
  0x2a   :  { %178 = vmatpush.msra.mxu0 %v127_v21  ;;  %213 = vmatpush.msra.mxu2 %v144_v48  ;;  %v470_v48 = vld [vmem:[#allocation6 + $0xf0] sm:$0xff] }
  0x2b   :  { %199 = vmatpush.msra.mxu1 %v125_v22  ;;  %v377_v22 = vld [vmem:[#allocation4 + $0x78] sm:$0xff] }
  0x2c   :  { %179 = vmatpush.msra.mxu0 %v124_v23  ;;  %214 = vmatpush.msra.mxu2 %v141_v49  ;;  %v376_v23 = vld [vmem:[#allocation4 + $0x70] sm:$0xff]  ;;  %v471_v49 = vld [vmem:[#allocation6 + $0xf8] sm:$0xff] }
  0x2d   :  { %200 = vmatpush.msra.mxu1 %v122_v24  ;;  %v375_v24 = vld [vmem:[#allocation4 + $0x68] sm:$0xff] }
  0x2e   :  { %180 = vmatpush.msra.mxu0 %v121_v25  ;;  %215 = vmatpush.msra.mxu2 %v138_v50  ;;  %v374_v25 = vld [vmem:[#allocation4 + $0x60] sm:$0xff] }
  0x2f   :  { %201 = vmatpush.msra.mxu1 %v119_v26  ;;  %v373_v26 = vld [vmem:[#allocation4 + $0x58] sm:$0xff]  ;;  %v468_v50 = vld [vmem:[#allocation6 + $0xe0] sm:$0xff] }
  0x30   :  { %181 = vmatpush.msra.mxu0 %v118_v27  ;;  %216 = vmatpush.msra.mxu2 %v135_v51  ;;  %v372_v27 = vld [vmem:[#allocation4 + $0x50] sm:$0xff]  ;;  %v469_v51 = vld [vmem:[#allocation6 + $0xe8] sm:$0xff] }
  0x31   :  { %202 = vmatpush.msra.mxu1 %v116_v28  ;;  %v371_v28 = vld [vmem:[#allocation4 + $0x48] sm:$0xff] }
  0x32   :  { %182 = vmatpush.msra.mxu0 %v115_v29  ;;  %217 = vmatpush.msra.mxu2 %v132_v52  ;;  %v370_v29 = vld [vmem:[#allocation4 + $0x40] sm:$0xff] }
  0x33   :  { %203 = vmatpush.msra.mxu1 %v113_v30  ;;  %v369_v30 = vld [vmem:[#allocation4 + $0x38] sm:$0xff] }
  0x34   :  { %204 = vmatmul.f32.vlgmr.msra.gmra.mxu1 %v877_v31  ;;  %183 = vmatpush.msra.mxu0 %v112_v32  ;;  %v368_v32 = vld [vmem:[#allocation4 + $0x30] sm:$0xff] }
  0x35   :  { %184 = vmatmul.f32.vlgmr.msra.gmra.mxu0 %v877_v31  ;;  %218 = vmatpush.msra.mxu2 %v129_v53 }
  0x37   :  { %219 = vmatpush.msra.mxu2 %v126_v54 }
  0x39   :  { %220 = vmatpush.msra.mxu2 %v123_v55 }
  0x3b   :  { %221 = vmatpush.msra.mxu2 %v120_v56 }
  0x3d   :  { %222 = vmatpush.msra.mxu2 %v117_v57 }
  0x3f   :  { %223 = vmatpush.msra.mxu2 %v114_v58 }
  0x40   :  { %224 = vmatmul.f32.vlgmr.msra.gmra.mxu2 %v877_v31 }
  0xb1   :  { %v205_v36 = vpop.f32.mrf.mxu1 }
  0xb2   :  { %v206_v37 = vadd.f32 %v205_v36, %v163_v34  ;;  %v185_v38 = vpop.f32.mrf.mxu0  ;;  %v366_v34 = vld [vmem:[#allocation4 + $0x20] sm:$0xff] }
  0xb3   :  { %v186_v39 = vadd.f32 %v185_v38, %v162_v35  ;;  %v365_v35 = vld [vmem:[#allocation4 + $0x18] sm:$0xff]  ;;  %v363_v38 = vld [vmem:[#allocation4 + $0x8] sm:$0xff] }
  0xb4   :  { %293 = vrot.lane.b32.xlu0 %v206_v37, %s785_s0  ;;  %635 = vmatpush.xpose.msk.msrb.mxu0 %vm229_vm0, %v206_v37  ;;  %v364_v37 = vld [vmem:[#allocation4 + $0x10] sm:$0xff] }
  0xb5   :  { %v228_v40 = vmul.f32 0.125, %v186_v39  ;;  %v362_v39 = vld [vmem:[#allocation4] sm:$0xff] }
  0xb7   :  { %636 = vmatmul.msk.f32.vlgmr.msrb.gmra.mxu0 %vm229_vm0, %v228_v40 }
  0xb8   :  { %478 = vmatpush.msra.mxu0 %v470_v48 }
  0xba   :  { %479 = vmatpush.msra.mxu0 %v468_v50  ;;  %v542_v50 = vld [vmem:[#allocation7 + $0xb0] sm:$0xff] }
  0xbc   :  { %291 = vrot.lane.b32.xlu0 %v228_v40, %s785_s0 }
  0xc3   :  { %v225_v10 = vpop.f32.mrf.mxu2 }
  0xc4   :  { %v226_v12 = vadd.f32 %v225_v10, %v164_v6  ;;  %v459_v6 = vld [vmem:[#allocation6 + $0x98] sm:$0xff] }
  0xc5   :  { %v455_v10 = vld [vmem:[#allocation6 + $0x78] sm:$0xff] }
  0xc6   :  { %286 = vmatpush.msrb.mxu2 %v226_v12 }
 0x126   :  { %v294_v42 = vpop.permute.xlu0 %293 }
 0x127   :  { %638 = vmatpush.xpose.msk.msrb.mxu1 %vm229_vm0, %v294_v42 }
 0x12b   :  { %498 = vmatpush.msra.mxu1 %v471_v49  ;;  %v526_v49 = vld [vmem:[#allocation7 + $0x30] sm:$0xff] }
 0x12d   :  { %499 = vmatpush.msra.mxu1 %v469_v51 }
 0x12e   :  { %v292_v43 = vpop.permute.xlu0 %291 }
 0x12f   :  { %639 = vmatmul.msk.f32.vlgmr.msrb.gmra.mxu1 %vm229_vm0, %v292_v43  ;;  %v653_v43 = vld [vmem:[%s949_s5] ss:$0 sm:$0xff] }
 0x134   :  { %v253_v63 = vpop.f32.mrf.mxu0 }
 0x135   :  { %v254_v0 = vadd.f32 %v253_v63, %v111_v59  ;;  %v464_v63 = vld [vmem:[#allocation6 + $0xc0] sm:$0xff] }
 0x137   :  { %v257_v1 = vsel %vm256_vm1, %v254_v0, -inf }
 0x1ac   :  { %v316_v60 = vpop.f32.mrf.mxu1 }
 0x1ad   :  { %v317_v61 = vadd.f32 %v316_v60, %v111_v59 }
 0x1af   :  { %v319_v62 = vsel %vm256_vm1, %v317_v61, -inf }
 0x1b0   :  { %320 = vmax.xlane.f32.xlu1 %v319_v62  ;;  %v467_v62 = vld [vmem:[#allocation6 + $0xd8] sm:$0xff] }
 0x1b1   :  { %500 = vmatpush.msra.mxu1 %v467_v62  ;;  %v654_v62 = vld [vmem:[%s954_s10] ss:$0 sm:$0xff] }
 0x1b8   :  { %258 = vmax.xlane.f32.xlu1 %v257_v1  ;;  %v462_v1 = vld [vmem:[#allocation6 + $0xb0] sm:$0xff] }
 0x223   :  { %v321_v2 = vpop.xlane.xlu1 %320 }
 0x224   :  { %v322_v3 = vsub.f32 %v317_v61, %v321_v2  ;;  %v466_v61 = vld [vmem:[#allocation6 + $0xd0] sm:$0xff]  ;;  %v463_v2 = vld [vmem:[#allocation6 + $0xb8] sm:$0xff] }
 0x225   :  { %480 = vmatpush.msra.mxu0 %v466_v61 }
 0x226   :  { %v323_v4 = vmul.f32 1.442695, %v322_v3  ;;  %v460_v3 = vld [vmem:[#allocation6 + $0xa0] sm:$0xff] }
 0x227   :  { %481 = vmatpush.msra.mxu0 %v464_v63 }
 0x228   :  { %659 = vpow2.f32 %v323_v4  ;;  %v461_v4 = vld [vmem:[#allocation6 + $0xa8] sm:$0xff] }
 0x229   :  { %482 = vmatpush.msra.mxu0 %v462_v1  ;;  %v655_v1 = vld [vmem:[%s955_s11] ss:$0 sm:$0xff] }
 0x22b   :  { %v259_v5 = vpop.xlane.xlu1 %258  ;;  %483 = vmatpush.msra.mxu0 %v460_v3 }
 0x22c   :  { %v260_v7 = vsub.f32 %v254_v0, %v259_v5  ;;  %v465_v0 = vld [vmem:[#allocation6 + $0xc8] sm:$0xff]  ;;  %v458_v5 = vld [vmem:[#allocation6 + $0x90] sm:$0xff] }
 0x22d   :  { %501 = vmatpush.msra.mxu1 %v465_v0  ;;  %484 = vmatpush.msra.mxu0 %v458_v5  ;;  %v538_v5 = vld [vmem:[#allocation7 + $0x90] sm:$0xff] }
 0x22e   :  { %v660_v8 = vpop.eup %659  ;;  %v261_v9 = vmul.f32 1.442695, %v260_v7  ;;  %v456_v7 = vld [vmem:[#allocation6 + $0x80] sm:$0xff] }
 0x22f   :  { %v325_v11 = vsel %vm256_vm1, %v660_v8, 0.0  ;;  %502 = vmatpush.msra.mxu1 %v463_v2  ;;  %485 = vmatpush.msra.mxu0 %v456_v7  ;;  %v537_v7 = vld [vmem:[#allocation7 + $0x88] sm:$0xff] }
 0x230   :  { %661 = vpow2.f32 %v261_v9  ;;  %326 = vadd.xlane.f32.xlu2 %v325_v11  ;;  %v454_v9 = vld [vmem:[#allocation6 + $0x70] sm:$0xff]  ;;  %v452_v11 = vld [vmem:[#allocation6 + $0x60] sm:$0xff] }
 0x231   :  { %503 = vmatpush.msra.mxu1 %v461_v4  ;;  %486 = vmatpush.msra.mxu0 %v454_v9  ;;  %v522_v4 = vld [vmem:[#allocation7 + $0x10] sm:$0xff]  ;;  %v536_v9 = vld [vmem:[#allocation7 + $0x80] sm:$0xff] }
 0x233   :  { %504 = vmatpush.msra.mxu1 %v459_v6  ;;  %487 = vmatpush.msra.mxu0 %v452_v11  ;;  %v521_v6 = vld [vmem:[#allocation7 + $0x8] sm:$0xff] }
 0x236   :  { %v662_v13 = vpop.eup %661 }
 0x237   :  { %v263_v14 = vsel %vm256_vm1, %v662_v13, 0.0 }
 0x238   :  { %264 = vadd.xlane.f32.xlu0 %v263_v14  ;;  %v451_v14 = vld [vmem:[#allocation6 + $0x58] sm:$0xff] }
 0x248   :  { %331 = vrot.lane.b32.xlu2 %v226_v12, %s785_s0  ;;  %v453_v12 = vld [vmem:[#allocation6 + $0x68] sm:$0xff] }
 0x2a3   :  { %v327_v15 = vpop.xlane.xlu2 %326 }
 0x2a4   :  { %663 = vrcp.f32 %v327_v15  ;;  %v448_v15 = vld [vmem:[#allocation6 + $0x40] sm:$0xff] }
 0x2aa   :  { %v664_v16 = vpop.eup %663 }
 0x2ab   :  { %v332_v17 = vpop.permute.xlu2 %331  ;;  %v265_v18 = vpop.xlane.xlu0 %264  ;;  %v329_v19 = vmul.f32 %v664_v16, %v660_v8  ;;  %v457_v8 = vld [vmem:[#allocation6 + $0x88] sm:$0xff] }
 0x2ac   :  { %665 = vrcp.f32 %v265_v18  ;;  %352 = vmatpush.msra.mxu3 %v332_v17  ;;  %505 = vmatpush.msra.mxu1 %v457_v8  ;;  %v449_v16 = vld [vmem:[#allocation6 + $0x48] sm:$0xff]  ;;  %v446_v17 = vld [vmem:[#allocation6 + $0x30] sm:$0xff]  ;;  %v447_v18 = vld [vmem:[#allocation6 + $0x38] sm:$0xff] }
 0x2ad   :  { %640 = vmatmul.msk.f32.vlgmr.msra.gmra.mxu3 %vm256_vm1, %v329_v19  ;;  %667 = vrcp.f32 %v786_v47  ;;  %v444_v19 = vld [vmem:[#allocation6 + $0x20] sm:$0xff]  ;;  %v543_v47 = vld [vmem:[#allocation7 + $0xb8] sm:$0xff] }
 0x2ae   :  { %382 = vmatpush.msrb.mxu3 %v377_v22  ;;  %506 = vmatpush.msra.mxu1 %v455_v10  ;;  %v443_v22 = vld [vmem:[#allocation6 + $0x18] sm:$0xff]  ;;  %v520_v8 = vld [vmem:[#allocation7] sm:$0xff] }
 0x2b0   :  { %383 = vmatpush.msrb.mxu3 %v376_v23  ;;  %507 = vmatpush.msra.mxu1 %v453_v12  ;;  %v440_v23 = vld [vmem:[#allocation6] sm:$0xff] }
 0x2b2   :  { %v666_v20 = vpop.eup %665  ;;  %384 = vmatpush.msrb.mxu3 %v375_v24  ;;  %508 = vmatpush.msra.mxu1 %v451_v14  ;;  %v441_v24 = vld [vmem:[#allocation6 + $0x8] sm:$0xff] }
 0x2b3   :  { %v267_v21 = vmul.f32 %v666_v20, %v662_v13  ;;  %v668_v52 = vpop.eup %667  ;;  %v450_v13 = vld [vmem:[#allocation6 + $0x50] sm:$0xff]  ;;  %v445_v20 = vld [vmem:[#allocation6 + $0x28] sm:$0xff] }
 0x2b4   :  { %385 = vmatpush.msrb.mxu3 %v374_v25  ;;  %v408_v53 = vmul.f32 128.0, %v668_v52  ;;  %vm412_vm2 = vweird.f32 %v668_v52  ;;  %488 = vmatpush.msra.mxu0 %v450_v13  ;;  %v535_v25 = vld [vmem:[#allocation7 + $0x78] sm:$0xff] }
 0x2b5   :  { %637 = vmatmul.msk.f32.vlgmr.msrb.gmra.mxu2 %vm256_vm1, %v267_v21  ;;  %509 = vmatpush.msra.mxu1 %v449_v16  ;;  %v442_v21 = vld [vmem:[#allocation6 + $0x10] sm:$0xff] }
 0x2b6   :  { %386 = vmatpush.msrb.mxu3 %v373_v26  ;;  %v409_v54 = vsub.f32 1.0, %v408_v53  ;;  %489 = vmatpush.msra.mxu0 %v448_v15  ;;  %v551_v26 = vld [vmem:[#allocation7 + $0xf8] sm:$0xff]  ;;  %v541_v53 = vld [vmem:[#allocation7 + $0xa8] sm:$0xff] }
 0x2b7   :  { %510 = vmatpush.msra.mxu1 %v447_v18  ;;  %556 = vmatpush.msra.mxu2 %v535_v25  ;;  %v656_v18 = vld [vmem:[%s953_s9] ss:$0 sm:$0xff] }
 0x2b8   :  { %387 = vmatpush.msrb.mxu3 %v372_v27  ;;  %v410_v55 = vmul.f32 %v668_v52, %v409_v54  ;;  %490 = vmatpush.msra.mxu0 %v446_v17  ;;  %v534_v27 = vld [vmem:[#allocation7 + $0x70] sm:$0xff] }
 0x2b9   :  { %511 = vmatpush.msra.mxu1 %v445_v20  ;;  %557 = vmatpush.msra.mxu2 %v534_v27 }
 0x2ba   :  { %388 = vmatpush.msrb.mxu3 %v371_v28  ;;  %v411_v56 = vadd.f32 %v668_v52, %v410_v55  ;;  %491 = vmatpush.msra.mxu0 %v444_v19  ;;  %v550_v28 = vld [vmem:[#allocation7 + $0xf0] sm:$0xff]  ;;  %v524_v55 = vld [vmem:[#allocation7 + $0x20] sm:$0xff] }
 0x2bb   :  { %512 = vmatpush.msra.mxu1 %v443_v22 }
 0x2bc   :  { %389 = vmatpush.msrb.mxu3 %v370_v29  ;;  %v912_v57 = vsel %vm412_vm2, %v668_v52, %v411_v56  ;;  %492 = vmatpush.msra.mxu0 %v442_v21  ;;  %v533_v29 = vld [vmem:[#allocation7 + $0x68] sm:$0xff]  ;;  %v540_v56 = vld [vmem:[#allocation7 + $0xa0] sm:$0xff] }
 0x2bd   :  { %513 = vmatpush.msra.mxu1 %v441_v24  ;;  %558 = vmatpush.msra.mxu2 %v533_v29  ;;  %v525_v52 = vld [vmem:[#allocation7 + $0x28] sm:$0xff] }
 0x2be   :  { %390 = vmatpush.msrb.mxu3 %v369_v30  ;;  %493 = vmatpush.msra.mxu0 %v440_v23  ;;  %v549_v30 = vld [vmem:[#allocation7 + $0xe8] sm:$0xff] }
 0x2c0   :  { %391 = vmatpush.msrb.mxu3 %v368_v32 }
 0x2c2   :  { %392 = vmatpush.msrb.mxu3 %v367_v33 }
 0x2c4   :  { %393 = vmatpush.msrb.mxu3 %v366_v34  ;;  %v532_v34 = vld [vmem:[#allocation7 + $0x60] sm:$0xff] }
 0x2c5   :  { %559 = vmatpush.msra.mxu2 %v532_v34 }
 0x2c6   :  { %394 = vmatpush.msrb.mxu3 %v365_v35  ;;  %v548_v35 = vld [vmem:[#allocation7 + $0xe0] sm:$0xff] }
 0x2c8   :  { %395 = vmatpush.msrb.mxu3 %v364_v37  ;;  %v531_v37 = vld [vmem:[#allocation7 + $0x58] sm:$0xff] }
 0x2c9   :  { %560 = vmatpush.msra.mxu2 %v531_v37 }
 0x2ca   :  { %396 = vmatpush.msrb.mxu3 %v363_v38  ;;  %v547_v38 = vld [vmem:[#allocation7 + $0xd8] sm:$0xff] }
 0x2cc   :  { %397 = vmatpush.msrb.mxu3 %v362_v39  ;;  %v530_v39 = vld [vmem:[#allocation7 + $0x50] sm:$0xff] }
 0x2cd   :  { %561 = vmatpush.msra.mxu2 %v530_v39 }
 0x2ce   :  { %576 = vmatpush.msra.mxu3 %v551_v26 }
 0x2d0   :  { %577 = vmatpush.msra.mxu3 %v550_v28 }
 0x2d2   :  { %578 = vmatpush.msra.mxu3 %v549_v30 }
 0x2d4   :  { %579 = vmatpush.msra.mxu3 %v548_v35 }
 0x2d6   :  { %580 = vmatpush.msra.mxu3 %v547_v38  ;;  %v657_v38 = vld [vmem:[%s956_s12] ss:$0 sm:$0xff] }
 0x330   :  { %v354_v36 = vpop.f32.mrf.mxu3 }
 0x331   :  { %358 = vrot.lane.b32.xlu1 %v354_v36, %s785_s0 }
 0x338   :  { %v288_v40 = vpop.f32.mrf.mxu2 }
 0x3a3   :  { %v359_v41 = vpop.permute.xlu1 %358 }
 0x3a4   :  { %v361_v42 = vsel %vm229_vm0, %v288_v40, %v359_v41  ;;  %v546_v40 = vld [vmem:[#allocation7 + $0xd0] sm:$0xff]  ;;  %v529_v41 = vld [vmem:[#allocation7 + $0x48] sm:$0xff] }
 0x3a5   :  { %398 = vmatmul.f32.vlgmr.msrb.gmra.mxu3 %v361_v42  ;;  %v545_v42 = vld [vmem:[#allocation7 + $0xc8] sm:$0xff]  ;;  %562 = vmatpush.msra.mxu2 %v529_v41 }
 0x3a6   :  { %581 = vmatpush.msra.mxu3 %v546_v40 }
 0x3a8   :  { %582 = vmatpush.msra.mxu3 %v545_v42 }
 0x428   :  { %v399_v44 = vpop.f32.mrf.mxu3 }
 0x429   :  { %v400_v45 = vadd.f32 %v653_v43, %v399_v44  ;;  %v528_v43 = vld [vmem:[#allocation7 + $0x40] sm:$0xff] }
 0x42a   :  { %v544_v44 = vld [vmem:[#allocation7 + $0xc0] sm:$0xff]  ;;  %563 = vmatpush.msra.mxu2 %v528_v43 }
 0x42b   :  { %v402_v46 = vadd.f32 %v400_v45, %v877_v31  ;;  %583 = vmatpush.msra.mxu3 %v544_v44 }
 0x42d   :  { %405 = vadd.xlane.f32.xlu2 %v402_v46  ;;  %584 = vmatpush.msra.mxu3 %v543_v47 }
 0x42f   :  { %585 = vmatpush.msra.mxu3 %v542_v50 }
 0x431   :  { %586 = vmatpush.msra.mxu3 %v541_v53 }
 0x433   :  { %587 = vmatpush.msra.mxu3 %v540_v56 }
 0x4a0   :  { %v406_v31 = vpop.xlane.xlu2 %405 }
 0x4a1   :  { %v414_v58 = vmul.f32 %v912_v57, %v406_v31 }
 0x4a3   :  { %v915_v59 = vsub.f32 %v402_v46, %v414_v58  ;;  %v527_v46 = vld [vmem:[#allocation7 + $0x38] sm:$0xff] }
 0x4a4   :  { %564 = vmatpush.msra.mxu2 %v527_v46  ;;  %v523_v58 = vld [vmem:[#allocation7 + $0x18] sm:$0xff] }
 0x4a5   :  { %v416_v60 = vmul.f32 %v915_v59, %v915_v59 }
 0x4a6   :  { %565 = vmatpush.msra.mxu2 %v526_v49 }
 0x4a7   :  { %417 = vadd.xlane.f32.xlu1 %v416_v60  ;;  %v539_v60 = vld [vmem:[#allocation7 + $0x98] sm:$0xff] }
 0x4a8   :  { %566 = vmatpush.msra.mxu2 %v525_v52  ;;  %588 = vmatpush.msra.mxu3 %v539_v60 }
 0x4aa   :  { %567 = vmatpush.msra.mxu2 %v524_v55  ;;  %589 = vmatpush.msra.mxu3 %v538_v5 }
 0x4ac   :  { %568 = vmatpush.msra.mxu2 %v523_v58  ;;  %590 = vmatpush.msra.mxu3 %v537_v7 }
 0x4ae   :  { %569 = vmatpush.msra.mxu2 %v522_v4  ;;  %591 = vmatpush.msra.mxu3 %v536_v9 }
 0x4b0   :  { %570 = vmatpush.msra.mxu2 %v521_v6 }
 0x4b2   :  { %571 = vmatpush.msra.mxu2 %v520_v8 }
 0x51a   :  { %v418_v32 = vpop.xlane.xlu1 %417 }
 0x51b   :  { %v419_v33 = vmul.f32 %v418_v32, %v912_v57 }
 0x51d   :  { %v420_v36 = vadd.f32 1e-05, %v419_v33 }
 0x51f   :  { %669 = vrsqrt.f32 %v420_v36  ;;  %vm427_vm4 = vweird.f32 %v420_v36 }
 0x525   :  { %v670_v45 = vpop.eup %669 }
 0x526   :  { %v422_v48 = vmul.f32 %v670_v45, %v420_v36  ;;  %vm428_vm3 = vweird.f32 %v670_v45 }
 0x527   :  { %vm429_vm5 = vmor %vm427_vm4, %vm428_vm3 }
 0x528   :  { %v423_v51 = vmul.f32 %v670_v45, %v422_v48 }
 0x52a   :  { %v424_v54 = vmul.f32 0.5, %v423_v51 }
 0x52c   :  { %v425_v31 = vsub.f32 1.5, %v424_v54 }
 0x52e   :  { %v426_v61 = vmul.f32 %v670_v45, %v425_v31 }
 0x530   :  { %v430_v63 = vsel %vm429_vm5, %v670_v45, %v426_v61 }
 0x531   :  { %v431_v0 = vmul.f32 %v430_v63, %v915_v59  ;;  %v472_v59 = vld [vmem:[%s951_s7] sm:$0x3] }
 0x532   :  { %v474_v10 = vperm.slane %v472_v59, 0  ;;  %v475_v11 = vperm.slane %v472_v59, 1 }
 0x533   :  { %v435_v2 = vmul.f32 %v654_v62, %v431_v0 }
 0x535   :  { %v439_v3 = vadd.f32 %v655_v1, %v435_v2 }
 0x537   :  { %494 = vmatmul.f32.vlgmr.msra.gmra.mxu0 %v439_v3  ;;  %514 = vmatmul.f32.vlgmr.msra.gmra.mxu1 %v439_v3 }
 0x5b4   :  { %v495_v12 = vpop.f32.mrf.mxu0  ;;  %v515_v13 = vpop.f32.mrf.mxu1 }
 0x5b5   :  { %v496_v14 = vadd.f32 %v495_v12, %v474_v10  ;;  %v516_v15 = vadd.f32 %v515_v13, %v475_v11 }
 0x5b7   :  { %v518_v16 = vmax.f32 %v496_v14, 0.0  ;;  %v519_v17 = vmax.f32 %v516_v15, 0.0 }
 0x5b9   :  { %572 = vmatmul.f32.vlgmr.msra.gmra.mxu2 %v518_v16  ;;  %592 = vmatmul.f32.vlgmr.msra.gmra.mxu3 %v519_v17 }
 0x63c   :  { %v573_v19 = vpop.f32.mrf.mxu2  ;;  %v593_v21 = vpop.f32.mrf.mxu3 }
 0x63d   :  { %v574_v20 = vadd.f32 %v656_v18, %v573_v19 }
 0x63f   :  { %v594_v22 = vadd.f32 %v593_v21, %v574_v20 }
 0x641   :  { %v596_v23 = vadd.f32 %v594_v22, %v439_v3 }
 0x643   :  { %599 = vadd.xlane.f32.xlu0 %v596_v23 }
 0x6b6   :  { %v600_v24 = vpop.xlane.xlu0 %599 }
 0x6b7   :  { %v601_v25 = vmul.f32 %v600_v24, %v912_v57 }
 0x6b9   :  { %v602_v26 = vsub.f32 %v596_v23, %v601_v25 }
 0x6bb   :  { %v603_v27 = vmul.f32 %v602_v26, %v602_v26 }
 0x6bd   :  { %604 = vadd.xlane.f32.xlu0 %v603_v27 }
 0x730   :  { %v605_v28 = vpop.xlane.xlu0 %604 }
 0x731   :  { %v606_v29 = vmul.f32 %v605_v28, %v912_v57  ;;  %v658_v57 = vld [vmem:[%s957_s13] ss:$0 sm:$0xff] }
 0x733   :  { %v607_v30 = vadd.f32 1e-05, %v606_v29 }
 0x735   :  { %671 = vrsqrt.f32 %v607_v30  ;;  %vm614_vm7 = vweird.f32 %v607_v30 }
 0x73b   :  { %v672_v32 = vpop.eup %671 }
 0x73c   :  { %v609_v33 = vmul.f32 %v672_v32, %v607_v30  ;;  %vm615_vm6 = vweird.f32 %v672_v32 }
 0x73d   :  { %vm616_vm8 = vmor %vm614_vm7, %vm615_vm6 }
 0x73e   :  { %v610_v34 = vmul.f32 %v672_v32, %v609_v33 }
 0x740   :  { %v611_v35 = vmul.f32 0.5, %v610_v34 }
 0x742   :  { %v612_v36 = vsub.f32 1.5, %v611_v35 }
 0x744   :  { %v613_v37 = vmul.f32 %v672_v32, %v612_v36 }
 0x746   :  { %v617_v39 = vsel %vm616_vm8, %v672_v32, %v613_v37 }
 0x747   :  { %v618_v40 = vmul.f32 %v617_v39, %v602_v26 }
 0x749   :  { %v622_v41 = vmul.f32 %v657_v38, %v618_v40 }
 0x74b   :  { %v626_v42 = vadd.f32 %v658_v57, %v622_v41 }
 0x74d   :  { %627 = vst [vmem:[%s958_s14] sm:$0xff] %v626_v42 }
 0x74e   :  { %632 = vsyncpa [#allocation3], 1 }
 0x74f   :  { %633 = vsyncpa [#allocation5], 1 }
 0x750   :  { %634 = vsyncpa [#allocation8], 1 }

// kernel: lxmert_encoder_wrapper_forward.12
= control target key start
LH: loop header
LB: loop body
LE: loop exit
PB: predicated region body
PF: predicated region fallthrough
CT: control target
= control target key end

     0   :  { %19 = vsyncpa [#allocation3], 0  ;;  %s988_s0 = inlined_call_operand.vmem [shape: f32[8,128], index: 0, kind: input, shape index: {}]   ;;  %s989_s1 = inlined_call_operand.vmem [shape: f32[8,8], index: 1, kind: input, shape index: {}]   ;;  %s990_s2 = inlined_call_operand.hbm [shape: f32[128,384], index: 2, kind: input, shape index: {}]   ;;  %s991_s3 = inlined_call_operand.vmem [shape: f32[1,384], index: 3, kind: input, shape index: {}]   ;;  %s992_s4 = inlined_call_operand.hbm [shape: f32[128,128], index: 4, kind: input, shape index: {}]   ;;  %s993_s5 = inlined_call_operand.vmem [shape: f32[1,128], index: 5, kind: input, shape index: {}]   ;;  %s994_s6 = inlined_call_operand.vmem [shape: f32[128,256], index: 6, kind: input, shape index: {}]   ;;  %s995_s7 = inlined_call_operand.vmem [shape: f32[1,256], index: 7, kind: input, shape index: {}]   ;;  %s996_s8 = inlined_call_operand.hbm [shape: f32[256,128], index: 8, kind: input, shape index: {}]   ;;  %s997_s9 = inlined_call_operand.vmem [shape: f32[1,128], index: 9, kind: input, shape index: {}]   ;;  %s998_s10 = inlined_call_operand.vmem [shape: f32[1,128], index: 10, kind: input, shape index: {}]   ;;  %s999_s11 = inlined_call_operand.vmem [shape: f32[1,128], index: 11, kind: input, shape index: {}]   ;;  %s1000_s12 = inlined_call_operand.vmem [shape: f32[1,128], index: 12, kind: input, shape index: {}]   ;;  %s1001_s13 = inlined_call_operand.vmem [shape: f32[1,128], index: 13, kind: input, shape index: {}]   ;;  %s1002_s14 = inlined_call_operand.vmem [shape: f32[8,128], index: 14, kind: output, shape index: {}]  }
   0x1   :  { %20 = vsyncpa [#allocation5], 0  ;;  %s44_s15 = sshll.u32 %s992_s4, 4  ;;  %s729_s16 = smov [#allocation4]   ;;  %s45_s15 = int_to_ptr.hbm [resolvable:$true] %s44_s15 }
   0x2   :  { %s46_s17 = sshll.u32 %s729_s16, 4  ;;  %s29_s20 = sshll.u32 %s990_s2, 4  ;;  %s47_s17 = int_to_ptr.vmem [resolvable:$true] %s46_s17  ;;  %s30_s20 = int_to_ptr.hbm [resolvable:$true] %s29_s20 }
   0x3   :  { %s730_s21 = smov 128   ;;  %s731_s22 = smov 8  }
   0x4   :  { %52 = dma.hbm_to_vmem [thread:$0]  %s45_s15, 2048, %s47_s17, [#allocation5], %s730_s21, %s730_s21, %s731_s22  }
   0x5   :  { %s732_s23 = smov [#allocation2]   ;;  %s733_s25 = smov 384  }
   0x6   :  { %s31_s24 = sshll.u32 %s732_s23, 4  ;;  %s734_s26 = smov 24   ;;  %s32_s24 = int_to_ptr.vmem [resolvable:$true] %s31_s24 }
   0x7   :  { %37 = dma.hbm_to_vmem [thread:$0]  %s30_s20, 6144, %s32_s24, [#allocation3], %s733_s25, %s733_s25, %s734_s26  }
   0x8   :  { %s63_s28 = sshll.u32 %s996_s8, 4  ;;  %s735_s29 = smov [#allocation6]   ;;  %s64_s28 = int_to_ptr.hbm [resolvable:$true] %s63_s28 }
   0x9   :  { %s65_s30 = sshll.u32 %s735_s29, 4  ;;  %s66_s30 = int_to_ptr.vmem [resolvable:$true] %s65_s30 }
   0xa   :  { %71 = dma.hbm_to_vmem [thread:$0]  %s64_s28, 4096, %s66_s30, [#allocation5], %s730_s21, %s730_s21, %s731_s22  }
   0xb   :  { %725 = dma.done.wait [#allocation3], 6144  }
   0xc   :  { %726 = vsyncadd [#allocation3], 4294961152 }
   0xd   :  { %727 = dma.done.wait [#allocation5], 6144  }
   0xe   :  { %728 = vsyncadd [#allocation5], 4294961152  ;;  %v142_v0 = vld [vmem:[#allocation2 + $0x170] sm:$0xff]  ;;  %v139_v1 = vld [vmem:[#allocation2 + $0x158] sm:$0xff]  ;;  %vm213_vm0 = vcmask 523264   ;;  %vm240_vm1 = vcmask 64512  }
   0xf   :  { %172 = vmatpush.msra.mxu1 %v142_v0  ;;  %v141_v2 = vld [vmem:[#allocation2 + $0x168] sm:$0xff]  ;;  %v138_v3 = vld [vmem:[#allocation2 + $0x150] sm:$0xff]  ;;  %v136_v4 = vld [vmem:[#allocation2 + $0x140] sm:$0xff] }
  0x10   :  { %152 = vmatpush.msra.mxu0 %v141_v2  ;;  %v135_v5 = vld [vmem:[#allocation2 + $0x138] sm:$0xff]  ;;  %v133_v6 = vld [vmem:[#allocation2 + $0x128] sm:$0xff]  ;;  %v132_v7 = vld [vmem:[#allocation2 + $0x120] sm:$0xff] }
  0x11   :  { %173 = vmatpush.msra.mxu1 %v139_v1  ;;  %v130_v8 = vld [vmem:[#allocation2 + $0x110] sm:$0xff]  ;;  %v129_v9 = vld [vmem:[#allocation2 + $0x108] sm:$0xff]  ;;  %v127_v10 = vld [vmem:[#allocation2 + $0xf8] sm:$0xff] }
  0x12   :  { %153 = vmatpush.msra.mxu0 %v138_v3  ;;  %v126_v11 = vld [vmem:[#allocation2 + $0xf0] sm:$0xff]  ;;  %v124_v12 = vld [vmem:[#allocation2 + $0xe0] sm:$0xff]  ;;  %v123_v13 = vld [vmem:[#allocation2 + $0xd8] sm:$0xff] }
  0x13   :  { %174 = vmatpush.msra.mxu1 %v136_v4  ;;  %v121_v14 = vld [vmem:[#allocation2 + $0xc8] sm:$0xff]  ;;  %v120_v15 = vld [vmem:[#allocation2 + $0xc0] sm:$0xff]  ;;  %v118_v16 = vld [vmem:[#allocation2 + $0xb0] sm:$0xff] }
  0x14   :  { %154 = vmatpush.msra.mxu0 %v135_v5  ;;  %v117_v17 = vld [vmem:[#allocation2 + $0xa8] sm:$0xff]  ;;  %v115_v18 = vld [vmem:[#allocation2 + $0x98] sm:$0xff]  ;;  %v114_v19 = vld [vmem:[#allocation2 + $0x90] sm:$0xff] }
  0x15   :  { %175 = vmatpush.msra.mxu1 %v133_v6  ;;  %v112_v20 = vld [vmem:[#allocation2 + $0x80] sm:$0xff]  ;;  %v111_v21 = vld [vmem:[#allocation2 + $0x78] sm:$0xff]  ;;  %v109_v22 = vld [vmem:[#allocation2 + $0x68] sm:$0xff] }
  0x16   :  { %155 = vmatpush.msra.mxu0 %v132_v7  ;;  %v108_v23 = vld [vmem:[#allocation2 + $0x60] sm:$0xff]  ;;  %v106_v24 = vld [vmem:[#allocation2 + $0x50] sm:$0xff]  ;;  %v105_v25 = vld [vmem:[#allocation2 + $0x48] sm:$0xff] }
  0x17   :  { %176 = vmatpush.msra.mxu1 %v130_v8  ;;  %v103_v26 = vld [vmem:[#allocation2 + $0x38] sm:$0xff]  ;;  %v102_v27 = vld [vmem:[#allocation2 + $0x30] sm:$0xff]  ;;  %v100_v28 = vld [vmem:[#allocation2 + $0x20] sm:$0xff] }
  0x18   :  { %156 = vmatpush.msra.mxu0 %v129_v9  ;;  %v99_v29 = vld [vmem:[#allocation2 + $0x18] sm:$0xff]  ;;  %v97_v30 = vld [vmem:[#allocation2 + $0x8] sm:$0xff]  ;;  %v825_v31 = vld [vmem:[%s988_s0] sm:$0xff]  ;;  %s736_s0 = smov 64  }
  0x19   :  { %177 = vmatpush.msra.mxu1 %v127_v10  ;;  %v96_v32 = vld [vmem:[#allocation2] sm:$0xff]  ;;  %v143_v41 = vld [vmem:[#allocation2 + $0x178] sm:$0xff]  ;;  %v137_v45 = vld [vmem:[#allocation2 + $0x148] sm:$0xff] }
  0x1a   :  { %157 = vmatpush.msra.mxu0 %v126_v11  ;;  %v832_v33 = vld [vmem:[%s991_s3] sm:$0x7]  ;;  %192 = vmatpush.msra.mxu2 %v143_v41  ;;  %v134_v46 = vld [vmem:[#allocation2 + $0x130] sm:$0xff]  ;;  %v131_v47 = vld [vmem:[#allocation2 + $0x118] sm:$0xff] }
  0x1b   :  { %178 = vmatpush.msra.mxu1 %v124_v12  ;;  %v147_v34 = vperm.slane %v832_v33, 1  ;;  %v146_v35 = vperm.slane %v832_v33, 0  ;;  %v140_v44 = vld [vmem:[#allocation2 + $0x160] sm:$0xff]  ;;  %v125_v49 = vld [vmem:[#allocation2 + $0xe8] sm:$0xff]  ;;  %v122_v50 = vld [vmem:[#allocation2 + $0xd0] sm:$0xff]  ;;  %v148_v6 = vperm.slane %v832_v33, 2 }
  0x1c   :  { %158 = vmatpush.msra.mxu0 %v123_v13  ;;  %193 = vmatpush.msra.mxu2 %v140_v44  ;;  %v128_v48 = vld [vmem:[#allocation2 + $0x100] sm:$0xff]  ;;  %v119_v51 = vld [vmem:[#allocation2 + $0xb8] sm:$0xff]  ;;  %v113_v53 = vld [vmem:[#allocation2 + $0x88] sm:$0xff] }
  0x1d   :  { %179 = vmatpush.msra.mxu1 %v121_v14  ;;  %v116_v52 = vld [vmem:[#allocation2 + $0xa0] sm:$0xff]  ;;  %v110_v54 = vld [vmem:[#allocation2 + $0x70] sm:$0xff]  ;;  %v107_v55 = vld [vmem:[#allocation2 + $0x58] sm:$0xff] }
  0x1e   :  { %159 = vmatpush.msra.mxu0 %v120_v15  ;;  %194 = vmatpush.msra.mxu2 %v137_v45  ;;  %v104_v56 = vld [vmem:[#allocation2 + $0x40] sm:$0xff]  ;;  %v101_v57 = vld [vmem:[#allocation2 + $0x28] sm:$0xff]  ;;  %v98_v58 = vld [vmem:[#allocation2 + $0x10] sm:$0xff] }
  0x1f   :  { %180 = vmatpush.msra.mxu1 %v118_v16  ;;  %v95_v59 = vld [vmem:[%s989_s1] sm:$0xff]  ;;  %v351_v33 = vld [vmem:[#allocation4 + $0x28] sm:$0xff] }
  0x20   :  { %160 = vmatpush.msra.mxu0 %v117_v17  ;;  %195 = vmatpush.msra.mxu2 %v134_v46 }
  0x21   :  { %181 = vmatpush.msra.mxu1 %v115_v18 }
  0x22   :  { %161 = vmatpush.msra.mxu0 %v114_v19  ;;  %196 = vmatpush.msra.mxu2 %v131_v47  ;;  %v737_v47 = vmov 128.0  }
  0x23   :  { %182 = vmatpush.msra.mxu1 %v112_v20 }
  0x24   :  { %162 = vmatpush.msra.mxu0 %v111_v21  ;;  %197 = vmatpush.msra.mxu2 %v128_v48  ;;  %v454_v48 = vld [vmem:[%s994_s6 + $0xf0] sm:$0xff] }
  0x25   :  { %183 = vmatpush.msra.mxu1 %v109_v22  ;;  %v361_v22 = vld [vmem:[#allocation4 + $0x78] sm:$0xff] }
  0x26   :  { %163 = vmatpush.msra.mxu0 %v108_v23  ;;  %198 = vmatpush.msra.mxu2 %v125_v49  ;;  %v360_v23 = vld [vmem:[#allocation4 + $0x70] sm:$0xff]  ;;  %v455_v49 = vld [vmem:[%s994_s6 + $0xf8] sm:$0xff] }
  0x27   :  { %184 = vmatpush.msra.mxu1 %v106_v24  ;;  %v359_v24 = vld [vmem:[#allocation4 + $0x68] sm:$0xff] }
  0x28   :  { %164 = vmatpush.msra.mxu0 %v105_v25  ;;  %199 = vmatpush.msra.mxu2 %v122_v50  ;;  %v358_v25 = vld [vmem:[#allocation4 + $0x60] sm:$0xff] }
  0x29   :  { %185 = vmatpush.msra.mxu1 %v103_v26  ;;  %v357_v26 = vld [vmem:[#allocation4 + $0x58] sm:$0xff]  ;;  %v452_v50 = vld [vmem:[%s994_s6 + $0xe0] sm:$0xff] }
  0x2a   :  { %165 = vmatpush.msra.mxu0 %v102_v27  ;;  %200 = vmatpush.msra.mxu2 %v119_v51  ;;  %v356_v27 = vld [vmem:[#allocation4 + $0x50] sm:$0xff] }
  0x2b   :  { %186 = vmatpush.msra.mxu1 %v100_v28  ;;  %v355_v28 = vld [vmem:[#allocation4 + $0x48] sm:$0xff] }
  0x2c   :  { %166 = vmatpush.msra.mxu0 %v99_v29  ;;  %201 = vmatpush.msra.mxu2 %v116_v52  ;;  %v354_v29 = vld [vmem:[#allocation4 + $0x40] sm:$0xff] }
  0x2d   :  { %187 = vmatpush.msra.mxu1 %v97_v30  ;;  %v353_v30 = vld [vmem:[#allocation4 + $0x38] sm:$0xff] }
  0x2e   :  { %188 = vmatmul.f32.vlgmr.msra.gmra.mxu1 %v825_v31  ;;  %167 = vmatpush.msra.mxu0 %v96_v32  ;;  %v352_v32 = vld [vmem:[#allocation4 + $0x30] sm:$0xff] }
  0x2f   :  { %168 = vmatmul.f32.vlgmr.msra.gmra.mxu0 %v825_v31  ;;  %202 = vmatpush.msra.mxu2 %v113_v53 }
  0x31   :  { %203 = vmatpush.msra.mxu2 %v110_v54 }
  0x33   :  { %204 = vmatpush.msra.mxu2 %v107_v55 }
  0x35   :  { %205 = vmatpush.msra.mxu2 %v104_v56 }
  0x37   :  { %206 = vmatpush.msra.mxu2 %v101_v57 }
  0x39   :  { %207 = vmatpush.msra.mxu2 %v98_v58 }
  0x3a   :  { %208 = vmatmul.f32.vlgmr.msra.gmra.mxu2 %v825_v31 }
  0xab   :  { %v189_v36 = vpop.f32.mrf.mxu1 }
  0xac   :  { %v190_v37 = vadd.f32 %v189_v36, %v147_v34  ;;  %v169_v38 = vpop.f32.mrf.mxu0  ;;  %v350_v34 = vld [vmem:[#allocation4 + $0x20] sm:$0xff] }
  0xad   :  { %v170_v39 = vadd.f32 %v169_v38, %v146_v35  ;;  %v349_v35 = vld [vmem:[#allocation4 + $0x18] sm:$0xff]  ;;  %v347_v38 = vld [vmem:[#allocation4 + $0x8] sm:$0xff] }
  0xae   :  { %277 = vrot.lane.b32.xlu0 %v190_v37, %s736_s0  ;;  %618 = vmatpush.xpose.msk.msrb.mxu0 %vm213_vm0, %v190_v37  ;;  %v348_v37 = vld [vmem:[#allocation4 + $0x10] sm:$0xff] }
  0xaf   :  { %v212_v40 = vmul.f32 0.125, %v170_v39  ;;  %v346_v39 = vld [vmem:[#allocation4] sm:$0xff] }
  0xb1   :  { %619 = vmatmul.msk.f32.vlgmr.msrb.gmra.mxu0 %vm213_vm0, %v212_v40 }
  0xb2   :  { %462 = vmatpush.msra.mxu0 %v454_v48 }
  0xb4   :  { %463 = vmatpush.msra.mxu0 %v452_v50  ;;  %v526_v50 = vld [vmem:[#allocation6 + $0xb0] sm:$0xff] }
  0xb6   :  { %275 = vrot.lane.b32.xlu0 %v212_v40, %s736_s0 }
  0xbd   :  { %v209_v10 = vpop.f32.mrf.mxu2 }
  0xbe   :  { %v210_v12 = vadd.f32 %v209_v10, %v148_v6  ;;  %v443_v6 = vld [vmem:[%s994_s6 + $0x98] sm:$0xff] }
  0xbf   :  { %v439_v10 = vld [vmem:[%s994_s6 + $0x78] sm:$0xff] }
  0xc0   :  { %270 = vmatpush.msrb.mxu2 %v210_v12 }
 0x120   :  { %v278_v42 = vpop.permute.xlu0 %277 }
 0x121   :  { %621 = vmatpush.xpose.msk.msrb.mxu1 %vm213_vm0, %v278_v42 }
 0x125   :  { %482 = vmatpush.msra.mxu1 %v455_v49  ;;  %v510_v49 = vld [vmem:[#allocation6 + $0x30] sm:$0xff] }
 0x128   :  { %v276_v43 = vpop.permute.xlu0 %275 }
 0x129   :  { %622 = vmatmul.msk.f32.vlgmr.msrb.gmra.mxu1 %vm213_vm0, %v276_v43  ;;  %v633_v43 = vld [vmem:[%s993_s5] ss:$0 sm:$0xff] }
 0x12e   :  { %v237_v63 = vpop.f32.mrf.mxu0 }
 0x12f   :  { %v238_v0 = vadd.f32 %v237_v63, %v95_v59  ;;  %v448_v63 = vld [vmem:[%s994_s6 + $0xc0] sm:$0xff] }
 0x131   :  { %v241_v1 = vsel %vm240_vm1, %v238_v0, -inf }
 0x1a6   :  { %v300_v60 = vpop.f32.mrf.mxu1 }
 0x1a7   :  { %v301_v61 = vadd.f32 %v300_v60, %v95_v59 }
 0x1a9   :  { %v303_v62 = vsel %vm240_vm1, %v301_v61, -inf }
 0x1aa   :  { %304 = vmax.xlane.f32.xlu1 %v303_v62  ;;  %v451_v62 = vld [vmem:[%s994_s6 + $0xd8] sm:$0xff] }
 0x1b2   :  { %242 = vmax.xlane.f32.xlu1 %v241_v1  ;;  %v446_v1 = vld [vmem:[%s994_s6 + $0xb0] sm:$0xff] }
 0x21d   :  { %v305_v2 = vpop.xlane.xlu1 %304 }
 0x21e   :  { %v306_v3 = vsub.f32 %v301_v61, %v305_v2  ;;  %v450_v61 = vld [vmem:[%s994_s6 + $0xd0] sm:$0xff]  ;;  %v447_v2 = vld [vmem:[%s994_s6 + $0xb8] sm:$0xff] }
 0x21f   :  { %464 = vmatpush.msra.mxu0 %v450_v61 }
 0x220   :  { %v307_v4 = vmul.f32 1.442695, %v306_v3  ;;  %v444_v3 = vld [vmem:[%s994_s6 + $0xa0] sm:$0xff] }
 0x221   :  { %465 = vmatpush.msra.mxu0 %v448_v63 }
 0x222   :  { %639 = vpow2.f32 %v307_v4  ;;  %v445_v4 = vld [vmem:[%s994_s6 + $0xa8] sm:$0xff] }
 0x223   :  { %466 = vmatpush.msra.mxu0 %v446_v1  ;;  %v635_v1 = vld [vmem:[%s999_s11] ss:$0 sm:$0xff] }
 0x225   :  { %v243_v5 = vpop.xlane.xlu1 %242  ;;  %467 = vmatpush.msra.mxu0 %v444_v3 }
 0x226   :  { %v244_v7 = vsub.f32 %v238_v0, %v243_v5  ;;  %v449_v0 = vld [vmem:[%s994_s6 + $0xc8] sm:$0xff]  ;;  %v442_v5 = vld [vmem:[%s994_s6 + $0x90] sm:$0xff] }
 0x227   :  { %468 = vmatpush.msra.mxu0 %v442_v5  ;;  %v522_v5 = vld [vmem:[#allocation6 + $0x90] sm:$0xff] }
 0x228   :  { %v640_v8 = vpop.eup %639  ;;  %v245_v9 = vmul.f32 1.442695, %v244_v7  ;;  %v440_v7 = vld [vmem:[%s994_s6 + $0x80] sm:$0xff] }
 0x229   :  { %v309_v11 = vsel %vm240_vm1, %v640_v8, 0.0  ;;  %469 = vmatpush.msra.mxu0 %v440_v7  ;;  %v521_v7 = vld [vmem:[#allocation6 + $0x88] sm:$0xff] }
 0x22a   :  { %641 = vpow2.f32 %v245_v9  ;;  %310 = vadd.xlane.f32.xlu2 %v309_v11  ;;  %v438_v9 = vld [vmem:[%s994_s6 + $0x70] sm:$0xff]  ;;  %v436_v11 = vld [vmem:[%s994_s6 + $0x60] sm:$0xff] }
 0x22b   :  { %470 = vmatpush.msra.mxu0 %v438_v9  ;;  %v520_v9 = vld [vmem:[#allocation6 + $0x80] sm:$0xff] }
 0x22d   :  { %471 = vmatpush.msra.mxu0 %v436_v11 }
 0x230   :  { %v642_v13 = vpop.eup %641 }
 0x231   :  { %v247_v14 = vsel %vm240_vm1, %v642_v13, 0.0 }
 0x232   :  { %248 = vadd.xlane.f32.xlu0 %v247_v14  ;;  %v435_v14 = vld [vmem:[%s994_s6 + $0x58] sm:$0xff] }
 0x242   :  { %315 = vrot.lane.b32.xlu2 %v210_v12, %s736_s0  ;;  %v437_v12 = vld [vmem:[%s994_s6 + $0x68] sm:$0xff] }
 0x29d   :  { %v311_v15 = vpop.xlane.xlu2 %310 }
 0x29e   :  { %643 = vrcp.f32 %v311_v15  ;;  %v432_v15 = vld [vmem:[%s994_s6 + $0x40] sm:$0xff] }
 0x2a4   :  { %v644_v16 = vpop.eup %643 }
 0x2a5   :  { %v316_v17 = vpop.permute.xlu2 %315  ;;  %v249_v18 = vpop.xlane.xlu0 %248  ;;  %v313_v19 = vmul.f32 %v644_v16, %v640_v8  ;;  %v441_v8 = vld [vmem:[%s994_s6 + $0x88] sm:$0xff] }
 0x2a6   :  { %645 = vrcp.f32 %v249_v18  ;;  %336 = vmatpush.msra.mxu3 %v316_v17  ;;  %v433_v16 = vld [vmem:[%s994_s6 + $0x48] sm:$0xff]  ;;  %v430_v17 = vld [vmem:[%s994_s6 + $0x30] sm:$0xff]  ;;  %v431_v18 = vld [vmem:[%s994_s6 + $0x38] sm:$0xff] }
 0x2a7   :  { %623 = vmatmul.msk.f32.vlgmr.msra.gmra.mxu3 %vm240_vm1, %v313_v19  ;;  %647 = vrcp.f32 %v737_v47  ;;  %v428_v19 = vld [vmem:[%s994_s6 + $0x20] sm:$0xff]  ;;  %v527_v47 = vld [vmem:[#allocation6 + $0xb8] sm:$0xff] }
 0x2a8   :  { %366 = vmatpush.msrb.mxu3 %v361_v22  ;;  %v427_v22 = vld [vmem:[%s994_s6 + $0x18] sm:$0xff] }
 0x2aa   :  { %367 = vmatpush.msrb.mxu3 %v360_v23  ;;  %v424_v23 = vld [vmem:[%s994_s6] sm:$0xff] }
 0x2ac   :  { %v646_v20 = vpop.eup %645  ;;  %368 = vmatpush.msrb.mxu3 %v359_v24  ;;  %v425_v24 = vld [vmem:[%s994_s6 + $0x8] sm:$0xff] }
 0x2ad   :  { %v251_v21 = vmul.f32 %v646_v20, %v642_v13  ;;  %v648_v51 = vpop.eup %647  ;;  %v434_v13 = vld [vmem:[%s994_s6 + $0x50] sm:$0xff]  ;;  %v429_v20 = vld [vmem:[%s994_s6 + $0x28] sm:$0xff] }
 0x2ae   :  { %369 = vmatpush.msrb.mxu3 %v358_v25  ;;  %v392_v52 = vmul.f32 128.0, %v648_v51  ;;  %vm396_vm2 = vweird.f32 %v648_v51  ;;  %472 = vmatpush.msra.mxu0 %v434_v13  ;;  %v519_v25 = vld [vmem:[#allocation6 + $0x78] sm:$0xff] }
 0x2af   :  { %620 = vmatmul.msk.f32.vlgmr.msrb.gmra.mxu2 %vm240_vm1, %v251_v21  ;;  %v426_v21 = vld [vmem:[%s994_s6 + $0x10] sm:$0xff] }
 0x2b0   :  { %370 = vmatpush.msrb.mxu3 %v357_v26  ;;  %v393_v53 = vsub.f32 1.0, %v392_v52  ;;  %473 = vmatpush.msra.mxu0 %v432_v15  ;;  %v535_v26 = vld [vmem:[#allocation6 + $0xf8] sm:$0xff]  ;;  %v525_v52 = vld [vmem:[#allocation6 + $0xa8] sm:$0xff] }
 0x2b1   :  { %540 = vmatpush.msra.mxu2 %v519_v25 }
 0x2b2   :  { %371 = vmatpush.msrb.mxu3 %v356_v27  ;;  %v394_v54 = vmul.f32 %v648_v51, %v393_v53  ;;  %474 = vmatpush.msra.mxu0 %v430_v17  ;;  %v518_v27 = vld [vmem:[#allocation6 + $0x70] sm:$0xff] }
 0x2b3   :  { %541 = vmatpush.msra.mxu2 %v518_v27 }
 0x2b4   :  { %372 = vmatpush.msrb.mxu3 %v355_v28  ;;  %v395_v55 = vadd.f32 %v648_v51, %v394_v54  ;;  %475 = vmatpush.msra.mxu0 %v428_v19  ;;  %v534_v28 = vld [vmem:[#allocation6 + $0xf0] sm:$0xff]  ;;  %v508_v54 = vld [vmem:[#allocation6 + $0x20] sm:$0xff] }
 0x2b6   :  { %373 = vmatpush.msrb.mxu3 %v354_v29  ;;  %v872_v56 = vsel %vm396_vm2, %v648_v51, %v395_v55  ;;  %476 = vmatpush.msra.mxu0 %v426_v21  ;;  %v517_v29 = vld [vmem:[#allocation6 + $0x68] sm:$0xff]  ;;  %v524_v55 = vld [vmem:[#allocation6 + $0xa0] sm:$0xff] }
 0x2b7   :  { %542 = vmatpush.msra.mxu2 %v517_v29  ;;  %v509_v51 = vld [vmem:[#allocation6 + $0x28] sm:$0xff] }
 0x2b8   :  { %374 = vmatpush.msrb.mxu3 %v353_v30  ;;  %477 = vmatpush.msra.mxu0 %v424_v23  ;;  %v533_v30 = vld [vmem:[#allocation6 + $0xe8] sm:$0xff] }
 0x2ba   :  { %375 = vmatpush.msrb.mxu3 %v352_v32 }
 0x2bc   :  { %376 = vmatpush.msrb.mxu3 %v351_v33 }
 0x2be   :  { %377 = vmatpush.msrb.mxu3 %v350_v34  ;;  %v516_v34 = vld [vmem:[#allocation6 + $0x60] sm:$0xff] }
 0x2bf   :  { %543 = vmatpush.msra.mxu2 %v516_v34 }
 0x2c0   :  { %378 = vmatpush.msrb.mxu3 %v349_v35  ;;  %v532_v35 = vld [vmem:[#allocation6 + $0xe0] sm:$0xff] }
 0x2c2   :  { %379 = vmatpush.msrb.mxu3 %v348_v37  ;;  %v515_v37 = vld [vmem:[#allocation6 + $0x58] sm:$0xff] }
 0x2c3   :  { %544 = vmatpush.msra.mxu2 %v515_v37 }
 0x2c4   :  { %380 = vmatpush.msrb.mxu3 %v347_v38  ;;  %v531_v38 = vld [vmem:[#allocation6 + $0xd8] sm:$0xff] }
 0x2c6   :  { %381 = vmatpush.msrb.mxu3 %v346_v39  ;;  %v514_v39 = vld [vmem:[#allocation6 + $0x50] sm:$0xff] }
 0x2c7   :  { %545 = vmatpush.msra.mxu2 %v514_v39 }
 0x2c8   :  { %560 = vmatpush.msra.mxu3 %v535_v26 }
 0x2ca   :  { %561 = vmatpush.msra.mxu3 %v534_v28 }
 0x2cc   :  { %562 = vmatpush.msra.mxu3 %v533_v30 }
 0x2ce   :  { %563 = vmatpush.msra.mxu3 %v532_v35 }
 0x2d0   :  { %564 = vmatpush.msra.mxu3 %v531_v38  ;;  %v637_v38 = vld [vmem:[%s1000_s12] ss:$0 sm:$0xff] }
 0x32a   :  { %v338_v36 = vpop.f32.mrf.mxu3 }
 0x32b   :  { %342 = vrot.lane.b32.xlu1 %v338_v36, %s736_s0 }
 0x332   :  { %v272_v40 = vpop.f32.mrf.mxu2 }
 0x39d   :  { %v343_v41 = vpop.permute.xlu1 %342 }
 0x39e   :  { %v345_v42 = vsel %vm213_vm0, %v272_v40, %v343_v41  ;;  %v530_v40 = vld [vmem:[#allocation6 + $0xd0] sm:$0xff]  ;;  %v513_v41 = vld [vmem:[#allocation6 + $0x48] sm:$0xff] }
 0x39f   :  { %382 = vmatmul.f32.vlgmr.msrb.gmra.mxu3 %v345_v42  ;;  %v529_v42 = vld [vmem:[#allocation6 + $0xc8] sm:$0xff]  ;;  %546 = vmatpush.msra.mxu2 %v513_v41 }
 0x3a0   :  { %565 = vmatpush.msra.mxu3 %v530_v40 }
 0x3a2   :  { %566 = vmatpush.msra.mxu3 %v529_v42 }
 0x422   :  { %v383_v44 = vpop.f32.mrf.mxu3 }
 0x423   :  { %v384_v45 = vadd.f32 %v633_v43, %v383_v44  ;;  %v512_v43 = vld [vmem:[#allocation6 + $0x40] sm:$0xff] }
 0x424   :  { %v528_v44 = vld [vmem:[#allocation6 + $0xc0] sm:$0xff]  ;;  %547 = vmatpush.msra.mxu2 %v512_v43 }
 0x425   :  { %v386_v46 = vadd.f32 %v384_v45, %v825_v31  ;;  %v453_v31 = vld [vmem:[%s994_s6 + $0xe8] sm:$0xff]  ;;  %567 = vmatpush.msra.mxu3 %v528_v44 }
 0x426   :  { %483 = vmatpush.msra.mxu1 %v453_v31 }
 0x427   :  { %389 = vadd.xlane.f32.xlu2 %v386_v46  ;;  %568 = vmatpush.msra.mxu3 %v527_v47 }
 0x428   :  { %484 = vmatpush.msra.mxu1 %v451_v62  ;;  %v634_v62 = vld [vmem:[%s998_s10] ss:$0 sm:$0xff] }
 0x429   :  { %569 = vmatpush.msra.mxu3 %v526_v50 }
 0x42a   :  { %485 = vmatpush.msra.mxu1 %v449_v0 }
 0x42b   :  { %570 = vmatpush.msra.mxu3 %v525_v52 }
 0x42c   :  { %486 = vmatpush.msra.mxu1 %v447_v2 }
 0x42d   :  { %571 = vmatpush.msra.mxu3 %v524_v55 }
 0x42e   :  { %487 = vmatpush.msra.mxu1 %v445_v4  ;;  %v506_v4 = vld [vmem:[#allocation6 + $0x10] sm:$0xff] }
 0x430   :  { %488 = vmatpush.msra.mxu1 %v443_v6  ;;  %v505_v6 = vld [vmem:[#allocation6 + $0x8] sm:$0xff] }
 0x432   :  { %489 = vmatpush.msra.mxu1 %v441_v8  ;;  %v504_v8 = vld [vmem:[#allocation6] sm:$0xff] }
 0x434   :  { %490 = vmatpush.msra.mxu1 %v439_v10 }
 0x436   :  { %491 = vmatpush.msra.mxu1 %v437_v12 }
 0x438   :  { %492 = vmatpush.msra.mxu1 %v435_v14 }
 0x43a   :  { %493 = vmatpush.msra.mxu1 %v433_v16 }
 0x43c   :  { %494 = vmatpush.msra.mxu1 %v431_v18  ;;  %v636_v18 = vld [vmem:[%s997_s9] ss:$0 sm:$0xff] }
 0x43e   :  { %495 = vmatpush.msra.mxu1 %v429_v20 }
 0x440   :  { %496 = vmatpush.msra.mxu1 %v427_v22 }
 0x442   :  { %497 = vmatpush.msra.mxu1 %v425_v24 }
 0x49a   :  { %v390_v57 = vpop.xlane.xlu2 %389 }
 0x49b   :  { %v398_v58 = vmul.f32 %v872_v56, %v390_v57 }
 0x49d   :  { %v875_v59 = vsub.f32 %v386_v46, %v398_v58  ;;  %v511_v46 = vld [vmem:[#allocation6 + $0x38] sm:$0xff] }
 0x49e   :  { %548 = vmatpush.msra.mxu2 %v511_v46  ;;  %v507_v58 = vld [vmem:[#allocation6 + $0x18] sm:$0xff] }
 0x49f   :  { %v400_v60 = vmul.f32 %v875_v59, %v875_v59 }
 0x4a0   :  { %549 = vmatpush.msra.mxu2 %v510_v49 }
 0x4a1   :  { %401 = vadd.xlane.f32.xlu1 %v400_v60  ;;  %v523_v60 = vld [vmem:[#allocation6 + $0x98] sm:$0xff] }
 0x4a2   :  { %550 = vmatpush.msra.mxu2 %v509_v51  ;;  %572 = vmatpush.msra.mxu3 %v523_v60 }
 0x4a4   :  { %551 = vmatpush.msra.mxu2 %v508_v54  ;;  %573 = vmatpush.msra.mxu3 %v522_v5 }
 0x4a6   :  { %552 = vmatpush.msra.mxu2 %v507_v58  ;;  %574 = vmatpush.msra.mxu3 %v521_v7 }
 0x4a8   :  { %553 = vmatpush.msra.mxu2 %v506_v4  ;;  %575 = vmatpush.msra.mxu3 %v520_v9 }
 0x4aa   :  { %554 = vmatpush.msra.mxu2 %v505_v6 }
 0x4ac   :  { %555 = vmatpush.msra.mxu2 %v504_v8 }
 0x514   :  { %v402_v32 = vpop.xlane.xlu1 %401 }
 0x515   :  { %v403_v33 = vmul.f32 %v402_v32, %v872_v56 }
 0x517   :  { %v404_v36 = vadd.f32 1e-05, %v403_v33 }
 0x519   :  { %649 = vrsqrt.f32 %v404_v36  ;;  %vm411_vm4 = vweird.f32 %v404_v36 }
 0x51f   :  { %v650_v45 = vpop.eup %649 }
 0x520   :  { %v406_v48 = vmul.f32 %v650_v45, %v404_v36  ;;  %vm412_vm3 = vweird.f32 %v650_v45 }
 0x521   :  { %vm413_vm5 = vmor %vm411_vm4, %vm412_vm3 }
 0x522   :  { %v407_v31 = vmul.f32 %v650_v45, %v406_v48 }
 0x524   :  { %v408_v53 = vmul.f32 0.5, %v407_v31 }
 0x526   :  { %v409_v57 = vsub.f32 1.5, %v408_v53 }
 0x528   :  { %v410_v61 = vmul.f32 %v650_v45, %v409_v57 }
 0x52a   :  { %v414_v63 = vsel %vm413_vm5, %v650_v45, %v410_v61 }
 0x52b   :  { %v415_v0 = vmul.f32 %v414_v63, %v875_v59  ;;  %v456_v59 = vld [vmem:[%s995_s7] sm:$0x3] }
 0x52c   :  { %v458_v10 = vperm.slane %v456_v59, 0  ;;  %v459_v11 = vperm.slane %v456_v59, 1 }
 0x52d   :  { %v419_v2 = vmul.f32 %v634_v62, %v415_v0 }
 0x52f   :  { %v423_v3 = vadd.f32 %v635_v1, %v419_v2 }
 0x531   :  { %478 = vmatmul.f32.vlgmr.msra.gmra.mxu0 %v423_v3  ;;  %498 = vmatmul.f32.vlgmr.msra.gmra.mxu1 %v423_v3 }
 0x5ae   :  { %v479_v12 = vpop.f32.mrf.mxu0  ;;  %v499_v13 = vpop.f32.mrf.mxu1 }
 0x5af   :  { %v480_v14 = vadd.f32 %v479_v12, %v458_v10  ;;  %v500_v15 = vadd.f32 %v499_v13, %v459_v11 }
 0x5b1   :  { %v502_v16 = vmax.f32 %v480_v14, 0.0  ;;  %v503_v17 = vmax.f32 %v500_v15, 0.0 }
 0x5b3   :  { %556 = vmatmul.f32.vlgmr.msra.gmra.mxu2 %v502_v16  ;;  %576 = vmatmul.f32.vlgmr.msra.gmra.mxu3 %v503_v17 }
 0x636   :  { %v557_v19 = vpop.f32.mrf.mxu2  ;;  %v577_v21 = vpop.f32.mrf.mxu3 }
 0x637   :  { %v558_v20 = vadd.f32 %v636_v18, %v557_v19 }
 0x639   :  { %v578_v22 = vadd.f32 %v577_v21, %v558_v20 }
 0x63b   :  { %v580_v23 = vadd.f32 %v578_v22, %v423_v3 }
 0x63d   :  { %583 = vadd.xlane.f32.xlu0 %v580_v23 }
 0x6b0   :  { %v584_v24 = vpop.xlane.xlu0 %583 }
 0x6b1   :  { %v585_v25 = vmul.f32 %v584_v24, %v872_v56 }
 0x6b3   :  { %v586_v26 = vsub.f32 %v580_v23, %v585_v25 }
 0x6b5   :  { %v587_v27 = vmul.f32 %v586_v26, %v586_v26 }
 0x6b7   :  { %588 = vadd.xlane.f32.xlu0 %v587_v27 }
 0x72a   :  { %v589_v28 = vpop.xlane.xlu0 %588 }
 0x72b   :  { %v590_v29 = vmul.f32 %v589_v28, %v872_v56  ;;  %v638_v56 = vld [vmem:[%s1001_s13] ss:$0 sm:$0xff] }
 0x72d   :  { %v591_v30 = vadd.f32 1e-05, %v590_v29 }
 0x72f   :  { %651 = vrsqrt.f32 %v591_v30  ;;  %vm598_vm7 = vweird.f32 %v591_v30 }
 0x735   :  { %v652_v32 = vpop.eup %651 }
 0x736   :  { %v593_v33 = vmul.f32 %v652_v32, %v591_v30  ;;  %vm599_vm6 = vweird.f32 %v652_v32 }
 0x737   :  { %vm600_vm8 = vmor %vm598_vm7, %vm599_vm6 }
 0x738   :  { %v594_v34 = vmul.f32 %v652_v32, %v593_v33 }
 0x73a   :  { %v595_v35 = vmul.f32 0.5, %v594_v34 }
 0x73c   :  { %v596_v36 = vsub.f32 1.5, %v595_v35 }
 0x73e   :  { %v597_v37 = vmul.f32 %v652_v32, %v596_v36 }
 0x740   :  { %v601_v39 = vsel %vm600_vm8, %v652_v32, %v597_v37 }
 0x741   :  { %v602_v40 = vmul.f32 %v601_v39, %v586_v26 }
 0x743   :  { %v606_v41 = vmul.f32 %v637_v38, %v602_v40 }
 0x745   :  { %v610_v42 = vadd.f32 %v638_v56, %v606_v41 }
 0x747   :  { %611 = vst [vmem:[%s1002_s14] sm:$0xff] %v610_v42 }
 0x748   :  { %616 = vsyncpa [#allocation3], 1 }
 0x749   :  { %617 = vsyncpa [#allocation5], 1 }

// kernel: lxmert_encoder_wrapper_forward.9
= control target key start
LH: loop header
LB: loop body
LE: loop exit
PB: predicated region body
PF: predicated region fallthrough
CT: control target
= control target key end

     0   :  { %13 = vsyncpa [#allocation3], 0  ;;  %s759_s30 = smov [#allocation2]   ;;  %s760_s10 = smov 128   ;;  %s880_s0 = inlined_call_operand.vmem [shape: f32[8,2048], index: 0, kind: input, shape index: {}]   ;;  %s881_s1 = inlined_call_operand.vmem [shape: f32[8,4], index: 1, kind: input, shape index: {}]   ;;  %s882_s2 = inlined_call_operand.hbm [shape: f32[2048,128], index: 2, kind: input, shape index: {}]   ;;  %s883_s3 = inlined_call_operand.vmem [shape: f32[1,128], index: 3, kind: input, shape index: {}]   ;;  %s884_s4 = inlined_call_operand.vmem [shape: f32[4,128], index: 4, kind: input, shape index: {}]   ;;  %s885_s5 = inlined_call_operand.vmem [shape: f32[1,128], index: 5, kind: input, shape index: {}]   ;;  %s886_s6 = inlined_call_operand.vmem [shape: f32[1,128], index: 6, kind: input, shape index: {}]   ;;  %s887_s7 = inlined_call_operand.vmem [shape: f32[1,128], index: 7, kind: input, shape index: {}]   ;;  %s888_s8 = inlined_call_operand.vmem [shape: f32[8,128], index: 8, kind: output, shape index: {}]  }
   0x1   :  { %s22_s29 = sshll.u32 %s882_s2, 4  ;;  %s24_s9 = sshll.u32 %s759_s30, 4  ;;  %s23_s29 = int_to_ptr.hbm [resolvable:$true] %s22_s29  ;;  %s25_s9 = int_to_ptr.vmem [resolvable:$true] %s24_s9 }
   0x2   :  { %s761_s11 = smov 8  }
   0x3   :  { %30 = dma.hbm_to_vmem [thread:$0]  %s23_s29, 32768, %s25_s9, [#allocation3], %s760_s10, %s760_s10, %s761_s11  }
   0x4   :  { %757 = dma.done.wait [#allocation3], 32768  }
   0x5   :  { %758 = vsyncadd [#allocation3], 4294934528  ;;  %v76_v0 = vld [vmem:[#allocation2 + $0x78] sm:$0xff]  ;;  %v75_v2 = vld [vmem:[#allocation2 + $0x70] sm:$0xff]  ;;  %vm651_vm0 = vcmask 1043456   ;;  %vm647_vm1 = vcmask 31744  }
   0x6   :  { %v108_v1 = vld [vmem:[#allocation2 + $0x178] sm:$0xff]  ;;  %321 = vmatpush.msra.mxu0 %v76_v0  ;;  %v107_v4 = vld [vmem:[#allocation2 + $0x170] sm:$0xff]  ;;  %v74_v6 = vld [vmem:[#allocation2 + $0x68] sm:$0xff] }
   0x7   :  { %361 = vmatpush.msra.mxu2 %v108_v1  ;;  %v92_v3 = vld [vmem:[#allocation2 + $0xf8] sm:$0xff]  ;;  %v91_v7 = vld [vmem:[#allocation2 + $0xf0] sm:$0xff]  ;;  %v106_v8 = vld [vmem:[#allocation2 + $0x168] sm:$0xff] }
   0x8   :  { %v124_v5 = vld [vmem:[#allocation2 + $0x1f8] sm:$0xff]  ;;  %341 = vmatpush.msra.mxu1 %v92_v3  ;;  %322 = vmatpush.msra.mxu0 %v75_v2  ;;  %v123_v9 = vld [vmem:[#allocation2 + $0x1f0] sm:$0xff]  ;;  %v90_v10 = vld [vmem:[#allocation2 + $0xe8] sm:$0xff] }
   0x9   :  { %381 = vmatpush.msra.mxu3 %v124_v5  ;;  %362 = vmatpush.msra.mxu2 %v107_v4  ;;  %v73_v11 = vld [vmem:[#allocation2 + $0x60] sm:$0xff]  ;;  %v122_v13 = vld [vmem:[#allocation2 + $0x1e8] sm:$0xff]  ;;  %v72_v16 = vld [vmem:[#allocation2 + $0x58] sm:$0xff] }
   0xa   :  { %342 = vmatpush.msra.mxu1 %v91_v7  ;;  %v105_v12 = vld [vmem:[#allocation2 + $0x160] sm:$0xff]  ;;  %323 = vmatpush.msra.mxu0 %v74_v6  ;;  %v104_v17 = vld [vmem:[#allocation2 + $0x158] sm:$0xff]  ;;  %v71_v20 = vld [vmem:[#allocation2 + $0x50] sm:$0xff] }
   0xb   :  { %382 = vmatpush.msra.mxu3 %v123_v9  ;;  %363 = vmatpush.msra.mxu2 %v106_v8  ;;  %v89_v14 = vld [vmem:[#allocation2 + $0xe0] sm:$0xff]  ;;  %v88_v18 = vld [vmem:[#allocation2 + $0xd8] sm:$0xff]  ;;  %v103_v21 = vld [vmem:[#allocation2 + $0x150] sm:$0xff] }
   0xc   :  { %v121_v15 = vld [vmem:[#allocation2 + $0x1e0] sm:$0xff]  ;;  %343 = vmatpush.msra.mxu1 %v90_v10  ;;  %324 = vmatpush.msra.mxu0 %v73_v11  ;;  %v120_v19 = vld [vmem:[#allocation2 + $0x1d8] sm:$0xff]  ;;  %v87_v22 = vld [vmem:[#allocation2 + $0xd0] sm:$0xff] }
   0xd   :  { %383 = vmatpush.msra.mxu3 %v122_v13  ;;  %364 = vmatpush.msra.mxu2 %v105_v12  ;;  %v119_v23 = vld [vmem:[#allocation2 + $0x1d0] sm:$0xff]  ;;  %v70_v24 = vld [vmem:[#allocation2 + $0x48] sm:$0xff]  ;;  %v69_v28 = vld [vmem:[#allocation2 + $0x40] sm:$0xff] }
   0xe   :  { %344 = vmatpush.msra.mxu1 %v89_v14  ;;  %325 = vmatpush.msra.mxu0 %v72_v16  ;;  %v102_v25 = vld [vmem:[#allocation2 + $0x148] sm:$0xff]  ;;  %v101_v29 = vld [vmem:[#allocation2 + $0x140] sm:$0xff]  ;;  %v68_v32 = vld [vmem:[#allocation2 + $0x38] sm:$0xff] }
   0xf   :  { %384 = vmatpush.msra.mxu3 %v121_v15  ;;  %365 = vmatpush.msra.mxu2 %v104_v17  ;;  %v86_v26 = vld [vmem:[#allocation2 + $0xc8] sm:$0xff]  ;;  %v85_v30 = vld [vmem:[#allocation2 + $0xc0] sm:$0xff]  ;;  %v100_v33 = vld [vmem:[#allocation2 + $0x138] sm:$0xff] }
  0x10   :  { %345 = vmatpush.msra.mxu1 %v88_v18  ;;  %326 = vmatpush.msra.mxu0 %v71_v20  ;;  %v118_v27 = vld [vmem:[#allocation2 + $0x1c8] sm:$0xff]  ;;  %v117_v31 = vld [vmem:[#allocation2 + $0x1c0] sm:$0xff]  ;;  %v84_v34 = vld [vmem:[#allocation2 + $0xb8] sm:$0xff] }
  0x11   :  { %385 = vmatpush.msra.mxu3 %v120_v19  ;;  %366 = vmatpush.msra.mxu2 %v103_v21  ;;  %v116_v35 = vld [vmem:[#allocation2 + $0x1b8] sm:$0xff]  ;;  %v67_v36 = vld [vmem:[#allocation2 + $0x30] sm:$0xff]  ;;  %v66_v40 = vld [vmem:[#allocation2 + $0x28] sm:$0xff] }
  0x12   :  { %346 = vmatpush.msra.mxu1 %v87_v22  ;;  %327 = vmatpush.msra.mxu0 %v70_v24  ;;  %v99_v37 = vld [vmem:[#allocation2 + $0x130] sm:$0xff]  ;;  %v98_v41 = vld [vmem:[#allocation2 + $0x128] sm:$0xff]  ;;  %v65_v44 = vld [vmem:[#allocation2 + $0x20] sm:$0xff] }
  0x13   :  { %386 = vmatpush.msra.mxu3 %v119_v23  ;;  %367 = vmatpush.msra.mxu2 %v102_v25  ;;  %v83_v38 = vld [vmem:[#allocation2 + $0xb0] sm:$0xff]  ;;  %v82_v42 = vld [vmem:[#allocation2 + $0xa8] sm:$0xff]  ;;  %v97_v45 = vld [vmem:[#allocation2 + $0x120] sm:$0xff] }
  0x14   :  { %347 = vmatpush.msra.mxu1 %v86_v26  ;;  %328 = vmatpush.msra.mxu0 %v69_v28  ;;  %v115_v39 = vld [vmem:[#allocation2 + $0x1b0] sm:$0xff]  ;;  %v114_v43 = vld [vmem:[#allocation2 + $0x1a8] sm:$0xff]  ;;  %v81_v46 = vld [vmem:[#allocation2 + $0xa0] sm:$0xff] }
  0x15   :  { %387 = vmatpush.msra.mxu3 %v118_v27  ;;  %368 = vmatpush.msra.mxu2 %v101_v29  ;;  %v113_v47 = vld [vmem:[#allocation2 + $0x1a0] sm:$0xff]  ;;  %v64_v48 = vld [vmem:[#allocation2 + $0x18] sm:$0xff]  ;;  %v63_v52 = vld [vmem:[#allocation2 + $0x10] sm:$0xff] }
  0x16   :  { %348 = vmatpush.msra.mxu1 %v85_v30  ;;  %329 = vmatpush.msra.mxu0 %v68_v32  ;;  %v96_v49 = vld [vmem:[#allocation2 + $0x118] sm:$0xff]  ;;  %v95_v53 = vld [vmem:[#allocation2 + $0x110] sm:$0xff]  ;;  %v62_v56 = vld [vmem:[#allocation2 + $0x8] sm:$0xff] }
  0x17   :  { %388 = vmatpush.msra.mxu3 %v117_v31  ;;  %369 = vmatpush.msra.mxu2 %v100_v33  ;;  %v80_v50 = vld [vmem:[#allocation2 + $0x98] sm:$0xff]  ;;  %v79_v54 = vld [vmem:[#allocation2 + $0x90] sm:$0xff]  ;;  %v94_v57 = vld [vmem:[#allocation2 + $0x108] sm:$0xff] }
  0x18   :  { %349 = vmatpush.msra.mxu1 %v84_v34  ;;  %330 = vmatpush.msra.mxu0 %v67_v36  ;;  %v112_v51 = vld [vmem:[#allocation2 + $0x198] sm:$0xff]  ;;  %v111_v55 = vld [vmem:[#allocation2 + $0x190] sm:$0xff]  ;;  %v78_v58 = vld [vmem:[#allocation2 + $0x88] sm:$0xff] }
  0x19   :  { %389 = vmatpush.msra.mxu3 %v116_v35  ;;  %370 = vmatpush.msra.mxu2 %v99_v37  ;;  %v110_v59 = vld [vmem:[#allocation2 + $0x188] sm:$0xff]  ;;  %v61_v60 = vld [vmem:[#allocation2] sm:$0xff]  ;;  %v140_v62 = vld [vmem:[#allocation2 + $0x278] sm:$0xff] }
  0x1a   :  { %350 = vmatpush.msra.mxu1 %v83_v38  ;;  %331 = vmatpush.msra.mxu0 %v66_v40  ;;  %v93_v61 = vld [vmem:[#allocation2 + $0x100] sm:$0xff]  ;;  %v172_v63 = vld [vmem:[#allocation2 + $0x378] sm:$0xff]  ;;  %v139_v2 = vld [vmem:[#allocation2 + $0x270] sm:$0xff] }
  0x1b   :  { %390 = vmatpush.msra.mxu3 %v115_v39  ;;  %371 = vmatpush.msra.mxu2 %v98_v41  ;;  %v77_v0 = vld [vmem:[#allocation2 + $0x80] sm:$0xff]  ;;  %v156_v3 = vld [vmem:[#allocation2 + $0x2f8] sm:$0xff]  ;;  %v171_v4 = vld [vmem:[#allocation2 + $0x370] sm:$0xff] }
  0x1c   :  { %351 = vmatpush.msra.mxu1 %v82_v42  ;;  %332 = vmatpush.msra.mxu0 %v65_v44  ;;  %v109_v1 = vld [vmem:[#allocation2 + $0x180] sm:$0xff]  ;;  %v188_v5 = vld [vmem:[#allocation2 + $0x3f8] sm:$0xff]  ;;  %v138_v6 = vld [vmem:[#allocation2 + $0x268] sm:$0xff] }
  0x1d   :  { %391 = vmatpush.msra.mxu3 %v114_v43  ;;  %372 = vmatpush.msra.mxu2 %v97_v45  ;;  %v155_v7 = vld [vmem:[#allocation2 + $0x2f0] sm:$0xff]  ;;  %v170_v8 = vld [vmem:[#allocation2 + $0x368] sm:$0xff]  ;;  %v137_v10 = vld [vmem:[#allocation2 + $0x260] sm:$0xff] }
  0x1e   :  { %352 = vmatpush.msra.mxu1 %v81_v46  ;;  %333 = vmatpush.msra.mxu0 %v64_v48  ;;  %v187_v9 = vld [vmem:[#allocation2 + $0x3f0] sm:$0xff]  ;;  %v154_v11 = vld [vmem:[#allocation2 + $0x2e8] sm:$0xff]  ;;  %v169_v12 = vld [vmem:[#allocation2 + $0x360] sm:$0xff] }
  0x1f   :  { %392 = vmatpush.msra.mxu3 %v113_v47  ;;  %373 = vmatpush.msra.mxu2 %v96_v49  ;;  %v186_v13 = vld [vmem:[#allocation2 + $0x3e8] sm:$0xff]  ;;  %v136_v14 = vld [vmem:[#allocation2 + $0x258] sm:$0xff]  ;;  %v153_v15 = vld [vmem:[#allocation2 + $0x2e0] sm:$0xff] }
  0x20   :  { %353 = vmatpush.msra.mxu1 %v80_v50  ;;  %334 = vmatpush.msra.mxu0 %v63_v52  ;;  %v168_v16 = vld [vmem:[#allocation2 + $0x358] sm:$0xff]  ;;  %v185_v17 = vld [vmem:[#allocation2 + $0x3e0] sm:$0xff]  ;;  %v135_v18 = vld [vmem:[#allocation2 + $0x250] sm:$0xff] }
  0x21   :  { %393 = vmatpush.msra.mxu3 %v112_v51  ;;  %374 = vmatpush.msra.mxu2 %v95_v53  ;;  %v152_v19 = vld [vmem:[#allocation2 + $0x2d8] sm:$0xff]  ;;  %v167_v20 = vld [vmem:[#allocation2 + $0x350] sm:$0xff]  ;;  %v134_v22 = vld [vmem:[#allocation2 + $0x248] sm:$0xff] }
  0x22   :  { %354 = vmatpush.msra.mxu1 %v79_v54  ;;  %335 = vmatpush.msra.mxu0 %v62_v56  ;;  %v184_v21 = vld [vmem:[#allocation2 + $0x3d8] sm:$0xff]  ;;  %v151_v23 = vld [vmem:[#allocation2 + $0x2d0] sm:$0xff]  ;;  %v166_v24 = vld [vmem:[#allocation2 + $0x348] sm:$0xff] }
  0x23   :  { %394 = vmatpush.msra.mxu3 %v111_v55  ;;  %375 = vmatpush.msra.mxu2 %v94_v57  ;;  %v183_v25 = vld [vmem:[#allocation2 + $0x3d0] sm:$0xff]  ;;  %v133_v26 = vld [vmem:[#allocation2 + $0x240] sm:$0xff]  ;;  %v150_v27 = vld [vmem:[#allocation2 + $0x2c8] sm:$0xff] }
  0x24   :  { %355 = vmatpush.msra.mxu1 %v78_v58  ;;  %336 = vmatpush.msra.mxu0 %v61_v60  ;;  %v165_v28 = vld [vmem:[#allocation2 + $0x340] sm:$0xff]  ;;  %v182_v29 = vld [vmem:[#allocation2 + $0x3c8] sm:$0xff]  ;;  %v132_v30 = vld [vmem:[#allocation2 + $0x238] sm:$0xff] }
  0x25   :  { %395 = vmatpush.msra.mxu3 %v110_v59  ;;  %376 = vmatpush.msra.mxu2 %v93_v61  ;;  %v149_v31 = vld [vmem:[#allocation2 + $0x2c0] sm:$0xff]  ;;  %v164_v32 = vld [vmem:[#allocation2 + $0x338] sm:$0xff]  ;;  %v131_v34 = vld [vmem:[#allocation2 + $0x230] sm:$0xff] }
  0x26   :  { %401 = vmatpush.msrb.mxu0 %v140_v62  ;;  %356 = vmatpush.msra.mxu1 %v77_v0  ;;  %v181_v33 = vld [vmem:[#allocation2 + $0x3c0] sm:$0xff]  ;;  %v148_v35 = vld [vmem:[#allocation2 + $0x2b8] sm:$0xff]  ;;  %v163_v36 = vld [vmem:[#allocation2 + $0x330] sm:$0xff] }
  0x27   :  { %441 = vmatpush.msrb.mxu2 %v172_v63  ;;  %396 = vmatpush.msra.mxu3 %v109_v1  ;;  %v180_v37 = vld [vmem:[#allocation2 + $0x3b8] sm:$0xff]  ;;  %v130_v38 = vld [vmem:[#allocation2 + $0x228] sm:$0xff]  ;;  %v147_v39 = vld [vmem:[#allocation2 + $0x2b0] sm:$0xff] }
  0x28   :  { %402 = vmatpush.msrb.mxu0 %v139_v2  ;;  %421 = vmatpush.msrb.mxu1 %v156_v3  ;;  %v162_v40 = vld [vmem:[#allocation2 + $0x328] sm:$0xff]  ;;  %v179_v41 = vld [vmem:[#allocation2 + $0x3b0] sm:$0xff]  ;;  %v129_v42 = vld [vmem:[#allocation2 + $0x220] sm:$0xff] }
  0x29   :  { %442 = vmatpush.msrb.mxu2 %v171_v4  ;;  %461 = vmatpush.msrb.mxu3 %v188_v5  ;;  %v146_v43 = vld [vmem:[#allocation2 + $0x2a8] sm:$0xff]  ;;  %v161_v44 = vld [vmem:[#allocation2 + $0x320] sm:$0xff]  ;;  %v128_v46 = vld [vmem:[#allocation2 + $0x218] sm:$0xff] }
  0x2a   :  { %403 = vmatpush.msrb.mxu0 %v138_v6  ;;  %422 = vmatpush.msrb.mxu1 %v155_v7  ;;  %v178_v45 = vld [vmem:[#allocation2 + $0x3a8] sm:$0xff]  ;;  %v145_v47 = vld [vmem:[#allocation2 + $0x2a0] sm:$0xff]  ;;  %v160_v48 = vld [vmem:[#allocation2 + $0x318] sm:$0xff] }
  0x2b   :  { %443 = vmatpush.msrb.mxu2 %v170_v8  ;;  %462 = vmatpush.msrb.mxu3 %v187_v9  ;;  %v177_v49 = vld [vmem:[#allocation2 + $0x3a0] sm:$0xff]  ;;  %v127_v50 = vld [vmem:[#allocation2 + $0x210] sm:$0xff]  ;;  %v144_v51 = vld [vmem:[#allocation2 + $0x298] sm:$0xff] }
  0x2c   :  { %404 = vmatpush.msrb.mxu0 %v137_v10  ;;  %423 = vmatpush.msrb.mxu1 %v154_v11  ;;  %v159_v52 = vld [vmem:[#allocation2 + $0x310] sm:$0xff]  ;;  %v176_v53 = vld [vmem:[#allocation2 + $0x398] sm:$0xff]  ;;  %v126_v54 = vld [vmem:[#allocation2 + $0x208] sm:$0xff] }
  0x2d   :  { %444 = vmatpush.msrb.mxu2 %v169_v12  ;;  %463 = vmatpush.msrb.mxu3 %v186_v13  ;;  %v143_v55 = vld [vmem:[#allocation2 + $0x290] sm:$0xff]  ;;  %v158_v56 = vld [vmem:[#allocation2 + $0x308] sm:$0xff]  ;;  %v125_v59 = vld [vmem:[#allocation2 + $0x200] sm:$0xff] }
  0x2e   :  { %405 = vmatpush.msrb.mxu0 %v136_v14  ;;  %424 = vmatpush.msrb.mxu1 %v153_v15  ;;  %v175_v57 = vld [vmem:[#allocation2 + $0x390] sm:$0xff]  ;;  %v142_v60 = vld [vmem:[#allocation2 + $0x288] sm:$0xff]  ;;  %v157_v61 = vld [vmem:[#allocation2 + $0x300] sm:$0xff] }
  0x2f   :  { %445 = vmatpush.msrb.mxu2 %v168_v16  ;;  %464 = vmatpush.msrb.mxu3 %v185_v17  ;;  %v47_v58 = vld [vmem:[%s880_s0 + $0x10] sm:$0xff]  ;;  %v174_v62 = vld [vmem:[#allocation2 + $0x388] sm:$0xff]  ;;  %v45_v63 = vld [vmem:[%s880_s0] sm:$0xff] }
  0x30   :  { %406 = vmatpush.msrb.mxu0 %v135_v18  ;;  %425 = vmatpush.msrb.mxu1 %v152_v19  ;;  %v48_v0 = vld [vmem:[%s880_s0 + $0x18] sm:$0xff]  ;;  %v141_v3 = vld [vmem:[#allocation2 + $0x280] sm:$0xff]  ;;  %v46_v5 = vld [vmem:[%s880_s0 + $0x8] sm:$0xff] }
  0x31   :  { %446 = vmatpush.msrb.mxu2 %v167_v20  ;;  %465 = vmatpush.msrb.mxu3 %v184_v21  ;;  %v204_v1 = vld [vmem:[#allocation2 + $0x478] sm:$0xff]  ;;  %v173_v4 = vld [vmem:[#allocation2 + $0x380] sm:$0xff]  ;;  %v203_v6 = vld [vmem:[#allocation2 + $0x470] sm:$0xff] }
  0x32   :  { %407 = vmatpush.msrb.mxu0 %v134_v22  ;;  %426 = vmatpush.msrb.mxu1 %v151_v23  ;;  %v236_v2 = vld [vmem:[#allocation2 + $0x578] sm:$0xff]  ;;  %v235_v8 = vld [vmem:[#allocation2 + $0x570] sm:$0xff]  ;;  %v202_v10 = vld [vmem:[#allocation2 + $0x468] sm:$0xff] }
  0x33   :  { %447 = vmatpush.msrb.mxu2 %v166_v24  ;;  %466 = vmatpush.msrb.mxu3 %v183_v25  ;;  %v220_v7 = vld [vmem:[#allocation2 + $0x4f8] sm:$0xff]  ;;  %v219_v11 = vld [vmem:[#allocation2 + $0x4f0] sm:$0xff]  ;;  %v234_v12 = vld [vmem:[#allocation2 + $0x568] sm:$0xff] }
  0x34   :  { %408 = vmatpush.msrb.mxu0 %v133_v26  ;;  %427 = vmatpush.msrb.mxu1 %v150_v27  ;;  %v252_v9 = vld [vmem:[#allocation2 + $0x5f8] sm:$0xff]  ;;  %v251_v13 = vld [vmem:[#allocation2 + $0x5f0] sm:$0xff]  ;;  %v201_v15 = vld [vmem:[#allocation2 + $0x460] sm:$0xff] }
  0x35   :  { %448 = vmatpush.msrb.mxu2 %v165_v28  ;;  %467 = vmatpush.msrb.mxu3 %v182_v29  ;;  %v51_v14 = vld [vmem:[%s880_s0 + $0x30] sm:$0xff]  ;;  %v218_v16 = vld [vmem:[#allocation2 + $0x4e8] sm:$0xff]  ;;  %v233_v17 = vld [vmem:[#allocation2 + $0x560] sm:$0xff] }
  0x36   :  { %409 = vmatpush.msrb.mxu0 %v132_v30  ;;  %428 = vmatpush.msrb.mxu1 %v149_v31  ;;  %v250_v18 = vld [vmem:[#allocation2 + $0x5e8] sm:$0xff]  ;;  %v49_v19 = vld [vmem:[%s880_s0 + $0x20] sm:$0xff]  ;;  %v52_v20 = vld [vmem:[%s880_s0 + $0x38] sm:$0xff] }
  0x37   :  { %449 = vmatpush.msrb.mxu2 %v164_v32  ;;  %468 = vmatpush.msrb.mxu3 %v181_v33  ;;  %v200_v21 = vld [vmem:[#allocation2 + $0x458] sm:$0xff]  ;;  %v217_v22 = vld [vmem:[#allocation2 + $0x4e0] sm:$0xff]  ;;  %v50_v25 = vld [vmem:[%s880_s0 + $0x28] sm:$0xff] }
  0x38   :  { %410 = vmatpush.msrb.mxu0 %v131_v34  ;;  %429 = vmatpush.msrb.mxu1 %v148_v35  ;;  %v232_v23 = vld [vmem:[#allocation2 + $0x558] sm:$0xff]  ;;  %v249_v24 = vld [vmem:[#allocation2 + $0x5e0] sm:$0xff]  ;;  %v199_v26 = vld [vmem:[#allocation2 + $0x450] sm:$0xff] }
  0x39   :  { %450 = vmatpush.msrb.mxu2 %v163_v36  ;;  %469 = vmatpush.msrb.mxu3 %v180_v37  ;;  %v216_v27 = vld [vmem:[#allocation2 + $0x4d8] sm:$0xff]  ;;  %v231_v28 = vld [vmem:[#allocation2 + $0x550] sm:$0xff]  ;;  %v198_v30 = vld [vmem:[#allocation2 + $0x448] sm:$0xff] }
  0x3a   :  { %411 = vmatpush.msrb.mxu0 %v130_v38  ;;  %430 = vmatpush.msrb.mxu1 %v147_v39  ;;  %v248_v29 = vld [vmem:[#allocation2 + $0x5d8] sm:$0xff]  ;;  %v215_v31 = vld [vmem:[#allocation2 + $0x4d0] sm:$0xff]  ;;  %v230_v32 = vld [vmem:[#allocation2 + $0x548] sm:$0xff] }
  0x3b   :  { %451 = vmatpush.msrb.mxu2 %v162_v40  ;;  %470 = vmatpush.msrb.mxu3 %v179_v41  ;;  %v247_v33 = vld [vmem:[#allocation2 + $0x5d0] sm:$0xff]  ;;  %v197_v34 = vld [vmem:[#allocation2 + $0x440] sm:$0xff]  ;;  %v214_v35 = vld [vmem:[#allocation2 + $0x4c8] sm:$0xff] }
  0x3c   :  { %412 = vmatpush.msrb.mxu0 %v129_v42  ;;  %431 = vmatpush.msrb.mxu1 %v146_v43  ;;  %v229_v36 = vld [vmem:[#allocation2 + $0x540] sm:$0xff]  ;;  %v246_v37 = vld [vmem:[#allocation2 + $0x5c8] sm:$0xff]  ;;  %v196_v38 = vld [vmem:[#allocation2 + $0x438] sm:$0xff] }
  0x3d   :  { %452 = vmatpush.msrb.mxu2 %v161_v44  ;;  %471 = vmatpush.msrb.mxu3 %v178_v45  ;;  %v213_v39 = vld [vmem:[#allocation2 + $0x4c0] sm:$0xff]  ;;  %v228_v40 = vld [vmem:[#allocation2 + $0x538] sm:$0xff]  ;;  %v195_v42 = vld [vmem:[#allocation2 + $0x430] sm:$0xff] }
  0x3e   :  { %413 = vmatpush.msrb.mxu0 %v128_v46  ;;  %432 = vmatpush.msrb.mxu1 %v145_v47  ;;  %v245_v41 = vld [vmem:[#allocation2 + $0x5c0] sm:$0xff]  ;;  %v212_v43 = vld [vmem:[#allocation2 + $0x4b8] sm:$0xff]  ;;  %v227_v44 = vld [vmem:[#allocation2 + $0x530] sm:$0xff] }
  0x3f   :  { %453 = vmatpush.msrb.mxu2 %v160_v48  ;;  %472 = vmatpush.msrb.mxu3 %v177_v49  ;;  %v244_v45 = vld [vmem:[#allocation2 + $0x5b8] sm:$0xff]  ;;  %v194_v46 = vld [vmem:[#allocation2 + $0x428] sm:$0xff]  ;;  %v211_v47 = vld [vmem:[#allocation2 + $0x4b0] sm:$0xff] }
  0x40   :  { %414 = vmatpush.msrb.mxu0 %v127_v50  ;;  %433 = vmatpush.msrb.mxu1 %v144_v51  ;;  %v226_v48 = vld [vmem:[#allocation2 + $0x528] sm:$0xff]  ;;  %v243_v49 = vld [vmem:[#allocation2 + $0x5b0] sm:$0xff]  ;;  %v193_v50 = vld [vmem:[#allocation2 + $0x420] sm:$0xff] }
  0x41   :  { %454 = vmatpush.msrb.mxu2 %v159_v52  ;;  %473 = vmatpush.msrb.mxu3 %v176_v53  ;;  %v210_v51 = vld [vmem:[#allocation2 + $0x4a8] sm:$0xff]  ;;  %v225_v52 = vld [vmem:[#allocation2 + $0x520] sm:$0xff] }
  0x42   :  { %415 = vmatpush.msrb.mxu0 %v126_v54  ;;  %434 = vmatpush.msrb.mxu1 %v143_v55  ;;  %v242_v53 = vld [vmem:[#allocation2 + $0x5a8] sm:$0xff]  ;;  %v192_v54 = vld [vmem:[#allocation2 + $0x418] sm:$0xff]  ;;  %v209_v55 = vld [vmem:[#allocation2 + $0x4a0] sm:$0xff] }
  0x43   :  { %455 = vmatpush.msrb.mxu2 %v158_v56  ;;  %474 = vmatpush.msrb.mxu3 %v175_v57  ;;  %v224_v56 = vld [vmem:[#allocation2 + $0x518] sm:$0xff]  ;;  %v241_v57 = vld [vmem:[#allocation2 + $0x5a0] sm:$0xff] }
  0x44   :  { %377 = vmatmul.f32.vlgmr.msra.gmra.mxu2 %v47_v58  ;;  %416 = vmatpush.msrb.mxu0 %v125_v59  ;;  %v191_v58 = vld [vmem:[#allocation2 + $0x410] sm:$0xff]  ;;  %v208_v59 = vld [vmem:[#allocation2 + $0x498] sm:$0xff] }
  0x45   :  { %435 = vmatpush.msrb.mxu1 %v142_v60  ;;  %456 = vmatpush.msrb.mxu2 %v157_v61  ;;  %v223_v60 = vld [vmem:[#allocation2 + $0x510] sm:$0xff]  ;;  %v240_v61 = vld [vmem:[#allocation2 + $0x598] sm:$0xff] }
  0x46   :  { %475 = vmatpush.msrb.mxu3 %v174_v62  ;;  %337 = vmatmul.f32.vlgmr.msra.gmra.mxu0 %v45_v63  ;;  %v190_v62 = vld [vmem:[#allocation2 + $0x408] sm:$0xff]  ;;  %v207_v63 = vld [vmem:[#allocation2 + $0x490] sm:$0xff] }
  0x47   :  { %397 = vmatmul.f32.vlgmr.msra.gmra.mxu3 %v48_v0  ;;  %481 = vmatpush.msra.mxu0 %v204_v1  ;;  %v222_v0 = vld [vmem:[#allocation2 + $0x508] sm:$0xff]  ;;  %v239_v1 = vld [vmem:[#allocation2 + $0x590] sm:$0xff] }
  0x48   :  { %521 = vmatpush.msra.mxu2 %v236_v2  ;;  %436 = vmatpush.msrb.mxu1 %v141_v3  ;;  %v189_v2 = vld [vmem:[#allocation2 + $0x400] sm:$0xff]  ;;  %v206_v3 = vld [vmem:[#allocation2 + $0x488] sm:$0xff] }
  0x49   :  { %476 = vmatpush.msrb.mxu3 %v173_v4  ;;  %357 = vmatmul.f32.vlgmr.msra.gmra.mxu1 %v46_v5  ;;  %v221_v4 = vld [vmem:[#allocation2 + $0x500] sm:$0xff]  ;;  %v238_v5 = vld [vmem:[#allocation2 + $0x588] sm:$0xff] }
  0x4a   :  { %482 = vmatpush.msra.mxu0 %v203_v6  ;;  %501 = vmatpush.msra.mxu1 %v220_v7  ;;  %v53_v6 = vld [vmem:[%s880_s0 + $0x40] sm:$0xff]  ;;  %v55_v7 = vld [vmem:[%s880_s0 + $0x50] sm:$0xff] }
  0x4b   :  { %522 = vmatpush.msra.mxu2 %v235_v8  ;;  %541 = vmatpush.msra.mxu3 %v252_v9  ;;  %v268_v8 = vld [vmem:[#allocation2 + $0x678] sm:$0xff] }
  0x4c   :  { %483 = vmatpush.msra.mxu0 %v202_v10  ;;  %502 = vmatpush.msra.mxu1 %v219_v11  ;;  %v300_v9 = vld [vmem:[#allocation2 + $0x778] sm:$0xff]  ;;  %v205_v10 = vld [vmem:[#allocation2 + $0x480] sm:$0xff] }
  0x4d   :  { %523 = vmatpush.msra.mxu2 %v234_v12  ;;  %542 = vmatpush.msra.mxu3 %v251_v13  ;;  %v237_v11 = vld [vmem:[#allocation2 + $0x580] sm:$0xff]  ;;  %v54_v12 = vld [vmem:[%s880_s0 + $0x48] sm:$0xff]  ;;  %v56_v13 = vld [vmem:[%s880_s0 + $0x58] sm:$0xff] }
  0x4e   :  { %457 = vmatmul.f32.vlgmr.msrb.gmra.mxu2 %v51_v14  ;;  %484 = vmatpush.msra.mxu0 %v201_v15  ;;  %v267_v14 = vld [vmem:[#allocation2 + $0x670] sm:$0xff]  ;;  %v284_v15 = vld [vmem:[#allocation2 + $0x6f8] sm:$0xff] }
  0x4f   :  { %503 = vmatpush.msra.mxu1 %v218_v16  ;;  %524 = vmatpush.msra.mxu2 %v233_v17  ;;  %v299_v16 = vld [vmem:[#allocation2 + $0x770] sm:$0xff]  ;;  %v316_v17 = vld [vmem:[#allocation2 + $0x7f8] sm:$0xff] }
  0x50   :  { %543 = vmatpush.msra.mxu3 %v250_v18  ;;  %417 = vmatmul.f32.vlgmr.msrb.gmra.mxu0 %v49_v19  ;;  %v266_v18 = vld [vmem:[#allocation2 + $0x668] sm:$0xff]  ;;  %v283_v19 = vld [vmem:[#allocation2 + $0x6f0] sm:$0xff] }
  0x51   :  { %477 = vmatmul.f32.vlgmr.msrb.gmra.mxu3 %v52_v20  ;;  %485 = vmatpush.msra.mxu0 %v200_v21  ;;  %v298_v20 = vld [vmem:[#allocation2 + $0x768] sm:$0xff]  ;;  %v315_v21 = vld [vmem:[#allocation2 + $0x7f0] sm:$0xff] }
  0x52   :  { %504 = vmatpush.msra.mxu1 %v217_v22  ;;  %525 = vmatpush.msra.mxu2 %v232_v23  ;;  %v265_v22 = vld [vmem:[#allocation2 + $0x660] sm:$0xff]  ;;  %v282_v23 = vld [vmem:[#allocation2 + $0x6e8] sm:$0xff] }
  0x53   :  { %544 = vmatpush.msra.mxu3 %v249_v24  ;;  %437 = vmatmul.f32.vlgmr.msrb.gmra.mxu1 %v50_v25  ;;  %v297_v24 = vld [vmem:[#allocation2 + $0x760] sm:$0xff]  ;;  %v314_v25 = vld [vmem:[#allocation2 + $0x7e8] sm:$0xff] }
  0x54   :  { %486 = vmatpush.msra.mxu0 %v199_v26  ;;  %505 = vmatpush.msra.mxu1 %v216_v27  ;;  %v264_v26 = vld [vmem:[#allocation2 + $0x658] sm:$0xff]  ;;  %v281_v27 = vld [vmem:[#allocation2 + $0x6e0] sm:$0xff] }
  0x55   :  { %526 = vmatpush.msra.mxu2 %v231_v28  ;;  %545 = vmatpush.msra.mxu3 %v248_v29  ;;  %v296_v28 = vld [vmem:[#allocation2 + $0x758] sm:$0xff]  ;;  %v313_v29 = vld [vmem:[#allocation2 + $0x7e0] sm:$0xff] }
  0x56   :  { %487 = vmatpush.msra.mxu0 %v198_v30  ;;  %506 = vmatpush.msra.mxu1 %v215_v31  ;;  %v263_v30 = vld [vmem:[#allocation2 + $0x650] sm:$0xff]  ;;  %v280_v31 = vld [vmem:[#allocation2 + $0x6d8] sm:$0xff] }
  0x57   :  { %527 = vmatpush.msra.mxu2 %v230_v32  ;;  %546 = vmatpush.msra.mxu3 %v247_v33  ;;  %v295_v32 = vld [vmem:[#allocation2 + $0x750] sm:$0xff]  ;;  %v312_v33 = vld [vmem:[#allocation2 + $0x7d8] sm:$0xff] }
  0x58   :  { %488 = vmatpush.msra.mxu0 %v197_v34  ;;  %507 = vmatpush.msra.mxu1 %v214_v35  ;;  %v262_v34 = vld [vmem:[#allocation2 + $0x648] sm:$0xff]  ;;  %v279_v35 = vld [vmem:[#allocation2 + $0x6d0] sm:$0xff] }
  0x59   :  { %528 = vmatpush.msra.mxu2 %v229_v36  ;;  %547 = vmatpush.msra.mxu3 %v246_v37  ;;  %v294_v36 = vld [vmem:[#allocation2 + $0x748] sm:$0xff]  ;;  %v311_v37 = vld [vmem:[#allocation2 + $0x7d0] sm:$0xff] }
  0x5a   :  { %489 = vmatpush.msra.mxu0 %v196_v38  ;;  %508 = vmatpush.msra.mxu1 %v213_v39  ;;  %v261_v38 = vld [vmem:[#allocation2 + $0x640] sm:$0xff]  ;;  %v278_v39 = vld [vmem:[#allocation2 + $0x6c8] sm:$0xff] }
  0x5b   :  { %529 = vmatpush.msra.mxu2 %v228_v40  ;;  %548 = vmatpush.msra.mxu3 %v245_v41  ;;  %v293_v40 = vld [vmem:[#allocation2 + $0x740] sm:$0xff]  ;;  %v310_v41 = vld [vmem:[#allocation2 + $0x7c8] sm:$0xff] }
  0x5c   :  { %490 = vmatpush.msra.mxu0 %v195_v42  ;;  %509 = vmatpush.msra.mxu1 %v212_v43  ;;  %v260_v42 = vld [vmem:[#allocation2 + $0x638] sm:$0xff]  ;;  %v277_v43 = vld [vmem:[#allocation2 + $0x6c0] sm:$0xff] }
  0x5d   :  { %530 = vmatpush.msra.mxu2 %v227_v44  ;;  %549 = vmatpush.msra.mxu3 %v244_v45  ;;  %v292_v44 = vld [vmem:[#allocation2 + $0x738] sm:$0xff]  ;;  %v309_v45 = vld [vmem:[#allocation2 + $0x7c0] sm:$0xff] }
  0x5e   :  { %491 = vmatpush.msra.mxu0 %v194_v46  ;;  %510 = vmatpush.msra.mxu1 %v211_v47  ;;  %v259_v46 = vld [vmem:[#allocation2 + $0x630] sm:$0xff]  ;;  %v276_v47 = vld [vmem:[#allocation2 + $0x6b8] sm:$0xff] }
  0x5f   :  { %531 = vmatpush.msra.mxu2 %v226_v48  ;;  %550 = vmatpush.msra.mxu3 %v243_v49  ;;  %v291_v48 = vld [vmem:[#allocation2 + $0x730] sm:$0xff]  ;;  %v308_v49 = vld [vmem:[#allocation2 + $0x7b8] sm:$0xff] }
  0x60   :  { %492 = vmatpush.msra.mxu0 %v193_v50  ;;  %511 = vmatpush.msra.mxu1 %v210_v51  ;;  %v258_v50 = vld [vmem:[#allocation2 + $0x628] sm:$0xff]  ;;  %v275_v51 = vld [vmem:[#allocation2 + $0x6b0] sm:$0xff] }
  0x61   :  { %532 = vmatpush.msra.mxu2 %v225_v52  ;;  %551 = vmatpush.msra.mxu3 %v242_v53  ;;  %v290_v52 = vld [vmem:[#allocation2 + $0x728] sm:$0xff]  ;;  %v307_v53 = vld [vmem:[#allocation2 + $0x7b0] sm:$0xff] }
  0x62   :  { %493 = vmatpush.msra.mxu0 %v192_v54  ;;  %512 = vmatpush.msra.mxu1 %v209_v55  ;;  %v257_v54 = vld [vmem:[#allocation2 + $0x620] sm:$0xff]  ;;  %v274_v55 = vld [vmem:[#allocation2 + $0x6a8] sm:$0xff] }
  0x63   :  { %533 = vmatpush.msra.mxu2 %v224_v56  ;;  %552 = vmatpush.msra.mxu3 %v241_v57  ;;  %v289_v56 = vld [vmem:[#allocation2 + $0x720] sm:$0xff]  ;;  %v306_v57 = vld [vmem:[#allocation2 + $0x7a8] sm:$0xff] }
  0x64   :  { %494 = vmatpush.msra.mxu0 %v191_v58  ;;  %513 = vmatpush.msra.mxu1 %v208_v59  ;;  %v256_v58 = vld [vmem:[#allocation2 + $0x618] sm:$0xff]  ;;  %v273_v59 = vld [vmem:[#allocation2 + $0x6a0] sm:$0xff] }
  0x65   :  { %534 = vmatpush.msra.mxu2 %v223_v60  ;;  %553 = vmatpush.msra.mxu3 %v240_v61  ;;  %v288_v60 = vld [vmem:[#allocation2 + $0x718] sm:$0xff]  ;;  %v305_v61 = vld [vmem:[#allocation2 + $0x7a0] sm:$0xff] }
  0x66   :  { %495 = vmatpush.msra.mxu0 %v190_v62  ;;  %514 = vmatpush.msra.mxu1 %v207_v63  ;;  %v255_v62 = vld [vmem:[#allocation2 + $0x610] sm:$0xff]  ;;  %v272_v63 = vld [vmem:[#allocation2 + $0x698] sm:$0xff] }
  0x67   :  { %535 = vmatpush.msra.mxu2 %v222_v0  ;;  %554 = vmatpush.msra.mxu3 %v239_v1  ;;  %v287_v0 = vld [vmem:[#allocation2 + $0x710] sm:$0xff]  ;;  %v304_v1 = vld [vmem:[#allocation2 + $0x798] sm:$0xff] }
  0x68   :  { %496 = vmatpush.msra.mxu0 %v189_v2  ;;  %515 = vmatpush.msra.mxu1 %v206_v3  ;;  %v254_v2 = vld [vmem:[#allocation2 + $0x608] sm:$0xff]  ;;  %v271_v3 = vld [vmem:[#allocation2 + $0x690] sm:$0xff] }
  0x69   :  { %536 = vmatpush.msra.mxu2 %v221_v4  ;;  %555 = vmatpush.msra.mxu3 %v238_v5  ;;  %v286_v4 = vld [vmem:[#allocation2 + $0x708] sm:$0xff]  ;;  %v303_v5 = vld [vmem:[#allocation2 + $0x790] sm:$0xff] }
  0x6a   :  { %497 = vmatmul.f32.vlgmr.msra.gmra.mxu0 %v53_v6  ;;  %537 = vmatmul.f32.vlgmr.msra.gmra.mxu2 %v55_v7  ;;  %v253_v6 = vld [vmem:[#allocation2 + $0x600] sm:$0xff]  ;;  %v270_v7 = vld [vmem:[#allocation2 + $0x688] sm:$0xff] }
  0x6b   :  { %561 = vmatpush.msrb.mxu0 %v268_v8  ;;  %601 = vmatpush.msrb.mxu2 %v300_v9  ;;  %v285_v8 = vld [vmem:[#allocation2 + $0x700] sm:$0xff]  ;;  %v302_v9 = vld [vmem:[#allocation2 + $0x788] sm:$0xff] }
  0x6c   :  { %516 = vmatpush.msra.mxu1 %v205_v10  ;;  %556 = vmatpush.msra.mxu3 %v237_v11  ;;  %v57_v10 = vld [vmem:[%s880_s0 + $0x60] sm:$0xff]  ;;  %v59_v11 = vld [vmem:[%s880_s0 + $0x70] sm:$0xff] }
  0x6d   :  { %517 = vmatmul.f32.vlgmr.msra.gmra.mxu1 %v54_v12  ;;  %557 = vmatmul.f32.vlgmr.msra.gmra.mxu3 %v56_v13  ;;  %v642_v12 = vld [vmem:[%s884_s4] sm:$0xf] }
  0x6e   :  { %562 = vmatpush.msrb.mxu0 %v267_v14  ;;  %581 = vmatpush.msrb.mxu1 %v284_v15  ;;  %v269_v13 = vld [vmem:[#allocation2 + $0x680] sm:$0xff]  ;;  %v58_v15 = vld [vmem:[%s880_s0 + $0x68] sm:$0xff] }
  0x6f   :  { %602 = vmatpush.msrb.mxu2 %v299_v16  ;;  %621 = vmatpush.msrb.mxu3 %v316_v17  ;;  %v301_v14 = vld [vmem:[#allocation2 + $0x780] sm:$0xff]  ;;  %v60_v16 = vld [vmem:[%s880_s0 + $0x78] sm:$0xff] }
  0x70   :  { %563 = vmatpush.msrb.mxu0 %v266_v18  ;;  %582 = vmatpush.msrb.mxu1 %v283_v19  ;;  %v641_v17 = vld [vmem:[%s881_s1] sm:$0xff] }
  0x71   :  { %603 = vmatpush.msrb.mxu2 %v298_v20  ;;  %622 = vmatpush.msrb.mxu3 %v315_v21  ;;  %v725_v18 = vld [vmem:[%s883_s3] ss:$0 sm:$0xff] }
  0x72   :  { %564 = vmatpush.msrb.mxu0 %v265_v22  ;;  %583 = vmatpush.msrb.mxu1 %v282_v23 }
  0x73   :  { %604 = vmatpush.msrb.mxu2 %v297_v24  ;;  %623 = vmatpush.msrb.mxu3 %v314_v25 }
  0x74   :  { %565 = vmatpush.msrb.mxu0 %v264_v26  ;;  %584 = vmatpush.msrb.mxu1 %v281_v27 }
  0x75   :  { %605 = vmatpush.msrb.mxu2 %v296_v28  ;;  %624 = vmatpush.msrb.mxu3 %v313_v29 }
  0x76   :  { %566 = vmatpush.msrb.mxu0 %v263_v30  ;;  %585 = vmatpush.msrb.mxu1 %v280_v31 }
  0x77   :  { %606 = vmatpush.msrb.mxu2 %v295_v32  ;;  %625 = vmatpush.msrb.mxu3 %v312_v33 }
  0x78   :  { %567 = vmatpush.msrb.mxu0 %v262_v34  ;;  %586 = vmatpush.msrb.mxu1 %v279_v35 }
  0x79   :  { %607 = vmatpush.msrb.mxu2 %v294_v36  ;;  %626 = vmatpush.msrb.mxu3 %v311_v37 }
  0x7a   :  { %568 = vmatpush.msrb.mxu0 %v261_v38  ;;  %587 = vmatpush.msrb.mxu1 %v278_v39 }
  0x7b   :  { %608 = vmatpush.msrb.mxu2 %v293_v40  ;;  %627 = vmatpush.msrb.mxu3 %v310_v41 }
  0x7c   :  { %569 = vmatpush.msrb.mxu0 %v260_v42  ;;  %588 = vmatpush.msrb.mxu1 %v277_v43 }
  0x7d   :  { %609 = vmatpush.msrb.mxu2 %v292_v44  ;;  %628 = vmatpush.msrb.mxu3 %v309_v45 }
  0x7e   :  { %570 = vmatpush.msrb.mxu0 %v259_v46  ;;  %589 = vmatpush.msrb.mxu1 %v276_v47  ;;  %v726_v47 = vld [vmem:[%s885_s5] ss:$0 sm:$0xff] }
  0x7f   :  { %610 = vmatpush.msrb.mxu2 %v291_v48  ;;  %629 = vmatpush.msrb.mxu3 %v308_v49 }
  0x80   :  { %571 = vmatpush.msrb.mxu0 %v258_v50  ;;  %590 = vmatpush.msrb.mxu1 %v275_v51 }
  0x81   :  { %611 = vmatpush.msrb.mxu2 %v290_v52  ;;  %630 = vmatpush.msrb.mxu3 %v307_v53 }
  0x82   :  { %572 = vmatpush.msrb.mxu0 %v257_v54  ;;  %591 = vmatpush.msrb.mxu1 %v274_v55  ;;  %v762_v55 = vmov 128.0  }
  0x83   :  { %612 = vmatpush.msrb.mxu2 %v289_v56  ;;  %631 = vmatpush.msrb.mxu3 %v306_v57  ;;  %729 = vrcp.f32 %v762_v55 }
  0x84   :  { %573 = vmatpush.msrb.mxu0 %v256_v58  ;;  %592 = vmatpush.msrb.mxu1 %v273_v59 }
  0x85   :  { %613 = vmatpush.msrb.mxu2 %v288_v60  ;;  %632 = vmatpush.msrb.mxu3 %v305_v61 }
  0x86   :  { %574 = vmatpush.msrb.mxu0 %v255_v62  ;;  %593 = vmatpush.msrb.mxu1 %v272_v63 }
  0x87   :  { %614 = vmatpush.msrb.mxu2 %v287_v0  ;;  %633 = vmatpush.msrb.mxu3 %v304_v1 }
  0x88   :  { %575 = vmatpush.msrb.mxu0 %v254_v2  ;;  %594 = vmatpush.msrb.mxu1 %v271_v3 }
  0x89   :  { %615 = vmatpush.msrb.mxu2 %v286_v4  ;;  %634 = vmatpush.msrb.mxu3 %v303_v5  ;;  %v730_v56 = vpop.eup %729 }
  0x8a   :  { %576 = vmatpush.msrb.mxu0 %v253_v6  ;;  %595 = vmatpush.msrb.mxu1 %v270_v7  ;;  %v681_v57 = vmul.f32 128.0, %v730_v56  ;;  %vm685_vm2 = vweird.f32 %v730_v56 }
  0x8b   :  { %616 = vmatpush.msrb.mxu2 %v285_v8  ;;  %635 = vmatpush.msrb.mxu3 %v302_v9 }
  0x8c   :  { %577 = vmatmul.f32.vlgmr.msrb.gmra.mxu0 %v57_v10  ;;  %617 = vmatmul.f32.vlgmr.msrb.gmra.mxu2 %v59_v11  ;;  %v682_v58 = vsub.f32 1.0, %v681_v57  ;;  %v727_v11 = vld [vmem:[%s886_s6] ss:$0 sm:$0xff] }
  0x8d   :  { %719 = vmatpush.msk.msra.mxu0 %vm651_vm0, %v642_v12  ;;  %596 = vmatpush.msrb.mxu1 %v269_v13  ;;  %v728_v13 = vld [vmem:[%s887_s7] ss:$0 sm:$0xff] }
  0x8e   :  { %636 = vmatpush.msrb.mxu3 %v301_v14  ;;  %597 = vmatmul.f32.vlgmr.msrb.gmra.mxu1 %v58_v15  ;;  %v683_v59 = vmul.f32 %v730_v56, %v682_v58 }
  0x8f   :  { %637 = vmatmul.f32.vlgmr.msrb.gmra.mxu3 %v60_v16 }
  0x90   :  { %v684_v60 = vadd.f32 %v730_v56, %v683_v59 }
  0x92   :  { %v686_v61 = vsel %vm685_vm2, %v730_v56, %v684_v60 }
  0x94   :  { %720 = vmatmul.msk.f32.vlgmr.msra.gmra.mxu0 %vm647_vm1, %v641_v17 }
  0xc3   :  { %v338_v19 = vpop.f32.mrf.mxu0 }
  0xc4   :  { %v339_v20 = vadd.f32 %v725_v18, %v338_v19 }
  0xc6   :  { %v358_v21 = vpop.f32.mrf.mxu1 }
  0xc7   :  { %v359_v22 = vadd.f32 %v358_v21, %v339_v20  ;;  %v378_v23 = vpop.f32.mrf.mxu2 }
  0xc9   :  { %v379_v24 = vadd.f32 %v378_v23, %v359_v22 }
  0xca   :  { %v398_v25 = vpop.f32.mrf.mxu3 }
  0xcb   :  { %v399_v26 = vadd.f32 %v398_v25, %v379_v24 }
  0xcd   :  { %v418_v27 = vpop.f32.mrf.mxu0 }
  0xce   :  { %v419_v28 = vadd.f32 %v418_v27, %v399_v26 }
  0xd0   :  { %v438_v29 = vpop.f32.mrf.mxu1 }
  0xd1   :  { %v439_v30 = vadd.f32 %v438_v29, %v419_v28  ;;  %v458_v31 = vpop.f32.mrf.mxu2 }
  0xd3   :  { %v459_v32 = vadd.f32 %v458_v31, %v439_v30 }
  0xd4   :  { %v478_v33 = vpop.f32.mrf.mxu3 }
  0xd5   :  { %v479_v35 = vadd.f32 %v478_v33, %v459_v32 }
  0xe7   :  { %v498_v34 = vpop.f32.mrf.mxu0 }
  0xe8   :  { %v499_v36 = vadd.f32 %v498_v34, %v479_v35 }
  0xea   :  { %v518_v37 = vpop.f32.mrf.mxu1 }
  0xeb   :  { %v519_v39 = vadd.f32 %v518_v37, %v499_v36 }
  0xed   :  { %v538_v38 = vpop.f32.mrf.mxu2 }
  0xee   :  { %v539_v40 = vadd.f32 %v538_v38, %v519_v39 }
  0xf0   :  { %v558_v41 = vpop.f32.mrf.mxu3 }
  0xf1   :  { %v559_v42 = vadd.f32 %v558_v41, %v539_v40 }
 0x109   :  { %v578_v43 = vpop.f32.mrf.mxu0 }
 0x10a   :  { %v579_v44 = vadd.f32 %v578_v43, %v559_v42 }
 0x10b   :  { %v598_v45 = vpop.f32.mrf.mxu1 }
 0x10c   :  { %v599_v46 = vadd.f32 %v598_v45, %v579_v44 }
 0x10f   :  { %v618_v48 = vpop.f32.mrf.mxu2 }
 0x110   :  { %v619_v49 = vadd.f32 %v618_v48, %v599_v46 }
 0x111   :  { %v672_v50 = vpop.f32.mrf.mxu0 }
 0x112   :  { %v638_v51 = vpop.f32.mrf.mxu3  ;;  %v673_v52 = vadd.f32 %v726_v47, %v672_v50 }
 0x113   :  { %v639_v53 = vadd.f32 %v638_v51, %v619_v49 }
 0x115   :  { %v675_v54 = vadd.f32 %v673_v52, %v639_v53 }
 0x117   :  { %678 = vadd.xlane.f32.xlu0 %v675_v54 }
 0x18a   :  { %v679_v62 = vpop.xlane.xlu0 %678 }
 0x18b   :  { %v687_v63 = vmul.f32 %v686_v61, %v679_v62 }
 0x18d   :  { %v688_v0 = vsub.f32 %v675_v54, %v687_v63 }
 0x18f   :  { %v689_v1 = vmul.f32 %v688_v0, %v688_v0 }
 0x191   :  { %690 = vadd.xlane.f32.xlu0 %v689_v1 }
 0x204   :  { %v691_v2 = vpop.xlane.xlu0 %690 }
 0x205   :  { %v692_v3 = vmul.f32 %v691_v2, %v686_v61 }
 0x207   :  { %v693_v4 = vadd.f32 1e-05, %v692_v3 }
 0x209   :  { %731 = vrsqrt.f32 %v693_v4  ;;  %vm700_vm4 = vweird.f32 %v693_v4 }
 0x20f   :  { %v732_v5 = vpop.eup %731 }
 0x210   :  { %v695_v6 = vmul.f32 %v732_v5, %v693_v4  ;;  %vm701_vm3 = vweird.f32 %v732_v5 }
 0x211   :  { %vm702_vm5 = vmor %vm700_vm4, %vm701_vm3 }
 0x212   :  { %v696_v7 = vmul.f32 %v732_v5, %v695_v6 }
 0x214   :  { %v697_v8 = vmul.f32 0.5, %v696_v7 }
 0x216   :  { %v698_v9 = vsub.f32 1.5, %v697_v8 }
 0x218   :  { %v699_v10 = vmul.f32 %v732_v5, %v698_v9 }
 0x21a   :  { %v703_v12 = vsel %vm702_vm5, %v732_v5, %v699_v10 }
 0x21b   :  { %v704_v14 = vmul.f32 %v703_v12, %v688_v0 }
 0x21d   :  { %v708_v15 = vmul.f32 %v727_v11, %v704_v14 }
 0x21f   :  { %v712_v16 = vadd.f32 %v728_v13, %v708_v15 }
 0x221   :  { %713 = vst [vmem:[%s888_s8] sm:$0xff] %v712_v16 }
 0x222   :  { %718 = vsyncpa [#allocation3], 1 }

// kernel: lxmert_encoder_wrapper_forward.15
= control target key start
LH: loop header
LB: loop body
LE: loop exit
PB: predicated region body
PF: predicated region fallthrough
CT: control target
= control target key end

     0   :  { %vm63_vm0 = vcmask 523264   ;;  %s193_s1 = inlined_call_operand.vmem [shape: f32[128,64], index: 1, kind: input, shape index: {}]   ;;  %s194_s2 = inlined_call_operand.vmem [shape: f32[1,64], index: 2, kind: input, shape index: {}]   ;;  %s195_s0 = inlined_call_operand.vmem [shape: f32[24,128], index: 0, kind: input, shape index: {}]   ;;  %s196_s3 = inlined_call_operand.vmem [shape: f32[24,64], index: 3, kind: output, shape index: {}]  }
   0x1   :  { %v32_v0 = vld [vmem:[%s193_s1 + $0x78] sm:$0xff]  ;;  %v31_v1 = vld [vmem:[%s193_s1 + $0x70] sm:$0xff]  ;;  %v30_v2 = vld [vmem:[%s193_s1 + $0x68] sm:$0xff] }
   0x2   :  { %72 = vmatpush.msra.mxu2 %v32_v0  ;;  %37 = vmatpush.msra.mxu0 %v32_v0  ;;  %v29_v3 = vld [vmem:[%s193_s1 + $0x60] sm:$0xff]  ;;  %v28_v4 = vld [vmem:[%s193_s1 + $0x58] sm:$0xff]  ;;  %v27_v5 = vld [vmem:[%s193_s1 + $0x50] sm:$0xff] }
   0x3   :  { %71 = vmatpush.msra.mxu1 %v32_v0  ;;  %v26_v6 = vld [vmem:[%s193_s1 + $0x48] sm:$0xff]  ;;  %v25_v7 = vld [vmem:[%s193_s1 + $0x40] sm:$0xff]  ;;  %v24_v8 = vld [vmem:[%s193_s1 + $0x38] sm:$0xff] }
   0x4   :  { %74 = vmatpush.msra.mxu2 %v31_v1  ;;  %38 = vmatpush.msra.mxu0 %v31_v1  ;;  %v23_v9 = vld [vmem:[%s193_s1 + $0x30] sm:$0xff]  ;;  %v22_v10 = vld [vmem:[%s193_s1 + $0x28] sm:$0xff]  ;;  %v21_v11 = vld [vmem:[%s193_s1 + $0x20] sm:$0xff] }
   0x5   :  { %73 = vmatpush.msra.mxu1 %v31_v1  ;;  %v20_v12 = vld [vmem:[%s193_s1 + $0x18] sm:$0xff]  ;;  %v19_v13 = vld [vmem:[%s193_s1 + $0x10] sm:$0xff]  ;;  %v18_v14 = vld [vmem:[%s193_s1 + $0x8] sm:$0xff] }
   0x6   :  { %76 = vmatpush.msra.mxu2 %v30_v2  ;;  %39 = vmatpush.msra.mxu0 %v30_v2  ;;  %v17_v15 = vld [vmem:[%s193_s1] sm:$0xff]  ;;  %v16_v16 = vld [vmem:[%s195_s0 + $0x10] sm:$0xff]  ;;  %v15_v18 = vld [vmem:[%s195_s0 + $0x8] sm:$0xff] }
   0x7   :  { %75 = vmatpush.msra.mxu1 %v30_v2  ;;  %v14_v17 = vld [vmem:[%s195_s0] sm:$0xff] }
   0x8   :  { %78 = vmatpush.msra.mxu2 %v29_v3  ;;  %40 = vmatpush.msra.mxu0 %v29_v3  ;;  %v103_v19 = vld [vmem:[%s194_s2] ss:$0 sm:$0xff] }
   0x9   :  { %77 = vmatpush.msra.mxu1 %v29_v3 }
   0xa   :  { %80 = vmatpush.msra.mxu2 %v28_v4  ;;  %41 = vmatpush.msra.mxu0 %v28_v4 }
   0xb   :  { %79 = vmatpush.msra.mxu1 %v28_v4 }
   0xc   :  { %82 = vmatpush.msra.mxu2 %v27_v5  ;;  %42 = vmatpush.msra.mxu0 %v27_v5 }
   0xd   :  { %81 = vmatpush.msra.mxu1 %v27_v5 }
   0xe   :  { %84 = vmatpush.msra.mxu2 %v26_v6  ;;  %43 = vmatpush.msra.mxu0 %v26_v6 }
   0xf   :  { %83 = vmatpush.msra.mxu1 %v26_v6 }
  0x10   :  { %86 = vmatpush.msra.mxu2 %v25_v7  ;;  %44 = vmatpush.msra.mxu0 %v25_v7 }
  0x11   :  { %85 = vmatpush.msra.mxu1 %v25_v7 }
  0x12   :  { %88 = vmatpush.msra.mxu2 %v24_v8  ;;  %45 = vmatpush.msra.mxu0 %v24_v8 }
  0x13   :  { %87 = vmatpush.msra.mxu1 %v24_v8 }
  0x14   :  { %90 = vmatpush.msra.mxu2 %v23_v9  ;;  %46 = vmatpush.msra.mxu0 %v23_v9 }
  0x15   :  { %89 = vmatpush.msra.mxu1 %v23_v9 }
  0x16   :  { %92 = vmatpush.msra.mxu2 %v22_v10  ;;  %47 = vmatpush.msra.mxu0 %v22_v10 }
  0x17   :  { %91 = vmatpush.msra.mxu1 %v22_v10 }
  0x18   :  { %94 = vmatpush.msra.mxu2 %v21_v11  ;;  %48 = vmatpush.msra.mxu0 %v21_v11 }
  0x19   :  { %93 = vmatpush.msra.mxu1 %v21_v11 }
  0x1a   :  { %96 = vmatpush.msra.mxu2 %v20_v12  ;;  %49 = vmatpush.msra.mxu0 %v20_v12 }
  0x1b   :  { %95 = vmatpush.msra.mxu1 %v20_v12 }
  0x1c   :  { %98 = vmatpush.msra.mxu2 %v19_v13  ;;  %50 = vmatpush.msra.mxu0 %v19_v13 }
  0x1d   :  { %97 = vmatpush.msra.mxu1 %v19_v13 }
  0x1e   :  { %100 = vmatpush.msra.mxu2 %v18_v14  ;;  %51 = vmatpush.msra.mxu0 %v18_v14 }
  0x1f   :  { %99 = vmatpush.msra.mxu1 %v18_v14 }
  0x20   :  { %102 = vmatpush.msra.mxu2 %v17_v15  ;;  %52 = vmatpush.msra.mxu0 %v17_v15 }
  0x21   :  { %59 = vmatmul.f32.vlgmr.msra.gmra.mxu2 %v16_v16  ;;  %101 = vmatpush.msra.mxu1 %v17_v15 }
  0x22   :  { %53 = vmatmul.f32.vlgmr.msra.gmra.mxu0 %v14_v17  ;;  %56 = vmatmul.f32.vlgmr.msra.gmra.mxu1 %v15_v18 }
  0x9f   :  { %v54_v20 = vpop.f32.mrf.mxu0  ;;  %v57_v21 = vpop.f32.mrf.mxu1 }
  0xa0   :  { %v55_v22 = vadd.f32 %v103_v19, %v54_v20  ;;  %v58_v23 = vadd.f32 %v103_v19, %v57_v21 }
  0xa2   :  { %64 = vst.msk [vmem:[%s196_s3] sm:$0xff] %vm63_vm0, %v55_v22 }
  0xa3   :  { %65 = vst.msk [vmem:[%s196_s3 + $0x8] sm:$0xff] %vm63_vm0, %v58_v23 }
  0xa4   :  { %v60_v24 = vpop.f32.mrf.mxu2 }
  0xa5   :  { %v61_v25 = vadd.f32 %v103_v19, %v60_v24 }
  0xa7   :  { %66 = vst.msk [vmem:[%s196_s3 + $0x10] sm:$0xff] %vm63_vm0, %v61_v25 }

// kernel: lxmert_encoder_wrapper_forward.10
= control target key start
LH: loop header
LB: loop body
LE: loop exit
PB: predicated region body
PF: predicated region fallthrough
CT: control target
= control target key end

     0   :  { %19 = vsyncpa [#allocation3], 0  ;;  %s1174_s0 = inlined_call_operand.vmem [shape: f32[16,128], index: 0, kind: input, shape index: {}]   ;;  %s1175_s1 = inlined_call_operand.vmem [shape: f32[16,16], index: 1, kind: input, shape index: {}]   ;;  %s1176_s2 = inlined_call_operand.hbm [shape: f32[128,384], index: 2, kind: input, shape index: {}]   ;;  %s1177_s3 = inlined_call_operand.vmem [shape: f32[1,384], index: 3, kind: input, shape index: {}]   ;;  %s1178_s4 = inlined_call_operand.hbm [shape: f32[128,128], index: 4, kind: input, shape index: {}]   ;;  %s1179_s5 = inlined_call_operand.vmem [shape: f32[1,128], index: 5, kind: input, shape index: {}]   ;;  %s1180_s6 = inlined_call_operand.hbm [shape: f32[128,256], index: 6, kind: input, shape index: {}]   ;;  %s1181_s7 = inlined_call_operand.vmem [shape: f32[1,256], index: 7, kind: input, shape index: {}]   ;;  %s1182_s8 = inlined_call_operand.hbm [shape: f32[256,128], index: 8, kind: input, shape index: {}]   ;;  %s1183_s9 = inlined_call_operand.vmem [shape: f32[1,128], index: 9, kind: input, shape index: {}]   ;;  %s1184_s10 = inlined_call_operand.vmem [shape: f32[1,128], index: 10, kind: input, shape index: {}]   ;;  %s1185_s11 = inlined_call_operand.vmem [shape: f32[1,128], index: 11, kind: input, shape index: {}]   ;;  %s1186_s12 = inlined_call_operand.vmem [shape: f32[1,128], index: 12, kind: input, shape index: {}]   ;;  %s1187_s13 = inlined_call_operand.vmem [shape: f32[1,128], index: 13, kind: input, shape index: {}]   ;;  %s1188_s14 = inlined_call_operand.vmem [shape: f32[16,128], index: 14, kind: output, shape index: {}]  }
   0x1   :  { %20 = vsyncpa [#allocation5], 0  ;;  %s45_s15 = sshll.u32 %s1178_s4, 4  ;;  %s46_s15 = int_to_ptr.hbm [resolvable:$true] %s45_s15 }
   0x2   :  { %21 = vsyncpa [#allocation8], 0  ;;  %s953_s16 = smov [#allocation4]   ;;  %s30_s20 = sshll.u32 %s1176_s2, 4  ;;  %s31_s20 = int_to_ptr.hbm [resolvable:$true] %s30_s20 }
   0x3   :  { %s47_s17 = sshll.u32 %s953_s16, 4  ;;  %s954_s21 = smov 128   ;;  %s48_s17 = int_to_ptr.vmem [resolvable:$true] %s47_s17 }
   0x4   :  { %s955_s22 = smov 8   ;;  %s956_s23 = smov [#allocation2]  }
   0x5   :  { %53 = dma.hbm_to_vmem [thread:$0]  %s46_s15, 2048, %s48_s17, [#allocation5], %s954_s21, %s954_s21, %s955_s22  }
   0x6   :  { %s32_s24 = sshll.u32 %s956_s23, 4  ;;  %s957_s25 = smov 384   ;;  %s33_s24 = int_to_ptr.vmem [resolvable:$true] %s32_s24 }
   0x7   :  { %s958_s26 = smov 24   ;;  %s60_s28 = sshll.u32 %s1180_s6, 4  ;;  %s61_s28 = int_to_ptr.hbm [resolvable:$true] %s60_s28 }
   0x8   :  { %38 = dma.hbm_to_vmem [thread:$0]  %s31_s20, 6144, %s33_s24, [#allocation3], %s957_s25, %s957_s25, %s958_s26  }
   0x9   :  { %s959_s29 = smov [#allocation6]   ;;  %s75_s18 = sshll.u32 %s1182_s8, 4  ;;  %s76_s18 = int_to_ptr.hbm [resolvable:$true] %s75_s18 }
   0xa   :  { %s62_s30 = sshll.u32 %s959_s29, 4  ;;  %s960_s15 = smov 256   ;;  %s63_s30 = int_to_ptr.vmem [resolvable:$true] %s62_s30 }
   0xb   :  { %s961_s17 = smov 16   ;;  %s962_s19 = smov [#allocation7]  }
   0xc   :  { %68 = dma.hbm_to_vmem [thread:$0]  %s61_s28, 4096, %s63_s30, [#allocation5], %s960_s15, %s960_s15, %s961_s17  }
   0xd   :  { %s77_s23 = sshll.u32 %s962_s19, 4  ;;  %s78_s23 = int_to_ptr.vmem [resolvable:$true] %s77_s23 }
   0xe   :  { %83 = dma.hbm_to_vmem [thread:$0]  %s76_s18, 4096, %s78_s23, [#allocation8], %s954_s21, %s954_s21, %s955_s22  }
   0xf   :  { %947 = dma.done.wait [#allocation3], 6144  }
  0x10   :  { %948 = vsyncadd [#allocation3], 4294961152 }
  0x11   :  { %949 = dma.done.wait [#allocation5], 6144  }
  0x12   :  { %950 = vsyncadd [#allocation5], 4294961152 }
  0x13   :  { %951 = dma.done.wait [#allocation8], 4096  }
  0x14   :  { %952 = vsyncadd [#allocation8], 4294963200  ;;  %v160_v0 = vld [vmem:[#allocation2 + $0x170] sm:$0xff]  ;;  %v157_v1 = vld [vmem:[#allocation2 + $0x158] sm:$0xff]  ;;  %vm241_vm0 = vcmask 523264   ;;  %vm277_vm1 = vcmask 130048  }
  0x15   :  { %193 = vmatpush.msra.mxu1 %v160_v0  ;;  %v154_v2 = vld [vmem:[#allocation2 + $0x140] sm:$0xff]  ;;  %v159_v3 = vld [vmem:[#allocation2 + $0x168] sm:$0xff]  ;;  %v156_v4 = vld [vmem:[#allocation2 + $0x150] sm:$0xff] }
  0x16   :  { %170 = vmatpush.msra.mxu0 %v159_v3  ;;  %v151_v5 = vld [vmem:[#allocation2 + $0x128] sm:$0xff]  ;;  %v153_v6 = vld [vmem:[#allocation2 + $0x138] sm:$0xff]  ;;  %v148_v7 = vld [vmem:[#allocation2 + $0x110] sm:$0xff] }
  0x17   :  { %194 = vmatpush.msra.mxu1 %v157_v1  ;;  %v150_v8 = vld [vmem:[#allocation2 + $0x120] sm:$0xff]  ;;  %v145_v9 = vld [vmem:[#allocation2 + $0xf8] sm:$0xff]  ;;  %v147_v10 = vld [vmem:[#allocation2 + $0x108] sm:$0xff] }
  0x18   :  { %171 = vmatpush.msra.mxu0 %v156_v4  ;;  %v142_v11 = vld [vmem:[#allocation2 + $0xe0] sm:$0xff]  ;;  %v144_v12 = vld [vmem:[#allocation2 + $0xf0] sm:$0xff]  ;;  %v161_v13 = vld [vmem:[#allocation2 + $0x178] sm:$0xff] }
  0x19   :  { %195 = vmatpush.msra.mxu1 %v154_v2  ;;  %v158_v14 = vld [vmem:[#allocation2 + $0x160] sm:$0xff]  ;;  %v139_v15 = vld [vmem:[#allocation2 + $0xc8] sm:$0xff]  ;;  %v141_v16 = vld [vmem:[#allocation2 + $0xd8] sm:$0xff]  ;;  %216 = vmatpush.msra.mxu2 %v161_v13 }
  0x1a   :  { %172 = vmatpush.msra.mxu0 %v153_v6  ;;  %v155_v17 = vld [vmem:[#allocation2 + $0x148] sm:$0xff]  ;;  %v136_v18 = vld [vmem:[#allocation2 + $0xb0] sm:$0xff]  ;;  %v138_v19 = vld [vmem:[#allocation2 + $0xc0] sm:$0xff] }
  0x1b   :  { %196 = vmatpush.msra.mxu1 %v151_v5  ;;  %217 = vmatpush.msra.mxu2 %v158_v14  ;;  %v133_v20 = vld [vmem:[#allocation2 + $0x98] sm:$0xff]  ;;  %v152_v21 = vld [vmem:[#allocation2 + $0x130] sm:$0xff]  ;;  %v130_v22 = vld [vmem:[#allocation2 + $0x80] sm:$0xff] }
  0x1c   :  { %173 = vmatpush.msra.mxu0 %v150_v8  ;;  %v135_v23 = vld [vmem:[#allocation2 + $0xa8] sm:$0xff]  ;;  %v149_v24 = vld [vmem:[#allocation2 + $0x118] sm:$0xff]  ;;  %v132_v25 = vld [vmem:[#allocation2 + $0x90] sm:$0xff] }
  0x1d   :  { %197 = vmatpush.msra.mxu1 %v148_v7  ;;  %218 = vmatpush.msra.mxu2 %v155_v17  ;;  %v146_v26 = vld [vmem:[#allocation2 + $0x100] sm:$0xff]  ;;  %v127_v27 = vld [vmem:[#allocation2 + $0x68] sm:$0xff]  ;;  %v129_v28 = vld [vmem:[#allocation2 + $0x78] sm:$0xff] }
  0x1e   :  { %174 = vmatpush.msra.mxu0 %v147_v10  ;;  %v143_v29 = vld [vmem:[#allocation2 + $0xe8] sm:$0xff]  ;;  %v124_v30 = vld [vmem:[#allocation2 + $0x50] sm:$0xff]  ;;  %v126_v31 = vld [vmem:[#allocation2 + $0x60] sm:$0xff] }
  0x1f   :  { %198 = vmatpush.msra.mxu1 %v145_v9  ;;  %219 = vmatpush.msra.mxu2 %v152_v21  ;;  %v140_v32 = vld [vmem:[#allocation2 + $0xd0] sm:$0xff]  ;;  %v121_v33 = vld [vmem:[#allocation2 + $0x38] sm:$0xff]  ;;  %v123_v34 = vld [vmem:[#allocation2 + $0x48] sm:$0xff] }
  0x20   :  { %175 = vmatpush.msra.mxu0 %v144_v12  ;;  %v137_v35 = vld [vmem:[#allocation2 + $0xb8] sm:$0xff]  ;;  %v118_v36 = vld [vmem:[#allocation2 + $0x20] sm:$0xff]  ;;  %v120_v37 = vld [vmem:[#allocation2 + $0x30] sm:$0xff] }
  0x21   :  { %199 = vmatpush.msra.mxu1 %v142_v11  ;;  %220 = vmatpush.msra.mxu2 %v149_v24  ;;  %v134_v38 = vld [vmem:[#allocation2 + $0xa0] sm:$0xff]  ;;  %v115_v39 = vld [vmem:[#allocation2 + $0x8] sm:$0xff]  ;;  %v117_v40 = vld [vmem:[#allocation2 + $0x18] sm:$0xff] }
  0x22   :  { %176 = vmatpush.msra.mxu0 %v141_v16  ;;  %v1055_v41 = vld [vmem:[%s1174_s0] sm:$0xff]  ;;  %v131_v42 = vld [vmem:[#allocation2 + $0x88] sm:$0xff]  ;;  %v128_v44 = vld [vmem:[#allocation2 + $0x70] sm:$0xff] }
  0x23   :  { %200 = vmatpush.msra.mxu1 %v139_v15  ;;  %221 = vmatpush.msra.mxu2 %v146_v26  ;;  %v114_v43 = vld [vmem:[#allocation2] sm:$0xff]  ;;  %v125_v45 = vld [vmem:[#allocation2 + $0x58] sm:$0xff]  ;;  %v1062_v47 = vld [vmem:[%s1174_s0 + $0x8] sm:$0xff]  ;;  %s963_s0 = smov 64  }
  0x24   :  { %177 = vmatpush.msra.mxu0 %v138_v19  ;;  %v122_v46 = vld [vmem:[#allocation2 + $0x40] sm:$0xff]  ;;  %v119_v48 = vld [vmem:[#allocation2 + $0x28] sm:$0xff]  ;;  %v116_v49 = vld [vmem:[#allocation2 + $0x10] sm:$0xff] }
  0x25   :  { %201 = vmatpush.msra.mxu1 %v136_v18  ;;  %222 = vmatpush.msra.mxu2 %v143_v29  ;;  %v162_v51 = vld [vmem:[%s1177_s3] sm:$0x7]  ;;  %v113_v11 = vld [vmem:[%s1175_s1 + $0x8] sm:$0xff] }
  0x26   :  { %178 = vmatpush.msra.mxu0 %v135_v23  ;;  %v164_v53 = vperm.slane %v162_v51, 0  ;;  %v165_v54 = vperm.slane %v162_v51, 1  ;;  %v166_v0 = vperm.slane %v162_v51, 2  ;;  %v112_v7 = vld [vmem:[%s1175_s1] sm:$0xff] }
  0x27   :  { %202 = vmatpush.msra.mxu1 %v133_v20  ;;  %223 = vmatpush.msra.mxu2 %v140_v32 }
  0x28   :  { %179 = vmatpush.msra.mxu0 %v132_v25 }
  0x29   :  { %203 = vmatpush.msra.mxu1 %v130_v22  ;;  %224 = vmatpush.msra.mxu2 %v137_v35 }
  0x2a   :  { %180 = vmatpush.msra.mxu0 %v129_v28 }
  0x2b   :  { %204 = vmatpush.msra.mxu1 %v127_v27  ;;  %225 = vmatpush.msra.mxu2 %v134_v38 }
  0x2c   :  { %181 = vmatpush.msra.mxu0 %v126_v31 }
  0x2d   :  { %205 = vmatpush.msra.mxu1 %v124_v30  ;;  %226 = vmatpush.msra.mxu2 %v131_v42 }
  0x2e   :  { %182 = vmatpush.msra.mxu0 %v123_v34 }
  0x2f   :  { %206 = vmatpush.msra.mxu1 %v121_v33  ;;  %227 = vmatpush.msra.mxu2 %v128_v44 }
  0x30   :  { %183 = vmatpush.msra.mxu0 %v120_v37 }
  0x31   :  { %207 = vmatpush.msra.mxu1 %v118_v36  ;;  %228 = vmatpush.msra.mxu2 %v125_v45 }
  0x32   :  { %184 = vmatpush.msra.mxu0 %v117_v40 }
  0x33   :  { %208 = vmatpush.msra.mxu1 %v115_v39  ;;  %229 = vmatpush.msra.mxu2 %v122_v46 }
  0x34   :  { %209 = vmatmul.f32.vlgmr.msra.gmra.mxu1 %v1055_v41  ;;  %185 = vmatpush.msra.mxu0 %v114_v43 }
  0x35   :  { %186 = vmatmul.f32.vlgmr.msra.gmra.mxu0 %v1055_v41  ;;  %230 = vmatpush.msra.mxu2 %v119_v48 }
  0x37   :  { %231 = vmatpush.msra.mxu2 %v116_v49 }
  0x38   :  { %232 = vmatmul.f32.vlgmr.msra.gmra.mxu2 %v1055_v41 }
  0x3c   :  { %212 = vmatmul.f32.gmra.mxu1 %v1062_v47 }
  0x3d   :  { %189 = vmatmul.f32.gmra.mxu0 %v1062_v47 }
  0x40   :  { %235 = vmatmul.f32.gmra.mxu2 %v1062_v47 }
  0xb1   :  { %v210_v50 = vpop.f32.mrf.mxu1 }
  0xb2   :  { %v187_v52 = vpop.f32.mrf.mxu0  ;;  %v211_v58 = vadd.f32 %v210_v50, %v165_v54 }
  0xb3   :  { %v188_v57 = vadd.f32 %v187_v52, %v164_v53 }
  0xb5   :  { %v239_v59 = vmul.f32 0.125, %v188_v57 }
  0xb9   :  { %v213_v55 = vpop.f32.mrf.mxu1 }
  0xba   :  { %v214_v56 = vadd.f32 %v213_v55, %v165_v54  ;;  %v190_v60 = vpop.f32.mrf.mxu0 }
  0xbb   :  { %v233_v61 = vpop.f32.mrf.mxu2  ;;  %v191_v62 = vadd.f32 %v190_v60, %v164_v53 }
  0xbc   :  { %335 = vrot.lane.b32.xlu2 %v214_v56, %s963_s0  ;;  %774 = vmatpush.xpose.msk.msra.mxu3 %vm241_vm0, %v214_v56  ;;  %v234_v2 = vadd.f32 %v233_v61, %v166_v0 }
  0xbd   :  { %v240_v63 = vmul.f32 0.125, %v191_v62  ;;  %v452_v62 = vld [vmem:[#allocation4 + $0x78] sm:$0xff] }
  0xbe   :  { %457 = vmatpush.msrb.mxu1 %v452_v62  ;;  %v551_v62 = vld [vmem:[#allocation6 + $0x50] sm:$0xff] }
  0xc0   :  { %775 = vmatpush.xpose.msk.msra.mxu3 %vm241_vm0, %v211_v58 }
  0xc3   :  { %776 = vmatmul.msk.f32.vlgmr.msra.gmra.mxu3 %vm241_vm0, %v239_v59  ;;  %v236_v1 = vpop.f32.mrf.mxu2 }
  0xc4   :  { %333 = vrot.lane.b32.xlu2 %v211_v58, %s963_s0  ;;  %v237_v3 = vadd.f32 %v236_v1, %v166_v0  ;;  %v450_v0 = vld [vmem:[#allocation4 + $0x68] sm:$0xff]  ;;  %v449_v1 = vld [vmem:[#allocation4 + $0x60] sm:$0xff] }
  0xc6   :  { %v814_v4 = vpack.i.bf16 %v234_v2, %v237_v3  ;;  %320 = vmatpush.msrb.mxu3 %v237_v3  ;;  %v447_v3 = vld [vmem:[#allocation4 + $0x50] sm:$0xff] }
  0xc8   :  { %321 = vmatpush.msrb.mxu3 %v234_v2  ;;  %v448_v2 = vld [vmem:[#allocation4 + $0x58] sm:$0xff] }
  0xcb   :  { %777 = vmatmul.msk.f32.gmra.mxu3 %vm241_vm0, %v240_v63 }
 0x116   :  { %v336_v5 = vpop.permute.xlu2 %335 }
 0x117   :  { %780 = vmatpush.xpose.msk.msra.mxu3 %vm241_vm0, %v336_v5  ;;  %v445_v5 = vld [vmem:[#allocation4 + $0x40] sm:$0xff] }
 0x11e   :  { %v334_v6 = vpop.permute.xlu2 %333 }
 0x11f   :  { %781 = vmatpush.xpose.msk.msra.mxu3 %vm241_vm0, %v334_v6  ;;  %v444_v6 = vld [vmem:[#allocation4 + $0x38] sm:$0xff] }
 0x146   :  { %v271_v8 = vpop.f32.mrf.mxu3 }
 0x147   :  { %v272_v9 = vadd.f32 %v271_v8, %v112_v7  ;;  %v442_v8 = vld [vmem:[#allocation4 + $0x28] sm:$0xff] }
 0x149   :  { %v278_v10 = vsel %vm277_vm1, %v272_v9, -inf }
 0x14a   :  { %279 = vmax.xlane.f32.xlu0 %v278_v10  ;;  %v440_v10 = vld [vmem:[#allocation4 + $0x18] sm:$0xff] }
 0x14e   :  { %v274_v12 = vpop.f32.mrf.mxu3 }
 0x14f   :  { %v275_v13 = vadd.f32 %v274_v12, %v113_v11  ;;  %v439_v12 = vld [vmem:[#allocation4 + $0x10] sm:$0xff] }
 0x151   :  { %v281_v14 = vsel %vm277_vm1, %v275_v13, -inf }
 0x152   :  { %282 = vmax.xlane.f32.xlu0 %v281_v14 }
 0x166   :  { %329 = vrot.lane.b32.xlu0 %v239_v59, %s963_s0 }
 0x1bd   :  { %v280_v15 = vpop.xlane.xlu0 %279 }
 0x1be   :  { %v284_v16 = vsub.f32 %v272_v9, %v280_v15  ;;  %v441_v9 = vld [vmem:[#allocation4 + $0x20] sm:$0xff] }
 0x1bf   :  { %v437_v15 = vld [vmem:[#allocation4] sm:$0xff] }
 0x1c0   :  { %v286_v17 = vmul.f32 1.442695, %v284_v16 }
 0x1c2   :  { %825 = vpow2.f32 %v286_v17 }
 0x1c5   :  { %v283_v18 = vpop.xlane.xlu0 %282 }
 0x1c6   :  { %v285_v19 = vsub.f32 %v275_v13, %v283_v18  ;;  %v438_v13 = vld [vmem:[#allocation4 + $0x8] sm:$0xff] }
 0x1c8   :  { %v826_v20 = vpop.eup %825  ;;  %v288_v21 = vmul.f32 1.442695, %v285_v19 }
 0x1c9   :  { %v290_v22 = vsel %vm277_vm1, %v826_v20, 0.0 }
 0x1ca   :  { %827 = vpow2.f32 %v288_v21  ;;  %291 = vadd.xlane.f32.xlu1 %v290_v22 }
 0x1d0   :  { %v828_v23 = vpop.eup %827 }
 0x1d1   :  { %v293_v24 = vsel %vm277_vm1, %v828_v23, 0.0 }
 0x1d2   :  { %294 = vadd.xlane.f32.xlu1 %v293_v24 }
 0x1d8   :  { %v330_v31 = vpop.permute.xlu0 %329 }
 0x1eb   :  { %331 = vrot.lane.b32.xlu1 %v240_v63, %s963_s0  ;;  %v451_v63 = vld [vmem:[#allocation4 + $0x70] sm:$0xff] }
 0x1ec   :  { %458 = vmatpush.msrb.mxu1 %v451_v63  ;;  %v552_v63 = vld [vmem:[#allocation6 + $0x58] sm:$0xff] }
 0x1ee   :  { %459 = vmatpush.msrb.mxu1 %v450_v0  ;;  %v549_v0 = vld [vmem:[#allocation6 + $0x40] sm:$0xff] }
 0x1f0   :  { %460 = vmatpush.msrb.mxu1 %v449_v1  ;;  %v550_v1 = vld [vmem:[#allocation6 + $0x48] sm:$0xff] }
 0x1f2   :  { %461 = vmatpush.msrb.mxu1 %v448_v2  ;;  %v547_v2 = vld [vmem:[#allocation6 + $0x30] sm:$0xff] }
 0x1f4   :  { %462 = vmatpush.msrb.mxu1 %v447_v3  ;;  %v548_v3 = vld [vmem:[#allocation6 + $0x38] sm:$0xff] }
 0x23d   :  { %v292_v25 = vpop.xlane.xlu1 %291 }
 0x23e   :  { %829 = vrcp.f32 %v292_v25 }
 0x244   :  { %v830_v26 = vpop.eup %829 }
 0x245   :  { %v295_v27 = vpop.xlane.xlu1 %294  ;;  %v298_v28 = vmul.f32 %v830_v26, %v826_v20  ;;  %v819_v20 = vld [vmem:[%s1179_s5] ss:$0 sm:$0xff] }
 0x246   :  { %831 = vrcp.f32 %v295_v27  ;;  %v964_v27 = vmov 128.0  }
 0x247   :  { %778 = vmatmul.msk.f32.vlgmr.msrb.gmra.mxu3 %vm277_vm1, %v298_v28 }
 0x24c   :  { %v832_v29 = vpop.eup %831 }
 0x24d   :  { %v299_v30 = vmul.f32 %v832_v29, %v828_v23 }
 0x24f   :  { %779 = vmatmul.msk.f32.gmra.mxu3 %vm277_vm1, %v299_v30 }
 0x257   :  { %782 = vmatmul.msk.f32.vlgmr.msra.gmra.mxu3 %vm241_vm0, %v330_v31 }
 0x25d   :  { %v332_v32 = vpop.permute.xlu1 %331 }
 0x25f   :  { %783 = vmatmul.msk.f32.gmra.mxu3 %vm241_vm0, %v332_v32 }
 0x2ca   :  { %v1095_v33 = vpop.f32.mrf.mxu3 }
 0x2d2   :  { %v1097_v34 = vpop.f32.mrf.mxu3 }
 0x2da   :  { %v362_v35 = vpop.f32.mrf.mxu3 }
 0x2db   :  { %v363_v36 = vadd.f32 %v362_v35, %v112_v7  ;;  %v443_v7 = vld [vmem:[#allocation4 + $0x30] sm:$0xff] }
 0x2dd   :  { %v368_v37 = vsel %vm277_vm1, %v363_v36, -inf }
 0x2de   :  { %369 = vmax.xlane.f32.xlu2 %v368_v37  ;;  %v572_v37 = vld [vmem:[#allocation6 + $0xf8] sm:$0xff] }
 0x2df   :  { %602 = vmatpush.msrb.mxu3 %v572_v37  ;;  %v639_v37 = vld [vmem:[#allocation7 + $0x50] sm:$0xff] }
 0x2e2   :  { %v365_v38 = vpop.f32.mrf.mxu3 }
 0x2e3   :  { %v366_v39 = vadd.f32 %v365_v38, %v113_v11  ;;  %v569_v38 = vld [vmem:[#allocation6 + $0xe0] sm:$0xff] }
 0x2e5   :  { %v371_v40 = vsel %vm277_vm1, %v366_v39, -inf }
 0x2e6   :  { %372 = vmax.xlane.f32.xlu0 %v371_v40 }
 0x2f6   :  { %815 = vrot.lane.b32.xlu2 %v814_v4, %s963_s0  ;;  %v446_v4 = vld [vmem:[#allocation4 + $0x48] sm:$0xff] }
 0x2f7   :  { %463 = vmatpush.msrb.mxu1 %v446_v4  ;;  %v545_v4 = vld [vmem:[#allocation6 + $0x20] sm:$0xff] }
 0x2f9   :  { %464 = vmatpush.msrb.mxu1 %v445_v5  ;;  %v546_v5 = vld [vmem:[#allocation6 + $0x28] sm:$0xff] }
 0x2fb   :  { %465 = vmatpush.msrb.mxu1 %v444_v6  ;;  %v543_v6 = vld [vmem:[#allocation6 + $0x10] sm:$0xff] }
 0x2fd   :  { %466 = vmatpush.msrb.mxu1 %v443_v7  ;;  %v544_v7 = vld [vmem:[#allocation6 + $0x18] sm:$0xff] }
 0x2ff   :  { %467 = vmatpush.msrb.mxu1 %v442_v8  ;;  %v541_v8 = vld [vmem:[#allocation6] sm:$0xff] }
 0x301   :  { %468 = vmatpush.msrb.mxu1 %v441_v9  ;;  %v542_v9 = vld [vmem:[#allocation6 + $0x8] sm:$0xff] }
 0x303   :  { %469 = vmatpush.msrb.mxu1 %v440_v10 }
 0x305   :  { %470 = vmatpush.msrb.mxu1 %v439_v12 }
 0x307   :  { %471 = vmatpush.msrb.mxu1 %v438_v13 }
 0x309   :  { %472 = vmatpush.msrb.mxu1 %v437_v15 }
 0x351   :  { %v370_v42 = vpop.xlane.xlu2 %369 }
 0x352   :  { %v374_v43 = vsub.f32 %v363_v36, %v370_v42 }
 0x354   :  { %v376_v44 = vmul.f32 1.442695, %v374_v43 }
 0x356   :  { %833 = vpow2.f32 %v376_v44 }
 0x359   :  { %v373_v45 = vpop.xlane.xlu0 %372  ;;  %v816_v46 = vpop.permute.xlu2 %815 }
 0x35a   :  { %v375_v48 = vsub.f32 %v366_v39, %v373_v45  ;;  %v817_v49 = vunpack.i.l.bf16 %v816_v46  ;;  %v818_v52 = vunpack.i.h.bf16 %v816_v46  ;;  %v570_v39 = vld [vmem:[#allocation6 + $0xe8] sm:$0xff]  ;;  %v567_v45 = vld [vmem:[#allocation6 + $0xd0] sm:$0xff]  ;;  %v568_v46 = vld [vmem:[#allocation6 + $0xd8] sm:$0xff] }
 0x35b   :  { %603 = vmatpush.msrb.mxu3 %v570_v39  ;;  %v638_v39 = vld [vmem:[#allocation7 + $0x48] sm:$0xff] }
 0x35c   :  { %v834_v50 = vpop.eup %833  ;;  %v378_v51 = vmul.f32 1.442695, %v375_v48  ;;  %418 = vmatpush.msrb.mxu0 %v817_v49  ;;  %v565_v48 = vld [vmem:[#allocation6 + $0xc0] sm:$0xff]  ;;  %v566_v49 = vld [vmem:[#allocation6 + $0xc8] sm:$0xff] }
 0x35d   :  { %v380_v53 = vsel %vm277_vm1, %v834_v50, 0.0  ;;  %604 = vmatpush.msrb.mxu3 %v568_v46  ;;  %v636_v46 = vld [vmem:[#allocation7 + $0x38] sm:$0xff] }
 0x35e   :  { %835 = vpow2.f32 %v378_v51  ;;  %381 = vadd.xlane.f32.xlu1 %v380_v53  ;;  %419 = vmatpush.msrb.mxu0 %v818_v52  ;;  %v564_v51 = vld [vmem:[#allocation6 + $0xb8] sm:$0xff]  ;;  %v561_v52 = vld [vmem:[#allocation6 + $0xa0] sm:$0xff]  ;;  %v562_v53 = vld [vmem:[#allocation6 + $0xa8] sm:$0xff] }
 0x35f   :  { %605 = vmatpush.msrb.mxu3 %v566_v49 }
 0x361   :  { %606 = vmatpush.msrb.mxu3 %v564_v51  ;;  %v651_v51 = vld [vmem:[#allocation7 + $0xb0] sm:$0xff] }
 0x363   :  { %607 = vmatpush.msrb.mxu3 %v562_v53  ;;  %v634_v53 = vld [vmem:[#allocation7 + $0x28] sm:$0xff] }
 0x364   :  { %v836_v54 = vpop.eup %835 }
 0x365   :  { %v383_v55 = vsel %vm277_vm1, %v836_v54, 0.0 }
 0x366   :  { %384 = vadd.xlane.f32.xlu0 %v383_v55  ;;  %v560_v55 = vld [vmem:[#allocation6 + $0x98] sm:$0xff] }
 0x367   :  { %608 = vmatpush.msrb.mxu3 %v560_v55 }
 0x3d1   :  { %v382_v56 = vpop.xlane.xlu1 %381 }
 0x3d2   :  { %837 = vrcp.f32 %v382_v56  ;;  %v557_v56 = vld [vmem:[#allocation6 + $0x80] sm:$0xff] }
 0x3d8   :  { %v838_v57 = vpop.eup %837 }
 0x3d9   :  { %v385_v58 = vpop.xlane.xlu0 %384  ;;  %v388_v59 = vmul.f32 %v838_v57, %v834_v50  ;;  %v563_v50 = vld [vmem:[#allocation6 + $0xb0] sm:$0xff]  ;;  %v558_v57 = vld [vmem:[#allocation6 + $0x88] sm:$0xff] }
 0x3da   :  { %839 = vrcp.f32 %v385_v58  ;;  %609 = vmatpush.msrb.mxu3 %v558_v57  ;;  %v555_v58 = vld [vmem:[#allocation6 + $0x70] sm:$0xff]  ;;  %v649_v57 = vld [vmem:[#allocation7 + $0xa0] sm:$0xff] }
 0x3db   :  { %784 = vmatmul.msk.f32.vlgmr.msrb.gmra.mxu0 %vm277_vm1, %v388_v59  ;;  %841 = vrcp.f32 %v964_v27  ;;  %v556_v59 = vld [vmem:[#allocation6 + $0x78] sm:$0xff]  ;;  %v643_v27 = vld [vmem:[#allocation7 + $0x70] sm:$0xff] }
 0x3dc   :  { %610 = vmatpush.msrb.mxu3 %v556_v59  ;;  %v632_v59 = vld [vmem:[#allocation7 + $0x18] sm:$0xff] }
 0x3e0   :  { %v840_v60 = vpop.eup %839 }
 0x3e1   :  { %v389_v61 = vmul.f32 %v840_v60, %v836_v54  ;;  %v842_v28 = vpop.eup %841  ;;  %v559_v54 = vld [vmem:[#allocation6 + $0x90] sm:$0xff]  ;;  %v553_v60 = vld [vmem:[#allocation6 + $0x60] sm:$0xff] }
 0x3e2   :  { %v489_v29 = vmul.f32 128.0, %v842_v28  ;;  %vm493_vm2 = vweird.f32 %v842_v28 }
 0x3e3   :  { %785 = vmatmul.msk.f32.gmra.mxu0 %vm277_vm1, %v389_v61  ;;  %v554_v61 = vld [vmem:[#allocation6 + $0x68] sm:$0xff] }
 0x3e4   :  { %v490_v30 = vsub.f32 1.0, %v489_v29  ;;  %611 = vmatpush.msrb.mxu3 %v554_v61  ;;  %v642_v29 = vld [vmem:[#allocation7 + $0x68] sm:$0xff] }
 0x3e6   :  { %v491_v31 = vmul.f32 %v842_v28, %v490_v30  ;;  %612 = vmatpush.msrb.mxu3 %v552_v63  ;;  %v658_v30 = vld [vmem:[#allocation7 + $0xe8] sm:$0xff] }
 0x3e8   :  { %v492_v32 = vadd.f32 %v842_v28, %v491_v31  ;;  %613 = vmatpush.msrb.mxu3 %v550_v1 }
 0x3ea   :  { %614 = vmatpush.msrb.mxu3 %v548_v3  ;;  %v647_v3 = vld [vmem:[#allocation7 + $0x90] sm:$0xff] }
 0x3ec   :  { %615 = vmatpush.msrb.mxu3 %v546_v5  ;;  %v646_v5 = vld [vmem:[#allocation7 + $0x88] sm:$0xff] }
 0x3ee   :  { %616 = vmatpush.msrb.mxu3 %v544_v7  ;;  %v645_v7 = vld [vmem:[#allocation7 + $0x80] sm:$0xff] }
 0x3f0   :  { %617 = vmatpush.msrb.mxu3 %v542_v9 }
 0x458   :  { %v421_v11 = vpop.f32.mrf.mxu0 }
 0x459   :  { %429 = vrot.lane.b32.xlu2 %v421_v11, %s963_s0 }
 0x460   :  { %v424_v14 = vpop.f32.mrf.mxu0 }
 0x461   :  { %431 = vrot.lane.b32.xlu1 %v424_v14, %s963_s0 }
 0x4b3   :  { %v430_v16 = vpop.permute.xlu2 %429 }
 0x4b4   :  { %v435_v17 = vsel %vm241_vm0, %v1095_v33, %v430_v16  ;;  %v1117_v33 = vsel %vm493_vm2, %v842_v28, %v492_v32  ;;  %v659_v28 = vld [vmem:[#allocation7 + $0xf0] sm:$0xff] }
 0x4b5   :  { %473 = vmatmul.f32.vlgmr.msrb.gmra.mxu1 %v435_v17 }
 0x4d3   :  { %v432_v18 = vpop.permute.xlu1 %431 }
 0x4d4   :  { %v436_v19 = vsel %vm241_vm0, %v1097_v34, %v432_v18 }
 0x4d5   :  { %476 = vmatmul.f32.gmra.mxu1 %v436_v19  ;;  %v1133_v19 = vld [vmem:[%s1184_s10] ss:$0 sm:$0xff] }
 0x532   :  { %v474_v21 = vpop.f32.mrf.mxu1 }
 0x533   :  { %v475_v22 = vadd.f32 %v819_v20, %v474_v21 }
 0x535   :  { %v480_v23 = vadd.f32 %v475_v22, %v1055_v41  ;;  %v1139_v22 = vld [vmem:[%s1185_s11] ss:$0 sm:$0xff] }
 0x537   :  { %484 = vadd.xlane.f32.xlu0 %v480_v23 }
 0x552   :  { %v477_v24 = vpop.f32.mrf.mxu1 }
 0x553   :  { %v478_v25 = vadd.f32 %v819_v20, %v477_v24 }
 0x555   :  { %v481_v26 = vadd.f32 %v478_v25, %v1062_v47  ;;  %v571_v47 = vld [vmem:[#allocation6 + $0xf0] sm:$0xff]  ;;  %v644_v25 = vld [vmem:[#allocation7 + $0x78] sm:$0xff] }
 0x556   :  { %579 = vmatpush.msrb.mxu2 %v571_v47  ;;  %665 = vmatpush.msra.mxu0 %v644_v25  ;;  %v656_v47 = vld [vmem:[#allocation7 + $0xd8] sm:$0xff] }
 0x557   :  { %486 = vadd.xlane.f32.xlu2 %v481_v26 }
 0x558   :  { %580 = vmatpush.msrb.mxu2 %v569_v38  ;;  %666 = vmatpush.msra.mxu0 %v643_v27  ;;  %v655_v38 = vld [vmem:[#allocation7 + $0xd0] sm:$0xff] }
 0x55a   :  { %581 = vmatpush.msrb.mxu2 %v567_v45  ;;  %667 = vmatpush.msra.mxu0 %v642_v29 }
 0x55c   :  { %582 = vmatpush.msrb.mxu2 %v565_v48  ;;  %v652_v48 = vld [vmem:[#allocation7 + $0xb8] sm:$0xff] }
 0x55e   :  { %583 = vmatpush.msrb.mxu2 %v563_v50  ;;  %v635_v50 = vld [vmem:[#allocation7 + $0x30] sm:$0xff] }
 0x560   :  { %584 = vmatpush.msrb.mxu2 %v561_v52 }
 0x562   :  { %585 = vmatpush.msrb.mxu2 %v559_v54  ;;  %v650_v54 = vld [vmem:[#allocation7 + $0xa8] sm:$0xff] }
 0x564   :  { %586 = vmatpush.msrb.mxu2 %v557_v56  ;;  %v633_v56 = vld [vmem:[#allocation7 + $0x20] sm:$0xff] }
 0x566   :  { %587 = vmatpush.msrb.mxu2 %v555_v58 }
 0x568   :  { %588 = vmatpush.msrb.mxu2 %v553_v60  ;;  %v648_v60 = vld [vmem:[#allocation7 + $0x98] sm:$0xff] }
 0x56a   :  { %589 = vmatpush.msrb.mxu2 %v551_v62 }
 0x56c   :  { %590 = vmatpush.msrb.mxu2 %v549_v0 }
 0x56e   :  { %591 = vmatpush.msrb.mxu2 %v547_v2  ;;  %v631_v2 = vld [vmem:[#allocation7 + $0x10] sm:$0xff] }
 0x570   :  { %592 = vmatpush.msrb.mxu2 %v545_v4  ;;  %v630_v4 = vld [vmem:[#allocation7 + $0x8] sm:$0xff] }
 0x572   :  { %593 = vmatpush.msrb.mxu2 %v543_v6  ;;  %v629_v6 = vld [vmem:[#allocation7] sm:$0xff] }
 0x574   :  { %594 = vmatpush.msrb.mxu2 %v541_v8 }
 0x5aa   :  { %v485_v34 = vpop.xlane.xlu0 %484 }
 0x5ab   :  { %v495_v35 = vmul.f32 %v1117_v33, %v485_v34  ;;  %v641_v34 = vld [vmem:[#allocation7 + $0x60] sm:$0xff] }
 0x5ac   :  { %668 = vmatpush.msra.mxu0 %v641_v34 }
 0x5ad   :  { %v1120_v41 = vsub.f32 %v480_v23, %v495_v35  ;;  %v657_v35 = vld [vmem:[#allocation7 + $0xe0] sm:$0xff] }
 0x5af   :  { %v499_v36 = vmul.f32 %v1120_v41, %v1120_v41 }
 0x5b1   :  { %501 = vadd.xlane.f32.xlu0 %v499_v36  ;;  %v640_v36 = vld [vmem:[#allocation7 + $0x58] sm:$0xff] }
 0x5b2   :  { %669 = vmatpush.msra.mxu0 %v640_v36 }
 0x5b4   :  { %670 = vmatpush.msra.mxu0 %v639_v37 }
 0x5b6   :  { %671 = vmatpush.msra.mxu0 %v638_v39 }
 0x5ca   :  { %v487_v40 = vpop.xlane.xlu2 %486 }
 0x5cb   :  { %v496_v42 = vmul.f32 %v1117_v33, %v487_v40  ;;  %v654_v40 = vld [vmem:[#allocation7 + $0xc8] sm:$0xff] }
 0x5cd   :  { %v1125_v43 = vsub.f32 %v481_v26, %v496_v42  ;;  %v660_v26 = vld [vmem:[#allocation7 + $0xf8] sm:$0xff]  ;;  %v637_v42 = vld [vmem:[#allocation7 + $0x40] sm:$0xff] }
 0x5ce   :  { %688 = vmatpush.msra.mxu1 %v660_v26  ;;  %786 = vmatpush.msra.mxu2 %v660_v26 }
 0x5cf   :  { %v500_v44 = vmul.f32 %v1125_v43, %v1125_v43  ;;  %672 = vmatpush.msra.mxu0 %v637_v42 }
 0x5d0   :  { %689 = vmatpush.msra.mxu1 %v659_v28  ;;  %787 = vmatpush.msra.mxu2 %v659_v28 }
 0x5d1   :  { %503 = vadd.xlane.f32.xlu0 %v500_v44  ;;  %v653_v44 = vld [vmem:[#allocation7 + $0xc0] sm:$0xff]  ;;  %673 = vmatpush.msra.mxu0 %v636_v46 }
 0x5d2   :  { %690 = vmatpush.msra.mxu1 %v658_v30  ;;  %788 = vmatpush.msra.mxu2 %v658_v30 }
 0x5d3   :  { %674 = vmatpush.msra.mxu0 %v635_v50 }
 0x5d4   :  { %691 = vmatpush.msra.mxu1 %v657_v35  ;;  %789 = vmatpush.msra.mxu2 %v657_v35 }
 0x5d5   :  { %675 = vmatpush.msra.mxu0 %v634_v53 }
 0x5d6   :  { %692 = vmatpush.msra.mxu1 %v656_v47  ;;  %790 = vmatpush.msra.mxu2 %v656_v47 }
 0x5d7   :  { %676 = vmatpush.msra.mxu0 %v633_v56 }
 0x5d8   :  { %693 = vmatpush.msra.mxu1 %v655_v38  ;;  %791 = vmatpush.msra.mxu2 %v655_v38 }
 0x5d9   :  { %677 = vmatpush.msra.mxu0 %v632_v59 }
 0x5da   :  { %694 = vmatpush.msra.mxu1 %v654_v40  ;;  %792 = vmatpush.msra.mxu2 %v654_v40 }
 0x5db   :  { %678 = vmatpush.msra.mxu0 %v631_v2 }
 0x5dc   :  { %695 = vmatpush.msra.mxu1 %v653_v44  ;;  %793 = vmatpush.msra.mxu2 %v653_v44 }
 0x5dd   :  { %679 = vmatpush.msra.mxu0 %v630_v4 }
 0x5de   :  { %696 = vmatpush.msra.mxu1 %v652_v48  ;;  %794 = vmatpush.msra.mxu2 %v652_v48 }
 0x5df   :  { %680 = vmatpush.msra.mxu0 %v629_v6 }
 0x5e0   :  { %697 = vmatpush.msra.mxu1 %v651_v51  ;;  %795 = vmatpush.msra.mxu2 %v651_v51 }
 0x5e2   :  { %698 = vmatpush.msra.mxu1 %v650_v54  ;;  %796 = vmatpush.msra.mxu2 %v650_v54  ;;  %v824_v54 = vld [vmem:[%s1187_s13] ss:$0 sm:$0xff] }
 0x5e4   :  { %699 = vmatpush.msra.mxu1 %v649_v57  ;;  %797 = vmatpush.msra.mxu2 %v649_v57 }
 0x5e6   :  { %700 = vmatpush.msra.mxu1 %v648_v60  ;;  %798 = vmatpush.msra.mxu2 %v648_v60 }
 0x5e8   :  { %701 = vmatpush.msra.mxu1 %v647_v3  ;;  %799 = vmatpush.msra.mxu2 %v647_v3 }
 0x5ea   :  { %702 = vmatpush.msra.mxu1 %v646_v5  ;;  %800 = vmatpush.msra.mxu2 %v646_v5 }
 0x5ec   :  { %703 = vmatpush.msra.mxu1 %v645_v7  ;;  %801 = vmatpush.msra.mxu2 %v645_v7 }
 0x624   :  { %v502_v10 = vpop.xlane.xlu0 %501 }
 0x625   :  { %v505_v11 = vmul.f32 %v502_v10, %v1117_v33 }
 0x627   :  { %v507_v12 = vadd.f32 1e-05, %v505_v11 }
 0x629   :  { %843 = vrsqrt.f32 %v507_v12  ;;  %vm515_vm4 = vweird.f32 %v507_v12 }
 0x62f   :  { %v844_v13 = vpop.eup %843 }
 0x630   :  { %v510_v14 = vmul.f32 %v844_v13, %v507_v12  ;;  %vm516_vm3 = vweird.f32 %v844_v13 }
 0x631   :  { %vm517_vm5 = vmor %vm515_vm4, %vm516_vm3 }
 0x632   :  { %v511_v15 = vmul.f32 %v844_v13, %v510_v14 }
 0x634   :  { %v512_v16 = vmul.f32 0.5, %v511_v15 }
 0x636   :  { %v513_v17 = vsub.f32 1.5, %v512_v16 }
 0x638   :  { %v514_v18 = vmul.f32 %v844_v13, %v513_v17 }
 0x63a   :  { %v518_v20 = vsel %vm517_vm5, %v844_v13, %v514_v18 }
 0x63b   :  { %v529_v21 = vmul.f32 %v518_v20, %v1120_v41 }
 0x63d   :  { %v534_v23 = vmul.f32 %v1133_v19, %v529_v21 }
 0x63f   :  { %v1143_v24 = vadd.f32 %v1139_v22, %v534_v23 }
 0x641   :  { %595 = vmatmul.f32.vlgmr.msrb.gmra.mxu2 %v1143_v24  ;;  %618 = vmatmul.f32.vlgmr.msrb.gmra.mxu3 %v1143_v24 }
 0x644   :  { %v504_v31 = vpop.xlane.xlu0 %503 }
 0x645   :  { %v506_v32 = vmul.f32 %v504_v31, %v1117_v33 }
 0x647   :  { %v508_v41 = vadd.f32 1e-05, %v506_v32 }
 0x649   :  { %845 = vrsqrt.f32 %v508_v41  ;;  %vm525_vm7 = vweird.f32 %v508_v41 }
 0x64f   :  { %v846_v45 = vpop.eup %845 }
 0x650   :  { %v520_v49 = vmul.f32 %v846_v45, %v508_v41  ;;  %vm526_vm6 = vweird.f32 %v846_v45 }
 0x651   :  { %vm527_vm8 = vmor %vm525_vm7, %vm526_vm6 }
 0x652   :  { %v521_v52 = vmul.f32 %v846_v45, %v520_v49 }
 0x654   :  { %v522_v55 = vmul.f32 0.5, %v521_v52  ;;  %v823_v52 = vld [vmem:[%s1186_s12] ss:$0 sm:$0xff] }
 0x656   :  { %v523_v58 = vsub.f32 1.5, %v522_v55 }
 0x658   :  { %v524_v61 = vmul.f32 %v846_v45, %v523_v58 }
 0x65a   :  { %v528_v62 = vsel %vm527_vm8, %v846_v45, %v524_v61 }
 0x65b   :  { %v530_v63 = vmul.f32 %v528_v62, %v1125_v43  ;;  %v573_v43 = vld [vmem:[%s1181_s7] sm:$0x3] }
 0x65c   :  { %v575_v8 = vperm.slane %v573_v43, 0  ;;  %v576_v9 = vperm.slane %v573_v43, 1 }
 0x65d   :  { %v535_v0 = vmul.f32 %v1133_v19, %v530_v63 }
 0x65f   :  { %v540_v1 = vadd.f32 %v1139_v22, %v535_v0  ;;  %v822_v22 = vld [vmem:[%s1183_s9] ss:$0 sm:$0xff] }
 0x661   :  { %598 = vmatmul.f32.gmra.mxu2 %v540_v1  ;;  %621 = vmatmul.f32.gmra.mxu3 %v540_v1 }
 0x6c4   :  { %v596_v10 = vpop.f32.mrf.mxu2  ;;  %v619_v11 = vpop.f32.mrf.mxu3 }
 0x6c5   :  { %v597_v12 = vadd.f32 %v596_v10, %v575_v8  ;;  %v620_v13 = vadd.f32 %v619_v11, %v576_v9 }
 0x6c7   :  { %v625_v14 = vmax.f32 %v597_v12, 0.0  ;;  %v626_v15 = vmax.f32 %v620_v13, 0.0 }
 0x6c9   :  { %681 = vmatmul.f32.vlgmr.msra.gmra.mxu0 %v625_v14  ;;  %704 = vmatmul.f32.vlgmr.msra.gmra.mxu1 %v626_v15 }
 0x6e4   :  { %v599_v16 = vpop.f32.mrf.mxu2  ;;  %v622_v17 = vpop.f32.mrf.mxu3 }
 0x6e5   :  { %v600_v18 = vadd.f32 %v599_v16, %v575_v8  ;;  %v623_v19 = vadd.f32 %v622_v17, %v576_v9 }
 0x6e7   :  { %v627_v20 = vmax.f32 %v600_v18, 0.0  ;;  %v628_v21 = vmax.f32 %v623_v19, 0.0 }
 0x6e9   :  { %684 = vmatmul.f32.gmra.mxu0 %v627_v20  ;;  %707 = vmatmul.f32.vlgmr.msra.gmra.mxu2 %v628_v21 }
 0x746   :  { %v682_v23 = vpop.f32.mrf.mxu0  ;;  %v705_v26 = vpop.f32.mrf.mxu1 }
 0x747   :  { %v683_v25 = vadd.f32 %v822_v22, %v682_v23 }
 0x749   :  { %v706_v27 = vadd.f32 %v705_v26, %v683_v25 }
 0x74b   :  { %v711_v28 = vadd.f32 %v706_v27, %v1143_v24 }
 0x74d   :  { %715 = vadd.xlane.f32.xlu1 %v711_v28 }
 0x766   :  { %v685_v29 = vpop.f32.mrf.mxu0 }
 0x767   :  { %v686_v30 = vadd.f32 %v822_v22, %v685_v29 }
 0x76c   :  { %v708_v31 = vpop.f32.mrf.mxu2 }
 0x76d   :  { %v709_v32 = vadd.f32 %v708_v31, %v686_v30 }
 0x76f   :  { %v712_v34 = vadd.f32 %v709_v32, %v540_v1 }
 0x771   :  { %717 = vadd.xlane.f32.xlu0 %v712_v34 }
 0x7c0   :  { %v716_v35 = vpop.xlane.xlu1 %715 }
 0x7c1   :  { %v719_v41 = vmul.f32 %v716_v35, %v1117_v33 }
 0x7c3   :  { %v721_v36 = vsub.f32 %v711_v28, %v719_v41 }
 0x7c5   :  { %v723_v47 = vmul.f32 %v721_v36, %v721_v36 }
 0x7c7   :  { %725 = vadd.xlane.f32.xlu0 %v723_v47 }
 0x7e4   :  { %v718_v37 = vpop.xlane.xlu0 %717 }
 0x7e5   :  { %v720_v38 = vmul.f32 %v718_v37, %v1117_v33 }
 0x7e7   :  { %v722_v39 = vsub.f32 %v712_v34, %v720_v38 }
 0x7e9   :  { %v724_v40 = vmul.f32 %v722_v39, %v722_v39 }
 0x7eb   :  { %727 = vadd.xlane.f32.xlu0 %v724_v40 }
 0x83a   :  { %v726_v24 = vpop.xlane.xlu0 %725 }
 0x83b   :  { %v729_v42 = vmul.f32 %v726_v24, %v1117_v33 }
 0x83d   :  { %v731_v44 = vadd.f32 1e-05, %v729_v42 }
 0x83f   :  { %847 = vrsqrt.f32 %v731_v44  ;;  %vm739_vm10 = vweird.f32 %v731_v44 }
 0x845   :  { %v848_v45 = vpop.eup %847 }
 0x846   :  { %v734_v46 = vmul.f32 %v848_v45, %v731_v44  ;;  %vm740_vm9 = vweird.f32 %v848_v45 }
 0x847   :  { %vm741_vm11 = vmor %vm739_vm10, %vm740_vm9 }
 0x848   :  { %v735_v48 = vmul.f32 %v848_v45, %v734_v46 }
 0x84a   :  { %v736_v49 = vmul.f32 0.5, %v735_v48 }
 0x84c   :  { %v737_v50 = vsub.f32 1.5, %v736_v49 }
 0x84e   :  { %v738_v51 = vmul.f32 %v848_v45, %v737_v50 }
 0x850   :  { %v742_v53 = vsel %vm741_vm11, %v848_v45, %v738_v51 }
 0x851   :  { %v753_v55 = vmul.f32 %v742_v53, %v721_v36 }
 0x853   :  { %v758_v56 = vmul.f32 %v823_v52, %v753_v55 }
 0x855   :  { %v763_v57 = vadd.f32 %v824_v54, %v758_v56 }
 0x857   :  { %765 = vst [vmem:[%s1188_s14] sm:$0xff] %v763_v57 }
 0x85e   :  { %v728_v58 = vpop.xlane.xlu0 %727 }
 0x85f   :  { %v730_v59 = vmul.f32 %v728_v58, %v1117_v33 }
 0x861   :  { %v732_v60 = vadd.f32 1e-05, %v730_v59 }
 0x863   :  { %849 = vrsqrt.f32 %v732_v60  ;;  %vm749_vm13 = vweird.f32 %v732_v60 }
 0x869   :  { %v850_v61 = vpop.eup %849 }
 0x86a   :  { %v744_v62 = vmul.f32 %v850_v61, %v732_v60  ;;  %vm750_vm12 = vweird.f32 %v850_v61 }
 0x86b   :  { %vm751_vm14 = vmor %vm749_vm13, %vm750_vm12 }
 0x86c   :  { %v745_v63 = vmul.f32 %v850_v61, %v744_v62 }
 0x86e   :  { %v746_v0 = vmul.f32 0.5, %v745_v63 }
 0x870   :  { %v747_v1 = vsub.f32 1.5, %v746_v0 }
 0x872   :  { %v748_v2 = vmul.f32 %v850_v61, %v747_v1 }
 0x874   :  { %v752_v3 = vsel %vm751_vm14, %v850_v61, %v748_v2 }
 0x875   :  { %v754_v4 = vmul.f32 %v752_v3, %v722_v39 }
 0x877   :  { %v759_v5 = vmul.f32 %v823_v52, %v754_v4 }
 0x879   :  { %v764_v6 = vadd.f32 %v824_v54, %v759_v5 }
 0x87b   :  { %766 = vst [vmem:[%s1188_s14 + $0x8] sm:$0xff] %v764_v6 }
 0x87c   :  { %771 = vsyncpa [#allocation3], 1 }
 0x87d   :  { %772 = vsyncpa [#allocation5], 1 }
 0x87e   :  { %773 = vsyncpa [#allocation8], 1 }

// kernel: lxmert_encoder_wrapper_forward.11
= control target key start
LH: loop header
LB: loop body
LE: loop exit
PB: predicated region body
PF: predicated region fallthrough
CT: control target
= control target key end

     0   :  { %19 = vsyncpa [#allocation3], 0  ;;  %s1338_s0 = inlined_call_operand.vmem [shape: f32[16,128], index: 0, kind: input, shape index: {}]   ;;  %s1339_s1 = inlined_call_operand.vmem [shape: f32[16,16], index: 1, kind: input, shape index: {}]   ;;  %s1340_s2 = inlined_call_operand.hbm [shape: f32[128,384], index: 2, kind: input, shape index: {}]   ;;  %s1341_s3 = inlined_call_operand.vmem [shape: f32[1,384], index: 3, kind: input, shape index: {}]   ;;  %s1342_s4 = inlined_call_operand.hbm [shape: f32[128,128], index: 4, kind: input, shape index: {}]   ;;  %s1343_s5 = inlined_call_operand.vmem [shape: f32[1,128], index: 5, kind: input, shape index: {}]   ;;  %s1344_s6 = inlined_call_operand.hbm [shape: f32[128,256], index: 6, kind: input, shape index: {}]   ;;  %s1345_s7 = inlined_call_operand.vmem [shape: f32[1,256], index: 7, kind: input, shape index: {}]   ;;  %s1346_s8 = inlined_call_operand.hbm [shape: f32[256,128], index: 8, kind: input, shape index: {}]   ;;  %s1347_s9 = inlined_call_operand.vmem [shape: f32[1,128], index: 9, kind: input, shape index: {}]   ;;  %s1348_s10 = inlined_call_operand.hbm [shape: f32[1,128], index: 10, kind: input, shape index: {}]   ;;  %s1349_s11 = inlined_call_operand.hbm [shape: f32[1,128], index: 11, kind: input, shape index: {}]   ;;  %s1350_s12 = inlined_call_operand.hbm [shape: f32[1,128], index: 12, kind: input, shape index: {}]   ;;  %s1351_s13 = inlined_call_operand.hbm [shape: f32[1,128], index: 13, kind: input, shape index: {}]   ;;  %s1352_s14 = inlined_call_operand.vmem [shape: f32[16,128], index: 14, kind: output, shape index: {}]  }
   0x1   :  { %20 = vsyncpa [#allocation5], 0 }
   0x2   :  { %21 = vsyncpa [#allocation8], 0 }
   0x3   :  { %22 = vsyncpa [#allocation11], 0  ;;  %s47_s15 = sshll.u32 %s1342_s4, 4  ;;  %s48_s15 = int_to_ptr.hbm [resolvable:$true] %s47_s15 }
   0x4   :  { %23 = vsyncpa [#allocation14], 0  ;;  %s1113_s16 = smov [#allocation4]   ;;  %s77_s20 = sshll.u32 %s1346_s8, 4  ;;  %s78_s20 = int_to_ptr.hbm [resolvable:$true] %s77_s20 }
   0x5   :  { %s49_s17 = sshll.u32 %s1113_s16, 4  ;;  %s1114_s21 = smov 128   ;;  %s50_s17 = int_to_ptr.vmem [resolvable:$true] %s49_s17 }
   0x6   :  { %s1115_s22 = smov 8   ;;  %s1116_s23 = smov [#allocation7]  }
   0x7   :  { %55 = dma.hbm_to_vmem [thread:$0]  %s48_s15, 2048, %s50_s17, [#allocation5], %s1114_s21, %s1114_s21, %s1115_s22  }
   0x8   :  { %s79_s24 = sshll.u32 %s1116_s23, 4  ;;  %s104_s27 = sshll.u32 %s1349_s11, 4  ;;  %s80_s24 = int_to_ptr.vmem [resolvable:$true] %s79_s24  ;;  %s105_s27 = int_to_ptr.hbm [resolvable:$true] %s104_s27 }
   0x9   :  { %85 = dma.hbm_to_vmem [thread:$0]  %s78_s20, 4096, %s80_s24, [#allocation8], %s1114_s21, %s1114_s21, %s1115_s22  }
   0xa   :  { %s32_s29 = sshll.u32 %s1340_s2, 4  ;;  %s1117_s30 = smov [#allocation10]   ;;  %s33_s29 = int_to_ptr.hbm [resolvable:$true] %s32_s29 }
   0xb   :  { %s106_s16 = sshll.u32 %s1117_s30, 4  ;;  %s1118_s8 = smov [#allocation2]   ;;  %s107_s16 = int_to_ptr.vmem [resolvable:$true] %s106_s16 }
   0xc   :  { %109 = dma.hbm_to_vmem [thread:$0]  %s105_s27, 16, %s107_s16, [#allocation11]  }
   0xd   :  { %s34_s15 = sshll.u32 %s1118_s8, 4  ;;  %s1119_s17 = smov 384   ;;  %s35_s15 = int_to_ptr.vmem [resolvable:$true] %s34_s15 }
   0xe   :  { %s1120_s18 = smov 24   ;;  %s62_s23 = sshll.u32 %s1344_s6, 4  ;;  %s63_s23 = int_to_ptr.hbm [resolvable:$true] %s62_s23 }
   0xf   :  { %40 = dma.hbm_to_vmem [thread:$0]  %s33_s29, 6144, %s35_s15, [#allocation3], %s1119_s17, %s1119_s17, %s1120_s18  }
  0x10   :  { %s1121_s20 = smov [#allocation6]   ;;  %s93_s24 = sshll.u32 %s1348_s10, 4  ;;  %s94_s24 = int_to_ptr.hbm [resolvable:$true] %s93_s24 }
  0x11   :  { %s64_s21 = sshll.u32 %s1121_s20, 4  ;;  %s1122_s25 = smov 256   ;;  %s65_s21 = int_to_ptr.vmem [resolvable:$true] %s64_s21 }
  0x12   :  { %s1123_s26 = smov 16   ;;  %s1124_s27 = smov [#allocation9]  }
  0x13   :  { %70 = dma.hbm_to_vmem [thread:$0]  %s63_s23, 4096, %s65_s21, [#allocation5], %s1122_s25, %s1122_s25, %s1123_s26  }
  0x14   :  { %s95_s4 = sshll.u32 %s1124_s27, 4  ;;  %s115_s30 = sshll.u32 %s1350_s12, 4  ;;  %s96_s4 = int_to_ptr.vmem [resolvable:$true] %s95_s4  ;;  %s116_s30 = int_to_ptr.hbm [resolvable:$true] %s115_s30 }
  0x15   :  { %98 = dma.hbm_to_vmem [thread:$0]  %s94_s24, 16, %s96_s4, [#allocation8]  }
  0x16   :  { %s126_s8 = sshll.u32 %s1351_s13, 4  ;;  %s1125_s15 = smov [#allocation12]   ;;  %s127_s8 = int_to_ptr.hbm [resolvable:$true] %s126_s8 }
  0x17   :  { %s117_s17 = sshll.u32 %s1125_s15, 4  ;;  %s1126_s10 = smov [#allocation13]   ;;  %s118_s17 = int_to_ptr.vmem [resolvable:$true] %s117_s17 }
  0x18   :  { %120 = dma.hbm_to_vmem [thread:$0]  %s116_s30, 16, %s118_s17, [#allocation11]  }
  0x19   :  { %s128_s18 = sshll.u32 %s1126_s10, 4  ;;  %s129_s18 = int_to_ptr.vmem [resolvable:$true] %s128_s18 }
  0x1a   :  { %131 = dma.hbm_to_vmem [thread:$0]  %s127_s8, 16, %s129_s18, [#allocation14]  }
  0x1b   :  { %1103 = dma.done.wait [#allocation3], 6144  }
  0x1c   :  { %1104 = vsyncadd [#allocation3], 4294961152 }
  0x1d   :  { %1105 = dma.done.wait [#allocation5], 6144  }
  0x1e   :  { %1106 = vsyncadd [#allocation5], 4294961152 }
  0x1f   :  { %1107 = dma.done.wait [#allocation8], 4112  }
  0x20   :  { %1108 = vsyncadd [#allocation8], 4294963184 }
  0x21   :  { %1109 = dma.done.wait [#allocation11], 32  }
  0x22   :  { %1110 = vsyncadd [#allocation11], 4294967264 }
  0x23   :  { %1111 = dma.done.wait [#allocation14], 16  }
  0x24   :  { %1112 = vsyncadd [#allocation14], 4294967280  ;;  %v214_v0 = vld [vmem:[#allocation2 + $0x170] sm:$0xff]  ;;  %v211_v1 = vld [vmem:[#allocation2 + $0x158] sm:$0xff]  ;;  %vm295_vm0 = vcmask 523264   ;;  %vm331_vm1 = vcmask 130048  }
  0x25   :  { %247 = vmatpush.msra.mxu1 %v214_v0  ;;  %v208_v2 = vld [vmem:[#allocation2 + $0x140] sm:$0xff]  ;;  %v213_v3 = vld [vmem:[#allocation2 + $0x168] sm:$0xff]  ;;  %v210_v4 = vld [vmem:[#allocation2 + $0x150] sm:$0xff] }
  0x26   :  { %224 = vmatpush.msra.mxu0 %v213_v3  ;;  %v205_v5 = vld [vmem:[#allocation2 + $0x128] sm:$0xff]  ;;  %v207_v6 = vld [vmem:[#allocation2 + $0x138] sm:$0xff]  ;;  %v202_v7 = vld [vmem:[#allocation2 + $0x110] sm:$0xff] }
  0x27   :  { %248 = vmatpush.msra.mxu1 %v211_v1  ;;  %v204_v8 = vld [vmem:[#allocation2 + $0x120] sm:$0xff]  ;;  %v199_v9 = vld [vmem:[#allocation2 + $0xf8] sm:$0xff]  ;;  %v201_v10 = vld [vmem:[#allocation2 + $0x108] sm:$0xff] }
  0x28   :  { %225 = vmatpush.msra.mxu0 %v210_v4  ;;  %v196_v11 = vld [vmem:[#allocation2 + $0xe0] sm:$0xff]  ;;  %v198_v12 = vld [vmem:[#allocation2 + $0xf0] sm:$0xff]  ;;  %v215_v13 = vld [vmem:[#allocation2 + $0x178] sm:$0xff] }
  0x29   :  { %249 = vmatpush.msra.mxu1 %v208_v2  ;;  %v212_v14 = vld [vmem:[#allocation2 + $0x160] sm:$0xff]  ;;  %v193_v15 = vld [vmem:[#allocation2 + $0xc8] sm:$0xff]  ;;  %v195_v16 = vld [vmem:[#allocation2 + $0xd8] sm:$0xff]  ;;  %270 = vmatpush.msra.mxu2 %v215_v13 }
  0x2a   :  { %226 = vmatpush.msra.mxu0 %v207_v6  ;;  %v209_v17 = vld [vmem:[#allocation2 + $0x148] sm:$0xff]  ;;  %v190_v18 = vld [vmem:[#allocation2 + $0xb0] sm:$0xff]  ;;  %v192_v19 = vld [vmem:[#allocation2 + $0xc0] sm:$0xff] }
  0x2b   :  { %250 = vmatpush.msra.mxu1 %v205_v5  ;;  %271 = vmatpush.msra.mxu2 %v212_v14  ;;  %v187_v20 = vld [vmem:[#allocation2 + $0x98] sm:$0xff]  ;;  %v206_v21 = vld [vmem:[#allocation2 + $0x130] sm:$0xff]  ;;  %v184_v22 = vld [vmem:[#allocation2 + $0x80] sm:$0xff] }
  0x2c   :  { %227 = vmatpush.msra.mxu0 %v204_v8  ;;  %v189_v23 = vld [vmem:[#allocation2 + $0xa8] sm:$0xff]  ;;  %v203_v24 = vld [vmem:[#allocation2 + $0x118] sm:$0xff]  ;;  %v186_v25 = vld [vmem:[#allocation2 + $0x90] sm:$0xff] }
  0x2d   :  { %251 = vmatpush.msra.mxu1 %v202_v7  ;;  %272 = vmatpush.msra.mxu2 %v209_v17  ;;  %v200_v26 = vld [vmem:[#allocation2 + $0x100] sm:$0xff]  ;;  %v181_v27 = vld [vmem:[#allocation2 + $0x68] sm:$0xff]  ;;  %v183_v28 = vld [vmem:[#allocation2 + $0x78] sm:$0xff] }
  0x2e   :  { %228 = vmatpush.msra.mxu0 %v201_v10  ;;  %v197_v29 = vld [vmem:[#allocation2 + $0xe8] sm:$0xff]  ;;  %v178_v30 = vld [vmem:[#allocation2 + $0x50] sm:$0xff]  ;;  %v180_v31 = vld [vmem:[#allocation2 + $0x60] sm:$0xff] }
  0x2f   :  { %252 = vmatpush.msra.mxu1 %v199_v9  ;;  %273 = vmatpush.msra.mxu2 %v206_v21  ;;  %v194_v32 = vld [vmem:[#allocation2 + $0xd0] sm:$0xff]  ;;  %v175_v33 = vld [vmem:[#allocation2 + $0x38] sm:$0xff]  ;;  %v177_v34 = vld [vmem:[#allocation2 + $0x48] sm:$0xff] }
  0x30   :  { %229 = vmatpush.msra.mxu0 %v198_v12  ;;  %v191_v35 = vld [vmem:[#allocation2 + $0xb8] sm:$0xff]  ;;  %v172_v36 = vld [vmem:[#allocation2 + $0x20] sm:$0xff]  ;;  %v174_v37 = vld [vmem:[#allocation2 + $0x30] sm:$0xff] }
  0x31   :  { %253 = vmatpush.msra.mxu1 %v196_v11  ;;  %274 = vmatpush.msra.mxu2 %v203_v24  ;;  %v188_v38 = vld [vmem:[#allocation2 + $0xa0] sm:$0xff]  ;;  %v169_v39 = vld [vmem:[#allocation2 + $0x8] sm:$0xff]  ;;  %v171_v40 = vld [vmem:[#allocation2 + $0x18] sm:$0xff] }
  0x32   :  { %230 = vmatpush.msra.mxu0 %v195_v16  ;;  %v1231_v41 = vld [vmem:[%s1338_s0] sm:$0xff]  ;;  %v185_v42 = vld [vmem:[#allocation2 + $0x88] sm:$0xff]  ;;  %v182_v44 = vld [vmem:[#allocation2 + $0x70] sm:$0xff] }
  0x33   :  { %254 = vmatpush.msra.mxu1 %v193_v15  ;;  %275 = vmatpush.msra.mxu2 %v200_v26  ;;  %v168_v43 = vld [vmem:[#allocation2] sm:$0xff]  ;;  %v179_v45 = vld [vmem:[#allocation2 + $0x58] sm:$0xff]  ;;  %v1238_v47 = vld [vmem:[%s1338_s0 + $0x8] sm:$0xff]  ;;  %s1127_s0 = smov 64  }
  0x34   :  { %231 = vmatpush.msra.mxu0 %v192_v19  ;;  %v176_v46 = vld [vmem:[#allocation2 + $0x40] sm:$0xff]  ;;  %v173_v48 = vld [vmem:[#allocation2 + $0x28] sm:$0xff]  ;;  %v170_v49 = vld [vmem:[#allocation2 + $0x10] sm:$0xff] }
  0x35   :  { %255 = vmatpush.msra.mxu1 %v190_v18  ;;  %276 = vmatpush.msra.mxu2 %v197_v29  ;;  %v216_v51 = vld [vmem:[%s1341_s3] sm:$0x7]  ;;  %v167_v11 = vld [vmem:[%s1339_s1 + $0x8] sm:$0xff] }
  0x36   :  { %232 = vmatpush.msra.mxu0 %v189_v23  ;;  %v218_v53 = vperm.slane %v216_v51, 0  ;;  %v219_v54 = vperm.slane %v216_v51, 1  ;;  %v220_v0 = vperm.slane %v216_v51, 2  ;;  %v166_v7 = vld [vmem:[%s1339_s1] sm:$0xff] }
  0x37   :  { %256 = vmatpush.msra.mxu1 %v187_v20  ;;  %277 = vmatpush.msra.mxu2 %v194_v32 }
  0x38   :  { %233 = vmatpush.msra.mxu0 %v186_v25 }
  0x39   :  { %257 = vmatpush.msra.mxu1 %v184_v22  ;;  %278 = vmatpush.msra.mxu2 %v191_v35 }
  0x3a   :  { %234 = vmatpush.msra.mxu0 %v183_v28 }
  0x3b   :  { %258 = vmatpush.msra.mxu1 %v181_v27  ;;  %279 = vmatpush.msra.mxu2 %v188_v38 }
  0x3c   :  { %235 = vmatpush.msra.mxu0 %v180_v31 }
  0x3d   :  { %259 = vmatpush.msra.mxu1 %v178_v30  ;;  %280 = vmatpush.msra.mxu2 %v185_v42 }
  0x3e   :  { %236 = vmatpush.msra.mxu0 %v177_v34 }
  0x3f   :  { %260 = vmatpush.msra.mxu1 %v175_v33  ;;  %281 = vmatpush.msra.mxu2 %v182_v44 }
  0x40   :  { %237 = vmatpush.msra.mxu0 %v174_v37 }
  0x41   :  { %261 = vmatpush.msra.mxu1 %v172_v36  ;;  %282 = vmatpush.msra.mxu2 %v179_v45 }
  0x42   :  { %238 = vmatpush.msra.mxu0 %v171_v40 }
  0x43   :  { %262 = vmatpush.msra.mxu1 %v169_v39  ;;  %283 = vmatpush.msra.mxu2 %v176_v46 }
  0x44   :  { %263 = vmatmul.f32.vlgmr.msra.gmra.mxu1 %v1231_v41  ;;  %239 = vmatpush.msra.mxu0 %v168_v43 }
  0x45   :  { %240 = vmatmul.f32.vlgmr.msra.gmra.mxu0 %v1231_v41  ;;  %284 = vmatpush.msra.mxu2 %v173_v48 }
  0x47   :  { %285 = vmatpush.msra.mxu2 %v170_v49 }
  0x48   :  { %286 = vmatmul.f32.vlgmr.msra.gmra.mxu2 %v1231_v41 }
  0x4c   :  { %266 = vmatmul.f32.gmra.mxu1 %v1238_v47 }
  0x4d   :  { %243 = vmatmul.f32.gmra.mxu0 %v1238_v47 }
  0x50   :  { %289 = vmatmul.f32.gmra.mxu2 %v1238_v47 }
  0xc1   :  { %v264_v50 = vpop.f32.mrf.mxu1 }
  0xc2   :  { %v241_v52 = vpop.f32.mrf.mxu0  ;;  %v265_v58 = vadd.f32 %v264_v50, %v219_v54 }
  0xc3   :  { %v242_v57 = vadd.f32 %v241_v52, %v218_v53 }
  0xc5   :  { %v293_v59 = vmul.f32 0.125, %v242_v57 }
  0xc9   :  { %v267_v55 = vpop.f32.mrf.mxu1 }
  0xca   :  { %v268_v56 = vadd.f32 %v267_v55, %v219_v54  ;;  %v244_v60 = vpop.f32.mrf.mxu0 }
  0xcb   :  { %v287_v61 = vpop.f32.mrf.mxu2  ;;  %v245_v62 = vadd.f32 %v244_v60, %v218_v53 }
  0xcc   :  { %389 = vrot.lane.b32.xlu2 %v268_v56, %s1127_s0  ;;  %830 = vmatpush.xpose.msk.msra.mxu3 %vm295_vm0, %v268_v56  ;;  %v288_v2 = vadd.f32 %v287_v61, %v220_v0 }
  0xcd   :  { %v294_v63 = vmul.f32 0.125, %v245_v62  ;;  %v506_v62 = vld [vmem:[#allocation4 + $0x78] sm:$0xff] }
  0xce   :  { %511 = vmatpush.msrb.mxu1 %v506_v62  ;;  %v605_v62 = vld [vmem:[#allocation6 + $0x50] sm:$0xff] }
  0xd0   :  { %831 = vmatpush.xpose.msk.msra.mxu3 %vm295_vm0, %v265_v58 }
  0xd3   :  { %832 = vmatmul.msk.f32.vlgmr.msra.gmra.mxu3 %vm295_vm0, %v293_v59  ;;  %v290_v1 = vpop.f32.mrf.mxu2 }
  0xd4   :  { %387 = vrot.lane.b32.xlu2 %v265_v58, %s1127_s0  ;;  %v291_v3 = vadd.f32 %v290_v1, %v220_v0  ;;  %v504_v0 = vld [vmem:[#allocation4 + $0x68] sm:$0xff]  ;;  %v503_v1 = vld [vmem:[#allocation4 + $0x60] sm:$0xff] }
  0xd6   :  { %v874_v4 = vpack.i.bf16 %v288_v2, %v291_v3  ;;  %374 = vmatpush.msrb.mxu3 %v291_v3  ;;  %v501_v3 = vld [vmem:[#allocation4 + $0x50] sm:$0xff] }
  0xd8   :  { %375 = vmatpush.msrb.mxu3 %v288_v2  ;;  %v502_v2 = vld [vmem:[#allocation4 + $0x58] sm:$0xff] }
  0xdb   :  { %833 = vmatmul.msk.f32.gmra.mxu3 %vm295_vm0, %v294_v63 }
 0x126   :  { %v390_v5 = vpop.permute.xlu2 %389 }
 0x127   :  { %836 = vmatpush.xpose.msk.msra.mxu3 %vm295_vm0, %v390_v5  ;;  %v499_v5 = vld [vmem:[#allocation4 + $0x40] sm:$0xff] }
 0x12e   :  { %v388_v6 = vpop.permute.xlu2 %387 }
 0x12f   :  { %837 = vmatpush.xpose.msk.msra.mxu3 %vm295_vm0, %v388_v6  ;;  %v498_v6 = vld [vmem:[#allocation4 + $0x38] sm:$0xff] }
 0x156   :  { %v325_v8 = vpop.f32.mrf.mxu3 }
 0x157   :  { %v326_v9 = vadd.f32 %v325_v8, %v166_v7  ;;  %v496_v8 = vld [vmem:[#allocation4 + $0x28] sm:$0xff] }
 0x159   :  { %v332_v10 = vsel %vm331_vm1, %v326_v9, -inf }
 0x15a   :  { %333 = vmax.xlane.f32.xlu0 %v332_v10  ;;  %v494_v10 = vld [vmem:[#allocation4 + $0x18] sm:$0xff] }
 0x15e   :  { %v328_v12 = vpop.f32.mrf.mxu3 }
 0x15f   :  { %v329_v13 = vadd.f32 %v328_v12, %v167_v11  ;;  %v493_v12 = vld [vmem:[#allocation4 + $0x10] sm:$0xff] }
 0x161   :  { %v335_v14 = vsel %vm331_vm1, %v329_v13, -inf }
 0x162   :  { %336 = vmax.xlane.f32.xlu0 %v335_v14 }
 0x176   :  { %383 = vrot.lane.b32.xlu0 %v293_v59, %s1127_s0 }
 0x1cd   :  { %v334_v15 = vpop.xlane.xlu0 %333 }
 0x1ce   :  { %v338_v16 = vsub.f32 %v326_v9, %v334_v15  ;;  %v495_v9 = vld [vmem:[#allocation4 + $0x20] sm:$0xff] }
 0x1cf   :  { %v491_v15 = vld [vmem:[#allocation4] sm:$0xff] }
 0x1d0   :  { %v340_v17 = vmul.f32 1.442695, %v338_v16 }
 0x1d2   :  { %885 = vpow2.f32 %v340_v17 }
 0x1d5   :  { %v337_v18 = vpop.xlane.xlu0 %336 }
 0x1d6   :  { %v339_v19 = vsub.f32 %v329_v13, %v337_v18  ;;  %v492_v13 = vld [vmem:[#allocation4 + $0x8] sm:$0xff] }
 0x1d8   :  { %v886_v20 = vpop.eup %885  ;;  %v342_v21 = vmul.f32 1.442695, %v339_v19 }
 0x1d9   :  { %v344_v22 = vsel %vm331_vm1, %v886_v20, 0.0 }
 0x1da   :  { %887 = vpow2.f32 %v342_v21  ;;  %345 = vadd.xlane.f32.xlu1 %v344_v22 }
 0x1e0   :  { %v888_v23 = vpop.eup %887 }
 0x1e1   :  { %v347_v24 = vsel %vm331_vm1, %v888_v23, 0.0 }
 0x1e2   :  { %348 = vadd.xlane.f32.xlu1 %v347_v24 }
 0x1e8   :  { %v384_v31 = vpop.permute.xlu0 %383 }
 0x1fb   :  { %385 = vrot.lane.b32.xlu1 %v294_v63, %s1127_s0  ;;  %v505_v63 = vld [vmem:[#allocation4 + $0x70] sm:$0xff] }
 0x1fc   :  { %512 = vmatpush.msrb.mxu1 %v505_v63  ;;  %v606_v63 = vld [vmem:[#allocation6 + $0x58] sm:$0xff] }
 0x1fe   :  { %513 = vmatpush.msrb.mxu1 %v504_v0  ;;  %v603_v0 = vld [vmem:[#allocation6 + $0x40] sm:$0xff] }
 0x200   :  { %514 = vmatpush.msrb.mxu1 %v503_v1  ;;  %v604_v1 = vld [vmem:[#allocation6 + $0x48] sm:$0xff] }
 0x202   :  { %515 = vmatpush.msrb.mxu1 %v502_v2  ;;  %v601_v2 = vld [vmem:[#allocation6 + $0x30] sm:$0xff] }
 0x204   :  { %516 = vmatpush.msrb.mxu1 %v501_v3  ;;  %v602_v3 = vld [vmem:[#allocation6 + $0x38] sm:$0xff] }
 0x24d   :  { %v346_v25 = vpop.xlane.xlu1 %345 }
 0x24e   :  { %889 = vrcp.f32 %v346_v25 }
 0x254   :  { %v890_v26 = vpop.eup %889 }
 0x255   :  { %v349_v27 = vpop.xlane.xlu1 %348  ;;  %v352_v28 = vmul.f32 %v890_v26, %v886_v20  ;;  %v879_v20 = vld [vmem:[%s1343_s5] ss:$0 sm:$0xff] }
 0x256   :  { %891 = vrcp.f32 %v349_v27  ;;  %v1128_v27 = vmov 128.0  }
 0x257   :  { %834 = vmatmul.msk.f32.vlgmr.msrb.gmra.mxu3 %vm331_vm1, %v352_v28 }
 0x25c   :  { %v892_v29 = vpop.eup %891 }
 0x25d   :  { %v353_v30 = vmul.f32 %v892_v29, %v888_v23 }
 0x25f   :  { %835 = vmatmul.msk.f32.gmra.mxu3 %vm331_vm1, %v353_v30 }
 0x267   :  { %838 = vmatmul.msk.f32.vlgmr.msra.gmra.mxu3 %vm295_vm0, %v384_v31 }
 0x26d   :  { %v386_v32 = vpop.permute.xlu1 %385 }
 0x26f   :  { %839 = vmatmul.msk.f32.gmra.mxu3 %vm295_vm0, %v386_v32 }
 0x2da   :  { %v1271_v33 = vpop.f32.mrf.mxu3 }
 0x2e2   :  { %v1273_v34 = vpop.f32.mrf.mxu3 }
 0x2ea   :  { %v416_v35 = vpop.f32.mrf.mxu3 }
 0x2eb   :  { %v417_v36 = vadd.f32 %v416_v35, %v166_v7  ;;  %v497_v7 = vld [vmem:[#allocation4 + $0x30] sm:$0xff] }
 0x2ed   :  { %v422_v37 = vsel %vm331_vm1, %v417_v36, -inf }
 0x2ee   :  { %423 = vmax.xlane.f32.xlu2 %v422_v37  ;;  %v626_v37 = vld [vmem:[#allocation6 + $0xf8] sm:$0xff] }
 0x2ef   :  { %656 = vmatpush.msrb.mxu3 %v626_v37  ;;  %v693_v37 = vld [vmem:[#allocation7 + $0x50] sm:$0xff] }
 0x2f2   :  { %v419_v38 = vpop.f32.mrf.mxu3 }
 0x2f3   :  { %v420_v39 = vadd.f32 %v419_v38, %v167_v11  ;;  %v623_v38 = vld [vmem:[#allocation6 + $0xe0] sm:$0xff] }
 0x2f5   :  { %v425_v40 = vsel %vm331_vm1, %v420_v39, -inf }
 0x2f6   :  { %426 = vmax.xlane.f32.xlu0 %v425_v40 }
 0x306   :  { %875 = vrot.lane.b32.xlu2 %v874_v4, %s1127_s0  ;;  %v500_v4 = vld [vmem:[#allocation4 + $0x48] sm:$0xff] }
 0x307   :  { %517 = vmatpush.msrb.mxu1 %v500_v4  ;;  %v599_v4 = vld [vmem:[#allocation6 + $0x20] sm:$0xff] }
 0x309   :  { %518 = vmatpush.msrb.mxu1 %v499_v5  ;;  %v600_v5 = vld [vmem:[#allocation6 + $0x28] sm:$0xff] }
 0x30b   :  { %519 = vmatpush.msrb.mxu1 %v498_v6  ;;  %v597_v6 = vld [vmem:[#allocation6 + $0x10] sm:$0xff] }
 0x30d   :  { %520 = vmatpush.msrb.mxu1 %v497_v7  ;;  %v598_v7 = vld [vmem:[#allocation6 + $0x18] sm:$0xff] }
 0x30f   :  { %521 = vmatpush.msrb.mxu1 %v496_v8  ;;  %v595_v8 = vld [vmem:[#allocation6] sm:$0xff] }
 0x311   :  { %522 = vmatpush.msrb.mxu1 %v495_v9  ;;  %v596_v9 = vld [vmem:[#allocation6 + $0x8] sm:$0xff] }
 0x313   :  { %523 = vmatpush.msrb.mxu1 %v494_v10 }
 0x315   :  { %524 = vmatpush.msrb.mxu1 %v493_v12 }
 0x317   :  { %525 = vmatpush.msrb.mxu1 %v492_v13 }
 0x319   :  { %526 = vmatpush.msrb.mxu1 %v491_v15 }
 0x361   :  { %v424_v42 = vpop.xlane.xlu2 %423 }
 0x362   :  { %v428_v43 = vsub.f32 %v417_v36, %v424_v42 }
 0x364   :  { %v430_v44 = vmul.f32 1.442695, %v428_v43 }
 0x366   :  { %893 = vpow2.f32 %v430_v44 }
 0x369   :  { %v427_v45 = vpop.xlane.xlu0 %426  ;;  %v876_v46 = vpop.permute.xlu2 %875 }
 0x36a   :  { %v429_v48 = vsub.f32 %v420_v39, %v427_v45  ;;  %v877_v49 = vunpack.i.l.bf16 %v876_v46  ;;  %v878_v52 = vunpack.i.h.bf16 %v876_v46  ;;  %v624_v39 = vld [vmem:[#allocation6 + $0xe8] sm:$0xff]  ;;  %v621_v45 = vld [vmem:[#allocation6 + $0xd0] sm:$0xff]  ;;  %v622_v46 = vld [vmem:[#allocation6 + $0xd8] sm:$0xff] }
 0x36b   :  { %657 = vmatpush.msrb.mxu3 %v624_v39  ;;  %v692_v39 = vld [vmem:[#allocation7 + $0x48] sm:$0xff] }
 0x36c   :  { %v894_v50 = vpop.eup %893  ;;  %v432_v51 = vmul.f32 1.442695, %v429_v48  ;;  %472 = vmatpush.msrb.mxu0 %v877_v49  ;;  %v619_v48 = vld [vmem:[#allocation6 + $0xc0] sm:$0xff]  ;;  %v620_v49 = vld [vmem:[#allocation6 + $0xc8] sm:$0xff] }
 0x36d   :  { %v434_v53 = vsel %vm331_vm1, %v894_v50, 0.0  ;;  %658 = vmatpush.msrb.mxu3 %v622_v46  ;;  %v690_v46 = vld [vmem:[#allocation7 + $0x38] sm:$0xff] }
 0x36e   :  { %895 = vpow2.f32 %v432_v51  ;;  %435 = vadd.xlane.f32.xlu1 %v434_v53  ;;  %473 = vmatpush.msrb.mxu0 %v878_v52  ;;  %v618_v51 = vld [vmem:[#allocation6 + $0xb8] sm:$0xff]  ;;  %v615_v52 = vld [vmem:[#allocation6 + $0xa0] sm:$0xff]  ;;  %v616_v53 = vld [vmem:[#allocation6 + $0xa8] sm:$0xff] }
 0x36f   :  { %659 = vmatpush.msrb.mxu3 %v620_v49 }
 0x371   :  { %660 = vmatpush.msrb.mxu3 %v618_v51  ;;  %v705_v51 = vld [vmem:[#allocation7 + $0xb0] sm:$0xff] }
 0x373   :  { %661 = vmatpush.msrb.mxu3 %v616_v53  ;;  %v688_v53 = vld [vmem:[#allocation7 + $0x28] sm:$0xff] }
 0x374   :  { %v896_v54 = vpop.eup %895 }
 0x375   :  { %v437_v55 = vsel %vm331_vm1, %v896_v54, 0.0 }
 0x376   :  { %438 = vadd.xlane.f32.xlu0 %v437_v55  ;;  %v614_v55 = vld [vmem:[#allocation6 + $0x98] sm:$0xff] }
 0x377   :  { %662 = vmatpush.msrb.mxu3 %v614_v55 }
 0x3e1   :  { %v436_v56 = vpop.xlane.xlu1 %435 }
 0x3e2   :  { %897 = vrcp.f32 %v436_v56  ;;  %v611_v56 = vld [vmem:[#allocation6 + $0x80] sm:$0xff] }
 0x3e8   :  { %v898_v57 = vpop.eup %897 }
 0x3e9   :  { %v439_v58 = vpop.xlane.xlu0 %438  ;;  %v442_v59 = vmul.f32 %v898_v57, %v894_v50  ;;  %v617_v50 = vld [vmem:[#allocation6 + $0xb0] sm:$0xff]  ;;  %v612_v57 = vld [vmem:[#allocation6 + $0x88] sm:$0xff] }
 0x3ea   :  { %899 = vrcp.f32 %v439_v58  ;;  %663 = vmatpush.msrb.mxu3 %v612_v57  ;;  %v609_v58 = vld [vmem:[#allocation6 + $0x70] sm:$0xff]  ;;  %v703_v57 = vld [vmem:[#allocation7 + $0xa0] sm:$0xff] }
 0x3eb   :  { %840 = vmatmul.msk.f32.vlgmr.msrb.gmra.mxu0 %vm331_vm1, %v442_v59  ;;  %901 = vrcp.f32 %v1128_v27  ;;  %v610_v59 = vld [vmem:[#allocation6 + $0x78] sm:$0xff]  ;;  %v697_v27 = vld [vmem:[#allocation7 + $0x70] sm:$0xff] }
 0x3ec   :  { %664 = vmatpush.msrb.mxu3 %v610_v59  ;;  %v686_v59 = vld [vmem:[#allocation7 + $0x18] sm:$0xff] }
 0x3f0   :  { %v900_v60 = vpop.eup %899 }
 0x3f1   :  { %v443_v61 = vmul.f32 %v900_v60, %v896_v54  ;;  %v902_v28 = vpop.eup %901  ;;  %v613_v54 = vld [vmem:[#allocation6 + $0x90] sm:$0xff]  ;;  %v607_v60 = vld [vmem:[#allocation6 + $0x60] sm:$0xff] }
 0x3f2   :  { %v543_v29 = vmul.f32 128.0, %v902_v28  ;;  %vm547_vm2 = vweird.f32 %v902_v28 }
 0x3f3   :  { %841 = vmatmul.msk.f32.gmra.mxu0 %vm331_vm1, %v443_v61  ;;  %v608_v61 = vld [vmem:[#allocation6 + $0x68] sm:$0xff] }
 0x3f4   :  { %v544_v30 = vsub.f32 1.0, %v543_v29  ;;  %665 = vmatpush.msrb.mxu3 %v608_v61  ;;  %v696_v29 = vld [vmem:[#allocation7 + $0x68] sm:$0xff] }
 0x3f6   :  { %v545_v31 = vmul.f32 %v902_v28, %v544_v30  ;;  %666 = vmatpush.msrb.mxu3 %v606_v63  ;;  %v712_v30 = vld [vmem:[#allocation7 + $0xe8] sm:$0xff] }
 0x3f8   :  { %v546_v32 = vadd.f32 %v902_v28, %v545_v31  ;;  %667 = vmatpush.msrb.mxu3 %v604_v1 }
 0x3fa   :  { %668 = vmatpush.msrb.mxu3 %v602_v3  ;;  %v701_v3 = vld [vmem:[#allocation7 + $0x90] sm:$0xff] }
 0x3fc   :  { %669 = vmatpush.msrb.mxu3 %v600_v5  ;;  %v700_v5 = vld [vmem:[#allocation7 + $0x88] sm:$0xff] }
 0x3fe   :  { %670 = vmatpush.msrb.mxu3 %v598_v7  ;;  %v699_v7 = vld [vmem:[#allocation7 + $0x80] sm:$0xff] }
 0x400   :  { %671 = vmatpush.msrb.mxu3 %v596_v9 }
 0x468   :  { %v475_v11 = vpop.f32.mrf.mxu0 }
 0x469   :  { %483 = vrot.lane.b32.xlu2 %v475_v11, %s1127_s0 }
 0x470   :  { %v478_v14 = vpop.f32.mrf.mxu0 }
 0x471   :  { %485 = vrot.lane.b32.xlu1 %v478_v14, %s1127_s0 }
 0x4c3   :  { %v484_v16 = vpop.permute.xlu2 %483 }
 0x4c4   :  { %v489_v17 = vsel %vm295_vm0, %v1271_v33, %v484_v16  ;;  %v1293_v33 = vsel %vm547_vm2, %v902_v28, %v546_v32  ;;  %v713_v28 = vld [vmem:[#allocation7 + $0xf0] sm:$0xff] }
 0x4c5   :  { %527 = vmatmul.f32.vlgmr.msrb.gmra.mxu1 %v489_v17 }
 0x4e3   :  { %v486_v18 = vpop.permute.xlu1 %485 }
 0x4e4   :  { %v490_v19 = vsel %vm295_vm0, %v1273_v34, %v486_v18 }
 0x4e5   :  { %530 = vmatmul.f32.gmra.mxu1 %v490_v19  ;;  %v1306_v19 = vld [vmem:[#allocation9] ss:$0 sm:$0xff] }
 0x542   :  { %v528_v21 = vpop.f32.mrf.mxu1 }
 0x543   :  { %v529_v22 = vadd.f32 %v879_v20, %v528_v21 }
 0x545   :  { %v534_v23 = vadd.f32 %v529_v22, %v1231_v41  ;;  %v1309_v22 = vld [vmem:[#allocation10] ss:$0 sm:$0xff] }
 0x547   :  { %538 = vadd.xlane.f32.xlu0 %v534_v23 }
 0x562   :  { %v531_v24 = vpop.f32.mrf.mxu1 }
 0x563   :  { %v532_v25 = vadd.f32 %v879_v20, %v531_v24 }
 0x565   :  { %v535_v26 = vadd.f32 %v532_v25, %v1238_v47  ;;  %v625_v47 = vld [vmem:[#allocation6 + $0xf0] sm:$0xff]  ;;  %v698_v25 = vld [vmem:[#allocation7 + $0x78] sm:$0xff] }
 0x566   :  { %633 = vmatpush.msrb.mxu2 %v625_v47  ;;  %719 = vmatpush.msra.mxu0 %v698_v25  ;;  %v710_v47 = vld [vmem:[#allocation7 + $0xd8] sm:$0xff] }
 0x567   :  { %540 = vadd.xlane.f32.xlu2 %v535_v26 }
 0x568   :  { %634 = vmatpush.msrb.mxu2 %v623_v38  ;;  %720 = vmatpush.msra.mxu0 %v697_v27  ;;  %v709_v38 = vld [vmem:[#allocation7 + $0xd0] sm:$0xff] }
 0x56a   :  { %635 = vmatpush.msrb.mxu2 %v621_v45  ;;  %721 = vmatpush.msra.mxu0 %v696_v29 }
 0x56c   :  { %636 = vmatpush.msrb.mxu2 %v619_v48  ;;  %v706_v48 = vld [vmem:[#allocation7 + $0xb8] sm:$0xff] }
 0x56e   :  { %637 = vmatpush.msrb.mxu2 %v617_v50  ;;  %v689_v50 = vld [vmem:[#allocation7 + $0x30] sm:$0xff] }
 0x570   :  { %638 = vmatpush.msrb.mxu2 %v615_v52 }
 0x572   :  { %639 = vmatpush.msrb.mxu2 %v613_v54  ;;  %v704_v54 = vld [vmem:[#allocation7 + $0xa8] sm:$0xff] }
 0x574   :  { %640 = vmatpush.msrb.mxu2 %v611_v56  ;;  %v687_v56 = vld [vmem:[#allocation7 + $0x20] sm:$0xff] }
 0x576   :  { %641 = vmatpush.msrb.mxu2 %v609_v58 }
 0x578   :  { %642 = vmatpush.msrb.mxu2 %v607_v60  ;;  %v702_v60 = vld [vmem:[#allocation7 + $0x98] sm:$0xff] }
 0x57a   :  { %643 = vmatpush.msrb.mxu2 %v605_v62 }
 0x57c   :  { %644 = vmatpush.msrb.mxu2 %v603_v0 }
 0x57e   :  { %645 = vmatpush.msrb.mxu2 %v601_v2  ;;  %v685_v2 = vld [vmem:[#allocation7 + $0x10] sm:$0xff] }
 0x580   :  { %646 = vmatpush.msrb.mxu2 %v599_v4  ;;  %v684_v4 = vld [vmem:[#allocation7 + $0x8] sm:$0xff] }
 0x582   :  { %647 = vmatpush.msrb.mxu2 %v597_v6  ;;  %v683_v6 = vld [vmem:[#allocation7] sm:$0xff] }
 0x584   :  { %648 = vmatpush.msrb.mxu2 %v595_v8 }
 0x5ba   :  { %v539_v34 = vpop.xlane.xlu0 %538 }
 0x5bb   :  { %v549_v35 = vmul.f32 %v1293_v33, %v539_v34  ;;  %v695_v34 = vld [vmem:[#allocation7 + $0x60] sm:$0xff] }
 0x5bc   :  { %722 = vmatpush.msra.mxu0 %v695_v34 }
 0x5bd   :  { %v1296_v41 = vsub.f32 %v534_v23, %v549_v35  ;;  %v711_v35 = vld [vmem:[#allocation7 + $0xe0] sm:$0xff] }
 0x5bf   :  { %v553_v36 = vmul.f32 %v1296_v41, %v1296_v41 }
 0x5c1   :  { %555 = vadd.xlane.f32.xlu0 %v553_v36  ;;  %v694_v36 = vld [vmem:[#allocation7 + $0x58] sm:$0xff] }
 0x5c2   :  { %723 = vmatpush.msra.mxu0 %v694_v36 }
 0x5c4   :  { %724 = vmatpush.msra.mxu0 %v693_v37 }
 0x5c6   :  { %725 = vmatpush.msra.mxu0 %v692_v39 }
 0x5da   :  { %v541_v40 = vpop.xlane.xlu2 %540 }
 0x5db   :  { %v550_v42 = vmul.f32 %v1293_v33, %v541_v40  ;;  %v708_v40 = vld [vmem:[#allocation7 + $0xc8] sm:$0xff] }
 0x5dd   :  { %v1301_v43 = vsub.f32 %v535_v26, %v550_v42  ;;  %v714_v26 = vld [vmem:[#allocation7 + $0xf8] sm:$0xff]  ;;  %v691_v42 = vld [vmem:[#allocation7 + $0x40] sm:$0xff] }
 0x5de   :  { %742 = vmatpush.msra.mxu1 %v714_v26  ;;  %842 = vmatpush.msra.mxu2 %v714_v26 }
 0x5df   :  { %v554_v44 = vmul.f32 %v1301_v43, %v1301_v43  ;;  %726 = vmatpush.msra.mxu0 %v691_v42 }
 0x5e0   :  { %743 = vmatpush.msra.mxu1 %v713_v28  ;;  %843 = vmatpush.msra.mxu2 %v713_v28 }
 0x5e1   :  { %557 = vadd.xlane.f32.xlu0 %v554_v44  ;;  %v707_v44 = vld [vmem:[#allocation7 + $0xc0] sm:$0xff]  ;;  %727 = vmatpush.msra.mxu0 %v690_v46 }
 0x5e2   :  { %744 = vmatpush.msra.mxu1 %v712_v30  ;;  %844 = vmatpush.msra.mxu2 %v712_v30 }
 0x5e3   :  { %728 = vmatpush.msra.mxu0 %v689_v50 }
 0x5e4   :  { %745 = vmatpush.msra.mxu1 %v711_v35  ;;  %845 = vmatpush.msra.mxu2 %v711_v35 }
 0x5e5   :  { %729 = vmatpush.msra.mxu0 %v688_v53 }
 0x5e6   :  { %746 = vmatpush.msra.mxu1 %v710_v47  ;;  %846 = vmatpush.msra.mxu2 %v710_v47 }
 0x5e7   :  { %730 = vmatpush.msra.mxu0 %v687_v56 }
 0x5e8   :  { %747 = vmatpush.msra.mxu1 %v709_v38  ;;  %847 = vmatpush.msra.mxu2 %v709_v38 }
 0x5e9   :  { %731 = vmatpush.msra.mxu0 %v686_v59 }
 0x5ea   :  { %748 = vmatpush.msra.mxu1 %v708_v40  ;;  %848 = vmatpush.msra.mxu2 %v708_v40 }
 0x5eb   :  { %732 = vmatpush.msra.mxu0 %v685_v2 }
 0x5ec   :  { %749 = vmatpush.msra.mxu1 %v707_v44  ;;  %849 = vmatpush.msra.mxu2 %v707_v44 }
 0x5ed   :  { %733 = vmatpush.msra.mxu0 %v684_v4 }
 0x5ee   :  { %750 = vmatpush.msra.mxu1 %v706_v48  ;;  %850 = vmatpush.msra.mxu2 %v706_v48 }
 0x5ef   :  { %734 = vmatpush.msra.mxu0 %v683_v6 }
 0x5f0   :  { %751 = vmatpush.msra.mxu1 %v705_v51  ;;  %851 = vmatpush.msra.mxu2 %v705_v51 }
 0x5f2   :  { %752 = vmatpush.msra.mxu1 %v704_v54  ;;  %852 = vmatpush.msra.mxu2 %v704_v54  ;;  %v884_v54 = vld [vmem:[#allocation13] ss:$0 sm:$0xff] }
 0x5f4   :  { %753 = vmatpush.msra.mxu1 %v703_v57  ;;  %853 = vmatpush.msra.mxu2 %v703_v57 }
 0x5f6   :  { %754 = vmatpush.msra.mxu1 %v702_v60  ;;  %854 = vmatpush.msra.mxu2 %v702_v60 }
 0x5f8   :  { %755 = vmatpush.msra.mxu1 %v701_v3  ;;  %855 = vmatpush.msra.mxu2 %v701_v3 }
 0x5fa   :  { %756 = vmatpush.msra.mxu1 %v700_v5  ;;  %856 = vmatpush.msra.mxu2 %v700_v5 }
 0x5fc   :  { %757 = vmatpush.msra.mxu1 %v699_v7  ;;  %857 = vmatpush.msra.mxu2 %v699_v7 }
 0x634   :  { %v556_v10 = vpop.xlane.xlu0 %555 }
 0x635   :  { %v559_v11 = vmul.f32 %v556_v10, %v1293_v33 }
 0x637   :  { %v561_v12 = vadd.f32 1e-05, %v559_v11 }
 0x639   :  { %903 = vrsqrt.f32 %v561_v12  ;;  %vm569_vm4 = vweird.f32 %v561_v12 }
 0x63f   :  { %v904_v13 = vpop.eup %903 }
 0x640   :  { %v564_v14 = vmul.f32 %v904_v13, %v561_v12  ;;  %vm570_vm3 = vweird.f32 %v904_v13 }
 0x641   :  { %vm571_vm5 = vmor %vm569_vm4, %vm570_vm3 }
 0x642   :  { %v565_v15 = vmul.f32 %v904_v13, %v564_v14 }
 0x644   :  { %v566_v16 = vmul.f32 0.5, %v565_v15 }
 0x646   :  { %v567_v17 = vsub.f32 1.5, %v566_v16 }
 0x648   :  { %v568_v18 = vmul.f32 %v904_v13, %v567_v17 }
 0x64a   :  { %v572_v20 = vsel %vm571_vm5, %v904_v13, %v568_v18 }
 0x64b   :  { %v583_v21 = vmul.f32 %v572_v20, %v1296_v41 }
 0x64d   :  { %v588_v23 = vmul.f32 %v1306_v19, %v583_v21 }
 0x64f   :  { %v1313_v24 = vadd.f32 %v1309_v22, %v588_v23 }
 0x651   :  { %649 = vmatmul.f32.vlgmr.msrb.gmra.mxu2 %v1313_v24  ;;  %672 = vmatmul.f32.vlgmr.msrb.gmra.mxu3 %v1313_v24 }
 0x654   :  { %v558_v31 = vpop.xlane.xlu0 %557 }
 0x655   :  { %v560_v32 = vmul.f32 %v558_v31, %v1293_v33 }
 0x657   :  { %v562_v41 = vadd.f32 1e-05, %v560_v32 }
 0x659   :  { %905 = vrsqrt.f32 %v562_v41  ;;  %vm579_vm7 = vweird.f32 %v562_v41 }
 0x65f   :  { %v906_v45 = vpop.eup %905 }
 0x660   :  { %v574_v49 = vmul.f32 %v906_v45, %v562_v41  ;;  %vm580_vm6 = vweird.f32 %v906_v45 }
 0x661   :  { %vm581_vm8 = vmor %vm579_vm7, %vm580_vm6 }
 0x662   :  { %v575_v52 = vmul.f32 %v906_v45, %v574_v49 }
 0x664   :  { %v576_v55 = vmul.f32 0.5, %v575_v52  ;;  %v883_v52 = vld [vmem:[#allocation12] ss:$0 sm:$0xff] }
 0x666   :  { %v577_v58 = vsub.f32 1.5, %v576_v55 }
 0x668   :  { %v578_v61 = vmul.f32 %v906_v45, %v577_v58 }
 0x66a   :  { %v582_v62 = vsel %vm581_vm8, %v906_v45, %v578_v61 }
 0x66b   :  { %v584_v63 = vmul.f32 %v582_v62, %v1301_v43  ;;  %v627_v43 = vld [vmem:[%s1345_s7] sm:$0x3] }
 0x66c   :  { %v629_v8 = vperm.slane %v627_v43, 0  ;;  %v630_v9 = vperm.slane %v627_v43, 1 }
 0x66d   :  { %v589_v0 = vmul.f32 %v1306_v19, %v584_v63 }
 0x66f   :  { %v594_v1 = vadd.f32 %v1309_v22, %v589_v0  ;;  %v882_v22 = vld [vmem:[%s1347_s9] ss:$0 sm:$0xff] }
 0x671   :  { %652 = vmatmul.f32.gmra.mxu2 %v594_v1  ;;  %675 = vmatmul.f32.gmra.mxu3 %v594_v1 }
 0x6d4   :  { %v650_v10 = vpop.f32.mrf.mxu2  ;;  %v673_v11 = vpop.f32.mrf.mxu3 }
 0x6d5   :  { %v651_v12 = vadd.f32 %v650_v10, %v629_v8  ;;  %v674_v13 = vadd.f32 %v673_v11, %v630_v9 }
 0x6d7   :  { %v679_v14 = vmax.f32 %v651_v12, 0.0  ;;  %v680_v15 = vmax.f32 %v674_v13, 0.0 }
 0x6d9   :  { %735 = vmatmul.f32.vlgmr.msra.gmra.mxu0 %v679_v14  ;;  %758 = vmatmul.f32.vlgmr.msra.gmra.mxu1 %v680_v15 }
 0x6f4   :  { %v653_v16 = vpop.f32.mrf.mxu2  ;;  %v676_v17 = vpop.f32.mrf.mxu3 }
 0x6f5   :  { %v654_v18 = vadd.f32 %v653_v16, %v629_v8  ;;  %v677_v19 = vadd.f32 %v676_v17, %v630_v9 }
 0x6f7   :  { %v681_v20 = vmax.f32 %v654_v18, 0.0  ;;  %v682_v21 = vmax.f32 %v677_v19, 0.0 }
 0x6f9   :  { %738 = vmatmul.f32.gmra.mxu0 %v681_v20  ;;  %761 = vmatmul.f32.vlgmr.msra.gmra.mxu2 %v682_v21 }
 0x756   :  { %v736_v23 = vpop.f32.mrf.mxu0  ;;  %v759_v26 = vpop.f32.mrf.mxu1 }
 0x757   :  { %v737_v25 = vadd.f32 %v882_v22, %v736_v23 }
 0x759   :  { %v760_v27 = vadd.f32 %v759_v26, %v737_v25 }
 0x75b   :  { %v765_v28 = vadd.f32 %v760_v27, %v1313_v24 }
 0x75d   :  { %769 = vadd.xlane.f32.xlu1 %v765_v28 }
 0x776   :  { %v739_v29 = vpop.f32.mrf.mxu0 }
 0x777   :  { %v740_v30 = vadd.f32 %v882_v22, %v739_v29 }
 0x77c   :  { %v762_v31 = vpop.f32.mrf.mxu2 }
 0x77d   :  { %v763_v32 = vadd.f32 %v762_v31, %v740_v30 }
 0x77f   :  { %v766_v34 = vadd.f32 %v763_v32, %v594_v1 }
 0x781   :  { %771 = vadd.xlane.f32.xlu0 %v766_v34 }
 0x7d0   :  { %v770_v35 = vpop.xlane.xlu1 %769 }
 0x7d1   :  { %v773_v41 = vmul.f32 %v770_v35, %v1293_v33 }
 0x7d3   :  { %v775_v36 = vsub.f32 %v765_v28, %v773_v41 }
 0x7d5   :  { %v777_v47 = vmul.f32 %v775_v36, %v775_v36 }
 0x7d7   :  { %779 = vadd.xlane.f32.xlu0 %v777_v47 }
 0x7f4   :  { %v772_v37 = vpop.xlane.xlu0 %771 }
 0x7f5   :  { %v774_v38 = vmul.f32 %v772_v37, %v1293_v33 }
 0x7f7   :  { %v776_v39 = vsub.f32 %v766_v34, %v774_v38 }
 0x7f9   :  { %v778_v40 = vmul.f32 %v776_v39, %v776_v39 }
 0x7fb   :  { %781 = vadd.xlane.f32.xlu0 %v778_v40 }
 0x84a   :  { %v780_v24 = vpop.xlane.xlu0 %779 }
 0x84b   :  { %v783_v42 = vmul.f32 %v780_v24, %v1293_v33 }
 0x84d   :  { %v785_v44 = vadd.f32 1e-05, %v783_v42 }
 0x84f   :  { %907 = vrsqrt.f32 %v785_v44  ;;  %vm793_vm10 = vweird.f32 %v785_v44 }
 0x855   :  { %v908_v45 = vpop.eup %907 }
 0x856   :  { %v788_v46 = vmul.f32 %v908_v45, %v785_v44  ;;  %vm794_vm9 = vweird.f32 %v908_v45 }
 0x857   :  { %vm795_vm11 = vmor %vm793_vm10, %vm794_vm9 }
 0x858   :  { %v789_v48 = vmul.f32 %v908_v45, %v788_v46 }
 0x85a   :  { %v790_v49 = vmul.f32 0.5, %v789_v48 }
 0x85c   :  { %v791_v50 = vsub.f32 1.5, %v790_v49 }
 0x85e   :  { %v792_v51 = vmul.f32 %v908_v45, %v791_v50 }
 0x860   :  { %v796_v53 = vsel %vm795_vm11, %v908_v45, %v792_v51 }
 0x861   :  { %v807_v55 = vmul.f32 %v796_v53, %v775_v36 }
 0x863   :  { %v812_v56 = vmul.f32 %v883_v52, %v807_v55 }
 0x865   :  { %v817_v57 = vadd.f32 %v884_v54, %v812_v56 }
 0x867   :  { %819 = vst [vmem:[%s1352_s14] sm:$0xff] %v817_v57 }
 0x86e   :  { %v782_v58 = vpop.xlane.xlu0 %781 }
 0x86f   :  { %v784_v59 = vmul.f32 %v782_v58, %v1293_v33 }
 0x871   :  { %v786_v60 = vadd.f32 1e-05, %v784_v59 }
 0x873   :  { %909 = vrsqrt.f32 %v786_v60  ;;  %vm803_vm13 = vweird.f32 %v786_v60 }
 0x879   :  { %v910_v61 = vpop.eup %909 }
 0x87a   :  { %v798_v62 = vmul.f32 %v910_v61, %v786_v60  ;;  %vm804_vm12 = vweird.f32 %v910_v61 }
 0x87b   :  { %vm805_vm14 = vmor %vm803_vm13, %vm804_vm12 }
 0x87c   :  { %v799_v63 = vmul.f32 %v910_v61, %v798_v62 }
 0x87e   :  { %v800_v0 = vmul.f32 0.5, %v799_v63 }
 0x880   :  { %v801_v1 = vsub.f32 1.5, %v800_v0 }
 0x882   :  { %v802_v2 = vmul.f32 %v910_v61, %v801_v1 }
 0x884   :  { %v806_v3 = vsel %vm805_vm14, %v910_v61, %v802_v2 }
 0x885   :  { %v808_v4 = vmul.f32 %v806_v3, %v776_v39 }
 0x887   :  { %v813_v5 = vmul.f32 %v883_v52, %v808_v4 }
 0x889   :  { %v818_v6 = vadd.f32 %v884_v54, %v813_v5 }
 0x88b   :  { %820 = vst [vmem:[%s1352_s14 + $0x8] sm:$0xff] %v818_v6 }
 0x88c   :  { %825 = vsyncpa [#allocation3], 1 }
 0x88d   :  { %826 = vsyncpa [#allocation5], 1 }
 0x88e   :  { %827 = vsyncpa [#allocation8], 1 }
 0x88f   :  { %828 = vsyncpa [#allocation11], 1 }
 0x890   :  { %829 = vsyncpa [#allocation14], 1 }

// kernel: lxmert_encoder_wrapper_forward.14
= control target key start
LH: loop header
LB: loop body
LE: loop exit
PB: predicated region body
PF: predicated region fallthrough
CT: control target
= control target key end

     0   :  { %19 = vsyncpa [#allocation3], 0  ;;  %s1898_s0 = inlined_call_operand.vmem [shape: f32[24,128], index: 0, kind: input, shape index: {}]   ;;  %s1899_s1 = inlined_call_operand.vmem [shape: f32[24,24], index: 1, kind: input, shape index: {}]   ;;  %s1900_s2 = inlined_call_operand.hbm [shape: f32[128,384], index: 2, kind: input, shape index: {}]   ;;  %s1901_s3 = inlined_call_operand.vmem [shape: f32[1,384], index: 3, kind: input, shape index: {}]   ;;  %s1902_s4 = inlined_call_operand.hbm [shape: f32[128,128], index: 4, kind: input, shape index: {}]   ;;  %s1903_s5 = inlined_call_operand.vmem [shape: f32[1,128], index: 5, kind: input, shape index: {}]   ;;  %s1904_s6 = inlined_call_operand.vmem [shape: f32[128,256], index: 6, kind: input, shape index: {}]   ;;  %s1905_s7 = inlined_call_operand.vmem [shape: f32[1,256], index: 7, kind: input, shape index: {}]   ;;  %s1906_s8 = inlined_call_operand.hbm [shape: f32[256,128], index: 8, kind: input, shape index: {}]   ;;  %s1907_s9 = inlined_call_operand.vmem [shape: f32[1,128], index: 9, kind: input, shape index: {}]   ;;  %s1908_s10 = inlined_call_operand.vmem [shape: f32[1,128], index: 10, kind: input, shape index: {}]   ;;  %s1909_s11 = inlined_call_operand.vmem [shape: f32[1,128], index: 11, kind: input, shape index: {}]   ;;  %s1910_s12 = inlined_call_operand.vmem [shape: f32[1,128], index: 12, kind: input, shape index: {}]   ;;  %s1911_s13 = inlined_call_operand.vmem [shape: f32[1,128], index: 13, kind: input, shape index: {}]   ;;  %s1912_s14 = inlined_call_operand.vmem [shape: f32[24,128], index: 14, kind: output, shape index: {}]  }
   0x1   :  { %20 = vsyncpa [#allocation5], 0  ;;  %s44_s15 = sshll.u32 %s1902_s4, 4  ;;  %s1404_s16 = smov [#allocation4]   ;;  %s45_s15 = int_to_ptr.hbm [resolvable:$true] %s44_s15 }
   0x2   :  { %s46_s17 = sshll.u32 %s1404_s16, 4  ;;  %s29_s20 = sshll.u32 %s1900_s2, 4  ;;  %s47_s17 = int_to_ptr.vmem [resolvable:$true] %s46_s17  ;;  %s30_s20 = int_to_ptr.hbm [resolvable:$true] %s29_s20 }
   0x3   :  { %s1405_s21 = smov 128   ;;  %s1406_s22 = smov 8  }
   0x4   :  { %52 = dma.hbm_to_vmem [thread:$0]  %s45_s15, 2048, %s47_s17, [#allocation5], %s1405_s21, %s1405_s21, %s1406_s22  }
   0x5   :  { %s1407_s23 = smov [#allocation2]   ;;  %s1408_s25 = smov 384  }
   0x6   :  { %s31_s24 = sshll.u32 %s1407_s23, 4  ;;  %s1409_s26 = smov 24   ;;  %s32_s24 = int_to_ptr.vmem [resolvable:$true] %s31_s24 }
   0x7   :  { %37 = dma.hbm_to_vmem [thread:$0]  %s30_s20, 6144, %s32_s24, [#allocation3], %s1408_s25, %s1408_s25, %s1409_s26  }
   0x8   :  { %s63_s28 = sshll.u32 %s1906_s8, 4  ;;  %s1410_s29 = smov [#allocation6]   ;;  %s64_s28 = int_to_ptr.hbm [resolvable:$true] %s63_s28 }
   0x9   :  { %s65_s30 = sshll.u32 %s1410_s29, 4  ;;  %s66_s30 = int_to_ptr.vmem [resolvable:$true] %s65_s30 }
   0xa   :  { %71 = dma.hbm_to_vmem [thread:$0]  %s64_s28, 4096, %s66_s30, [#allocation5], %s1405_s21, %s1405_s21, %s1406_s22  }
   0xb   :  { %1400 = dma.done.wait [#allocation3], 6144  }
   0xc   :  { %1401 = vsyncadd [#allocation3], 4294961152 }
   0xd   :  { %1402 = dma.done.wait [#allocation5], 6144  }
   0xe   :  { %1403 = vsyncadd [#allocation5], 4294961152  ;;  %v146_v0 = vld [vmem:[#allocation2 + $0x170] sm:$0xff]  ;;  %v143_v1 = vld [vmem:[#allocation2 + $0x158] sm:$0xff]  ;;  %s1412_s21 = smov 64   ;;  %vm237_vm0 = vcmask 261120  }
   0xf   :  { %182 = vmatpush.msra.mxu1 %v146_v0  ;;  %v145_v2 = vld [vmem:[#allocation2 + $0x168] sm:$0xff]  ;;  %v142_v3 = vld [vmem:[#allocation2 + $0x150] sm:$0xff]  ;;  %v140_v4 = vld [vmem:[#allocation2 + $0x140] sm:$0xff]  ;;  %vm282_vm1 = vcmask 195584   ;;  %vm774_vm2 = vcmask 523264   ;;  %vm778_vm3 = vcmask 785408  }
  0x10   :  { %156 = vmatpush.msra.mxu0 %v145_v2  ;;  %v139_v5 = vld [vmem:[#allocation2 + $0x138] sm:$0xff]  ;;  %v137_v6 = vld [vmem:[#allocation2 + $0x128] sm:$0xff]  ;;  %v136_v7 = vld [vmem:[#allocation2 + $0x120] sm:$0xff] }
  0x11   :  { %183 = vmatpush.msra.mxu1 %v143_v1  ;;  %v134_v8 = vld [vmem:[#allocation2 + $0x110] sm:$0xff]  ;;  %v133_v9 = vld [vmem:[#allocation2 + $0x108] sm:$0xff]  ;;  %v131_v10 = vld [vmem:[#allocation2 + $0xf8] sm:$0xff] }
  0x12   :  { %157 = vmatpush.msra.mxu0 %v142_v3  ;;  %v130_v11 = vld [vmem:[#allocation2 + $0xf0] sm:$0xff]  ;;  %v128_v12 = vld [vmem:[#allocation2 + $0xe0] sm:$0xff]  ;;  %v125_v13 = vld [vmem:[#allocation2 + $0xc8] sm:$0xff] }
  0x13   :  { %184 = vmatpush.msra.mxu1 %v140_v4  ;;  %v127_v14 = vld [vmem:[#allocation2 + $0xd8] sm:$0xff]  ;;  %v124_v15 = vld [vmem:[#allocation2 + $0xc0] sm:$0xff]  ;;  %v122_v16 = vld [vmem:[#allocation2 + $0xb0] sm:$0xff] }
  0x14   :  { %158 = vmatpush.msra.mxu0 %v139_v5  ;;  %v121_v17 = vld [vmem:[#allocation2 + $0xa8] sm:$0xff]  ;;  %v119_v18 = vld [vmem:[#allocation2 + $0x98] sm:$0xff]  ;;  %v118_v19 = vld [vmem:[#allocation2 + $0x90] sm:$0xff] }
  0x15   :  { %185 = vmatpush.msra.mxu1 %v137_v6  ;;  %v147_v20 = vld [vmem:[#allocation2 + $0x178] sm:$0xff]  ;;  %v144_v21 = vld [vmem:[#allocation2 + $0x160] sm:$0xff]  ;;  %v141_v24 = vld [vmem:[#allocation2 + $0x148] sm:$0xff] }
  0x16   :  { %159 = vmatpush.msra.mxu0 %v136_v7  ;;  %v116_v22 = vld [vmem:[#allocation2 + $0x80] sm:$0xff]  ;;  %208 = vmatpush.msra.mxu2 %v147_v20  ;;  %v115_v23 = vld [vmem:[#allocation2 + $0x78] sm:$0xff]  ;;  %v113_v25 = vld [vmem:[#allocation2 + $0x68] sm:$0xff] }
  0x17   :  { %186 = vmatpush.msra.mxu1 %v134_v8  ;;  %v112_v26 = vld [vmem:[#allocation2 + $0x60] sm:$0xff]  ;;  %v138_v27 = vld [vmem:[#allocation2 + $0x130] sm:$0xff]  ;;  %v109_v29 = vld [vmem:[#allocation2 + $0x48] sm:$0xff] }
  0x18   :  { %160 = vmatpush.msra.mxu0 %v133_v9  ;;  %209 = vmatpush.msra.mxu2 %v144_v21  ;;  %v110_v28 = vld [vmem:[#allocation2 + $0x50] sm:$0xff]  ;;  %v135_v30 = vld [vmem:[#allocation2 + $0x118] sm:$0xff]  ;;  %v132_v33 = vld [vmem:[#allocation2 + $0x100] sm:$0xff] }
  0x19   :  { %187 = vmatpush.msra.mxu1 %v131_v10  ;;  %v107_v31 = vld [vmem:[#allocation2 + $0x38] sm:$0xff]  ;;  %v106_v32 = vld [vmem:[#allocation2 + $0x30] sm:$0xff]  ;;  %v104_v34 = vld [vmem:[#allocation2 + $0x20] sm:$0xff] }
  0x1a   :  { %161 = vmatpush.msra.mxu0 %v130_v11  ;;  %210 = vmatpush.msra.mxu2 %v141_v24  ;;  %v103_v35 = vld [vmem:[#allocation2 + $0x18] sm:$0xff]  ;;  %v129_v36 = vld [vmem:[#allocation2 + $0xe8] sm:$0xff]  ;;  %v1502_v38 = vld [vmem:[%s1898_s0] sm:$0xff] }
  0x1b   :  { %188 = vmatpush.msra.mxu1 %v128_v12  ;;  %v101_v37 = vld [vmem:[#allocation2 + $0x8] sm:$0xff]  ;;  %v100_v39 = vld [vmem:[#allocation2] sm:$0xff]  ;;  %v126_v40 = vld [vmem:[#allocation2 + $0xd0] sm:$0xff] }
  0x1c   :  { %162 = vmatpush.msra.mxu0 %v127_v14  ;;  %211 = vmatpush.msra.mxu2 %v138_v27  ;;  %v123_v41 = vld [vmem:[#allocation2 + $0xb8] sm:$0xff]  ;;  %v120_v42 = vld [vmem:[#allocation2 + $0xa0] sm:$0xff]  ;;  %v117_v43 = vld [vmem:[#allocation2 + $0x88] sm:$0xff] }
  0x1d   :  { %189 = vmatpush.msra.mxu1 %v125_v13  ;;  %v1509_v44 = vld [vmem:[%s1898_s0 + $0x8] sm:$0xff]  ;;  %v114_v45 = vld [vmem:[#allocation2 + $0x70] sm:$0xff]  ;;  %v111_v46 = vld [vmem:[#allocation2 + $0x58] sm:$0xff] }
  0x1e   :  { %163 = vmatpush.msra.mxu0 %v124_v15  ;;  %212 = vmatpush.msra.mxu2 %v135_v30  ;;  %v108_v47 = vld [vmem:[#allocation2 + $0x40] sm:$0xff]  ;;  %v105_v48 = vld [vmem:[#allocation2 + $0x28] sm:$0xff]  ;;  %v1516_v49 = vld [vmem:[%s1898_s0 + $0x10] sm:$0xff]  ;;  %s1411_s0 = smov 96  }
  0x1f   :  { %190 = vmatpush.msra.mxu1 %v122_v16  ;;  %v102_v50 = vld [vmem:[#allocation2 + $0x10] sm:$0xff]  ;;  %v148_v51 = vld [vmem:[%s1901_s3] sm:$0x7]  ;;  %s1413_s3 = smov 32  }
  0x20   :  { %164 = vmatpush.msra.mxu0 %v121_v17  ;;  %213 = vmatpush.msra.mxu2 %v132_v33  ;;  %v151_v52 = vperm.slane %v148_v51, 1  ;;  %v150_v53 = vperm.slane %v148_v51, 0  ;;  %v152_v7 = vperm.slane %v148_v51, 2  ;;  %v1572_v24 = vld [vmem:[%s1899_s1] sm:$0xff] }
  0x21   :  { %191 = vmatpush.msra.mxu1 %v119_v18 }
  0x22   :  { %165 = vmatpush.msra.mxu0 %v118_v19  ;;  %214 = vmatpush.msra.mxu2 %v129_v36 }
  0x23   :  { %192 = vmatpush.msra.mxu1 %v116_v22 }
  0x24   :  { %166 = vmatpush.msra.mxu0 %v115_v23  ;;  %215 = vmatpush.msra.mxu2 %v126_v40 }
  0x25   :  { %193 = vmatpush.msra.mxu1 %v113_v25 }
  0x26   :  { %167 = vmatpush.msra.mxu0 %v112_v26  ;;  %216 = vmatpush.msra.mxu2 %v123_v41 }
  0x27   :  { %194 = vmatpush.msra.mxu1 %v110_v28 }
  0x28   :  { %168 = vmatpush.msra.mxu0 %v109_v29  ;;  %217 = vmatpush.msra.mxu2 %v120_v42 }
  0x29   :  { %195 = vmatpush.msra.mxu1 %v107_v31  ;;  %v1583_v31 = vld [vmem:[%s1899_s1 + $0x8] sm:$0xff] }
  0x2a   :  { %169 = vmatpush.msra.mxu0 %v106_v32  ;;  %218 = vmatpush.msra.mxu2 %v117_v43 }
  0x2b   :  { %196 = vmatpush.msra.mxu1 %v104_v34 }
  0x2c   :  { %170 = vmatpush.msra.mxu0 %v103_v35  ;;  %219 = vmatpush.msra.mxu2 %v114_v45 }
  0x2d   :  { %197 = vmatpush.msra.mxu1 %v101_v37 }
  0x2e   :  { %198 = vmatmul.f32.vlgmr.msra.gmra.mxu1 %v1502_v38  ;;  %171 = vmatpush.msra.mxu0 %v100_v39 }
  0x2f   :  { %172 = vmatmul.f32.vlgmr.msra.gmra.mxu0 %v1502_v38  ;;  %220 = vmatpush.msra.mxu2 %v111_v46 }
  0x31   :  { %221 = vmatpush.msra.mxu2 %v108_v47  ;;  %v99_v47 = vld [vmem:[%s1899_s1 + $0x10] sm:$0xff] }
  0x33   :  { %222 = vmatpush.msra.mxu2 %v105_v48 }
  0x35   :  { %223 = vmatpush.msra.mxu2 %v102_v50 }
  0x36   :  { %201 = vmatmul.f32.gmra.mxu1 %v1509_v44  ;;  %224 = vmatmul.f32.vlgmr.msra.gmra.mxu2 %v1502_v38 }
  0x37   :  { %175 = vmatmul.f32.gmra.mxu0 %v1509_v44 }
  0x3e   :  { %204 = vmatmul.f32.gmra.mxu1 %v1516_v49  ;;  %227 = vmatmul.f32.gmra.mxu2 %v1509_v44 }
  0x3f   :  { %178 = vmatmul.f32.gmra.mxu0 %v1516_v49 }
  0x46   :  { %230 = vmatmul.f32.gmra.mxu2 %v1516_v49 }
  0xab   :  { %v199_v54 = vpop.f32.mrf.mxu1 }
  0xac   :  { %v200_v55 = vadd.f32 %v199_v54, %v151_v52  ;;  %v173_v56 = vpop.f32.mrf.mxu0 }
  0xad   :  { %v174_v57 = vadd.f32 %v173_v56, %v150_v53 }
  0xae   :  { %357 = vrot.lane.b32.xlu1 %v200_v55, %s1411_s0 }
  0xaf   :  { %v234_v58 = vmul.f32 0.17677669, %v174_v57 }
  0xb3   :  { %v202_v59 = vpop.f32.mrf.mxu1 }
  0xb4   :  { %v203_v60 = vadd.f32 %v202_v59, %v151_v52  ;;  %v176_v61 = vpop.f32.mrf.mxu0 }
  0xb5   :  { %v177_v3 = vadd.f32 %v176_v61, %v150_v53 }
  0xb6   :  { %489 = vrot.lane.b32.xlu2 %v203_v60, %s1412_s21  ;;  %351 = vrot.lane.b32.xlu1 %v234_v58, %s1411_s0 }
  0xb7   :  { %v235_v4 = vmul.f32 0.17677669, %v177_v3 }
  0xb9   :  { %v225_v5 = vpop.f32.mrf.mxu2 }
  0xba   :  { %v1550_v11 = vadd.f32 %v225_v5, %v152_v7 }
  0xbb   :  { %v205_v62 = vpop.f32.mrf.mxu1 }
  0xbc   :  { %v206_v63 = vadd.f32 %v205_v62, %v151_v52  ;;  %v179_v0 = vpop.f32.mrf.mxu0 }
  0xbd   :  { %v180_v1 = vadd.f32 %v179_v0, %v150_v53 }
  0xbe   :  { %361 = vrot.lane.b32.xlu0 %v206_v63, %s1411_s0  ;;  %1182 = vmatpush.xpose.msk.msra.mxu3 %vm237_vm0, %v206_v63 }
  0xbf   :  { %491 = vrot.lane.b32.xlu2 %v206_v63, %s1412_s21  ;;  %487 = vrot.lane.b32.xlu1 %v200_v55, %s1412_s21  ;;  %v236_v2 = vmul.f32 0.17677669, %v180_v1 }
  0xc1   :  { %v228_v6 = vpop.f32.mrf.mxu2 }
  0xc2   :  { %1183 = vmatpush.xpose.msk.msra.mxu3 %vm237_vm0, %v203_v60  ;;  %v229_v8 = vadd.f32 %v228_v6, %v152_v7 }
  0xc6   :  { %359 = vrot.lane.b32.xlu0 %v203_v60, %s1411_s0  ;;  %1184 = vmatpush.xpose.msk.msra.mxu3 %vm237_vm0, %v200_v55 }
  0xc7   :  { %481 = vrot.lane.b32.xlu2 %v234_v58, %s1412_s21  ;;  %355 = vrot.lane.b32.xlu1 %v236_v2, %s1411_s0 }
  0xc9   :  { %1185 = vmatmul.msk.f32.vlgmr.msra.gmra.mxu3 %vm237_vm0, %v234_v58  ;;  %v231_v9 = vpop.f32.mrf.mxu2 }
  0xca   :  { %v232_v10 = vadd.f32 %v231_v9, %v152_v7 }
  0xcc   :  { %v1552_v12 = vpack.i.bf16 %v229_v8, %v232_v10  ;;  %338 = vmatpush.msrb.mxu3 %v232_v10 }
  0xce   :  { %353 = vrot.lane.b32.xlu0 %v235_v4, %s1411_s0  ;;  %339 = vmatpush.msrb.mxu3 %v229_v8 }
  0xcf   :  { %616 = vrot.lane.b32.xlu2 %v203_v60, %s1413_s3  ;;  %614 = vrot.lane.b32.xlu1 %v200_v55, %s1413_s3 }
  0xd0   :  { %340 = vmatpush.msrb.mxu3 %v1550_v11 }
  0xd1   :  { %1186 = vmatmul.msk.f32.gmra.mxu3 %vm237_vm0, %v235_v4 }
  0xd6   :  { %618 = vrot.lane.b32.xlu0 %v206_v63, %s1413_s3 }
  0xd7   :  { %608 = vrot.lane.b32.xlu2 %v234_v58, %s1413_s3  ;;  %610 = vrot.lane.b32.xlu1 %v235_v4, %s1413_s3 }
  0xd9   :  { %1187 = vmatmul.msk.f32.gmra.mxu3 %vm237_vm0, %v236_v2 }
  0xde   :  { %483 = vrot.lane.b32.xlu0 %v235_v4, %s1412_s21 }
  0xdf   :  { %612 = vrot.lane.b32.xlu2 %v236_v2, %s1413_s3 }
  0xe6   :  { %485 = vrot.lane.b32.xlu0 %v236_v2, %s1412_s21 }
  0xe7   :  { %1246 = vrot.lane.b32.xlu2 %v1552_v12, %s1411_s0 }
  0xef   :  { %1251 = vrot.lane.b32.xlu2 %v1552_v12, %s1412_s21 }
 0x110   :  { %v490_v13 = vpop.permute.xlu2 %489 }
 0x119   :  { %v492_v14 = vpop.permute.xlu2 %491 }
 0x11a   :  { %1200 = vmatpush.xpose.msk.msrb.mxu2 %vm237_vm0, %v492_v14 }
 0x11e   :  { %1201 = vmatpush.xpose.msk.msrb.mxu2 %vm237_vm0, %v490_v13 }
 0x120   :  { %v358_v15 = vpop.permute.xlu1 %357 }
 0x121   :  { %v482_v19 = vpop.permute.xlu2 %481 }
 0x128   :  { %v352_v16 = vpop.permute.xlu1 %351 }
 0x129   :  { %v617_v25 = vpop.permute.xlu2 %616 }
 0x130   :  { %v362_v17 = vpop.permute.xlu0 %361 }
 0x131   :  { %v488_v18 = vpop.permute.xlu1 %487  ;;  %1191 = vmatpush.xpose.msk.msrb.mxu0 %vm237_vm0, %v362_v17  ;;  %v609_v34 = vpop.permute.xlu2 %608 }
 0x132   :  { %1202 = vmatpush.xpose.msk.msrb.mxu2 %vm237_vm0, %v488_v18 }
 0x135   :  { %1203 = vmatmul.msk.f32.vlgmr.msrb.gmra.mxu2 %vm237_vm0, %v482_v19 }
 0x138   :  { %v360_v20 = vpop.permute.xlu0 %359 }
 0x139   :  { %1192 = vmatpush.xpose.msk.msrb.mxu0 %vm237_vm0, %v360_v20  ;;  %v356_v22 = vpop.permute.xlu1 %355  ;;  %v613_v39 = vpop.permute.xlu2 %612 }
 0x13d   :  { %1193 = vmatpush.xpose.msk.msrb.mxu0 %vm237_vm0, %v358_v15 }
 0x140   :  { %v354_v21 = vpop.permute.xlu0 %353  ;;  %1194 = vmatmul.msk.f32.vlgmr.msrb.gmra.mxu0 %vm237_vm0, %v352_v16 }
 0x141   :  { %v615_v29 = vpop.permute.xlu1 %614  ;;  %v1247_v40 = vpop.permute.xlu2 %1246 }
 0x142   :  { %v1248_v41 = vunpack.i.l.bf16 %v1247_v40  ;;  %v1249_v42 = vunpack.i.h.bf16 %v1247_v40 }
 0x144   :  { %468 = vmatpush.msrb.mxu1 %v1248_v41 }
 0x146   :  { %469 = vmatpush.msrb.mxu1 %v1249_v42 }
 0x148   :  { %v619_v23 = vpop.permute.xlu0 %618  ;;  %1195 = vmatmul.msk.f32.gmra.mxu0 %vm237_vm0, %v354_v21 }
 0x149   :  { %1209 = vmatpush.xpose.msk.msra.mxu0 %vm237_vm0, %v619_v23  ;;  %v611_v37 = vpop.permute.xlu1 %610  ;;  %v1252_v43 = vpop.permute.xlu2 %1251 }
 0x14a   :  { %v1254_v45 = vunpack.i.h.bf16 %v1252_v43  ;;  %v1253_v46 = vunpack.i.l.bf16 %v1252_v43 }
 0x14c   :  { %v273_v26 = vpop.f32.mrf.mxu3  ;;  %595 = vmatpush.msra.mxu3 %v1253_v46 }
 0x14d   :  { %v274_v27 = vadd.f32 %v273_v26, %v1572_v24  ;;  %1210 = vmatpush.xpose.msk.msra.mxu0 %vm237_vm0, %v617_v25 }
 0x14e   :  { %596 = vmatpush.msra.mxu3 %v1254_v45 }
 0x14f   :  { %v283_v28 = vsel %vm282_vm1, %v274_v27, -inf }
 0x150   :  { %v484_v30 = vpop.permute.xlu0 %483  ;;  %1196 = vmatmul.msk.f32.gmra.mxu0 %vm237_vm0, %v356_v22  ;;  %284 = vmax.xlane.f32.xlu0 %v283_v28 }
 0x151   :  { %1204 = vmatmul.msk.f32.gmra.mxu2 %vm237_vm0, %v484_v30  ;;  %1211 = vmatpush.xpose.msk.msra.mxu0 %vm237_vm0, %v615_v29 }
 0x154   :  { %v276_v32 = vpop.f32.mrf.mxu3 }
 0x155   :  { %v277_v33 = vadd.f32 %v276_v32, %v1583_v31 }
 0x157   :  { %v286_v35 = vsel %vm282_vm1, %v277_v33, -inf }
 0x158   :  { %v486_v36 = vpop.permute.xlu0 %485  ;;  %1212 = vmatmul.msk.f32.vlgmr.msra.gmra.mxu0 %vm237_vm0, %v609_v34  ;;  %287 = vmax.xlane.f32.xlu2 %v286_v35 }
 0x159   :  { %1205 = vmatmul.msk.f32.gmra.mxu2 %vm237_vm0, %v486_v36 }
 0x15c   :  { %v279_v48 = vpop.f32.mrf.mxu3 }
 0x15d   :  { %v280_v50 = vadd.f32 %v279_v48, %v99_v47 }
 0x15f   :  { %v289_v51 = vsel %vm282_vm1, %v280_v50, -inf }
 0x160   :  { %1213 = vmatmul.msk.f32.gmra.mxu0 %vm237_vm0, %v611_v37 }
 0x164   :  { %437 = vrot.lane.b32.xlu0 %v1550_v11, %s1411_s0 }
 0x168   :  { %1214 = vmatmul.msk.f32.gmra.mxu0 %vm237_vm0, %v613_v39 }
 0x18e   :  { %290 = vmax.xlane.f32.xlu0 %v289_v51 }
 0x1b8   :  { %v522_v52 = vpop.f32.mrf.mxu2 }
 0x1b9   :  { %v523_v53 = vadd.f32 %v522_v52, %v1572_v24 }
 0x1bb   :  { %v531_v54 = vsel %vm282_vm1, %v523_v53, -inf }
 0x1bc   :  { %532 = vmax.xlane.f32.xlu2 %v531_v54 }
 0x1bd   :  { %v392_v55 = vpop.f32.mrf.mxu0 }
 0x1be   :  { %v393_v56 = vadd.f32 %v392_v55, %v1572_v24 }
 0x1c0   :  { %v401_v57 = vsel %vm282_vm1, %v393_v56, -inf }
 0x1c1   :  { %402 = vmax.xlane.f32.xlu1 %v401_v57 }
 0x1c3   :  { %v285_v58 = vpop.xlane.xlu0 %284 }
 0x1c4   :  { %v292_v59 = vsub.f32 %v274_v27, %v285_v58 }
 0x1c5   :  { %v395_v60 = vpop.f32.mrf.mxu0 }
 0x1c6   :  { %v295_v61 = vmul.f32 1.442695, %v292_v59  ;;  %v396_v62 = vadd.f32 %v395_v60, %v1583_v31 }
 0x1c8   :  { %1266 = vpow2.f32 %v295_v61  ;;  %v404_v63 = vsel %vm282_vm1, %v396_v62, -inf }
 0x1c9   :  { %405 = vmax.xlane.f32.xlu2 %v404_v63 }
 0x1cb   :  { %v288_v3 = vpop.xlane.xlu2 %287 }
 0x1cc   :  { %v293_v7 = vsub.f32 %v277_v33, %v288_v3 }
 0x1cd   :  { %v398_v0 = vpop.f32.mrf.mxu0 }
 0x1ce   :  { %v1603_v1 = vpop.eup %1266  ;;  %v297_v10 = vmul.f32 1.442695, %v293_v7  ;;  %v1612_v13 = vadd.f32 %v398_v0, %v99_v47 }
 0x1cf   :  { %v301_v2 = vsel %vm282_vm1, %v1603_v1, 0.0 }
 0x1d0   :  { %1268 = vpow2.f32 %v297_v10  ;;  %v407_v18 = vsel %vm282_vm1, %v1612_v13, -inf }
 0x1d1   :  { %302 = vadd.xlane.f32.xlu2 %v301_v2 }
 0x1d4   :  { %v525_v4 = vpop.f32.mrf.mxu2 }
 0x1d5   :  { %v1608_v5 = vadd.f32 %v525_v4, %v1583_v31  ;;  %v649_v6 = vpop.f32.mrf.mxu0 }
 0x1d6   :  { %v438_v8 = vpop.permute.xlu0 %437  ;;  %v1623_v21 = vadd.f32 %v649_v6, %v1572_v24  ;;  %v1625_v22 = vpop.eup %1268 }
 0x1d7   :  { %470 = vmatpush.msrb.mxu1 %v438_v8  ;;  %v534_v9 = vsel %vm282_vm1, %v1608_v5, -inf  ;;  %v304_v23 = vsel %vm282_vm1, %v1625_v22, 0.0 }
 0x1d8   :  { %535 = vmax.xlane.f32.xlu1 %v534_v9  ;;  %v658_v25 = vsel %vm282_vm1, %v1623_v21, -inf }
 0x1dc   :  { %v528_v14 = vpop.f32.mrf.mxu2 }
 0x1dd   :  { %v1614_v15 = vadd.f32 %v528_v14, %v99_v47  ;;  %v652_v16 = vpop.f32.mrf.mxu0 }
 0x1de   :  { %v653_v17 = vadd.f32 %v652_v16, %v1583_v31 }
 0x1df   :  { %v537_v19 = vsel %vm282_vm1, %v1614_v15, -inf }
 0x1e0   :  { %408 = vmax.xlane.f32.xlu1 %v407_v18  ;;  %538 = vmax.xlane.f32.xlu0 %v537_v19  ;;  %v661_v20 = vsel %vm282_vm1, %v653_v17, -inf }
 0x1e1   :  { %662 = vmax.xlane.f32.xlu2 %v661_v20 }
 0x1e5   :  { %v655_v30 = vpop.f32.mrf.mxu0 }
 0x1e6   :  { %v1637_v31 = vadd.f32 %v655_v30, %v99_v47 }
 0x1e8   :  { %305 = vadd.xlane.f32.xlu1 %v304_v23  ;;  %659 = vmax.xlane.f32.xlu0 %v658_v25  ;;  %v664_v32 = vsel %vm282_vm1, %v1637_v31, -inf }
 0x1f9   :  { %564 = vrot.lane.b32.xlu2 %v1550_v11, %s1412_s21 }
 0x201   :  { %v291_v26 = vpop.xlane.xlu0 %290 }
 0x202   :  { %v294_v27 = vsub.f32 %v280_v50, %v291_v26 }
 0x204   :  { %v299_v28 = vmul.f32 1.442695, %v294_v27 }
 0x206   :  { %1270 = vpow2.f32 %v299_v28 }
 0x20c   :  { %v1633_v29 = vpop.eup %1270 }
 0x20d   :  { %v307_v24 = vsel %vm282_vm1, %v1633_v29, 0.0 }
 0x20e   :  { %308 = vadd.xlane.f32.xlu1 %v307_v24 }
 0x216   :  { %665 = vmax.xlane.f32.xlu1 %v664_v32 }
 0x22f   :  { %v533_v33 = vpop.xlane.xlu2 %532 }
 0x230   :  { %v540_v34 = vsub.f32 %v523_v53, %v533_v33 }
 0x232   :  { %v543_v35 = vmul.f32 1.442695, %v540_v34 }
 0x234   :  { %1272 = vpow2.f32 %v543_v35  ;;  %v403_v36 = vpop.xlane.xlu1 %402 }
 0x235   :  { %v410_v37 = vsub.f32 %v393_v56, %v403_v36 }
 0x237   :  { %v413_v39 = vmul.f32 1.442695, %v410_v37 }
 0x239   :  { %1274 = vpow2.f32 %v413_v39 }
 0x23a   :  { %v1641_v40 = vpop.eup %1272 }
 0x23b   :  { %v549_v41 = vsel %vm282_vm1, %v1641_v40, 0.0 }
 0x23c   :  { %550 = vadd.xlane.f32.xlu1 %v549_v41  ;;  %v406_v42 = vpop.xlane.xlu2 %405 }
 0x23d   :  { %v411_v43 = vsub.f32 %v396_v62, %v406_v42 }
 0x23f   :  { %v1645_v45 = vpop.eup %1274  ;;  %v415_v46 = vmul.f32 1.442695, %v411_v43 }
 0x240   :  { %v419_v47 = vsel %vm282_vm1, %v1645_v45, 0.0 }
 0x241   :  { %1276 = vpow2.f32 %v415_v46  ;;  %420 = vadd.xlane.f32.xlu0 %v419_v47 }
 0x244   :  { %v303_v48 = vpop.xlane.xlu2 %302 }
 0x245   :  { %1278 = vrcp.f32 %v303_v48 }
 0x247   :  { %v1649_v50 = vpop.eup %1276 }
 0x248   :  { %v422_v51 = vsel %vm282_vm1, %v1649_v50, 0.0 }
 0x249   :  { %423 = vadd.xlane.f32.xlu0 %v422_v51 }
 0x24b   :  { %v1279_v52 = vpop.eup %1278  ;;  %v536_v53 = vpop.xlane.xlu1 %535 }
 0x24c   :  { %v541_v54 = vsub.f32 %v1608_v5, %v536_v53  ;;  %v313_v55 = vmul.f32 %v1279_v52, %v1603_v1 }
 0x24e   :  { %v545_v56 = vmul.f32 1.442695, %v541_v54  ;;  %1188 = vmatmul.msk.f32.vlgmr.msrb.gmra.mxu3 %vm282_vm1, %v313_v55 }
 0x250   :  { %1280 = vpow2.f32 %v545_v56 }
 0x253   :  { %v409_v57 = vpop.xlane.xlu1 %408  ;;  %v539_v58 = vpop.xlane.xlu0 %538 }
 0x254   :  { %v412_v59 = vsub.f32 %v1612_v13, %v409_v57  ;;  %v663_v60 = vpop.xlane.xlu2 %662 }
 0x255   :  { %v668_v61 = vsub.f32 %v653_v17, %v663_v60 }
 0x256   :  { %v1657_v62 = vpop.eup %1280  ;;  %v417_v63 = vmul.f32 1.442695, %v412_v59 }
 0x257   :  { %v672_v0 = vmul.f32 1.442695, %v668_v61  ;;  %v552_v2 = vsel %vm282_vm1, %v1657_v62, 0.0 }
 0x258   :  { %1282 = vpow2.f32 %v417_v63  ;;  %553 = vadd.xlane.f32.xlu0 %v552_v2 }
 0x259   :  { %1284 = vpow2.f32 %v672_v0 }
 0x25b   :  { %v306_v1 = vpop.xlane.xlu1 %305  ;;  %v660_v3 = vpop.xlane.xlu0 %659 }
 0x25c   :  { %1286 = vrcp.f32 %v306_v1  ;;  %v667_v4 = vsub.f32 %v1623_v21, %v660_v3  ;;  %v565_v5 = vpop.permute.xlu2 %564 }
 0x25d   :  { %597 = vmatpush.msra.mxu3 %v565_v5 }
 0x25e   :  { %v1283_v6 = vpop.eup %1282  ;;  %v670_v7 = vmul.f32 1.442695, %v667_v4 }
 0x25f   :  { %v425_v8 = vsel %vm282_vm1, %v1283_v6, 0.0  ;;  %v1663_v9 = vpop.eup %1284 }
 0x260   :  { %1288 = vpow2.f32 %v670_v7  ;;  %426 = vadd.xlane.f32.xlu1 %v425_v8  ;;  %v679_v10 = vsel %vm282_vm1, %v1663_v9, 0.0 }
 0x261   :  { %680 = vadd.xlane.f32.xlu2 %v679_v10  ;;  %v796_v10 = vld [vmem:[#allocation4 + $0x70] sm:$0xff] }
 0x262   :  { %v1287_v13 = vpop.eup %1286 }
 0x263   :  { %v314_v14 = vmul.f32 %v1287_v13, %v1625_v22  ;;  %v795_v13 = vld [vmem:[#allocation4 + $0x68] sm:$0xff] }
 0x265   :  { %1189 = vmatmul.msk.f32.gmra.mxu3 %vm282_vm1, %v314_v14  ;;  %v794_v14 = vld [vmem:[#allocation4 + $0x60] sm:$0xff] }
 0x266   :  { %v1289_v16 = vpop.eup %1288 }
 0x267   :  { %v676_v17 = vsel %vm282_vm1, %v1289_v16, 0.0 }
 0x268   :  { %677 = vadd.xlane.f32.xlu1 %v676_v17  ;;  %v792_v17 = vld [vmem:[#allocation4 + $0x50] sm:$0xff] }
 0x26c   :  { %691 = vrot.lane.b32.xlu0 %v1550_v11, %s1413_s3  ;;  %v542_v11 = vsub.f32 %v1614_v15, %v539_v58 }
 0x26e   :  { %v547_v27 = vmul.f32 1.442695, %v542_v11  ;;  %v783_v11 = vld [vmem:[#allocation4 + $0x8] sm:$0xff] }
 0x281   :  { %v309_v18 = vpop.xlane.xlu1 %308  ;;  %1256 = vrot.lane.b32.xlu1 %v1552_v12, %s1413_s3 }
 0x282   :  { %1290 = vrcp.f32 %v309_v18  ;;  %v791_v18 = vld [vmem:[#allocation4 + $0x48] sm:$0xff] }
 0x288   :  { %v1291_v19 = vpop.eup %1290 }
 0x289   :  { %v666_v20 = vpop.xlane.xlu1 %665  ;;  %v315_v21 = vmul.f32 %v1291_v19, %v1633_v29  ;;  %v790_v19 = vld [vmem:[#allocation4 + $0x40] sm:$0xff] }
 0x28a   :  { %v669_v22 = vsub.f32 %v1637_v31, %v666_v20  ;;  %v789_v20 = vld [vmem:[#allocation4 + $0x38] sm:$0xff] }
 0x28b   :  { %1190 = vmatmul.msk.f32.gmra.mxu3 %vm282_vm1, %v315_v21  ;;  %v788_v21 = vld [vmem:[#allocation4 + $0x30] sm:$0xff] }
 0x28c   :  { %v674_v23 = vmul.f32 1.442695, %v669_v22  ;;  %v787_v22 = vld [vmem:[#allocation4 + $0x28] sm:$0xff] }
 0x28e   :  { %1292 = vpow2.f32 %v674_v23  ;;  %v786_v23 = vld [vmem:[#allocation4 + $0x20] sm:$0xff] }
 0x28f   :  { %1294 = vpow2.f32 %v547_v27  ;;  %v782_v27 = vld [vmem:[#allocation4] sm:$0xff] }
 0x294   :  { %v1293_v25 = vpop.eup %1292 }
 0x295   :  { %v682_v26 = vsel %vm282_vm1, %v1293_v25, 0.0  ;;  %v1295_v12 = vpop.eup %1294 }
 0x296   :  { %683 = vadd.xlane.f32.xlu2 %v682_v26  ;;  %v555_v28 = vsel %vm282_vm1, %v1295_v12, 0.0  ;;  %v784_v26 = vld [vmem:[#allocation4 + $0x10] sm:$0xff] }
 0x2ab   :  { %556 = vadd.xlane.f32.xlu1 %v555_v28 }
 0x2af   :  { %v551_v24 = vpop.xlane.xlu1 %550 }
 0x2b0   :  { %1296 = vrcp.f32 %v551_v24 }
 0x2b4   :  { %v421_v29 = vpop.xlane.xlu0 %420 }
 0x2b5   :  { %1298 = vrcp.f32 %v421_v29 }
 0x2b6   :  { %v1297_v30 = vpop.eup %1296 }
 0x2b7   :  { %v561_v31 = vmul.f32 %v1297_v30, %v1641_v40 }
 0x2b9   :  { %1206 = vmatmul.msk.f32.vlgmr.msra.gmra.mxu3 %vm282_vm1, %v561_v31 }
 0x2bb   :  { %v1299_v32 = vpop.eup %1298 }
 0x2bc   :  { %v424_v33 = vpop.xlane.xlu0 %423  ;;  %v431_v34 = vmul.f32 %v1299_v32, %v1645_v45 }
 0x2bd   :  { %1300 = vrcp.f32 %v424_v33 }
 0x2be   :  { %1197 = vmatmul.msk.f32.vlgmr.msrb.gmra.mxu1 %vm282_vm1, %v431_v34 }
 0x2c3   :  { %v1301_v15 = vpop.eup %1300 }
 0x2c4   :  { %v432_v35 = vmul.f32 %v1301_v15, %v1649_v50 }
 0x2c6   :  { %1198 = vmatmul.msk.f32.gmra.mxu1 %vm282_vm1, %v432_v35 }
 0x2cb   :  { %v554_v36 = vpop.xlane.xlu0 %553 }
 0x2cc   :  { %1302 = vrcp.f32 %v554_v36 }
 0x2d1   :  { %v342_v59 = vpop.f32.mrf.mxu3 }
 0x2d2   :  { %v1303_v37 = vpop.eup %1302 }
 0x2d3   :  { %v427_v39 = vpop.xlane.xlu1 %426  ;;  %v562_v40 = vmul.f32 %v1303_v37, %v1657_v62 }
 0x2d4   :  { %1304 = vrcp.f32 %v427_v39  ;;  %v681_v47 = vpop.xlane.xlu2 %680 }
 0x2d5   :  { %1207 = vmatmul.msk.f32.gmra.mxu3 %vm282_vm1, %v562_v40 }
 0x2da   :  { %v1305_v41 = vpop.eup %1304 }
 0x2db   :  { %v433_v42 = vmul.f32 %v1305_v41, %v1283_v6  ;;  %v678_v43 = vpop.xlane.xlu1 %677 }
 0x2dc   :  { %1306 = vrcp.f32 %v678_v43 }
 0x2dd   :  { %1199 = vmatmul.msk.f32.gmra.mxu1 %vm282_vm1, %v433_v42  ;;  %1308 = vrcp.f32 %v681_v47 }
 0x2de   :  { %v692_v52 = vpop.permute.xlu0 %691 }
 0x2e2   :  { %v1307_v48 = vpop.eup %1306 }
 0x2e3   :  { %v688_v51 = vmul.f32 %v1307_v48, %v1289_v16  ;;  %v1309_v53 = vpop.eup %1308  ;;  %v793_v16 = vld [vmem:[#allocation4 + $0x58] sm:$0xff] }
 0x2e4   :  { %v689_v54 = vmul.f32 %v1309_v53, %v1663_v9  ;;  %v797_v9 = vld [vmem:[#allocation4 + $0x78] sm:$0xff] }
 0x2e5   :  { %802 = vmatpush.msra.mxu2 %v797_v9 }
 0x2e7   :  { %803 = vmatpush.msra.mxu2 %v796_v10 }
 0x2e8   :  { %v1694_v62 = vpop.f32.mrf.mxu3 }
 0x2e9   :  { %804 = vmatpush.msra.mxu2 %v795_v13 }
 0x2eb   :  { %805 = vmatpush.msra.mxu2 %v794_v14  ;;  %v938_v14 = vld [vmem:[%s1904_s6 + $0xd0] sm:$0xff] }
 0x2ed   :  { %806 = vmatpush.msra.mxu2 %v793_v16  ;;  %v939_v16 = vld [vmem:[%s1904_s6 + $0xd8] sm:$0xff] }
 0x2ef   :  { %807 = vmatpush.msra.mxu2 %v792_v17  ;;  %v936_v17 = vld [vmem:[%s1904_s6 + $0xc0] sm:$0xff] }
 0x2f1   :  { %808 = vmatpush.msra.mxu2 %v791_v18  ;;  %v937_v18 = vld [vmem:[%s1904_s6 + $0xc8] sm:$0xff] }
 0x2f3   :  { %v1257_v45 = vpop.permute.xlu1 %1256  ;;  %809 = vmatpush.msra.mxu2 %v790_v19  ;;  %v934_v19 = vld [vmem:[%s1904_s6 + $0xb0] sm:$0xff] }
 0x2f4   :  { %v1258_v46 = vunpack.i.l.bf16 %v1257_v45  ;;  %v1259_v50 = vunpack.i.h.bf16 %v1257_v45  ;;  %v1260_v45 = vld [vmem:[%s1903_s5] ss:$0 sm:$0xff] }
 0x2f5   :  { %810 = vmatpush.msra.mxu2 %v789_v20  ;;  %v935_v20 = vld [vmem:[%s1904_s6 + $0xb8] sm:$0xff] }
 0x2f6   :  { %722 = vmatpush.msra.mxu1 %v1258_v46 }
 0x2f7   :  { %811 = vmatpush.msra.mxu2 %v788_v21  ;;  %v932_v21 = vld [vmem:[%s1904_s6 + $0xa0] sm:$0xff] }
 0x2f8   :  { %723 = vmatpush.msra.mxu1 %v1259_v50 }
 0x2f9   :  { %812 = vmatpush.msra.mxu2 %v787_v22  ;;  %v933_v22 = vld [vmem:[%s1904_s6 + $0xa8] sm:$0xff] }
 0x2fa   :  { %724 = vmatpush.msra.mxu1 %v692_v52 }
 0x2fb   :  { %1215 = vmatmul.msk.f32.vlgmr.msra.gmra.mxu1 %vm282_vm1, %v688_v51  ;;  %813 = vmatpush.msra.mxu2 %v786_v23  ;;  %v930_v23 = vld [vmem:[%s1904_s6 + $0x90] sm:$0xff] }
 0x303   :  { %1216 = vmatmul.msk.f32.gmra.mxu1 %vm282_vm1, %v689_v54 }
 0x309   :  { %v684_v55 = vpop.xlane.xlu2 %683 }
 0x30a   :  { %1310 = vrcp.f32 %v684_v55 }
 0x30e   :  { %v1696_v63 = vpop.f32.mrf.mxu3 }
 0x310   :  { %v1311_v56 = vpop.eup %1310 }
 0x311   :  { %v690_v57 = vmul.f32 %v1311_v56, %v1293_v25  ;;  %v785_v25 = vld [vmem:[#allocation4 + $0x18] sm:$0xff]  ;;  %v1414_v56 = vmov 128.0  }
 0x312   :  { %814 = vmatpush.msra.mxu2 %v785_v25  ;;  %v931_v25 = vld [vmem:[%s1904_s6 + $0x98] sm:$0xff] }
 0x313   :  { %1217 = vmatmul.msk.f32.gmra.mxu1 %vm282_vm1, %v690_v57 }
 0x314   :  { %815 = vmatpush.msra.mxu2 %v784_v26  ;;  %v928_v26 = vld [vmem:[%s1904_s6 + $0x80] sm:$0xff] }
 0x316   :  { %816 = vmatpush.msra.mxu2 %v783_v11  ;;  %v929_v11 = vld [vmem:[%s1904_s6 + $0x88] sm:$0xff] }
 0x318   :  { %817 = vmatpush.msra.mxu2 %v782_v27  ;;  %v926_v27 = vld [vmem:[%s1904_s6 + $0x70] sm:$0xff] }
 0x31e   :  { %v557_v58 = vpop.xlane.xlu1 %556 }
 0x31f   :  { %1312 = vrcp.f32 %v557_v58 }
 0x320   :  { %1314 = vrcp.f32 %v1414_v56 }
 0x325   :  { %v1313_v60 = vpop.eup %1312 }
 0x326   :  { %v563_v61 = vmul.f32 %v1313_v60, %v1295_v12  ;;  %v1315_v57 = vpop.eup %1314 }
 0x327   :  { %v840_v58 = vmul.f32 128.0, %v1315_v57  ;;  %vm844_vm4 = vweird.f32 %v1315_v57 }
 0x328   :  { %1208 = vmatmul.msk.f32.gmra.mxu3 %vm282_vm1, %v563_v61 }
 0x33b   :  { %v472_v0 = vpop.f32.mrf.mxu1 }
 0x33c   :  { %v599_v2 = vpop.f32.mrf.mxu3  ;;  %738 = vrot.lane.b32.xlu2 %v472_v0, %s1413_s3  ;;  %v943_v0 = vld [vmem:[%s1904_s6 + $0xf8] sm:$0xff] }
 0x33d   :  { %750 = vrot.lane.b32.xlu0 %v599_v2, %s1412_s21  ;;  %v940_v2 = vld [vmem:[%s1904_s6 + $0xe0] sm:$0xff]  ;;  %976 = vmatpush.msrb.mxu0 %v943_v0  ;;  %v1038_v0 = vld [vmem:[#allocation6 + $0xf0] sm:$0xff] }
 0x343   :  { %v475_v1 = vpop.f32.mrf.mxu1 }
 0x344   :  { %740 = vrot.lane.b32.xlu1 %v475_v1, %s1413_s3  ;;  %v941_v1 = vld [vmem:[%s1904_s6 + $0xe8] sm:$0xff] }
 0x345   :  { %977 = vmatpush.msrb.mxu0 %v941_v1  ;;  %v1023_v1 = vld [vmem:[#allocation6 + $0x78] sm:$0xff] }
 0x346   :  { %1044 = vmatpush.msrb.mxu1 %v1023_v1 }
 0x347   :  { %978 = vmatpush.msrb.mxu0 %v939_v16 }
 0x349   :  { %979 = vmatpush.msrb.mxu0 %v937_v18  ;;  %v1035_v18 = vld [vmem:[#allocation6 + $0xd8] sm:$0xff] }
 0x34b   :  { %980 = vmatpush.msrb.mxu0 %v935_v20 }
 0x34d   :  { %981 = vmatpush.msrb.mxu0 %v933_v22  ;;  %v1019_v22 = vld [vmem:[#allocation6 + $0x58] sm:$0xff] }
 0x34f   :  { %982 = vmatpush.msrb.mxu0 %v931_v25  ;;  %v1033_v25 = vld [vmem:[#allocation6 + $0xc8] sm:$0xff] }
 0x351   :  { %983 = vmatpush.msrb.mxu0 %v929_v11  ;;  %v1017_v11 = vld [vmem:[#allocation6 + $0x48] sm:$0xff] }
 0x358   :  { %v602_v3 = vpop.f32.mrf.mxu3 }
 0x359   :  { %752 = vrot.lane.b32.xlu0 %v602_v3, %s1412_s21 }
 0x35a   :  { %v478_v4 = vpop.f32.mrf.mxu1 }
 0x378   :  { %v726_v5 = vpop.f32.mrf.mxu1 }
 0x379   :  { %762 = vrot.lane.b32.xlu0 %v726_v5, %s1411_s0 }
 0x380   :  { %v729_v6 = vpop.f32.mrf.mxu1 }
 0x381   :  { %742 = vrot.lane.b32.xlu0 %v478_v4, %s1413_s3  ;;  %764 = vrot.lane.b32.xlu2 %v729_v6, %s1411_s0 }
 0x390   :  { %v732_v7 = vpop.f32.mrf.mxu1 }
 0x391   :  { %766 = vrot.lane.b32.xlu0 %v732_v7, %s1411_s0 }
 0x396   :  { %v739_v24 = vpop.permute.xlu2 %738 }
 0x397   :  { %v771_v29 = vsel %vm237_vm0, %v342_v59, %v739_v24  ;;  %v841_v59 = vsub.f32 1.0, %v840_v58  ;;  %v925_v24 = vld [vmem:[%s1904_s6 + $0x68] sm:$0xff] }
 0x399   :  { %v842_v60 = vmul.f32 %v1315_v57, %v841_v59 }
 0x39b   :  { %v843_v61 = vadd.f32 %v1315_v57, %v842_v60 }
 0x3ab   :  { %v605_v8 = vpop.f32.mrf.mxu3 }
 0x3ac   :  { %754 = vrot.lane.b32.xlu2 %v605_v8, %s1412_s21 }
 0x3af   :  { %v751_v12 = vpop.permute.xlu0 %750 }
 0x3b0   :  { %v775_v30 = vsel %vm774_vm2, %v771_v29, %v751_v12  ;;  %v927_v12 = vld [vmem:[%s1904_s6 + $0x78] sm:$0xff]  ;;  %v922_v29 = vld [vmem:[%s1904_s6 + $0x50] sm:$0xff] }
 0x3b1   :  { %984 = vmatpush.msrb.mxu0 %v927_v12  ;;  %v1031_v12 = vld [vmem:[#allocation6 + $0xb8] sm:$0xff] }
 0x3b3   :  { %985 = vmatpush.msrb.mxu0 %v925_v24 }
 0x3b6   :  { %v741_v33 = vpop.permute.xlu1 %740 }
 0x3b7   :  { %v772_v15 = vsel %vm237_vm0, %v1694_v62, %v741_v33  ;;  %v918_v33 = vld [vmem:[%s1904_s6 + $0x30] sm:$0xff] }
 0x3cb   :  { %v753_v28 = vpop.permute.xlu0 %752 }
 0x3cc   :  { %v776_v35 = vsel %vm774_vm2, %v772_v15, %v753_v28  ;;  %v924_v28 = vld [vmem:[%s1904_s6 + $0x60] sm:$0xff] }
 0x3cd   :  { %v916_v15 = vld [vmem:[%s1904_s6 + $0x20] sm:$0xff] }
 0x3db   :  { %v765_v34 = vpop.permute.xlu2 %764 }
 0x3dc   :  { %v780_v36 = vsel %vm778_vm3, %v776_v35, %v765_v34  ;;  %v919_v34 = vld [vmem:[%s1904_s6 + $0x38] sm:$0xff]  ;;  %v917_v35 = vld [vmem:[%s1904_s6 + $0x28] sm:$0xff] }
 0x3eb   :  { %v763_v31 = vpop.permute.xlu0 %762 }
 0x3ec   :  { %v779_v32 = vsel %vm778_vm3, %v775_v30, %v763_v31  ;;  %v923_v30 = vld [vmem:[%s1904_s6 + $0x58] sm:$0xff]  ;;  %v920_v31 = vld [vmem:[%s1904_s6 + $0x40] sm:$0xff] }
 0x3ed   :  { %818 = vmatmul.f32.vlgmr.msra.gmra.mxu2 %v779_v32  ;;  %986 = vmatpush.msrb.mxu0 %v923_v30  ;;  %v921_v32 = vld [vmem:[%s1904_s6 + $0x48] sm:$0xff]  ;;  %v1015_v30 = vld [vmem:[#allocation6 + $0x38] sm:$0xff] }
 0x3ef   :  { %987 = vmatpush.msrb.mxu0 %v921_v32  ;;  %v1029_v32 = vld [vmem:[#allocation6 + $0xa8] sm:$0xff] }
 0x3f1   :  { %988 = vmatpush.msrb.mxu0 %v919_v34 }
 0x3f3   :  { %v743_v37 = vpop.permute.xlu0 %742  ;;  %989 = vmatpush.msrb.mxu0 %v917_v35 }
 0x3f4   :  { %v773_v39 = vsel %vm237_vm0, %v1696_v63, %v743_v37  ;;  %v915_v37 = vld [vmem:[%s1904_s6 + $0x18] sm:$0xff] }
 0x3f5   :  { %821 = vmatmul.f32.gmra.mxu2 %v780_v36  ;;  %v914_v36 = vld [vmem:[%s1904_s6 + $0x10] sm:$0xff]  ;;  %990 = vmatpush.msrb.mxu0 %v915_v37 }
 0x403   :  { %v767_v41 = vpop.permute.xlu0 %766 }
 0x406   :  { %v755_v40 = vpop.permute.xlu2 %754 }
 0x407   :  { %v777_v42 = vsel %vm774_vm2, %v773_v39, %v755_v40  ;;  %v912_v39 = vld [vmem:[%s1904_s6] sm:$0xff]  ;;  %v913_v40 = vld [vmem:[%s1904_s6 + $0x8] sm:$0xff] }
 0x408   :  { %v781_v43 = vsel %vm778_vm3, %v777_v42, %v767_v41  ;;  %991 = vmatpush.msrb.mxu0 %v913_v40 }
 0x409   :  { %824 = vmatmul.f32.gmra.mxu2 %v781_v43 }
 0x470   :  { %v819_v46 = vpop.f32.mrf.mxu2 }
 0x471   :  { %v820_v47 = vadd.f32 %v1260_v45, %v819_v46 }
 0x473   :  { %v828_v48 = vadd.f32 %v820_v47, %v1502_v38  ;;  %v1721_v38 = vsel %vm844_vm4, %v1315_v57, %v843_v61  ;;  %v1839_v57 = vld [vmem:[%s1908_s10] ss:$0 sm:$0xff] }
 0x474   :  { %v1845_v61 = vld [vmem:[%s1909_s11] ss:$0 sm:$0xff] }
 0x475   :  { %833 = vadd.xlane.f32.xlu1 %v828_v48 }
 0x478   :  { %v822_v50 = vpop.f32.mrf.mxu2 }
 0x479   :  { %v823_v51 = vadd.f32 %v1260_v45, %v822_v50 }
 0x47b   :  { %v829_v52 = vadd.f32 %v823_v51, %v1509_v44 }
 0x47d   :  { %835 = vadd.xlane.f32.xlu2 %v829_v52 }
 0x48c   :  { %v825_v53 = vpop.f32.mrf.mxu2 }
 0x48d   :  { %v826_v54 = vadd.f32 %v1260_v45, %v825_v53 }
 0x48f   :  { %v830_v55 = vadd.f32 %v826_v54, %v1516_v49  ;;  %v942_v49 = vld [vmem:[%s1904_s6 + $0xf0] sm:$0xff] }
 0x490   :  { %950 = vmatpush.msrb.mxu3 %v942_v49  ;;  %v1039_v49 = vld [vmem:[#allocation6 + $0xf8] sm:$0xff] }
 0x491   :  { %837 = vadd.xlane.f32.xlu0 %v830_v55  ;;  %1070 = vmatpush.msrb.mxu2 %v1039_v49 }
 0x492   :  { %951 = vmatpush.msrb.mxu3 %v940_v2 }
 0x493   :  { %1071 = vmatpush.msrb.mxu2 %v1038_v0 }
 0x494   :  { %952 = vmatpush.msrb.mxu3 %v938_v14 }
 0x496   :  { %953 = vmatpush.msrb.mxu3 %v936_v17 }
 0x498   :  { %954 = vmatpush.msrb.mxu3 %v934_v19  ;;  %v1020_v19 = vld [vmem:[#allocation6 + $0x60] sm:$0xff] }
 0x49a   :  { %955 = vmatpush.msrb.mxu3 %v932_v21  ;;  %v1034_v21 = vld [vmem:[#allocation6 + $0xd0] sm:$0xff] }
 0x49c   :  { %956 = vmatpush.msrb.mxu3 %v930_v23 }
 0x49e   :  { %957 = vmatpush.msrb.mxu3 %v928_v26  ;;  %v1018_v26 = vld [vmem:[#allocation6 + $0x50] sm:$0xff] }
 0x4a0   :  { %958 = vmatpush.msrb.mxu3 %v926_v27 }
 0x4a2   :  { %959 = vmatpush.msrb.mxu3 %v924_v28  ;;  %v1016_v28 = vld [vmem:[#allocation6 + $0x40] sm:$0xff] }
 0x4a4   :  { %960 = vmatpush.msrb.mxu3 %v922_v29  ;;  %v1030_v29 = vld [vmem:[#allocation6 + $0xb0] sm:$0xff] }
 0x4a6   :  { %961 = vmatpush.msrb.mxu3 %v920_v31 }
 0x4a8   :  { %962 = vmatpush.msrb.mxu3 %v918_v33  ;;  %v1014_v33 = vld [vmem:[#allocation6 + $0x30] sm:$0xff] }
 0x4aa   :  { %963 = vmatpush.msrb.mxu3 %v916_v15  ;;  %v1028_v15 = vld [vmem:[#allocation6 + $0xa0] sm:$0xff] }
 0x4ac   :  { %964 = vmatpush.msrb.mxu3 %v914_v36  ;;  %v1027_v36 = vld [vmem:[#allocation6 + $0x98] sm:$0xff] }
 0x4ae   :  { %965 = vmatpush.msrb.mxu3 %v912_v39 }
 0x4b0   :  { %1218 = vmatpush.msra.mxu3 %v1039_v49 }
 0x4b2   :  { %1219 = vmatpush.msra.mxu3 %v1038_v0 }
 0x4e8   :  { %v834_v62 = vpop.xlane.xlu1 %833 }
 0x4e9   :  { %v846_v63 = vmul.f32 %v1721_v38, %v834_v62 }
 0x4eb   :  { %v1724_v44 = vsub.f32 %v828_v48, %v846_v63 }
 0x4ed   :  { %v852_v3 = vmul.f32 %v1724_v44, %v1724_v44 }
 0x4ef   :  { %855 = vadd.xlane.f32.xlu1 %v852_v3 }
 0x4f0   :  { %v836_v4 = vpop.xlane.xlu2 %835 }
 0x4f1   :  { %v847_v5 = vmul.f32 %v1721_v38, %v836_v4  ;;  %v1037_v4 = vld [vmem:[#allocation6 + $0xe8] sm:$0xff] }
 0x4f2   :  { %1072 = vmatpush.msrb.mxu2 %v1037_v4  ;;  %1220 = vmatpush.msra.mxu3 %v1037_v4 }
 0x4f3   :  { %v1741_v6 = vsub.f32 %v829_v52, %v847_v5 }
 0x4f5   :  { %v853_v7 = vmul.f32 %v1741_v6, %v1741_v6 }
 0x4f7   :  { %857 = vadd.xlane.f32.xlu2 %v853_v7 }
 0x504   :  { %v838_v8 = vpop.xlane.xlu0 %837 }
 0x505   :  { %v848_v9 = vmul.f32 %v1721_v38, %v838_v8 }
 0x507   :  { %v1746_v10 = vsub.f32 %v830_v55, %v848_v9  ;;  %v1036_v9 = vld [vmem:[#allocation6 + $0xe0] sm:$0xff] }
 0x508   :  { %1073 = vmatpush.msrb.mxu2 %v1036_v9  ;;  %1221 = vmatpush.msra.mxu3 %v1036_v9 }
 0x509   :  { %v854_v13 = vmul.f32 %v1746_v10, %v1746_v10 }
 0x50a   :  { %1074 = vmatpush.msrb.mxu2 %v1035_v18  ;;  %1222 = vmatpush.msra.mxu3 %v1035_v18 }
 0x50b   :  { %859 = vadd.xlane.f32.xlu0 %v854_v13  ;;  %v1021_v13 = vld [vmem:[#allocation6 + $0x68] sm:$0xff] }
 0x50c   :  { %1075 = vmatpush.msrb.mxu2 %v1034_v21  ;;  %1223 = vmatpush.msra.mxu3 %v1034_v21 }
 0x50e   :  { %1076 = vmatpush.msrb.mxu2 %v1033_v25  ;;  %1224 = vmatpush.msra.mxu3 %v1033_v25 }
 0x562   :  { %v856_v41 = vpop.xlane.xlu1 %855 }
 0x563   :  { %v861_v42 = vmul.f32 %v856_v41, %v1721_v38 }
 0x565   :  { %v864_v43 = vadd.f32 1e-05, %v861_v42 }
 0x567   :  { %1316 = vrsqrt.f32 %v864_v43  ;;  %vm873_vm6 = vweird.f32 %v864_v43 }
 0x56a   :  { %v858_v45 = vpop.xlane.xlu2 %857 }
 0x56b   :  { %v862_v46 = vmul.f32 %v858_v45, %v1721_v38  ;;  %v1026_v45 = vld [vmem:[#allocation6 + $0x90] sm:$0xff] }
 0x56d   :  { %v1317_v47 = vpop.eup %1316  ;;  %v865_v48 = vadd.f32 1e-05, %v862_v46  ;;  %v1012_v46 = vld [vmem:[#allocation6 + $0x20] sm:$0xff] }
 0x56e   :  { %v868_v50 = vmul.f32 %v1317_v47, %v864_v43  ;;  %vm874_vm5 = vweird.f32 %v1317_v47  ;;  %v1013_v43 = vld [vmem:[#allocation6 + $0x28] sm:$0xff] }
 0x56f   :  { %1318 = vrsqrt.f32 %v865_v48  ;;  %vm875_vm7 = vmor %vm873_vm6, %vm874_vm5  ;;  %vm883_vm9 = vweird.f32 %v865_v48 }
 0x570   :  { %v869_v51 = vmul.f32 %v1317_v47, %v868_v50  ;;  %v1010_v50 = vld [vmem:[#allocation6 + $0x10] sm:$0xff] }
 0x572   :  { %v870_v52 = vmul.f32 0.5, %v869_v51  ;;  %v1009_v51 = vld [vmem:[#allocation6 + $0x8] sm:$0xff] }
 0x574   :  { %v871_v53 = vsub.f32 1.5, %v870_v52  ;;  %v1008_v52 = vld [vmem:[#allocation6] sm:$0xff] }
 0x575   :  { %v1319_v54 = vpop.eup %1318 }
 0x576   :  { %v872_v55 = vmul.f32 %v1317_v47, %v871_v53  ;;  %v878_v56 = vmul.f32 %v1319_v54, %v865_v48  ;;  %vm884_vm8 = vweird.f32 %v1319_v54  ;;  %v1024_v48 = vld [vmem:[#allocation6 + $0x80] sm:$0xff] }
 0x577   :  { %vm885_vm10 = vmor %vm883_vm9, %vm884_vm8  ;;  %v944_v53 = vld [vmem:[%s1905_s7] sm:$0x3] }
 0x578   :  { %v876_v58 = vsel %vm875_vm7, %v1317_v47, %v872_v55  ;;  %v879_v59 = vmul.f32 %v1319_v54, %v878_v56  ;;  %v1025_v47 = vld [vmem:[#allocation6 + $0x88] sm:$0xff] }
 0x579   :  { %v897_v60 = vmul.f32 %v876_v58, %v1724_v44  ;;  %v1022_v44 = vld [vmem:[#allocation6 + $0x70] sm:$0xff]  ;;  %v946_v58 = vperm.slane %v944_v53, 0 }
 0x57a   :  { %v880_v62 = vmul.f32 0.5, %v879_v59  ;;  %1045 = vmatpush.msrb.mxu1 %v1022_v44 }
 0x57b   :  { %v903_v63 = vmul.f32 %v1839_v57, %v897_v60 }
 0x57c   :  { %v881_v2 = vsub.f32 1.5, %v880_v62  ;;  %1046 = vmatpush.msrb.mxu1 %v1021_v13  ;;  %v1263_v13 = vld [vmem:[%s1907_s9] ss:$0 sm:$0xff] }
 0x57d   :  { %v1849_v3 = vadd.f32 %v1845_v61, %v903_v63 }
 0x57e   :  { %v882_v5 = vmul.f32 %v1319_v54, %v881_v2  ;;  %v860_v7 = vpop.xlane.xlu0 %859  ;;  %1047 = vmatpush.msrb.mxu1 %v1020_v19 }
 0x57f   :  { %v863_v8 = vmul.f32 %v860_v7, %v1721_v38  ;;  %966 = vmatmul.f32.vlgmr.msrb.gmra.mxu3 %v1849_v3  ;;  %992 = vmatmul.f32.vlgmr.msrb.gmra.mxu0 %v1849_v3 }
 0x580   :  { %v886_v14 = vsel %vm885_vm10, %v1319_v54, %v882_v5  ;;  %1048 = vmatpush.msrb.mxu1 %v1019_v22  ;;  %v947_v54 = vperm.slane %v944_v53, 1  ;;  %v1264_v53 = vld [vmem:[%s1910_s12] ss:$0 sm:$0xff] }
 0x581   :  { %v866_v16 = vadd.f32 1e-05, %v863_v8  ;;  %v898_v17 = vmul.f32 %v886_v14, %v1741_v6  ;;  %v1032_v6 = vld [vmem:[#allocation6 + $0xc0] sm:$0xff] }
 0x582   :  { %1049 = vmatpush.msrb.mxu1 %v1018_v26  ;;  %1077 = vmatpush.msrb.mxu2 %v1032_v6 }
 0x583   :  { %1320 = vrsqrt.f32 %v866_v16  ;;  %v904_v20 = vmul.f32 %v1839_v57, %v898_v17  ;;  %1225 = vmatpush.msra.mxu3 %v1032_v6  ;;  %vm893_vm12 = vweird.f32 %v866_v16 }
 0x584   :  { %1050 = vmatpush.msrb.mxu1 %v1017_v11  ;;  %1078 = vmatpush.msrb.mxu2 %v1031_v12 }
 0x585   :  { %v1857_v23 = vadd.f32 %v1845_v61, %v904_v20  ;;  %1226 = vmatpush.msra.mxu3 %v1031_v12 }
 0x586   :  { %1051 = vmatpush.msrb.mxu1 %v1016_v28  ;;  %1079 = vmatpush.msrb.mxu2 %v1030_v29 }
 0x587   :  { %969 = vmatmul.f32.gmra.mxu3 %v1857_v23  ;;  %995 = vmatmul.f32.gmra.mxu0 %v1857_v23 }
 0x588   :  { %1052 = vmatpush.msrb.mxu1 %v1015_v30  ;;  %1080 = vmatpush.msrb.mxu2 %v1029_v32 }
 0x589   :  { %v1321_v27 = vpop.eup %1320  ;;  %1227 = vmatpush.msra.mxu3 %v1030_v29 }
 0x58a   :  { %v888_v24 = vmul.f32 %v1321_v27, %v866_v16  ;;  %vm894_vm11 = vweird.f32 %v1321_v27  ;;  %1053 = vmatpush.msrb.mxu1 %v1014_v33  ;;  %1081 = vmatpush.msrb.mxu2 %v1028_v15 }
 0x58b   :  { %vm895_vm13 = vmor %vm893_vm12, %vm894_vm11  ;;  %1228 = vmatpush.msra.mxu3 %v1029_v32 }
 0x58c   :  { %v889_v31 = vmul.f32 %v1321_v27, %v888_v24  ;;  %1082 = vmatpush.msrb.mxu2 %v1027_v36  ;;  %1054 = vmatpush.msrb.mxu1 %v1013_v43 }
 0x58d   :  { %1229 = vmatpush.msra.mxu3 %v1028_v15 }
 0x58e   :  { %v890_v34 = vmul.f32 0.5, %v889_v31  ;;  %1083 = vmatpush.msrb.mxu2 %v1026_v45  ;;  %1055 = vmatpush.msrb.mxu1 %v1012_v46 }
 0x58f   :  { %1230 = vmatpush.msra.mxu3 %v1027_v36 }
 0x590   :  { %v891_v35 = vsub.f32 1.5, %v890_v34  ;;  %1084 = vmatpush.msrb.mxu2 %v1025_v47 }
 0x591   :  { %1231 = vmatpush.msra.mxu3 %v1026_v45 }
 0x592   :  { %v892_v37 = vmul.f32 %v1321_v27, %v891_v35  ;;  %1085 = vmatpush.msrb.mxu2 %v1024_v48 }
 0x593   :  { %1232 = vmatpush.msra.mxu3 %v1025_v47 }
 0x594   :  { %v896_v39 = vsel %vm895_vm13, %v1321_v27, %v892_v37 }
 0x595   :  { %v899_v40 = vmul.f32 %v896_v39, %v1746_v10  ;;  %v1011_v10 = vld [vmem:[#allocation6 + $0x18] sm:$0xff]  ;;  %1233 = vmatpush.msra.mxu3 %v1024_v48 }
 0x596   :  { %1056 = vmatpush.msrb.mxu1 %v1011_v10 }
 0x597   :  { %v905_v41 = vmul.f32 %v1839_v57, %v899_v40 }
 0x598   :  { %1057 = vmatpush.msrb.mxu1 %v1010_v50 }
 0x599   :  { %v1864_v42 = vadd.f32 %v1845_v61, %v905_v41 }
 0x59a   :  { %1058 = vmatpush.msrb.mxu1 %v1009_v51 }
 0x59b   :  { %972 = vmatmul.f32.gmra.mxu3 %v1864_v42  ;;  %998 = vmatmul.f32.gmra.mxu0 %v1864_v42 }
 0x59c   :  { %1059 = vmatpush.msrb.mxu1 %v1008_v52 }
 0x5fc   :  { %v993_v55 = vpop.f32.mrf.mxu0 }
 0x5fd   :  { %v994_v56 = vadd.f32 %v993_v55, %v947_v54 }
 0x5ff   :  { %v1003_v57 = vmax.f32 %v994_v56, 0.0  ;;  %v1265_v56 = vld [vmem:[%s1911_s13] ss:$0 sm:$0xff] }
 0x601   :  { %1086 = vmatmul.f32.vlgmr.msrb.gmra.mxu2 %v1003_v57 }
 0x602   :  { %v967_v59 = vpop.f32.mrf.mxu3 }
 0x603   :  { %v968_v60 = vadd.f32 %v967_v59, %v946_v58 }
 0x604   :  { %v996_v61 = vpop.f32.mrf.mxu0 }
 0x605   :  { %v1002_v62 = vmax.f32 %v968_v60, 0.0  ;;  %v997_v63 = vadd.f32 %v996_v61, %v947_v54 }
 0x607   :  { %v1005_v49 = vmax.f32 %v997_v63, 0.0  ;;  %1060 = vmatmul.f32.vlgmr.msrb.gmra.mxu1 %v1002_v62 }
 0x609   :  { %1089 = vmatmul.f32.gmra.mxu2 %v1005_v49 }
 0x60a   :  { %v970_v0 = vpop.f32.mrf.mxu3 }
 0x60b   :  { %v971_v2 = vadd.f32 %v970_v0, %v946_v58 }
 0x60d   :  { %v1004_v1 = vmax.f32 %v971_v2, 0.0 }
 0x60f   :  { %1063 = vmatmul.f32.gmra.mxu1 %v1004_v1 }
 0x618   :  { %v999_v4 = vpop.f32.mrf.mxu0 }
 0x619   :  { %v1000_v44 = vadd.f32 %v999_v4, %v947_v54 }
 0x61b   :  { %v1007_v5 = vmax.f32 %v1000_v44, 0.0 }
 0x61d   :  { %1092 = vmatmul.f32.vlgmr.msra.gmra.mxu3 %v1007_v5 }
 0x61e   :  { %v973_v7 = vpop.f32.mrf.mxu3 }
 0x61f   :  { %v974_v8 = vadd.f32 %v973_v7, %v946_v58 }
 0x621   :  { %v1006_v9 = vmax.f32 %v974_v8, 0.0 }
 0x623   :  { %1066 = vmatmul.f32.gmra.mxu1 %v1006_v9 }
 0x684   :  { %v1061_v14 = vpop.f32.mrf.mxu1  ;;  %v1087_v16 = vpop.f32.mrf.mxu2 }
 0x685   :  { %v1062_v17 = vadd.f32 %v1263_v13, %v1061_v14 }
 0x687   :  { %v1088_v18 = vadd.f32 %v1087_v16, %v1062_v17 }
 0x689   :  { %v1096_v19 = vadd.f32 %v1088_v18, %v1849_v3 }
 0x68b   :  { %1101 = vadd.xlane.f32.xlu1 %v1096_v19 }
 0x68c   :  { %v1064_v20 = vpop.f32.mrf.mxu1  ;;  %v1090_v22 = vpop.f32.mrf.mxu2 }
 0x68d   :  { %v1065_v21 = vadd.f32 %v1263_v13, %v1064_v20 }
 0x68f   :  { %v1091_v25 = vadd.f32 %v1090_v22, %v1065_v21 }
 0x691   :  { %v1097_v26 = vadd.f32 %v1091_v25, %v1857_v23 }
 0x693   :  { %1103 = vadd.xlane.f32.xlu2 %v1097_v26 }
 0x6a0   :  { %v1067_v6 = vpop.f32.mrf.mxu1  ;;  %v1093_v27 = vpop.f32.mrf.mxu3 }
 0x6a1   :  { %v1068_v11 = vadd.f32 %v1263_v13, %v1067_v6 }
 0x6a3   :  { %v1094_v12 = vadd.f32 %v1093_v27, %v1068_v11 }
 0x6a5   :  { %v1098_v28 = vadd.f32 %v1094_v12, %v1864_v42 }
 0x6a7   :  { %1105 = vadd.xlane.f32.xlu0 %v1098_v28 }
 0x6fe   :  { %v1102_v24 = vpop.xlane.xlu1 %1101 }
 0x6ff   :  { %v1107_v29 = vmul.f32 %v1102_v24, %v1721_v38 }
 0x701   :  { %v1110_v30 = vsub.f32 %v1096_v19, %v1107_v29 }
 0x703   :  { %v1113_v3 = vmul.f32 %v1110_v30, %v1110_v30 }
 0x705   :  { %1116 = vadd.xlane.f32.xlu1 %v1113_v3 }
 0x706   :  { %v1104_v31 = vpop.xlane.xlu2 %1103 }
 0x707   :  { %v1108_v32 = vmul.f32 %v1104_v31, %v1721_v38 }
 0x709   :  { %v1111_v33 = vsub.f32 %v1097_v26, %v1108_v32 }
 0x70b   :  { %v1114_v34 = vmul.f32 %v1111_v33, %v1111_v33 }
 0x70d   :  { %1118 = vadd.xlane.f32.xlu2 %v1114_v34 }
 0x71a   :  { %v1106_v23 = vpop.xlane.xlu0 %1105 }
 0x71b   :  { %v1109_v15 = vmul.f32 %v1106_v23, %v1721_v38 }
 0x71d   :  { %v1112_v35 = vsub.f32 %v1098_v28, %v1109_v15 }
 0x71f   :  { %v1115_v36 = vmul.f32 %v1112_v35, %v1112_v35 }
 0x721   :  { %1120 = vadd.xlane.f32.xlu0 %v1115_v36 }
 0x778   :  { %v1117_v37 = vpop.xlane.xlu1 %1116 }
 0x779   :  { %v1122_v39 = vmul.f32 %v1117_v37, %v1721_v38 }
 0x77b   :  { %v1125_v40 = vadd.f32 1e-05, %v1122_v39 }
 0x77d   :  { %1322 = vrsqrt.f32 %v1125_v40  ;;  %vm1134_vm15 = vweird.f32 %v1125_v40 }
 0x780   :  { %v1119_v41 = vpop.xlane.xlu2 %1118 }
 0x781   :  { %v1123_v42 = vmul.f32 %v1119_v41, %v1721_v38 }
 0x783   :  { %v1323_v43 = vpop.eup %1322  ;;  %v1126_v45 = vadd.f32 1e-05, %v1123_v42 }
 0x784   :  { %v1129_v46 = vmul.f32 %v1323_v43, %v1125_v40  ;;  %vm1135_vm14 = vweird.f32 %v1323_v43 }
 0x785   :  { %1324 = vrsqrt.f32 %v1126_v45  ;;  %vm1136_vm0 = vmor %vm1134_vm15, %vm1135_vm14  ;;  %vm1144_vm2 = vweird.f32 %v1126_v45 }
 0x786   :  { %v1130_v47 = vmul.f32 %v1323_v43, %v1129_v46 }
 0x788   :  { %v1131_v10 = vmul.f32 0.5, %v1130_v47 }
 0x78a   :  { %v1132_v48 = vsub.f32 1.5, %v1131_v10 }
 0x78b   :  { %v1325_v50 = vpop.eup %1324 }
 0x78c   :  { %v1133_v51 = vmul.f32 %v1323_v43, %v1132_v48  ;;  %v1139_v52 = vmul.f32 %v1325_v50, %v1126_v45  ;;  %vm1145_vm1 = vweird.f32 %v1325_v50 }
 0x78d   :  { %vm1146_vm3 = vmor %vm1144_vm2, %vm1145_vm1 }
 0x78e   :  { %v1137_v54 = vsel %vm1136_vm0, %v1323_v43, %v1133_v51  ;;  %v1140_v55 = vmul.f32 %v1325_v50, %v1139_v52 }
 0x78f   :  { %v1158_v57 = vmul.f32 %v1137_v54, %v1110_v30 }
 0x790   :  { %v1141_v58 = vmul.f32 0.5, %v1140_v55 }
 0x791   :  { %v1164_v59 = vmul.f32 %v1264_v53, %v1158_v57 }
 0x792   :  { %v1142_v60 = vsub.f32 1.5, %v1141_v58 }
 0x793   :  { %v1170_v61 = vadd.f32 %v1265_v56, %v1164_v59 }
 0x794   :  { %v1143_v62 = vmul.f32 %v1325_v50, %v1142_v60  ;;  %v1121_v63 = vpop.xlane.xlu0 %1120 }
 0x795   :  { %1173 = vst [vmem:[%s1912_s14] sm:$0xff] %v1170_v61  ;;  %v1124_v49 = vmul.f32 %v1121_v63, %v1721_v38 }
 0x796   :  { %v1147_v0 = vsel %vm1146_vm3, %v1325_v50, %v1143_v62 }
 0x797   :  { %v1159_v2 = vmul.f32 %v1147_v0, %v1111_v33  ;;  %v1127_v1 = vadd.f32 1e-05, %v1124_v49 }
 0x799   :  { %v1165_v4 = vmul.f32 %v1264_v53, %v1159_v2  ;;  %1326 = vrsqrt.f32 %v1127_v1  ;;  %vm1154_vm5 = vweird.f32 %v1127_v1 }
 0x79b   :  { %v1171_v44 = vadd.f32 %v1265_v56, %v1165_v4 }
 0x79d   :  { %1174 = vst [vmem:[%s1912_s14 + $0x8] sm:$0xff] %v1171_v44 }
 0x79f   :  { %v1327_v5 = vpop.eup %1326 }
 0x7a0   :  { %v1149_v7 = vmul.f32 %v1327_v5, %v1127_v1  ;;  %vm1155_vm4 = vweird.f32 %v1327_v5 }
 0x7a1   :  { %vm1156_vm6 = vmor %vm1154_vm5, %vm1155_vm4 }
 0x7a2   :  { %v1150_v8 = vmul.f32 %v1327_v5, %v1149_v7 }
 0x7a4   :  { %v1151_v9 = vmul.f32 0.5, %v1150_v8 }
 0x7a6   :  { %v1152_v13 = vsub.f32 1.5, %v1151_v9 }
 0x7a8   :  { %v1153_v14 = vmul.f32 %v1327_v5, %v1152_v13 }
 0x7aa   :  { %v1157_v38 = vsel %vm1156_vm6, %v1327_v5, %v1153_v14 }
 0x7ab   :  { %v1160_v16 = vmul.f32 %v1157_v38, %v1112_v35 }
 0x7ad   :  { %v1166_v17 = vmul.f32 %v1264_v53, %v1160_v16 }
 0x7af   :  { %v1172_v18 = vadd.f32 %v1265_v56, %v1166_v17 }
 0x7b1   :  { %1175 = vst [vmem:[%s1912_s14 + $0x10] sm:$0xff] %v1172_v18 }
 0x7b2   :  { %1180 = vsyncpa [#allocation3], 1 }
 0x7b3   :  { %1181 = vsyncpa [#allocation5], 1 }

</bundles_post_ra>
